<compile_context>
chip_gen: v5e
topology: v5e:2x2
jax: 0.10.0
libtpu: 0.0.40
codegen_flags: <defaults>
</compile_context>

<pallas_src>
import functools

import jax
import jax.numpy as jnp
from jax.experimental import pallas as pl
from jax.experimental.pallas import tpu as pltpu


_CDTYPE = jnp.bfloat16     # compute / activation dtype (MXU operands)
_LANE = 128                # lane width; Cout is padded to a multiple of this
_TK_MAX = 1536             # largest single-shot K tile; above this K is tiled by 512


def _round_up(x, m):
    return (x + m - 1) // m * m


@functools.lru_cache(maxsize=None)
def _target_tm():
    """Generation-aware M tile: big VMEM (v5e/v6e, 128 MiB) -> 1024 rows,
    small VMEM (v7x, 64 MiB) or unknown -> 512 rows."""
    vmem = 64 << 20
    try:
        info = pltpu.get_tpu_info()
        vmem = int(getattr(info, "vmem_capacity_bytes", vmem))
    except Exception:
        pass
    return 1024 if vmem >= (100 << 20) else 512


# --------------------------------------------------------------------------
# Pallas kernels: gridded matmul + folded-BN bias (+ReLU) (+residual add)
# Accumulator pattern: K is the last ("arbitrary") grid axis; the accumulator
# is initialized with the bias at k==0 and finalized at k==last.
# --------------------------------------------------------------------------
def _conv_mm_kernel(p_ref, w_ref, b_ref, o_ref, acc_ref, *, relu):
    @pl.when(pl.program_id(2) == 0)
    def _init():
        acc_ref[...] = jnp.broadcast_to(b_ref[...].astype(jnp.float32),
                                        acc_ref.shape)

    acc_ref[...] += jnp.dot(p_ref[...], w_ref[...],
                            preferred_element_type=jnp.float32)

    @pl.when(pl.program_id(2) == pl.num_programs(2) - 1)
    def _finalize():
        acc = acc_ref[...]
        if relu:
            acc = jnp.maximum(acc, 0.0)
        o_ref[...] = acc.astype(o_ref.dtype)


def _conv_mm_res_kernel(p_ref, w_ref, b_ref, r_ref, o_ref, acc_ref, *, relu):
    # NOTE: ReLU (if requested) is applied BEFORE the residual add, matching
    # PyTorch BasicBlock (call sites always pass relu=False together with a
    # residual: out = convbn(out) + identity, no final ReLU).
    @pl.when(pl.program_id(2) == 0)
    def _init():
        acc_ref[...] = jnp.broadcast_to(b_ref[...].astype(jnp.float32),
                                        acc_ref.shape)

    acc_ref[...] += jnp.dot(p_ref[...], w_ref[...],
                            preferred_element_type=jnp.float32)

    @pl.when(pl.program_id(2) == pl.num_programs(2) - 1)
    def _finalize():
        acc = acc_ref[...]
        if relu:
            acc = jnp.maximum(acc, 0.0)
        acc = acc + r_ref[...].astype(jnp.float32)
        o_ref[...] = acc.astype(o_ref.dtype)


def _fused_conv_matmul(pm, wm, bias, residual, relu, out_dtype):
    """pm:(M,K) bf16 patches, wm:(K,Cout) bf16 (BN scale pre-folded),
    bias:(Cout,) f32, residual:(M,Cout) bf16 | None -> (M,Cout) out_dtype."""
    M, K = pm.shape
    cout = wm.shape[1]

    # ---- tile sizes -------------------------------------------------------
    tn = _LANE
    cout_p = _round_up(cout, tn)            # lane-dense output tiles

    kp = _round_up(K, _LANE)
    if kp <= _TK_MAX:
        tk, k_pad = kp, kp                  # single K step
    else:
        tk, k_pad = 512, _round_up(K, 512)  # tile big K (e.g. lastconv1 K=2880)

    tm = min(_target_tm(), _round_up(M, 256))   # tm | M_pad by construction
    m_pad = _round_up(M, tm)

    # ---- pad operands to tile multiples (zeros -> no effect on real rows) --
    pmp = jnp.pad(pm, ((0, m_pad - M), (0, k_pad - K)))
    wmp = jnp.pad(wm, ((0, k_pad - K), (0, cout_p - cout)))
    bp = jnp.pad(bias, (0, cout_p - cout)).reshape(1, cout_p)

    in_specs = [
        pl.BlockSpec((tm, tk), lambda i, j, k: (i, k)),
        pl.BlockSpec((tk, tn), lambda i, j, k: (k, j)),
        pl.BlockSpec((1, tn), lambda i, j, k: (0, j)),
    ]
    args = [pmp, wmp, bp]
    if residual is None:
        kernel = functools.partial(_conv_mm_kernel, relu=relu)
    else:
        rp = jnp.pad(residual, ((0, m_pad - M), (0, cout_p - cout)))
        in_specs.append(pl.BlockSpec((tm, tn), lambda i, j, k: (i, j)))
        args.append(rp)
        kernel = functools.partial(_conv_mm_res_kernel, relu=relu)

    grid = (m_pad // tm, cout_p // tn, k_pad // tk)

    out = pl.pallas_call(
        kernel,
        out_shape=jax.ShapeDtypeStruct((m_pad, cout_p), out_dtype),
        grid_spec=pltpu.PrefetchScalarGridSpec(
            num_scalar_prefetch=0,
            grid=grid,
            in_specs=in_specs,
            out_specs=pl.BlockSpec((tm, tn), lambda i, j, k: (i, j)),
            scratch_shapes=[pltpu.VMEM((tm, tn), jnp.float32)],
        ),
        compiler_params=pltpu.CompilerParams(
            dimension_semantics=("parallel", "parallel", "arbitrary")),
    )(*args)

    return out[:M, :cout]


# --------------------------------------------------------------------------
# JAX glue: im2col + conv wrapper
# --------------------------------------------------------------------------
def _im2col(x, kh, kw, stride, pad, dilation):
    """x:(N,H,W,C) -> (N,Ho,Wo,kh*kw*C), patch order (kh,kw,C) row-major."""
    n, h, w, c = x.shape
    xp = jnp.pad(x, ((0, 0), (pad, pad), (pad, pad), (0, 0)))
    hp, wp = h + 2 * pad, w + 2 * pad
    eff_h = dilation * (kh - 1) + 1
    eff_w = dilation * (kw - 1) + 1
    ho = (hp - eff_h) // stride + 1
    wo = (wp - eff_w) // stride + 1
    cols = []
    for i in range(kh):
        for j in range(kw):
            patch = xp[:,
                       i * dilation: i * dilation + (ho - 1) * stride + 1: stride,
                       j * dilation: j * dilation + (wo - 1) * stride + 1: stride,
                       :]
            cols.append(patch)
    return jnp.concatenate(cols, axis=-1), ho, wo


def conv_bn(x, p, stride, pad, dilation, relu=False, residual=None):
    """Fused conv + folded-BN (+ReLU) (+residual add).  x NHWC bf16, w HWIO."""
    kh, kw, cin, cout = p["w"].shape
    n = x.shape[0]
    if kh == 1 and kw == 1 and pad == 0:
        # 1x1 conv: no im2col; stride handled by spatial subsampling.
        xs = x[:, ::stride, ::stride, :] if stride > 1 else x
        _, ho, wo, _ = xs.shape
        K = cin
        pm = xs.reshape(n * ho * wo, K)
    else:
        patches, ho, wo = _im2col(x, kh, kw, stride, pad, dilation)
        K = kh * kw * cin
        pm = patches.reshape(n * ho * wo, K)

    # Fold BN scale into the weight matrix; bias goes into the accumulator init.
    wm = (p["w"].reshape(K, cout).astype(jnp.float32)
          * p["scale"][None, :]).astype(_CDTYPE)
    rm = None if residual is None else residual.reshape(n * ho * wo, cout)

    out = _fused_conv_matmul(pm.astype(_CDTYPE), wm, p["bias"], rm, relu, _CDTYPE)
    return out.reshape(n, ho, wo, cout)


# --------------------------------------------------------------------------
# Deterministic parameter initialization (synthetic weights, no checkpoint)
# --------------------------------------------------------------------------
def _init_convbn(key, cin, cout, k, identity_bn=False):
    kw, kg, kb, km, kv = jax.random.split(key, 5)
    fan_in = k * k * cin
    w = jax.random.normal(kw, (k, k, cin, cout), jnp.float32) * jnp.sqrt(2.0 / fan_in)
    if identity_bn:  # plain conv (no BN, no bias) -> scale=1, bias=0
        scale = jnp.ones((cout,), jnp.float32)
        bias = jnp.zeros((cout,), jnp.float32)
    else:
        eps = 1e-5
        gamma = 1.0 + 0.1 * jax.random.normal(kg, (cout,), jnp.float32)
        beta = 0.1 * jax.random.normal(kb, (cout,), jnp.float32)
        mean = 0.1 * jax.random.normal(km, (cout,), jnp.float32)
        var = 1.0 + 0.1 * jax.random.uniform(kv, (cout,), jnp.float32)
        scale = gamma * jax.lax.rsqrt(var + eps)
        bias = beta - mean * scale
    return {"w": w, "scale": scale, "bias": bias}


def init_feature_extraction(key, concat_feature_channel=32):
    keys = iter(jax.random.split(key, 64))
    params = {}
    params["firstconv"] = [
        _init_convbn(next(keys), 3, 32, 3),
        _init_convbn(next(keys), 32, 32, 3),
        _init_convbn(next(keys), 32, 32, 3),
    ]

    def make_layer(inplanes, planes, blocks, stride):
        lp = {"blocks": []}
        if stride != 1 or inplanes != planes:       # BasicBlock.expansion == 1
            lp["downsample"] = _init_convbn(next(keys), inplanes, planes, 1)
        cur = inplanes
        for _ in range(blocks):
            lp["blocks"].append(
                {"conv1": _init_convbn(next(keys), cur, planes, 3),
                 "conv2": _init_convbn(next(keys), planes, planes, 3)})
            cur = planes
        return lp

    params["layer1"] = make_layer(32, 32, 3, 1)
    params["layer2"] = make_layer(32, 64, 16, 2)
    params["layer3"] = make_layer(64, 128, 3, 1)
    params["layer4"] = make_layer(128, 128, 3, 1)
    params["lastconv1"] = _init_convbn(next(keys), 320, 128, 3)
    params["lastconv2"] = _init_convbn(next(keys), 128, concat_feature_channel, 1,
                                       identity_bn=True)
    return params


# --------------------------------------------------------------------------
# Forward pass (mirrors the PyTorch module)
# --------------------------------------------------------------------------
def _layer_forward(x, lp, stride, pad, dilation):
    pad_ = dilation if dilation > 1 else pad        # convbn padding rule
    for i, bp in enumerate(lp["blocks"]):
        s = stride if i == 0 else 1
        if i == 0 and "downsample" in lp:
            res = conv_bn(x, lp["downsample"], s, 0, 1, relu=False)  # 1x1 conv + BN
        else:
            res = x
        out = conv_bn(x, bp["conv1"], s, pad_, dilation, relu=True)
        out = conv_bn(out, bp["conv2"], 1, pad_, dilation, relu=False, residual=res)
        x = out                                      # PSMNet BasicBlock: no final ReLU
    return x


def feature_extraction_forward(params, x_nchw):
    x = jnp.transpose(x_nchw, (0, 2, 3, 1)).astype(_CDTYPE)   # NCHW -> NHWC, bf16
    x = conv_bn(x, params["firstconv"][0], 2, 1, 1, relu=True)
    x = conv_bn(x, params["firstconv"][1], 1, 1, 1, relu=True)
    x = conv_bn(x, params["firstconv"][2], 1, 1, 1, relu=True)
    x = _layer_forward(x, params["layer1"], 1, 1, 1)
    l2 = _layer_forward(x, params["layer2"], 2, 1, 1)
    l3 = _layer_forward(l2, params["layer3"], 1, 1, 1)
    l4 = _layer_forward(l3, params["layer4"], 1, 1, 2)
    gwc = jnp.concatenate([l2, l3, l4], axis=-1)     # cat on channels
    cat = conv_bn(gwc, params["lastconv1"], 1, 1, 1, relu=True)
    cat = conv_bn(cat, params["lastconv2"], 1, 0, 1, relu=False)   # 1x1, no BN/bias
    gwc_f32 = gwc.astype(jnp.float32)
    cat_f32 = cat.astype(jnp.float32)
    return {"gwc_feature": jnp.transpose(gwc_f32, (0, 3, 1, 2)),   # back to NCHW
            "concat_feature": jnp.transpose(cat_f32, (0, 3, 1, 2))}


# --------------------------------------------------------------------------
if __name__ == "__main__":
    key = jax.random.PRNGKey(0)
    pkey, xkey = jax.random.split(key)
    params = init_feature_extraction(pkey, concat_feature_channel=32)
    x = jax.random.normal(xkey, (2, 3, 16, 16), jnp.float32)   # NCHW like PyTorch

    fwd = jax.jit(feature_extraction_forward)
    out = fwd(params, x)
    jax.block_until_ready(out)

    assert out["gwc_feature"].shape == (2, 320, 4, 4)
    assert out["concat_feature"].shape == (2, 32, 4, 4)
    assert out["gwc_feature"].dtype == jnp.float32
    assert out["concat_feature"].dtype == jnp.float32
    assert bool(jnp.all(jnp.isfinite(out["gwc_feature"])))
    assert bool(jnp.all(jnp.isfinite(out["concat_feature"])))
    print("KERNEL_OK")
</pallas_src>

<mosaic_0001>
module attributes {stable_mosaic.version = 11 : i64} {
  func.func @_conv_mm_kernel(%arg0: i32, %arg1: i32, %arg2: i32, %arg3: memref<256x128xbf16, #tpu.memory_space<vmem>>, %arg4: memref<128x128xbf16, #tpu.memory_space<vmem>>, %arg5: memref<1x128xf32, #tpu.memory_space<vmem>>, %arg6: memref<256x128xbf16, #tpu.memory_space<vmem>>, %arg7: memref<256x128xf32, #tpu.memory_space<vmem>>) attributes {dimension_semantics = [#tpu.dimension_semantics<parallel>, #tpu.dimension_semantics<parallel>, #tpu.dimension_semantics<arbitrary>], iteration_bounds = array<i64: 1, 1, 1>, scalar_prefetch = 0 : i64, scratch_operands = 1 : i64, tpu.core_type = #tpu.core_type<tc>, window_params = [{transform_indices = @transform_0, window_bounds = array<i64: 256, 128>}, {transform_indices = @transform_1, window_bounds = array<i64: 128, 128>}, {transform_indices = @transform_2, window_bounds = array<i64: 1, 128>}, {transform_indices = @transform_3, window_bounds = array<i64: 256, 128>}]} {
    %c0_i32 = arith.constant 0 : i32
    %0 = arith.cmpi eq, %arg2, %c0_i32 : i32
    %1 = arith.extui %0 : i1 to i32
    %c0_i32_0 = arith.constant 0 : i32
    %2 = arith.cmpi ne, %1, %c0_i32_0 : i32
    scf.if %2 {
      %c0_10 = arith.constant 0 : index
      %c0_11 = arith.constant 0 : index
      %12 = vector.load %arg5[%c0_10, %c0_11] : memref<1x128xf32, #tpu.memory_space<vmem>>, vector<1x128xf32>
      %13 = vector.shape_cast %12 : vector<1x128xf32> to vector<1x128xf32>
      %14 = vector.broadcast %13 : vector<1x128xf32> to vector<256x128xf32>
      %c0_12 = arith.constant 0 : index
      %c0_13 = arith.constant 0 : index
      %15 = vector.load %arg7[%c0_12, %c0_13] : memref<256x128xf32, #tpu.memory_space<vmem>>, vector<256x128xf32>
      tpu.vector_store %arg7[%c0_12, %c0_13], %14 {strides = array<i32>} : memref<256x128xf32, #tpu.memory_space<vmem>>, vector<256x128xf32>,
    } else {
    }
    %c0 = arith.constant 0 : index
    %c0_1 = arith.constant 0 : index
    %3 = vector.load %arg7[%c0, %c0_1] : memref<256x128xf32, #tpu.memory_space<vmem>>, vector<256x128xf32>
    %c0_2 = arith.constant 0 : index
    %c0_3 = arith.constant 0 : index
    %4 = vector.load %arg3[%c0_2, %c0_3] : memref<256x128xbf16, #tpu.memory_space<vmem>>, vector<256x128xbf16>
    %c0_4 = arith.constant 0 : index
    %c0_5 = arith.constant 0 : index
    %5 = vector.load %arg4[%c0_4, %c0_5] : memref<128x128xbf16, #tpu.memory_space<vmem>>, vector<128x128xbf16>
    %cst = arith.constant dense<0.000000e+00> : vector<256x128xf32>
    %6 = tpu.matmul %4, %5, %cst {dimension_numbers = #tpu.dot_dimension_numbers<[1], [0], [0], [1], [0, 0, 1, 1], [], []>} : vector<256x128xbf16>, vector<128x128xbf16>, vector<256x128xf32> -> vector<256x128xf32>
    %7 = arith.addf %3, %6 : vector<256x128xf32>
    %c0_6 = arith.constant 0 : index
    %c0_7 = arith.constant 0 : index
    %8 = vector.load %arg7[%c0_6, %c0_7] : memref<256x128xf32, #tpu.memory_space<vmem>>, vector<256x128xf32>
    tpu.vector_store %arg7[%c0_6, %c0_7], %7 {strides = array<i32>} : memref<256x128xf32, #tpu.memory_space<vmem>>, vector<256x128xf32>,
    %c0_i32_8 = arith.constant 0 : i32
    %9 = arith.cmpi eq, %arg2, %c0_i32_8 : i32
    %10 = arith.extui %9 : i1 to i32
    %c0_i32_9 = arith.constant 0 : i32
    %11 = arith.cmpi ne, %10, %c0_i32_9 : i32
    scf.if %11 {
      %c0_10 = arith.constant 0 : index
      %c0_11 = arith.constant 0 : index
      %12 = vector.load %arg7[%c0_10, %c0_11] : memref<256x128xf32, #tpu.memory_space<vmem>>, vector<256x128xf32>
      %cst_12 = arith.constant 0.000000e+00 : f32
      %13 = vector.broadcast %cst_12 : f32 to vector<256x128xf32>
      %14 = arith.maximumf %12, %13 : vector<256x128xf32>
      %15 = arith.truncf %14 : vector<256x128xf32> to vector<256x128xbf16>
      %c0_13 = arith.constant 0 : index
      %c0_14 = arith.constant 0 : index
      %16 = vector.load %arg6[%c0_13, %c0_14] : memref<256x128xbf16, #tpu.memory_space<vmem>>, vector<256x128xbf16>
      tpu.vector_store %arg6[%c0_13, %c0_14], %15 {strides = array<i32>} : memref<256x128xbf16, #tpu.memory_space<vmem>>, vector<256x128xbf16>,
    } else {
    }
    return
  }
  func.func @transform_0(%arg0: i32, %arg1: i32, %arg2: i32) -> (i32, i32) {
    %c0_i32 = arith.constant 0 : i32
    return %arg0, %arg2 : i32, i32
  }
  func.func @transform_1(%arg0: i32, %arg1: i32, %arg2: i32) -> (i32, i32) {
    %c0_i32 = arith.constant 0 : i32
    return %arg2, %arg1 : i32, i32
  }
  func.func @transform_2(%arg0: i32, %arg1: i32, %arg2: i32) -> (i32, i32) {
    %c0_i32 = arith.constant 0 : i32
    %c0_i32_0 = arith.constant 0 : i32
    return %c0_i32, %arg1 : i32, i32
  }
  func.func @transform_3(%arg0: i32, %arg1: i32, %arg2: i32) -> (i32, i32) {
    %c0_i32 = arith.constant 0 : i32
    return %arg0, %arg1 : i32, i32
  }
}

module attributes {stable_mosaic.version = 11 : i64} {
  func.func @_conv_mm_res_kernel(%arg0: i32, %arg1: i32, %arg2: i32, %arg3: memref<256x384xbf16, #tpu.memory_space<vmem>>, %arg4: memref<384x128xbf16, #tpu.memory_space<vmem>>, %arg5: memref<1x128xf32, #tpu.memory_space<vmem>>, %arg6: memref<256x128xbf16, #tpu.memory_space<vmem>>, %arg7: memref<256x128xbf16, #tpu.memory_space<vmem>>, %arg8: memref<256x128xf32, #tpu.memory_space<vmem>>) attributes {dimension_semantics = [#tpu.dimension_semantics<parallel>, #tpu.dimension_semantics<parallel>, #tpu.dimension_semantics<arbitrary>], iteration_bounds = array<i64: 1, 1, 1>, scalar_prefetch = 0 : i64, scratch_operands = 1 : i64, tpu.core_type = #tpu.core_type<tc>, window_params = [{transform_indices = @transform_0, window_bounds = array<i64: 256, 384>}, {transform_indices = @transform_1, window_bounds = array<i64: 384, 128>}, {transform_indices = @transform_2, window_bounds = array<i64: 1, 128>}, {transform_indices = @transform_3, window_bounds = array<i64: 256, 128>}, {transform_indices = @transform_4, window_bounds = array<i64: 256, 128>}]} {
    %c0_i32 = arith.constant 0 : i32
    %0 = arith.cmpi eq, %arg2, %c0_i32 : i32
    %1 = arith.extui %0 : i1 to i32
    %c0_i32_0 = arith.constant 0 : i32
    %2 = arith.cmpi ne, %1, %c0_i32_0 : i32
    scf.if %2 {
      %c0_10 = arith.constant 0 : index
      %c0_11 = arith.constant 0 : index
      %12 = vector.load %arg5[%c0_10, %c0_11] : memref<1x128xf32, #tpu.memory_space<vmem>>, vector<1x128xf32>
      %13 = vector.shape_cast %12 : vector<1x128xf32> to vector<1x128xf32>
      %14 = vector.broadcast %13 : vector<1x128xf32> to vector<256x128xf32>
      %c0_12 = arith.constant 0 : index
      %c0_13 = arith.constant 0 : index
      %15 = vector.load %arg8[%c0_12, %c0_13] : memref<256x128xf32, #tpu.memory_space<vmem>>, vector<256x128xf32>
      tpu.vector_store %arg8[%c0_12, %c0_13], %14 {strides = array<i32>} : memref<256x128xf32, #tpu.memory_space<vmem>>, vector<256x128xf32>,
    } else {
    }
    %c0 = arith.constant 0 : index
    %c0_1 = arith.constant 0 : index
    %3 = vector.load %arg8[%c0, %c0_1] : memref<256x128xf32, #tpu.memory_space<vmem>>, vector<256x128xf32>
    %c0_2 = arith.constant 0 : index
    %c0_3 = arith.constant 0 : index
    %4 = vector.load %arg3[%c0_2, %c0_3] : memref<256x384xbf16, #tpu.memory_space<vmem>>, vector<256x384xbf16>
    %c0_4 = arith.constant 0 : index
    %c0_5 = arith.constant 0 : index
    %5 = vector.load %arg4[%c0_4, %c0_5] : memref<384x128xbf16, #tpu.memory_space<vmem>>, vector<384x128xbf16>
    %cst = arith.constant dense<0.000000e+00> : vector<256x128xf32>
    %6 = tpu.matmul %4, %5, %cst {dimension_numbers = #tpu.dot_dimension_numbers<[1], [0], [0], [1], [0, 0, 1, 1], [], []>} : vector<256x384xbf16>, vector<384x128xbf16>, vector<256x128xf32> -> vector<256x128xf32>
    %7 = arith.addf %3, %6 : vector<256x128xf32>
    %c0_6 = arith.constant 0 : index
    %c0_7 = arith.constant 0 : index
    %8 = vector.load %arg8[%c0_6, %c0_7] : memref<256x128xf32, #tpu.memory_space<vmem>>, vector<256x128xf32>
    tpu.vector_store %arg8[%c0_6, %c0_7], %7 {strides = array<i32>} : memref<256x128xf32, #tpu.memory_space<vmem>>, vector<256x128xf32>,
    %c0_i32_8 = arith.constant 0 : i32
    %9 = arith.cmpi eq, %arg2, %c0_i32_8 : i32
    %10 = arith.extui %9 : i1 to i32
    %c0_i32_9 = arith.constant 0 : i32
    %11 = arith.cmpi ne, %10, %c0_i32_9 : i32
    scf.if %11 {
      %c0_10 = arith.constant 0 : index
      %c0_11 = arith.constant 0 : index
      %12 = vector.load %arg8[%c0_10, %c0_11] : memref<256x128xf32, #tpu.memory_space<vmem>>, vector<256x128xf32>
      %c0_12 = arith.constant 0 : index
      %c0_13 = arith.constant 0 : index
      %13 = vector.load %arg6[%c0_12, %c0_13] : memref<256x128xbf16, #tpu.memory_space<vmem>>, vector<256x128xbf16>
      %14 = arith.extf %13 : vector<256x128xbf16> to vector<256x128xf32>
      %15 = arith.addf %12, %14 : vector<256x128xf32>
      %16 = arith.truncf %15 : vector<256x128xf32> to vector<256x128xbf16>
      %c0_14 = arith.constant 0 : index
      %c0_15 = arith.constant 0 : index
      %17 = vector.load %arg7[%c0_14, %c0_15] : memref<256x128xbf16, #tpu.memory_space<vmem>>, vector<256x128xbf16>
      tpu.vector_store %arg7[%c0_14, %c0_15], %16 {strides = array<i32>} : memref<256x128xbf16, #tpu.memory_space<vmem>>, vector<256x128xbf16>,
    } else {
    }
    return
  }
  func.func @transform_0(%arg0: i32, %arg1: i32, %arg2: i32) -> (i32, i32) {
    %c0_i32 = arith.constant 0 : i32
    return %arg0, %arg2 : i32, i32
  }
  func.func @transform_1(%arg0: i32, %arg1: i32, %arg2: i32) -> (i32, i32) {
    %c0_i32 = arith.constant 0 : i32
    return %arg2, %arg1 : i32, i32
  }
  func.func @transform_2(%arg0: i32, %arg1: i32, %arg2: i32) -> (i32, i32) {
    %c0_i32 = arith.constant 0 : i32
    %c0_i32_0 = arith.constant 0 : i32
    return %c0_i32, %arg1 : i32, i32
  }
  func.func @transform_3(%arg0: i32, %arg1: i32, %arg2: i32) -> (i32, i32) {
    %c0_i32 = arith.constant 0 : i32
    return %arg0, %arg1 : i32, i32
  }
  func.func @transform_4(%arg0: i32, %arg1: i32, %arg2: i32) -> (i32, i32) {
    %c0_i32 = arith.constant 0 : i32
    return %arg0, %arg1 : i32, i32
  }
}

module attributes {stable_mosaic.version = 11 : i64} {
  func.func @_conv_mm_kernel(%arg0: i32, %arg1: i32, %arg2: i32, %arg3: memref<256x384xbf16, #tpu.memory_space<vmem>>, %arg4: memref<384x128xbf16, #tpu.memory_space<vmem>>, %arg5: memref<1x128xf32, #tpu.memory_space<vmem>>, %arg6: memref<256x128xbf16, #tpu.memory_space<vmem>>, %arg7: memref<256x128xf32, #tpu.memory_space<vmem>>) attributes {dimension_semantics = [#tpu.dimension_semantics<parallel>, #tpu.dimension_semantics<parallel>, #tpu.dimension_semantics<arbitrary>], iteration_bounds = array<i64: 1, 1, 1>, scalar_prefetch = 0 : i64, scratch_operands = 1 : i64, tpu.core_type = #tpu.core_type<tc>, window_params = [{transform_indices = @transform_0, window_bounds = array<i64: 256, 384>}, {transform_indices = @transform_1, window_bounds = array<i64: 384, 128>}, {transform_indices = @transform_2, window_bounds = array<i64: 1, 128>}, {transform_indices = @transform_3, window_bounds = array<i64: 256, 128>}]} {
    %c0_i32 = arith.constant 0 : i32
    %0 = arith.cmpi eq, %arg2, %c0_i32 : i32
    %1 = arith.extui %0 : i1 to i32
    %c0_i32_0 = arith.constant 0 : i32
    %2 = arith.cmpi ne, %1, %c0_i32_0 : i32
    scf.if %2 {
      %c0_10 = arith.constant 0 : index
      %c0_11 = arith.constant 0 : index
      %12 = vector.load %arg5[%c0_10, %c0_11] : memref<1x128xf32, #tpu.memory_space<vmem>>, vector<1x128xf32>
      %13 = vector.shape_cast %12 : vector<1x128xf32> to vector<1x128xf32>
      %14 = vector.broadcast %13 : vector<1x128xf32> to vector<256x128xf32>
      %c0_12 = arith.constant 0 : index
      %c0_13 = arith.constant 0 : index
      %15 = vector.load %arg7[%c0_12, %c0_13] : memref<256x128xf32, #tpu.memory_space<vmem>>, vector<256x128xf32>
      tpu.vector_store %arg7[%c0_12, %c0_13], %14 {strides = array<i32>} : memref<256x128xf32, #tpu.memory_space<vmem>>, vector<256x128xf32>,
    } else {
    }
    %c0 = arith.constant 0 : index
    %c0_1 = arith.constant 0 : index
    %3 = vector.load %arg7[%c0, %c0_1] : memref<256x128xf32, #tpu.memory_space<vmem>>, vector<256x128xf32>
    %c0_2 = arith.constant 0 : index
    %c0_3 = arith.constant 0 : index
    %4 = vector.load %arg3[%c0_2, %c0_3] : memref<256x384xbf16, #tpu.memory_space<vmem>>, vector<256x384xbf16>
    %c0_4 = arith.constant 0 : index
    %c0_5 = arith.constant 0 : index
    %5 = vector.load %arg4[%c0_4, %c0_5] : memref<384x128xbf16, #tpu.memory_space<vmem>>, vector<384x128xbf16>
    %cst = arith.constant dense<0.000000e+00> : vector<256x128xf32>
    %6 = tpu.matmul %4, %5, %cst {dimension_numbers = #tpu.dot_dimension_numbers<[1], [0], [0], [1], [0, 0, 1, 1], [], []>} : vector<256x384xbf16>, vector<384x128xbf16>, vector<256x128xf32> -> vector<256x128xf32>
    %7 = arith.addf %3, %6 : vector<256x128xf32>
    %c0_6 = arith.constant 0 : index
    %c0_7 = arith.constant 0 : index
    %8 = vector.load %arg7[%c0_6, %c0_7] : memref<256x128xf32, #tpu.memory_space<vmem>>, vector<256x128xf32>
    tpu.vector_store %arg7[%c0_6, %c0_7], %7 {strides = array<i32>} : memref<256x128xf32, #tpu.memory_space<vmem>>, vector<256x128xf32>,
    %c0_i32_8 = arith.constant 0 : i32
    %9 = arith.cmpi eq, %arg2, %c0_i32_8 : i32
    %10 = arith.extui %9 : i1 to i32
    %c0_i32_9 = arith.constant 0 : i32
    %11 = arith.cmpi ne, %10, %c0_i32_9 : i32
    scf.if %11 {
      %c0_10 = arith.constant 0 : index
      %c0_11 = arith.constant 0 : index
      %12 = vector.load %arg7[%c0_10, %c0_11] : memref<256x128xf32, #tpu.memory_space<vmem>>, vector<256x128xf32>
      %cst_12 = arith.constant 0.000000e+00 : f32
      %13 = vector.broadcast %cst_12 : f32 to vector<256x128xf32>
      %14 = arith.maximumf %12, %13 : vector<256x128xf32>
      %15 = arith.truncf %14 : vector<256x128xf32> to vector<256x128xbf16>
      %c0_13 = arith.constant 0 : index
      %c0_14 = arith.constant 0 : index
      %16 = vector.load %arg6[%c0_13, %c0_14] : memref<256x128xbf16, #tpu.memory_space<vmem>>, vector<256x128xbf16>
      tpu.vector_store %arg6[%c0_13, %c0_14], %15 {strides = array<i32>} : memref<256x128xbf16, #tpu.memory_space<vmem>>, vector<256x128xbf16>,
    } else {
    }
    return
  }
  func.func @transform_0(%arg0: i32, %arg1: i32, %arg2: i32) -> (i32, i32) {
    %c0_i32 = arith.constant 0 : i32
    return %arg0, %arg2 : i32, i32
  }
  func.func @transform_1(%arg0: i32, %arg1: i32, %arg2: i32) -> (i32, i32) {
    %c0_i32 = arith.constant 0 : i32
    return %arg2, %arg1 : i32, i32
  }
  func.func @transform_2(%arg0: i32, %arg1: i32, %arg2: i32) -> (i32, i32) {
    %c0_i32 = arith.constant 0 : i32
    %c0_i32_0 = arith.constant 0 : i32
    return %c0_i32, %arg1 : i32, i32
  }
  func.func @transform_3(%arg0: i32, %arg1: i32, %arg2: i32) -> (i32, i32) {
    %c0_i32 = arith.constant 0 : i32
    return %arg0, %arg1 : i32, i32
  }
}

module attributes {stable_mosaic.version = 11 : i64} {
  func.func @_conv_mm_kernel(%arg0: i32, %arg1: i32, %arg2: i32, %arg3: memref<256x128xbf16, #tpu.memory_space<vmem>>, %arg4: memref<128x128xbf16, #tpu.memory_space<vmem>>, %arg5: memref<1x128xf32, #tpu.memory_space<vmem>>, %arg6: memref<256x128xbf16, #tpu.memory_space<vmem>>, %arg7: memref<256x128xf32, #tpu.memory_space<vmem>>) attributes {dimension_semantics = [#tpu.dimension_semantics<parallel>, #tpu.dimension_semantics<parallel>, #tpu.dimension_semantics<arbitrary>], iteration_bounds = array<i64: 1, 1, 1>, scalar_prefetch = 0 : i64, scratch_operands = 1 : i64, tpu.core_type = #tpu.core_type<tc>, window_params = [{transform_indices = @transform_0, window_bounds = array<i64: 256, 128>}, {transform_indices = @transform_1, window_bounds = array<i64: 128, 128>}, {transform_indices = @transform_2, window_bounds = array<i64: 1, 128>}, {transform_indices = @transform_3, window_bounds = array<i64: 256, 128>}]} {
    %c0_i32 = arith.constant 0 : i32
    %0 = arith.cmpi eq, %arg2, %c0_i32 : i32
    %1 = arith.extui %0 : i1 to i32
    %c0_i32_0 = arith.constant 0 : i32
    %2 = arith.cmpi ne, %1, %c0_i32_0 : i32
    scf.if %2 {
      %c0_10 = arith.constant 0 : index
      %c0_11 = arith.constant 0 : index
      %12 = vector.load %arg5[%c0_10, %c0_11] : memref<1x128xf32, #tpu.memory_space<vmem>>, vector<1x128xf32>
      %13 = vector.shape_cast %12 : vector<1x128xf32> to vector<1x128xf32>
      %14 = vector.broadcast %13 : vector<1x128xf32> to vector<256x128xf32>
      %c0_12 = arith.constant 0 : index
      %c0_13 = arith.constant 0 : index
      %15 = vector.load %arg7[%c0_12, %c0_13] : memref<256x128xf32, #tpu.memory_space<vmem>>, vector<256x128xf32>
      tpu.vector_store %arg7[%c0_12, %c0_13], %14 {strides = array<i32>} : memref<256x128xf32, #tpu.memory_space<vmem>>, vector<256x128xf32>,
    } else {
    }
    %c0 = arith.constant 0 : index
    %c0_1 = arith.constant 0 : index
    %3 = vector.load %arg7[%c0, %c0_1] : memref<256x128xf32, #tpu.memory_space<vmem>>, vector<256x128xf32>
    %c0_2 = arith.constant 0 : index
    %c0_3 = arith.constant 0 : index
    %4 = vector.load %arg3[%c0_2, %c0_3] : memref<256x128xbf16, #tpu.memory_space<vmem>>, vector<256x128xbf16>
    %c0_4 = arith.constant 0 : index
    %c0_5 = arith.constant 0 : index
    %5 = vector.load %arg4[%c0_4, %c0_5] : memref<128x128xbf16, #tpu.memory_space<vmem>>, vector<128x128xbf16>
    %cst = arith.constant dense<0.000000e+00> : vector<256x128xf32>
    %6 = tpu.matmul %4, %5, %cst {dimension_numbers = #tpu.dot_dimension_numbers<[1], [0], [0], [1], [0, 0, 1, 1], [], []>} : vector<256x128xbf16>, vector<128x128xbf16>, vector<256x128xf32> -> vector<256x128xf32>
    %7 = arith.addf %3, %6 : vector<256x128xf32>
    %c0_6 = arith.constant 0 : index
    %c0_7 = arith.constant 0 : index
    %8 = vector.load %arg7[%c0_6, %c0_7] : memref<256x128xf32, #tpu.memory_space<vmem>>, vector<256x128xf32>
    tpu.vector_store %arg7[%c0_6, %c0_7], %7 {strides = array<i32>} : memref<256x128xf32, #tpu.memory_space<vmem>>, vector<256x128xf32>,
    %c0_i32_8 = arith.constant 0 : i32
    %9 = arith.cmpi eq, %arg2, %c0_i32_8 : i32
    %10 = arith.extui %9 : i1 to i32
    %c0_i32_9 = arith.constant 0 : i32
    %11 = arith.cmpi ne, %10, %c0_i32_9 : i32
    scf.if %11 {
      %c0_10 = arith.constant 0 : index
      %c0_11 = arith.constant 0 : index
      %12 = vector.load %arg7[%c0_10, %c0_11] : memref<256x128xf32, #tpu.memory_space<vmem>>, vector<256x128xf32>
      %13 = arith.truncf %12 : vector<256x128xf32> to vector<256x128xbf16>
      %c0_12 = arith.constant 0 : index
      %c0_13 = arith.constant 0 : index
      %14 = vector.load %arg6[%c0_12, %c0_13] : memref<256x128xbf16, #tpu.memory_space<vmem>>, vector<256x128xbf16>
      tpu.vector_store %arg6[%c0_12, %c0_13], %13 {strides = array<i32>} : memref<256x128xbf16, #tpu.memory_space<vmem>>, vector<256x128xbf16>,
    } else {
    }
    return
  }
  func.func @transform_0(%arg0: i32, %arg1: i32, %arg2: i32) -> (i32, i32) {
    %c0_i32 = arith.constant 0 : i32
    return %arg0, %arg2 : i32, i32
  }
  func.func @transform_1(%arg0: i32, %arg1: i32, %arg2: i32) -> (i32, i32) {
    %c0_i32 = arith.constant 0 : i32
    return %arg2, %arg1 : i32, i32
  }
  func.func @transform_2(%arg0: i32, %arg1: i32, %arg2: i32) -> (i32, i32) {
    %c0_i32 = arith.constant 0 : i32
    %c0_i32_0 = arith.constant 0 : i32
    return %c0_i32, %arg1 : i32, i32
  }
  func.func @transform_3(%arg0: i32, %arg1: i32, %arg2: i32) -> (i32, i32) {
    %c0_i32 = arith.constant 0 : i32
    return %arg0, %arg1 : i32, i32
  }
}

module attributes {stable_mosaic.version = 11 : i64} {
  func.func @_conv_mm_kernel(%arg0: i32, %arg1: i32, %arg2: i32, %arg3: memref<256x640xbf16, #tpu.memory_space<vmem>>, %arg4: memref<640x128xbf16, #tpu.memory_space<vmem>>, %arg5: memref<1x128xf32, #tpu.memory_space<vmem>>, %arg6: memref<256x128xbf16, #tpu.memory_space<vmem>>, %arg7: memref<256x128xf32, #tpu.memory_space<vmem>>) attributes {dimension_semantics = [#tpu.dimension_semantics<parallel>, #tpu.dimension_semantics<parallel>, #tpu.dimension_semantics<arbitrary>], iteration_bounds = array<i64: 1, 1, 1>, scalar_prefetch = 0 : i64, scratch_operands = 1 : i64, tpu.core_type = #tpu.core_type<tc>, window_params = [{transform_indices = @transform_0, window_bounds = array<i64: 256, 640>}, {transform_indices = @transform_1, window_bounds = array<i64: 640, 128>}, {transform_indices = @transform_2, window_bounds = array<i64: 1, 128>}, {transform_indices = @transform_3, window_bounds = array<i64: 256, 128>}]} {
    %c0_i32 = arith.constant 0 : i32
    %0 = arith.cmpi eq, %arg2, %c0_i32 : i32
    %1 = arith.extui %0 : i1 to i32
    %c0_i32_0 = arith.constant 0 : i32
    %2 = arith.cmpi ne, %1, %c0_i32_0 : i32
    scf.if %2 {
      %c0_10 = arith.constant 0 : index
      %c0_11 = arith.constant 0 : index
      %12 = vector.load %arg5[%c0_10, %c0_11] : memref<1x128xf32, #tpu.memory_space<vmem>>, vector<1x128xf32>
      %13 = vector.shape_cast %12 : vector<1x128xf32> to vector<1x128xf32>
      %14 = vector.broadcast %13 : vector<1x128xf32> to vector<256x128xf32>
      %c0_12 = arith.constant 0 : index
      %c0_13 = arith.constant 0 : index
      %15 = vector.load %arg7[%c0_12, %c0_13] : memref<256x128xf32, #tpu.memory_space<vmem>>, vector<256x128xf32>
      tpu.vector_store %arg7[%c0_12, %c0_13], %14 {strides = array<i32>} : memref<256x128xf32, #tpu.memory_space<vmem>>, vector<256x128xf32>,
    } else {
    }
    %c0 = arith.constant 0 : index
    %c0_1 = arith.constant 0 : index
    %3 = vector.load %arg7[%c0, %c0_1] : memref<256x128xf32, #tpu.memory_space<vmem>>, vector<256x128xf32>
    %c0_2 = arith.constant 0 : index
    %c0_3 = arith.constant 0 : index
    %4 = vector.load %arg3[%c0_2, %c0_3] : memref<256x640xbf16, #tpu.memory_space<vmem>>, vector<256x640xbf16>
    %c0_4 = arith.constant 0 : index
    %c0_5 = arith.constant 0 : index
    %5 = vector.load %arg4[%c0_4, %c0_5] : memref<640x128xbf16, #tpu.memory_space<vmem>>, vector<640x128xbf16>
    %cst = arith.constant dense<0.000000e+00> : vector<256x128xf32>
    %6 = tpu.matmul %4, %5, %cst {dimension_numbers = #tpu.dot_dimension_numbers<[1], [0], [0], [1], [0, 0, 1, 1], [], []>} : vector<256x640xbf16>, vector<640x128xbf16>, vector<256x128xf32> -> vector<256x128xf32>
    %7 = arith.addf %3, %6 : vector<256x128xf32>
    %c0_6 = arith.constant 0 : index
    %c0_7 = arith.constant 0 : index
    %8 = vector.load %arg7[%c0_6, %c0_7] : memref<256x128xf32, #tpu.memory_space<vmem>>, vector<256x128xf32>
    tpu.vector_store %arg7[%c0_6, %c0_7], %7 {strides = array<i32>} : memref<256x128xf32, #tpu.memory_space<vmem>>, vector<256x128xf32>,
    %c0_i32_8 = arith.constant 0 : i32
    %9 = arith.cmpi eq, %arg2, %c0_i32_8 : i32
    %10 = arith.extui %9 : i1 to i32
    %c0_i32_9 = arith.constant 0 : i32
    %11 = arith.cmpi ne, %10, %c0_i32_9 : i32
    scf.if %11 {
      %c0_10 = arith.constant 0 : index
      %c0_11 = arith.constant 0 : index
      %12 = vector.load %arg7[%c0_10, %c0_11] : memref<256x128xf32, #tpu.memory_space<vmem>>, vector<256x128xf32>
      %cst_12 = arith.constant 0.000000e+00 : f32
      %13 = vector.broadcast %cst_12 : f32 to vector<256x128xf32>
      %14 = arith.maximumf %12, %13 : vector<256x128xf32>
      %15 = arith.truncf %14 : vector<256x128xf32> to vector<256x128xbf16>
      %c0_13 = arith.constant 0 : index
      %c0_14 = arith.constant 0 : index
      %16 = vector.load %arg6[%c0_13, %c0_14] : memref<256x128xbf16, #tpu.memory_space<vmem>>, vector<256x128xbf16>
      tpu.vector_store %arg6[%c0_13, %c0_14], %15 {strides = array<i32>} : memref<256x128xbf16, #tpu.memory_space<vmem>>, vector<256x128xbf16>,
    } else {
    }
    return
  }
  func.func @transform_0(%arg0: i32, %arg1: i32, %arg2: i32) -> (i32, i32) {
    %c0_i32 = arith.constant 0 : i32
    return %arg0, %arg2 : i32, i32
  }
  func.func @transform_1(%arg0: i32, %arg1: i32, %arg2: i32) -> (i32, i32) {
    %c0_i32 = arith.constant 0 : i32
    return %arg2, %arg1 : i32, i32
  }
  func.func @transform_2(%arg0: i32, %arg1: i32, %arg2: i32) -> (i32, i32) {
    %c0_i32 = arith.constant 0 : i32
    %c0_i32_0 = arith.constant 0 : i32
    return %c0_i32, %arg1 : i32, i32
  }
  func.func @transform_3(%arg0: i32, %arg1: i32, %arg2: i32) -> (i32, i32) {
    %c0_i32 = arith.constant 0 : i32
    return %arg0, %arg1 : i32, i32
  }
}

module attributes {stable_mosaic.version = 11 : i64} {
  func.func @_conv_mm_res_kernel(%arg0: i32, %arg1: i32, %arg2: i32, %arg3: memref<256x640xbf16, #tpu.memory_space<vmem>>, %arg4: memref<640x128xbf16, #tpu.memory_space<vmem>>, %arg5: memref<1x128xf32, #tpu.memory_space<vmem>>, %arg6: memref<256x128xbf16, #tpu.memory_space<vmem>>, %arg7: memref<256x128xbf16, #tpu.memory_space<vmem>>, %arg8: memref<256x128xf32, #tpu.memory_space<vmem>>) attributes {dimension_semantics = [#tpu.dimension_semantics<parallel>, #tpu.dimension_semantics<parallel>, #tpu.dimension_semantics<arbitrary>], iteration_bounds = array<i64: 1, 1, 1>, scalar_prefetch = 0 : i64, scratch_operands = 1 : i64, tpu.core_type = #tpu.core_type<tc>, window_params = [{transform_indices = @transform_0, window_bounds = array<i64: 256, 640>}, {transform_indices = @transform_1, window_bounds = array<i64: 640, 128>}, {transform_indices = @transform_2, window_bounds = array<i64: 1, 128>}, {transform_indices = @transform_3, window_bounds = array<i64: 256, 128>}, {transform_indices = @transform_4, window_bounds = array<i64: 256, 128>}]} {
    %c0_i32 = arith.constant 0 : i32
    %0 = arith.cmpi eq, %arg2, %c0_i32 : i32
    %1 = arith.extui %0 : i1 to i32
    %c0_i32_0 = arith.constant 0 : i32
    %2 = arith.cmpi ne, %1, %c0_i32_0 : i32
    scf.if %2 {
      %c0_10 = arith.constant 0 : index
      %c0_11 = arith.constant 0 : index
      %12 = vector.load %arg5[%c0_10, %c0_11] : memref<1x128xf32, #tpu.memory_space<vmem>>, vector<1x128xf32>
      %13 = vector.shape_cast %12 : vector<1x128xf32> to vector<1x128xf32>
      %14 = vector.broadcast %13 : vector<1x128xf32> to vector<256x128xf32>
      %c0_12 = arith.constant 0 : index
      %c0_13 = arith.constant 0 : index
      %15 = vector.load %arg8[%c0_12, %c0_13] : memref<256x128xf32, #tpu.memory_space<vmem>>, vector<256x128xf32>
      tpu.vector_store %arg8[%c0_12, %c0_13], %14 {strides = array<i32>} : memref<256x128xf32, #tpu.memory_space<vmem>>, vector<256x128xf32>,
    } else {
    }
    %c0 = arith.constant 0 : index
    %c0_1 = arith.constant 0 : index
    %3 = vector.load %arg8[%c0, %c0_1] : memref<256x128xf32, #tpu.memory_space<vmem>>, vector<256x128xf32>
    %c0_2 = arith.constant 0 : index
    %c0_3 = arith.constant 0 : index
    %4 = vector.load %arg3[%c0_2, %c0_3] : memref<256x640xbf16, #tpu.memory_space<vmem>>, vector<256x640xbf16>
    %c0_4 = arith.constant 0 : index
    %c0_5 = arith.constant 0 : index
    %5 = vector.load %arg4[%c0_4, %c0_5] : memref<640x128xbf16, #tpu.memory_space<vmem>>, vector<640x128xbf16>
    %cst = arith.constant dense<0.000000e+00> : vector<256x128xf32>
    %6 = tpu.matmul %4, %5, %cst {dimension_numbers = #tpu.dot_dimension_numbers<[1], [0], [0], [1], [0, 0, 1, 1], [], []>} : vector<256x640xbf16>, vector<640x128xbf16>, vector<256x128xf32> -> vector<256x128xf32>
    %7 = arith.addf %3, %6 : vector<256x128xf32>
    %c0_6 = arith.constant 0 : index
    %c0_7 = arith.constant 0 : index
    %8 = vector.load %arg8[%c0_6, %c0_7] : memref<256x128xf32, #tpu.memory_space<vmem>>, vector<256x128xf32>
    tpu.vector_store %arg8[%c0_6, %c0_7], %7 {strides = array<i32>} : memref<256x128xf32, #tpu.memory_space<vmem>>, vector<256x128xf32>,
    %c0_i32_8 = arith.constant 0 : i32
    %9 = arith.cmpi eq, %arg2, %c0_i32_8 : i32
    %10 = arith.extui %9 : i1 to i32
    %c0_i32_9 = arith.constant 0 : i32
    %11 = arith.cmpi ne, %10, %c0_i32_9 : i32
    scf.if %11 {
      %c0_10 = arith.constant 0 : index
      %c0_11 = arith.constant 0 : index
      %12 = vector.load %arg8[%c0_10, %c0_11] : memref<256x128xf32, #tpu.memory_space<vmem>>, vector<256x128xf32>
      %c0_12 = arith.constant 0 : index
      %c0_13 = arith.constant 0 : index
      %13 = vector.load %arg6[%c0_12, %c0_13] : memref<256x128xbf16, #tpu.memory_space<vmem>>, vector<256x128xbf16>
      %14 = arith.extf %13 : vector<256x128xbf16> to vector<256x128xf32>
      %15 = arith.addf %12, %14 : vector<256x128xf32>
      %16 = arith.truncf %15 : vector<256x128xf32> to vector<256x128xbf16>
      %c0_14 = arith.constant 0 : index
      %c0_15 = arith.constant 0 : index
      %17 = vector.load %arg7[%c0_14, %c0_15] : memref<256x128xbf16, #tpu.memory_space<vmem>>, vector<256x128xbf16>
      tpu.vector_store %arg7[%c0_14, %c0_15], %16 {strides = array<i32>} : memref<256x128xbf16, #tpu.memory_space<vmem>>, vector<256x128xbf16>,
    } else {
    }
    return
  }
  func.func @transform_0(%arg0: i32, %arg1: i32, %arg2: i32) -> (i32, i32) {
    %c0_i32 = arith.constant 0 : i32
    return %arg0, %arg2 : i32, i32
  }
  func.func @transform_1(%arg0: i32, %arg1: i32, %arg2: i32) -> (i32, i32) {
    %c0_i32 = arith.constant 0 : i32
    return %arg2, %arg1 : i32, i32
  }
  func.func @transform_2(%arg0: i32, %arg1: i32, %arg2: i32) -> (i32, i32) {
    %c0_i32 = arith.constant 0 : i32
    %c0_i32_0 = arith.constant 0 : i32
    return %c0_i32, %arg1 : i32, i32
  }
  func.func @transform_3(%arg0: i32, %arg1: i32, %arg2: i32) -> (i32, i32) {
    %c0_i32 = arith.constant 0 : i32
    return %arg0, %arg1 : i32, i32
  }
  func.func @transform_4(%arg0: i32, %arg1: i32, %arg2: i32) -> (i32, i32) {
    %c0_i32 = arith.constant 0 : i32
    return %arg0, %arg1 : i32, i32
  }
}

module attributes {stable_mosaic.version = 11 : i64} {
  func.func @_conv_mm_res_kernel(%arg0: i32, %arg1: i32, %arg2: i32, %arg3: memref<256x1152xbf16, #tpu.memory_space<vmem>>, %arg4: memref<1152x128xbf16, #tpu.memory_space<vmem>>, %arg5: memref<1x128xf32, #tpu.memory_space<vmem>>, %arg6: memref<256x128xbf16, #tpu.memory_space<vmem>>, %arg7: memref<256x128xbf16, #tpu.memory_space<vmem>>, %arg8: memref<256x128xf32, #tpu.memory_space<vmem>>) attributes {dimension_semantics = [#tpu.dimension_semantics<parallel>, #tpu.dimension_semantics<parallel>, #tpu.dimension_semantics<arbitrary>], iteration_bounds = array<i64: 1, 1, 1>, scalar_prefetch = 0 : i64, scratch_operands = 1 : i64, tpu.core_type = #tpu.core_type<tc>, window_params = [{transform_indices = @transform_0, window_bounds = array<i64: 256, 1152>}, {transform_indices = @transform_1, window_bounds = array<i64: 1152, 128>}, {transform_indices = @transform_2, window_bounds = array<i64: 1, 128>}, {transform_indices = @transform_3, window_bounds = array<i64: 256, 128>}, {transform_indices = @transform_4, window_bounds = array<i64: 256, 128>}]} {
    %c0_i32 = arith.constant 0 : i32
    %0 = arith.cmpi eq, %arg2, %c0_i32 : i32
    %1 = arith.extui %0 : i1 to i32
    %c0_i32_0 = arith.constant 0 : i32
    %2 = arith.cmpi ne, %1, %c0_i32_0 : i32
    scf.if %2 {
      %c0_10 = arith.constant 0 : index
      %c0_11 = arith.constant 0 : index
      %12 = vector.load %arg5[%c0_10, %c0_11] : memref<1x128xf32, #tpu.memory_space<vmem>>, vector<1x128xf32>
      %13 = vector.shape_cast %12 : vector<1x128xf32> to vector<1x128xf32>
      %14 = vector.broadcast %13 : vector<1x128xf32> to vector<256x128xf32>
      %c0_12 = arith.constant 0 : index
      %c0_13 = arith.constant 0 : index
      %15 = vector.load %arg8[%c0_12, %c0_13] : memref<256x128xf32, #tpu.memory_space<vmem>>, vector<256x128xf32>
      tpu.vector_store %arg8[%c0_12, %c0_13], %14 {strides = array<i32>} : memref<256x128xf32, #tpu.memory_space<vmem>>, vector<256x128xf32>,
    } else {
    }
    %c0 = arith.constant 0 : index
    %c0_1 = arith.constant 0 : index
    %3 = vector.load %arg8[%c0, %c0_1] : memref<256x128xf32, #tpu.memory_space<vmem>>, vector<256x128xf32>
    %c0_2 = arith.constant 0 : index
    %c0_3 = arith.constant 0 : index
    %4 = vector.load %arg3[%c0_2, %c0_3] : memref<256x1152xbf16, #tpu.memory_space<vmem>>, vector<256x1152xbf16>
    %c0_4 = arith.constant 0 : index
    %c0_5 = arith.constant 0 : index
    %5 = vector.load %arg4[%c0_4, %c0_5] : memref<1152x128xbf16, #tpu.memory_space<vmem>>, vector<1152x128xbf16>
    %cst = arith.constant dense<0.000000e+00> : vector<256x128xf32>
    %6 = tpu.matmul %4, %5, %cst {dimension_numbers = #tpu.dot_dimension_numbers<[1], [0], [0], [1], [0, 0, 1, 1], [], []>} : vector<256x1152xbf16>, vector<1152x128xbf16>, vector<256x128xf32> -> vector<256x128xf32>
    %7 = arith.addf %3, %6 : vector<256x128xf32>
    %c0_6 = arith.constant 0 : index
    %c0_7 = arith.constant 0 : index
    %8 = vector.load %arg8[%c0_6, %c0_7] : memref<256x128xf32, #tpu.memory_space<vmem>>, vector<256x128xf32>
    tpu.vector_store %arg8[%c0_6, %c0_7], %7 {strides = array<i32>} : memref<256x128xf32, #tpu.memory_space<vmem>>, vector<256x128xf32>,
    %c0_i32_8 = arith.constant 0 : i32
    %9 = arith.cmpi eq, %arg2, %c0_i32_8 : i32
    %10 = arith.extui %9 : i1 to i32
    %c0_i32_9 = arith.constant 0 : i32
    %11 = arith.cmpi ne, %10, %c0_i32_9 : i32
    scf.if %11 {
      %c0_10 = arith.constant 0 : index
      %c0_11 = arith.constant 0 : index
      %12 = vector.load %arg8[%c0_10, %c0_11] : memref<256x128xf32, #tpu.memory_space<vmem>>, vector<256x128xf32>
      %c0_12 = arith.constant 0 : index
      %c0_13 = arith.constant 0 : index
      %13 = vector.load %arg6[%c0_12, %c0_13] : memref<256x128xbf16, #tpu.memory_space<vmem>>, vector<256x128xbf16>
      %14 = arith.extf %13 : vector<256x128xbf16> to vector<256x128xf32>
      %15 = arith.addf %12, %14 : vector<256x128xf32>
      %16 = arith.truncf %15 : vector<256x128xf32> to vector<256x128xbf16>
      %c0_14 = arith.constant 0 : index
      %c0_15 = arith.constant 0 : index
      %17 = vector.load %arg7[%c0_14, %c0_15] : memref<256x128xbf16, #tpu.memory_space<vmem>>, vector<256x128xbf16>
      tpu.vector_store %arg7[%c0_14, %c0_15], %16 {strides = array<i32>} : memref<256x128xbf16, #tpu.memory_space<vmem>>, vector<256x128xbf16>,
    } else {
    }
    return
  }
  func.func @transform_0(%arg0: i32, %arg1: i32, %arg2: i32) -> (i32, i32) {
    %c0_i32 = arith.constant 0 : i32
    return %arg0, %arg2 : i32, i32
  }
  func.func @transform_1(%arg0: i32, %arg1: i32, %arg2: i32) -> (i32, i32) {
    %c0_i32 = arith.constant 0 : i32
    return %arg2, %arg1 : i32, i32
  }
  func.func @transform_2(%arg0: i32, %arg1: i32, %arg2: i32) -> (i32, i32) {
    %c0_i32 = arith.constant 0 : i32
    %c0_i32_0 = arith.constant 0 : i32
    return %c0_i32, %arg1 : i32, i32
  }
  func.func @transform_3(%arg0: i32, %arg1: i32, %arg2: i32) -> (i32, i32) {
    %c0_i32 = arith.constant 0 : i32
    return %arg0, %arg1 : i32, i32
  }
  func.func @transform_4(%arg0: i32, %arg1: i32, %arg2: i32) -> (i32, i32) {
    %c0_i32 = arith.constant 0 : i32
    return %arg0, %arg1 : i32, i32
  }
}

module attributes {stable_mosaic.version = 11 : i64} {
  func.func @_conv_mm_kernel(%arg0: i32, %arg1: i32, %arg2: i32, %arg3: memref<256x1152xbf16, #tpu.memory_space<vmem>>, %arg4: memref<1152x128xbf16, #tpu.memory_space<vmem>>, %arg5: memref<1x128xf32, #tpu.memory_space<vmem>>, %arg6: memref<256x128xbf16, #tpu.memory_space<vmem>>, %arg7: memref<256x128xf32, #tpu.memory_space<vmem>>) attributes {dimension_semantics = [#tpu.dimension_semantics<parallel>, #tpu.dimension_semantics<parallel>, #tpu.dimension_semantics<arbitrary>], iteration_bounds = array<i64: 1, 1, 1>, scalar_prefetch = 0 : i64, scratch_operands = 1 : i64, tpu.core_type = #tpu.core_type<tc>, window_params = [{transform_indices = @transform_0, window_bounds = array<i64: 256, 1152>}, {transform_indices = @transform_1, window_bounds = array<i64: 1152, 128>}, {transform_indices = @transform_2, window_bounds = array<i64: 1, 128>}, {transform_indices = @transform_3, window_bounds = array<i64: 256, 128>}]} {
    %c0_i32 = arith.constant 0 : i32
    %0 = arith.cmpi eq, %arg2, %c0_i32 : i32
    %1 = arith.extui %0 : i1 to i32
    %c0_i32_0 = arith.constant 0 : i32
    %2 = arith.cmpi ne, %1, %c0_i32_0 : i32
    scf.if %2 {
      %c0_10 = arith.constant 0 : index
      %c0_11 = arith.constant 0 : index
      %12 = vector.load %arg5[%c0_10, %c0_11] : memref<1x128xf32, #tpu.memory_space<vmem>>, vector<1x128xf32>
      %13 = vector.shape_cast %12 : vector<1x128xf32> to vector<1x128xf32>
      %14 = vector.broadcast %13 : vector<1x128xf32> to vector<256x128xf32>
      %c0_12 = arith.constant 0 : index
      %c0_13 = arith.constant 0 : index
      %15 = vector.load %arg7[%c0_12, %c0_13] : memref<256x128xf32, #tpu.memory_space<vmem>>, vector<256x128xf32>
      tpu.vector_store %arg7[%c0_12, %c0_13], %14 {strides = array<i32>} : memref<256x128xf32, #tpu.memory_space<vmem>>, vector<256x128xf32>,
    } else {
    }
    %c0 = arith.constant 0 : index
    %c0_1 = arith.constant 0 : index
    %3 = vector.load %arg7[%c0, %c0_1] : memref<256x128xf32, #tpu.memory_space<vmem>>, vector<256x128xf32>
    %c0_2 = arith.constant 0 : index
    %c0_3 = arith.constant 0 : index
    %4 = vector.load %arg3[%c0_2, %c0_3] : memref<256x1152xbf16, #tpu.memory_space<vmem>>, vector<256x1152xbf16>
    %c0_4 = arith.constant 0 : index
    %c0_5 = arith.constant 0 : index
    %5 = vector.load %arg4[%c0_4, %c0_5] : memref<1152x128xbf16, #tpu.memory_space<vmem>>, vector<1152x128xbf16>
    %cst = arith.constant dense<0.000000e+00> : vector<256x128xf32>
    %6 = tpu.matmul %4, %5, %cst {dimension_numbers = #tpu.dot_dimension_numbers<[1], [0], [0], [1], [0, 0, 1, 1], [], []>} : vector<256x1152xbf16>, vector<1152x128xbf16>, vector<256x128xf32> -> vector<256x128xf32>
    %7 = arith.addf %3, %6 : vector<256x128xf32>
    %c0_6 = arith.constant 0 : index
    %c0_7 = arith.constant 0 : index
    %8 = vector.load %arg7[%c0_6, %c0_7] : memref<256x128xf32, #tpu.memory_space<vmem>>, vector<256x128xf32>
    tpu.vector_store %arg7[%c0_6, %c0_7], %7 {strides = array<i32>} : memref<256x128xf32, #tpu.memory_space<vmem>>, vector<256x128xf32>,
    %c0_i32_8 = arith.constant 0 : i32
    %9 = arith.cmpi eq, %arg2, %c0_i32_8 : i32
    %10 = arith.extui %9 : i1 to i32
    %c0_i32_9 = arith.constant 0 : i32
    %11 = arith.cmpi ne, %10, %c0_i32_9 : i32
    scf.if %11 {
      %c0_10 = arith.constant 0 : index
      %c0_11 = arith.constant 0 : index
      %12 = vector.load %arg7[%c0_10, %c0_11] : memref<256x128xf32, #tpu.memory_space<vmem>>, vector<256x128xf32>
      %cst_12 = arith.constant 0.000000e+00 : f32
      %13 = vector.broadcast %cst_12 : f32 to vector<256x128xf32>
      %14 = arith.maximumf %12, %13 : vector<256x128xf32>
      %15 = arith.truncf %14 : vector<256x128xf32> to vector<256x128xbf16>
      %c0_13 = arith.constant 0 : index
      %c0_14 = arith.constant 0 : index
      %16 = vector.load %arg6[%c0_13, %c0_14] : memref<256x128xbf16, #tpu.memory_space<vmem>>, vector<256x128xbf16>
      tpu.vector_store %arg6[%c0_13, %c0_14], %15 {strides = array<i32>} : memref<256x128xbf16, #tpu.memory_space<vmem>>, vector<256x128xbf16>,
    } else {
    }
    return
  }
  func.func @transform_0(%arg0: i32, %arg1: i32, %arg2: i32) -> (i32, i32) {
    %c0_i32 = arith.constant 0 : i32
    return %arg0, %arg2 : i32, i32
  }
  func.func @transform_1(%arg0: i32, %arg1: i32, %arg2: i32) -> (i32, i32) {
    %c0_i32 = arith.constant 0 : i32
    return %arg2, %arg1 : i32, i32
  }
  func.func @transform_2(%arg0: i32, %arg1: i32, %arg2: i32) -> (i32, i32) {
    %c0_i32 = arith.constant 0 : i32
    %c0_i32_0 = arith.constant 0 : i32
    return %c0_i32, %arg1 : i32, i32
  }
  func.func @transform_3(%arg0: i32, %arg1: i32, %arg2: i32) -> (i32, i32) {
    %c0_i32 = arith.constant 0 : i32
    return %arg0, %arg1 : i32, i32
  }
}

module attributes {stable_mosaic.version = 11 : i64} {
  func.func @_conv_mm_kernel(%arg0: i32, %arg1: i32, %arg2: i32, %arg3: memref<256x512xbf16, #tpu.memory_space<vmem>>, %arg4: memref<512x128xbf16, #tpu.memory_space<vmem>>, %arg5: memref<1x128xf32, #tpu.memory_space<vmem>>, %arg6: memref<256x128xbf16, #tpu.memory_space<vmem>>, %arg7: memref<256x128xf32, #tpu.memory_space<vmem>>) attributes {dimension_semantics = [#tpu.dimension_semantics<parallel>, #tpu.dimension_semantics<parallel>, #tpu.dimension_semantics<arbitrary>], iteration_bounds = array<i64: 1, 1, 6>, scalar_prefetch = 0 : i64, scratch_operands = 1 : i64, tpu.core_type = #tpu.core_type<tc>, window_params = [{transform_indices = @transform_0, window_bounds = array<i64: 256, 512>}, {transform_indices = @transform_1, window_bounds = array<i64: 512, 128>}, {transform_indices = @transform_2, window_bounds = array<i64: 1, 128>}, {transform_indices = @transform_3, window_bounds = array<i64: 256, 128>}]} {
    %c0_i32 = arith.constant 0 : i32
    %0 = arith.cmpi eq, %arg2, %c0_i32 : i32
    %1 = arith.extui %0 : i1 to i32
    %c0_i32_0 = arith.constant 0 : i32
    %2 = arith.cmpi ne, %1, %c0_i32_0 : i32
    scf.if %2 {
      %c0_9 = arith.constant 0 : index
      %c0_10 = arith.constant 0 : index
      %12 = vector.load %arg5[%c0_9, %c0_10] : memref<1x128xf32, #tpu.memory_space<vmem>>, vector<1x128xf32>
      %13 = vector.shape_cast %12 : vector<1x128xf32> to vector<1x128xf32>
      %14 = vector.broadcast %13 : vector<1x128xf32> to vector<256x128xf32>
      %c0_11 = arith.constant 0 : index
      %c0_12 = arith.constant 0 : index
      %15 = vector.load %arg7[%c0_11, %c0_12] : memref<256x128xf32, #tpu.memory_space<vmem>>, vector<256x128xf32>
      tpu.vector_store %arg7[%c0_11, %c0_12], %14 {strides = array<i32>} : memref<256x128xf32, #tpu.memory_space<vmem>>, vector<256x128xf32>,
    } else {
    }
    %c0 = arith.constant 0 : index
    %c0_1 = arith.constant 0 : index
    %3 = vector.load %arg7[%c0, %c0_1] : memref<256x128xf32, #tpu.memory_space<vmem>>, vector<256x128xf32>
    %c0_2 = arith.constant 0 : index
    %c0_3 = arith.constant 0 : index
    %4 = vector.load %arg3[%c0_2, %c0_3] : memref<256x512xbf16, #tpu.memory_space<vmem>>, vector<256x512xbf16>
    %c0_4 = arith.constant 0 : index
    %c0_5 = arith.constant 0 : index
    %5 = vector.load %arg4[%c0_4, %c0_5] : memref<512x128xbf16, #tpu.memory_space<vmem>>, vector<512x128xbf16>
    %cst = arith.constant dense<0.000000e+00> : vector<256x128xf32>
    %6 = tpu.matmul %4, %5, %cst {dimension_numbers = #tpu.dot_dimension_numbers<[1], [0], [0], [1], [0, 0, 1, 1], [], []>} : vector<256x512xbf16>, vector<512x128xbf16>, vector<256x128xf32> -> vector<256x128xf32>
    %7 = arith.addf %3, %6 : vector<256x128xf32>
    %c0_6 = arith.constant 0 : index
    %c0_7 = arith.constant 0 : index
    %8 = vector.load %arg7[%c0_6, %c0_7] : memref<256x128xf32, #tpu.memory_space<vmem>>, vector<256x128xf32>
    tpu.vector_store %arg7[%c0_6, %c0_7], %7 {strides = array<i32>} : memref<256x128xf32, #tpu.memory_space<vmem>>, vector<256x128xf32>,
    %c5_i32 = arith.constant 5 : i32
    %9 = arith.cmpi eq, %arg2, %c5_i32 : i32
    %10 = arith.extui %9 : i1 to i32
    %c0_i32_8 = arith.constant 0 : i32
    %11 = arith.cmpi ne, %10, %c0_i32_8 : i32
    scf.if %11 {
      %c0_9 = arith.constant 0 : index
      %c0_10 = arith.constant 0 : index
      %12 = vector.load %arg7[%c0_9, %c0_10] : memref<256x128xf32, #tpu.memory_space<vmem>>, vector<256x128xf32>
      %cst_11 = arith.constant 0.000000e+00 : f32
      %13 = vector.broadcast %cst_11 : f32 to vector<256x128xf32>
      %14 = arith.maximumf %12, %13 : vector<256x128xf32>
      %15 = arith.truncf %14 : vector<256x128xf32> to vector<256x128xbf16>
      %c0_12 = arith.constant 0 : index
      %c0_13 = arith.constant 0 : index
      %16 = vector.load %arg6[%c0_12, %c0_13] : memref<256x128xbf16, #tpu.memory_space<vmem>>, vector<256x128xbf16>
      tpu.vector_store %arg6[%c0_12, %c0_13], %15 {strides = array<i32>} : memref<256x128xbf16, #tpu.memory_space<vmem>>, vector<256x128xbf16>,
    } else {
    }
    return
  }
  func.func @transform_0(%arg0: i32, %arg1: i32, %arg2: i32) -> (i32, i32) {
    %c0_i32 = arith.constant 0 : i32
    return %arg0, %arg2 : i32, i32
  }
  func.func @transform_1(%arg0: i32, %arg1: i32, %arg2: i32) -> (i32, i32) {
    %c0_i32 = arith.constant 0 : i32
    return %arg2, %arg1 : i32, i32
  }
  func.func @transform_2(%arg0: i32, %arg1: i32, %arg2: i32) -> (i32, i32) {
    %c0_i32 = arith.constant 0 : i32
    %c0_i32_0 = arith.constant 0 : i32
    return %c0_i32, %arg1 : i32, i32
  }
  func.func @transform_3(%arg0: i32, %arg1: i32, %arg2: i32) -> (i32, i32) {
    %c0_i32 = arith.constant 0 : i32
    return %arg0, %arg1 : i32, i32
  }
}

</mosaic_0001>

<bundles_post_ra>
// kernel: feature_extraction_forward.57
= control target key start
LH: loop header
LB: loop body
LE: loop exit
PB: predicated region body
PF: predicated region fallthrough
CT: control target
= control target key end

     0   :  { %s983_s1 = inlined_call_operand.vmem [shape: bf16[128,128], index: 1, kind: input, shape index: {}]   ;;  %s984_s2 = inlined_call_operand.vmem [shape: f32[1,128], index: 2, kind: input, shape index: {}]   ;;  %s985_s0 = inlined_call_operand.vmem [shape: bf16[256,128], index: 0, kind: input, shape index: {}]   ;;  %s986_s3 = inlined_call_operand.vmem [shape: bf16[256,128], index: 3, kind: output, shape index: {}]  }
   0x1   :  { %v685_v0 = vld [vmem:[%s983_s1 + $0x38] sm:$0xff]  ;;  %v684_v1 = vld [vmem:[%s983_s1 + $0x30] sm:$0xff]  ;;  %v683_v2 = vld [vmem:[%s983_s1 + $0x28] sm:$0xff] }
   0x2   :  { %278 = vmatpush.bf16.msra.mxu0 %v685_v0  ;;  %781 = vmatpush.bf16.msra.mxu1 %v685_v0  ;;  %v682_v3 = vld [vmem:[%s983_s1 + $0x20] sm:$0xff]  ;;  %v681_v4 = vld [vmem:[%s983_s1 + $0x18] sm:$0xff]  ;;  %v680_v5 = vld [vmem:[%s983_s1 + $0x10] sm:$0xff] }
   0x3   :  { %782 = vmatpush.bf16.msra.mxu2 %v685_v0  ;;  %783 = vmatpush.bf16.msra.mxu3 %v685_v0  ;;  %v679_v6 = vld [vmem:[%s983_s1 + $0x8] sm:$0xff]  ;;  %v678_v7 = vld [vmem:[%s983_s1] sm:$0xff]  ;;  %v664_v16 = vld [vmem:[%s985_s0 + $0x10] sm:$0xff] }
   0x4   :  { %v662_v8 = vld [vmem:[%s985_s0] sm:$0xff]  ;;  %v663_v12 = vld [vmem:[%s985_s0 + $0x8] sm:$0xff]  ;;  %v668_v17 = vld [vmem:[%s985_s0 + $0x30] sm:$0xff] }
   0x5   :  { %v666_v9 = vld [vmem:[%s985_s0 + $0x20] sm:$0xff]  ;;  %v667_v13 = vld [vmem:[%s985_s0 + $0x28] sm:$0xff]  ;;  %v672_v18 = vld [vmem:[%s985_s0 + $0x50] sm:$0xff] }
   0x6   :  { %279 = vmatpush.bf16.msra.mxu0 %v684_v1  ;;  %784 = vmatpush.bf16.msra.mxu1 %v684_v1  ;;  %v670_v10 = vld [vmem:[%s985_s0 + $0x40] sm:$0xff]  ;;  %v671_v14 = vld [vmem:[%s985_s0 + $0x48] sm:$0xff]  ;;  %v676_v19 = vld [vmem:[%s985_s0 + $0x70] sm:$0xff] }
   0x7   :  { %785 = vmatpush.bf16.msra.mxu2 %v684_v1  ;;  %786 = vmatpush.bf16.msra.mxu3 %v684_v1  ;;  %v674_v11 = vld [vmem:[%s985_s0 + $0x60] sm:$0xff]  ;;  %v675_v15 = vld [vmem:[%s985_s0 + $0x68] sm:$0xff]  ;;  %v665_v20 = vld [vmem:[%s985_s0 + $0x18] sm:$0xff] }
   0x8   :  { %v669_v21 = vld [vmem:[%s985_s0 + $0x38] sm:$0xff]  ;;  %v901_v26 = vld [vmem:[%s984_s2] ss:$0 sm:$0xff] }
   0x9   :  { %v673_v22 = vld [vmem:[%s985_s0 + $0x58] sm:$0xff] }
   0xa   :  { %280 = vmatpush.bf16.msra.mxu0 %v683_v2  ;;  %787 = vmatpush.bf16.msra.mxu1 %v683_v2  ;;  %v677_v23 = vld [vmem:[%s985_s0 + $0x78] sm:$0xff] }
   0xb   :  { %788 = vmatpush.bf16.msra.mxu2 %v683_v2  ;;  %789 = vmatpush.bf16.msra.mxu3 %v683_v2 }
   0xe   :  { %281 = vmatpush.bf16.msra.mxu0 %v682_v3  ;;  %790 = vmatpush.bf16.msra.mxu1 %v682_v3 }
   0xf   :  { %791 = vmatpush.bf16.msra.mxu2 %v682_v3  ;;  %792 = vmatpush.bf16.msra.mxu3 %v682_v3 }
  0x12   :  { %282 = vmatpush.bf16.msra.mxu0 %v681_v4  ;;  %793 = vmatpush.bf16.msra.mxu1 %v681_v4 }
  0x13   :  { %794 = vmatpush.bf16.msra.mxu2 %v681_v4  ;;  %795 = vmatpush.bf16.msra.mxu3 %v681_v4 }
  0x16   :  { %283 = vmatpush.bf16.msra.mxu0 %v680_v5  ;;  %796 = vmatpush.bf16.msra.mxu1 %v680_v5 }
  0x17   :  { %797 = vmatpush.bf16.msra.mxu2 %v680_v5  ;;  %798 = vmatpush.bf16.msra.mxu3 %v680_v5 }
  0x1a   :  { %284 = vmatpush.bf16.msra.mxu0 %v679_v6  ;;  %799 = vmatpush.bf16.msra.mxu1 %v679_v6 }
  0x1b   :  { %800 = vmatpush.bf16.msra.mxu2 %v679_v6  ;;  %801 = vmatpush.bf16.msra.mxu3 %v679_v6 }
  0x1e   :  { %285 = vmatpush.bf16.msra.mxu0 %v678_v7  ;;  %802 = vmatpush.bf16.msra.mxu1 %v678_v7 }
  0x1f   :  { %803 = vmatpush.bf16.msra.mxu2 %v678_v7  ;;  %804 = vmatpush.bf16.msra.mxu3 %v678_v7 }
  0x21   :  { %286 = vmatmul.bf16.vlgmr.msra.gmra.mxu0 %v662_v8  ;;  %306 = vmatmul.bf16.vlgmr.msra.gmra.mxu1 %v666_v9 }
  0x22   :  { %326 = vmatmul.bf16.vlgmr.msra.gmra.mxu2 %v670_v10  ;;  %346 = vmatmul.bf16.vlgmr.msra.gmra.mxu3 %v674_v11 }
  0x31   :  { %291 = vmatmul.bf16.gmra.mxu0 %v663_v12  ;;  %311 = vmatmul.bf16.gmra.mxu1 %v667_v13 }
  0x32   :  { %331 = vmatmul.bf16.gmra.mxu2 %v671_v14  ;;  %351 = vmatmul.bf16.gmra.mxu3 %v675_v15 }
  0x41   :  { %296 = vmatmul.bf16.gmra.mxu0 %v664_v16  ;;  %316 = vmatmul.bf16.gmra.mxu1 %v668_v17 }
  0x42   :  { %336 = vmatmul.bf16.gmra.mxu2 %v672_v18  ;;  %356 = vmatmul.bf16.gmra.mxu3 %v676_v19 }
  0x51   :  { %301 = vmatmul.bf16.gmra.mxu0 %v665_v20  ;;  %321 = vmatmul.bf16.gmra.mxu1 %v669_v21 }
  0x52   :  { %341 = vmatmul.bf16.gmra.mxu2 %v673_v22  ;;  %361 = vmatmul.bf16.gmra.mxu3 %v677_v23 }
  0x9e   :  { %v287_v24 = vpop.f32.mrf.mxu0  ;;  %v307_v25 = vpop.f32.mrf.mxu1 }
  0x9f   :  { %v367_v27 = vadd.f32 %v901_v26, %v287_v24  ;;  %v375_v28 = vadd.f32 %v901_v26, %v307_v25 }
  0xa1   :  { %v466_v35 = vmax.f32 %v367_v27, 0.0  ;;  %v474_v36 = vmax.f32 %v375_v28, 0.0 }
  0xa5   :  { %v327_v29 = vpop.f32.mrf.mxu2  ;;  %v347_v30 = vpop.f32.mrf.mxu3 }
  0xa6   :  { %v289_v31 = vpop.f32.mrf.mxu0  ;;  %v309_v32 = vpop.f32.mrf.mxu1  ;;  %v383_v41 = vadd.f32 %v901_v26, %v327_v29  ;;  %v391_v42 = vadd.f32 %v901_v26, %v347_v30 }
  0xa7   :  { %v368_v33 = vadd.f32 %v901_v26, %v289_v31  ;;  %v376_v34 = vadd.f32 %v901_v26, %v309_v32 }
  0xa8   :  { %v482_v49 = vmax.f32 %v383_v41, 0.0  ;;  %v490_v50 = vmax.f32 %v391_v42, 0.0 }
  0xa9   :  { %v467_v37 = vmax.f32 %v368_v33, 0.0  ;;  %v475_v38 = vmax.f32 %v376_v34, 0.0 }
  0xab   :  { %v689_v39 = vpack.c.bf16 %v467_v37, %v466_v35  ;;  %v709_v40 = vpack.c.bf16 %v475_v38, %v474_v36 }
  0xad   :  { %690 = vst [vmem:[%s986_s3] sm:$0xff] %v689_v39   ;;  %v329_v43 = vpop.f32.mrf.mxu2  ;;  %v349_v44 = vpop.f32.mrf.mxu3 }
  0xae   :  { %769 = vst [vmem:[%s986_s3 + $0x20] sm:$0xff] %v709_v40   ;;  %v384_v45 = vadd.f32 %v901_v26, %v329_v43  ;;  %v392_v46 = vadd.f32 %v901_v26, %v349_v44  ;;  %v292_v47 = vpop.f32.mrf.mxu0  ;;  %v312_v48 = vpop.f32.mrf.mxu1 }
  0xaf   :  { %v369_v55 = vadd.f32 %v901_v26, %v292_v47  ;;  %v377_v56 = vadd.f32 %v901_v26, %v312_v48 }
  0xb0   :  { %v483_v51 = vmax.f32 %v384_v45, 0.0  ;;  %v491_v52 = vmax.f32 %v392_v46, 0.0 }
  0xb1   :  { %v468_v63 = vmax.f32 %v369_v55, 0.0  ;;  %v476_v0 = vmax.f32 %v377_v56, 0.0 }
  0xb2   :  { %v729_v53 = vpack.c.bf16 %v483_v51, %v482_v49  ;;  %v749_v54 = vpack.c.bf16 %v491_v52, %v490_v50 }
  0xb4   :  { %773 = vst [vmem:[%s986_s3 + $0x40] sm:$0xff] %v729_v53  }
  0xb5   :  { %777 = vst [vmem:[%s986_s3 + $0x60] sm:$0xff] %v749_v54   ;;  %v332_v57 = vpop.f32.mrf.mxu2  ;;  %v352_v58 = vpop.f32.mrf.mxu3 }
  0xb6   :  { %v294_v59 = vpop.f32.mrf.mxu0  ;;  %v314_v60 = vpop.f32.mrf.mxu1  ;;  %v385_v5 = vadd.f32 %v901_v26, %v332_v57  ;;  %v393_v6 = vadd.f32 %v901_v26, %v352_v58 }
  0xb7   :  { %v370_v61 = vadd.f32 %v901_v26, %v294_v59  ;;  %v378_v62 = vadd.f32 %v901_v26, %v314_v60 }
  0xb8   :  { %v484_v13 = vmax.f32 %v385_v5, 0.0  ;;  %v492_v14 = vmax.f32 %v393_v6, 0.0 }
  0xb9   :  { %v469_v1 = vmax.f32 %v370_v61, 0.0  ;;  %v477_v2 = vmax.f32 %v378_v62, 0.0 }
  0xbb   :  { %v694_v3 = vpack.c.bf16 %v469_v1, %v468_v63  ;;  %v714_v4 = vpack.c.bf16 %v477_v2, %v476_v0 }
  0xbd   :  { %766 = vst [vmem:[%s986_s3 + $0x8] sm:$0xff] %v694_v3   ;;  %v334_v7 = vpop.f32.mrf.mxu2  ;;  %v354_v8 = vpop.f32.mrf.mxu3 }
  0xbe   :  { %770 = vst [vmem:[%s986_s3 + $0x28] sm:$0xff] %v714_v4   ;;  %v386_v9 = vadd.f32 %v901_v26, %v334_v7  ;;  %v394_v10 = vadd.f32 %v901_v26, %v354_v8  ;;  %v297_v11 = vpop.f32.mrf.mxu0  ;;  %v317_v12 = vpop.f32.mrf.mxu1 }
  0xbf   :  { %v371_v19 = vadd.f32 %v901_v26, %v297_v11  ;;  %v379_v20 = vadd.f32 %v901_v26, %v317_v12 }
  0xc0   :  { %v485_v15 = vmax.f32 %v386_v9, 0.0  ;;  %v493_v16 = vmax.f32 %v394_v10, 0.0 }
  0xc1   :  { %v470_v28 = vmax.f32 %v371_v19, 0.0  ;;  %v478_v29 = vmax.f32 %v379_v20, 0.0 }
  0xc2   :  { %v734_v17 = vpack.c.bf16 %v485_v15, %v484_v13  ;;  %v754_v18 = vpack.c.bf16 %v493_v16, %v492_v14 }
  0xc4   :  { %774 = vst [vmem:[%s986_s3 + $0x48] sm:$0xff] %v734_v17  }
  0xc5   :  { %778 = vst [vmem:[%s986_s3 + $0x68] sm:$0xff] %v754_v18   ;;  %v337_v21 = vpop.f32.mrf.mxu2  ;;  %v357_v22 = vpop.f32.mrf.mxu3 }
  0xc6   :  { %v299_v23 = vpop.f32.mrf.mxu0  ;;  %v319_v24 = vpop.f32.mrf.mxu1  ;;  %v387_v34 = vadd.f32 %v901_v26, %v337_v21  ;;  %v395_v35 = vadd.f32 %v901_v26, %v357_v22 }
  0xc7   :  { %v372_v25 = vadd.f32 %v901_v26, %v299_v23  ;;  %v380_v27 = vadd.f32 %v901_v26, %v319_v24 }
  0xc8   :  { %v486_v42 = vmax.f32 %v387_v34, 0.0  ;;  %v494_v43 = vmax.f32 %v395_v35, 0.0 }
  0xc9   :  { %v471_v30 = vmax.f32 %v372_v25, 0.0  ;;  %v479_v31 = vmax.f32 %v380_v27, 0.0 }
  0xcb   :  { %v699_v32 = vpack.c.bf16 %v471_v30, %v470_v28  ;;  %v719_v33 = vpack.c.bf16 %v479_v31, %v478_v29 }
  0xcd   :  { %767 = vst [vmem:[%s986_s3 + $0x10] sm:$0xff] %v699_v32   ;;  %v339_v36 = vpop.f32.mrf.mxu2  ;;  %v359_v37 = vpop.f32.mrf.mxu3 }
  0xce   :  { %771 = vst [vmem:[%s986_s3 + $0x30] sm:$0xff] %v719_v33   ;;  %v388_v38 = vadd.f32 %v901_v26, %v339_v36  ;;  %v396_v39 = vadd.f32 %v901_v26, %v359_v37  ;;  %v302_v40 = vpop.f32.mrf.mxu0  ;;  %v322_v41 = vpop.f32.mrf.mxu1 }
  0xcf   :  { %v373_v48 = vadd.f32 %v901_v26, %v302_v40  ;;  %v381_v49 = vadd.f32 %v901_v26, %v322_v41 }
  0xd0   :  { %v487_v44 = vmax.f32 %v388_v38, 0.0  ;;  %v495_v45 = vmax.f32 %v396_v39, 0.0 }
  0xd1   :  { %v472_v56 = vmax.f32 %v373_v48, 0.0  ;;  %v480_v57 = vmax.f32 %v381_v49, 0.0 }
  0xd2   :  { %v739_v46 = vpack.c.bf16 %v487_v44, %v486_v42  ;;  %v759_v47 = vpack.c.bf16 %v495_v45, %v494_v43 }
  0xd4   :  { %775 = vst [vmem:[%s986_s3 + $0x50] sm:$0xff] %v739_v46  }
  0xd5   :  { %779 = vst [vmem:[%s986_s3 + $0x70] sm:$0xff] %v759_v47   ;;  %v342_v50 = vpop.f32.mrf.mxu2  ;;  %v362_v51 = vpop.f32.mrf.mxu3 }
  0xd6   :  { %v304_v52 = vpop.f32.mrf.mxu0  ;;  %v324_v53 = vpop.f32.mrf.mxu1  ;;  %v389_v62 = vadd.f32 %v901_v26, %v342_v50  ;;  %v397_v63 = vadd.f32 %v901_v26, %v362_v51 }
  0xd7   :  { %v374_v54 = vadd.f32 %v901_v26, %v304_v52  ;;  %v382_v55 = vadd.f32 %v901_v26, %v324_v53 }
  0xd8   :  { %v488_v4 = vmax.f32 %v389_v62, 0.0  ;;  %v496_v5 = vmax.f32 %v397_v63, 0.0 }
  0xd9   :  { %v473_v58 = vmax.f32 %v374_v54, 0.0  ;;  %v481_v59 = vmax.f32 %v382_v55, 0.0 }
  0xdb   :  { %v704_v60 = vpack.c.bf16 %v473_v58, %v472_v56  ;;  %v724_v61 = vpack.c.bf16 %v481_v59, %v480_v57 }
  0xdd   :  { %768 = vst [vmem:[%s986_s3 + $0x18] sm:$0xff] %v704_v60   ;;  %v344_v0 = vpop.f32.mrf.mxu2  ;;  %v364_v1 = vpop.f32.mrf.mxu3 }
  0xde   :  { %772 = vst [vmem:[%s986_s3 + $0x38] sm:$0xff] %v724_v61   ;;  %v390_v2 = vadd.f32 %v901_v26, %v344_v0  ;;  %v398_v3 = vadd.f32 %v901_v26, %v364_v1 }
  0xe0   :  { %v489_v6 = vmax.f32 %v390_v2, 0.0  ;;  %v497_v7 = vmax.f32 %v398_v3, 0.0 }
  0xe2   :  { %v744_v8 = vpack.c.bf16 %v489_v6, %v488_v4  ;;  %v764_v9 = vpack.c.bf16 %v497_v7, %v496_v5 }
  0xe4   :  { %776 = vst [vmem:[%s986_s3 + $0x58] sm:$0xff] %v744_v8  }
  0xe5   :  { %780 = vst [vmem:[%s986_s3 + $0x78] sm:$0xff] %v764_v9  }

// kernel: feature_extraction_forward.58
= control target key start
LH: loop header
LB: loop body
LE: loop exit
PB: predicated region body
PF: predicated region fallthrough
CT: control target
= control target key end

     0   :  { %s2097_s1 = inlined_call_operand.vmem [shape: bf16[384,128], index: 1, kind: input, shape index: {}]   ;;  %s2098_s0 = inlined_call_operand.vmem [shape: bf16[256,384], index: 0, kind: input, shape index: {}]   ;;  %s2099_s2 = inlined_call_operand.vmem [shape: f32[1,128], index: 2, kind: input, shape index: {}]   ;;  %s2100_s3 = inlined_call_operand.vmem [shape: bf16[256,128], index: 3, kind: output, shape index: {}]  }
   0x1   :  { %v1407_v0 = vld [vmem:[%s2097_s1 + $0x38] sm:$0xff]  ;;  %v1406_v3 = vld [vmem:[%s2097_s1 + $0x30] sm:$0xff]  ;;  %v1405_v6 = vld [vmem:[%s2097_s1 + $0x28] sm:$0xff] }
   0x2   :  { %v1570_v1 = vld [vmem:[%s2097_s1 + $0x78] sm:$0xff]  ;;  %598 = vmatpush.bf16.msra.mxu0 %v1407_v0  ;;  %1519 = vmatpush.bf16.msra.mxu3 %v1407_v0  ;;  %v1585_v4 = vld [vmem:[%s2097_s1 + $0x70] sm:$0xff]  ;;  %v1413_v7 = vld [vmem:[%s2097_s1 + $0x68] sm:$0xff] }
   0x3   :  { %v1575_v2 = vld [vmem:[%s2097_s1 + $0xb8] sm:$0xff]  ;;  %687 = vmatpush.bf16.msra.mxu1 %v1570_v1  ;;  %v1590_v5 = vld [vmem:[%s2097_s1 + $0xb0] sm:$0xff]  ;;  %v1603_v8 = vld [vmem:[%s2097_s1 + $0xa8] sm:$0xff] }
   0x4   :  { %776 = vmatpush.bf16.msra.mxu2 %v1575_v2  ;;  %v1404_v9 = vld [vmem:[%s2097_s1 + $0x20] sm:$0xff]  ;;  %v1403_v12 = vld [vmem:[%s2097_s1 + $0x18] sm:$0xff]  ;;  %v1402_v15 = vld [vmem:[%s2097_s1 + $0x10] sm:$0xff] }
   0x5   :  { %v1412_v10 = vld [vmem:[%s2097_s1 + $0x60] sm:$0xff]  ;;  %v1411_v13 = vld [vmem:[%s2097_s1 + $0x58] sm:$0xff]  ;;  %v1410_v16 = vld [vmem:[%s2097_s1 + $0x50] sm:$0xff] }
   0x6   :  { %599 = vmatpush.bf16.msra.mxu0 %v1406_v3  ;;  %1520 = vmatpush.bf16.msra.mxu3 %v1406_v3  ;;  %v1615_v11 = vld [vmem:[%s2097_s1 + $0xa0] sm:$0xff]  ;;  %v1627_v14 = vld [vmem:[%s2097_s1 + $0x98] sm:$0xff]  ;;  %v1639_v17 = vld [vmem:[%s2097_s1 + $0x90] sm:$0xff] }
   0x7   :  { %688 = vmatpush.bf16.msra.mxu1 %v1585_v4  ;;  %v1401_v18 = vld [vmem:[%s2097_s1 + $0x8] sm:$0xff]  ;;  %v1400_v21 = vld [vmem:[%s2097_s1] sm:$0xff]  ;;  %v1068_v29 = vld [vmem:[%s2098_s0 + $0xc] sm:$0xf0] }
   0x8   :  { %777 = vmatpush.bf16.msra.mxu2 %v1590_v5  ;;  %v1409_v19 = vld [vmem:[%s2097_s1 + $0x48] sm:$0xff]  ;;  %v1408_v22 = vld [vmem:[%s2097_s1 + $0x40] sm:$0xff]  ;;  %v1354_v31 = vld [vmem:[%s2098_s0 + $0x10] sm:$0xf0] }
   0x9   :  { %v1651_v20 = vld [vmem:[%s2097_s1 + $0x88] sm:$0xff]  ;;  %v1662_v23 = vld [vmem:[%s2097_s1 + $0x80] sm:$0xff]  ;;  %v1078_v36 = vld [vmem:[%s2098_s0 + $0x18] sm:$0xf] }
   0xa   :  { %600 = vmatpush.bf16.msra.mxu0 %v1405_v6  ;;  %1521 = vmatpush.bf16.msra.mxu3 %v1405_v6  ;;  %v1066_v24 = vld [vmem:[%s2098_s0] sm:$0xf]  ;;  %v1353_v25 = vld [vmem:[%s2098_s0 + $0x8] sm:$0xf0]  ;;  %v1352_v28 = vld [vmem:[%s2098_s0 + $0x4] sm:$0xf] }
   0xb   :  { %689 = vmatpush.bf16.msra.mxu1 %v1413_v7  ;;  %v1210_v26 = vld [vmem:[%s2098_s0 + $0x120] sm:$0xf]  ;;  %v1389_v27 = vld [vmem:[%s2098_s0 + $0x128] sm:$0xf0]  ;;  %v1074_v30 = vld [vmem:[%s2098_s0 + $0x8] sm:$0xf]  ;;  %v1067_v32 = vor.u32 %v1353_v25, %v1066_v24  ;;  %v1071_v34 = vor.u32 %v1352_v28, %v1068_v29 }
   0xc   :  { %778 = vmatpush.bf16.msra.mxu2 %v1603_v8  ;;  %v1211_v33 = vor.u32 %v1389_v27, %v1210_v26  ;;  %v1075_v35 = vor.u32 %v1354_v31, %v1074_v30  ;;  %v1356_v37 = vld [vmem:[%s2098_s0 + $0x20] sm:$0xf0]  ;;  %v1222_v38 = vld [vmem:[%s2098_s0 + $0x138] sm:$0xf]  ;;  %v1355_v40 = vld [vmem:[%s2098_s0 + $0x1c] sm:$0xf] }
   0xd   :  { %v1392_v39 = vld [vmem:[%s2098_s0 + $0x140] sm:$0xf0]  ;;  %v1080_v41 = vld [vmem:[%s2098_s0 + $0x24] sm:$0xf0]  ;;  %v1086_v42 = vld [vmem:[%s2098_s0 + $0x20] sm:$0xf]  ;;  %v1079_v44 = vor.u32 %v1356_v37, %v1078_v36 }
   0xe   :  { %601 = vmatpush.bf16.msra.mxu0 %v1404_v9  ;;  %1522 = vmatpush.bf16.msra.mxu3 %v1404_v9  ;;  %v1357_v43 = vld [vmem:[%s2098_s0 + $0x28] sm:$0xf0]  ;;  %v1223_v45 = vor.u32 %v1392_v39, %v1222_v38  ;;  %v1083_v46 = vor.u32 %v1355_v40, %v1080_v41  ;;  %v1090_v48 = vld [vmem:[%s2098_s0 + $0x30] sm:$0xf]  ;;  %v1359_v49 = vld [vmem:[%s2098_s0 + $0x38] sm:$0xf0] }
   0xf   :  { %690 = vmatpush.bf16.msra.mxu1 %v1412_v10  ;;  %v1087_v47 = vor.u32 %v1357_v43, %v1086_v42  ;;  %v1234_v50 = vld [vmem:[%s2098_s0 + $0x150] sm:$0xf]  ;;  %v1395_v51 = vld [vmem:[%s2098_s0 + $0x158] sm:$0xf0]  ;;  %v1358_v52 = vld [vmem:[%s2098_s0 + $0x34] sm:$0xf]  ;;  %v1091_v56 = vor.u32 %v1359_v49, %v1090_v48 }
  0x10   :  { %779 = vmatpush.bf16.msra.mxu2 %v1615_v11  ;;  %v1092_v53 = vld [vmem:[%s2098_s0 + $0x3c] sm:$0xf0]  ;;  %v1098_v54 = vld [vmem:[%s2098_s0 + $0x38] sm:$0xf]  ;;  %v1360_v55 = vld [vmem:[%s2098_s0 + $0x40] sm:$0xf0]  ;;  %v1235_v57 = vor.u32 %v1395_v51, %v1234_v50 }
  0x11   :  { %v1095_v58 = vor.u32 %v1358_v52, %v1092_v53  ;;  %v1099_v59 = vor.u32 %v1360_v55, %v1098_v54  ;;  %v1102_v60 = vld [vmem:[%s2098_s0 + $0x48] sm:$0xf]  ;;  %v1362_v61 = vld [vmem:[%s2098_s0 + $0x50] sm:$0xf0]  ;;  %v1361_v0 = vld [vmem:[%s2098_s0 + $0x4c] sm:$0xf] }
  0x12   :  { %602 = vmatpush.bf16.msra.mxu0 %v1403_v12  ;;  %1523 = vmatpush.bf16.msra.mxu3 %v1403_v12  ;;  %v1246_v62 = vld [vmem:[%s2098_s0 + $0x168] sm:$0xf]  ;;  %v1398_v63 = vld [vmem:[%s2098_s0 + $0x170] sm:$0xf0]  ;;  %v1363_v3 = vld [vmem:[%s2098_s0 + $0x58] sm:$0xf0] }
  0x13   :  { %691 = vmatpush.bf16.msra.mxu1 %v1411_v13  ;;  %v1365_v9 = vld [vmem:[%s2098_s0 + $0x68] sm:$0xf0]  ;;  %v1212_v12 = vld [vmem:[%s2098_s0 + $0x12c] sm:$0xf0]  ;;  %v1224_v24 = vld [vmem:[%s2098_s0 + $0x144] sm:$0xf0] }
  0x14   :  { %780 = vmatpush.bf16.msra.mxu2 %v1627_v14  ;;  %v1128_v25 = vld [vmem:[%s2098_s0 + $0x84] sm:$0xf0]  ;;  %v1134_v26 = vld [vmem:[%s2098_s0 + $0x80] sm:$0xf]  ;;  %v1369_v27 = vld [vmem:[%s2098_s0 + $0x88] sm:$0xf0] }
  0x15   :  { %v1135_v31 = vor.u32 %v1369_v27, %v1134_v26  ;;  %v1236_v36 = vld [vmem:[%s2098_s0 + $0x15c] sm:$0xf0]  ;;  %v1146_v38 = vld [vmem:[%s2098_s0 + $0x98] sm:$0xf]  ;;  %v1372_v39 = vld [vmem:[%s2098_s0 + $0xa0] sm:$0xf0] }
  0x16   :  { %603 = vmatpush.bf16.msra.mxu0 %v1402_v15  ;;  %1524 = vmatpush.bf16.msra.mxu3 %v1402_v15  ;;  %v1366_v15 = vld [vmem:[%s2098_s0 + $0x70] sm:$0xf0]  ;;  %v1140_v37 = vld [vmem:[%s2098_s0 + $0x9c] sm:$0xf0]  ;;  %v1147_v43 = vor.u32 %v1372_v39, %v1146_v38  ;;  %v1248_v48 = vld [vmem:[%s2098_s0 + $0x174] sm:$0xf0] }
  0x17   :  { %692 = vmatpush.bf16.msra.mxu1 %v1410_v16  ;;  %v1152_v49 = vld [vmem:[%s2098_s0 + $0xb4] sm:$0xf0]  ;;  %v1158_v50 = vld [vmem:[%s2098_s0 + $0xb0] sm:$0xf]  ;;  %v1375_v51 = vld [vmem:[%s2098_s0 + $0xb8] sm:$0xf0] }
  0x18   :  { %781 = vmatpush.bf16.msra.mxu2 %v1639_v17  ;;  %v1159_v55 = vor.u32 %v1375_v51, %v1158_v50 }
  0x1a   :  { %604 = vmatpush.bf16.msra.mxu0 %v1401_v18  ;;  %1525 = vmatpush.bf16.msra.mxu3 %v1401_v18 }
  0x1b   :  { %693 = vmatpush.bf16.msra.mxu1 %v1409_v19 }
  0x1c   :  { %782 = vmatpush.bf16.msra.mxu2 %v1651_v20 }
  0x1e   :  { %605 = vmatpush.bf16.msra.mxu0 %v1400_v21  ;;  %1526 = vmatpush.bf16.msra.mxu3 %v1400_v21  ;;  %v1368_v21 = vld [vmem:[%s2098_s0 + $0x80] sm:$0xf0] }
  0x1f   :  { %694 = vmatpush.bf16.msra.mxu1 %v1408_v22 }
  0x20   :  { %783 = vmatpush.bf16.msra.mxu2 %v1662_v23 }
  0x21   :  { %606 = vmatmul.bf16.vlgmr.msra.gmra.mxu0 %v1067_v32  ;;  %666 = vmatmul.bf16.vlgmr.msra.gmra.mxu3 %v1211_v33  ;;  %v1138_v32 = vld [vmem:[%s2098_s0 + $0x90] sm:$0xf]  ;;  %v1371_v33 = vld [vmem:[%s2098_s0 + $0x98] sm:$0xf0] }
  0x22   :  { %1527 = vmatpush.bf16.msrb.mxu3 %v1570_v1  ;;  %695 = vmatmul.bf16.vlgmr.msra.gmra.mxu1 %v1071_v34  ;;  %v1104_v1 = vld [vmem:[%s2098_s0 + $0x54] sm:$0xf0]  ;;  %v1370_v34 = vld [vmem:[%s2098_s0 + $0x94] sm:$0xf]  ;;  %v1139_v40 = vor.u32 %v1371_v33, %v1138_v32 }
  0x23   :  { %784 = vmatmul.bf16.vlgmr.msra.gmra.mxu2 %v1075_v35  ;;  %v1107_v6 = vor.u32 %v1361_v0, %v1104_v1  ;;  %v1394_v35 = vld [vmem:[%s2098_s0 + $0x154] sm:$0xf]  ;;  %v1143_v42 = vor.u32 %v1370_v34, %v1140_v37 }
  0x24   :  { %v1239_v41 = vor.u32 %v1394_v35, %v1236_v36 }
  0x26   :  { %1528 = vmatpush.bf16.msrb.mxu3 %v1585_v4  ;;  %v1103_v4 = vor.u32 %v1362_v61, %v1102_v60  ;;  %v1390_v60 = vld [vmem:[%s2098_s0 + $0x130] sm:$0xf0]  ;;  %v1164_v61 = vld [vmem:[%s2098_s0 + $0xcc] sm:$0xf0] }
  0x2a   :  { %1529 = vmatpush.bf16.msrb.mxu3 %v1413_v7 }
  0x2e   :  { %1530 = vmatpush.bf16.msrb.mxu3 %v1412_v10  ;;  %v1364_v10 = vld [vmem:[%s2098_s0 + $0x64] sm:$0xf] }
  0x31   :  { %611 = vmatmul.bf16.gmra.mxu0 %v1079_v44  ;;  %671 = vmatmul.bf16.gmra.mxu3 %v1223_v45  ;;  %v1150_v44 = vld [vmem:[%s2098_s0 + $0xa8] sm:$0xf]  ;;  %v1374_v45 = vld [vmem:[%s2098_s0 + $0xb0] sm:$0xf0] }
  0x32   :  { %1531 = vmatpush.bf16.msrb.mxu3 %v1411_v13  ;;  %700 = vmatmul.bf16.gmra.mxu1 %v1083_v46  ;;  %v1116_v13 = vld [vmem:[%s2098_s0 + $0x6c] sm:$0xf0]  ;;  %v1373_v46 = vld [vmem:[%s2098_s0 + $0xac] sm:$0xf]  ;;  %v1151_v52 = vor.u32 %v1374_v45, %v1150_v44  ;;  %v1382_v44 = vld [vmem:[%s2098_s0 + $0xf4] sm:$0xf] }
  0x33   :  { %789 = vmatmul.bf16.gmra.mxu2 %v1087_v47  ;;  %v1119_v18 = vor.u32 %v1364_v10, %v1116_v13  ;;  %v1397_v47 = vld [vmem:[%s2098_s0 + $0x16c] sm:$0xf]  ;;  %v1155_v54 = vor.u32 %v1373_v46, %v1152_v49  ;;  %v1380_v13 = vld [vmem:[%s2098_s0 + $0xe0] sm:$0xf0]  ;;  %v1242_v45 = vld [vmem:[%s2098_s0 + $0x158] sm:$0xf] }
  0x34   :  { %v1251_v53 = vor.u32 %v1397_v47, %v1248_v48  ;;  %v1396_v46 = vld [vmem:[%s2098_s0 + $0x160] sm:$0xf0]  ;;  %v1188_v47 = vld [vmem:[%s2098_s0 + $0xfc] sm:$0xf0]  ;;  %v1194_v48 = vld [vmem:[%s2098_s0 + $0xf8] sm:$0xf] }
  0x35   :  { %v1384_v49 = vld [vmem:[%s2098_s0 + $0x100] sm:$0xf0] }
  0x36   :  { %1532 = vmatpush.bf16.msrb.mxu3 %v1410_v16 }
  0x3a   :  { %1533 = vmatpush.bf16.msrb.mxu3 %v1409_v19 }
  0x3e   :  { %1534 = vmatpush.bf16.msrb.mxu3 %v1408_v22  ;;  %v1367_v22 = vld [vmem:[%s2098_s0 + $0x7c] sm:$0xf] }
  0x3f   :  { %v1131_v30 = vor.u32 %v1367_v22, %v1128_v25 }
  0x41   :  { %616 = vmatmul.bf16.gmra.mxu0 %v1091_v56  ;;  %676 = vmatmul.bf16.gmra.mxu3 %v1235_v57  ;;  %v1162_v56 = vld [vmem:[%s2098_s0 + $0xc0] sm:$0xf]  ;;  %v1377_v57 = vld [vmem:[%s2098_s0 + $0xc8] sm:$0xf0] }
  0x42   :  { %1535 = vmatpush.bf16.msra.mxu3 %v1575_v2  ;;  %705 = vmatmul.bf16.gmra.mxu1 %v1095_v58  ;;  %v1110_v2 = vld [vmem:[%s2098_s0 + $0x50] sm:$0xf]  ;;  %v1376_v58 = vld [vmem:[%s2098_s0 + $0xc4] sm:$0xf]  ;;  %v1163_v0 = vor.u32 %v1377_v57, %v1162_v56 }
  0x43   :  { %794 = vmatmul.bf16.gmra.mxu2 %v1099_v59  ;;  %v1111_v7 = vor.u32 %v1363_v3, %v1110_v2  ;;  %v1218_v59 = vld [vmem:[%s2098_s0 + $0x128] sm:$0xf]  ;;  %v1167_v3 = vor.u32 %v1376_v58, %v1164_v61  ;;  %v1191_v58 = vor.u32 %v1382_v44, %v1188_v47 }
  0x44   :  { %v1219_v1 = vor.u32 %v1390_v60, %v1218_v59  ;;  %v1195_v59 = vor.u32 %v1384_v49, %v1194_v48 }
  0x46   :  { %1536 = vmatpush.bf16.msra.mxu3 %v1590_v5  ;;  %v1247_v5 = vor.u32 %v1398_v63, %v1246_v62  ;;  %v1170_v62 = vld [vmem:[%s2098_s0 + $0xc8] sm:$0xf]  ;;  %v1378_v63 = vld [vmem:[%s2098_s0 + $0xd0] sm:$0xf0] }
  0x4a   :  { %1537 = vmatpush.bf16.msra.mxu3 %v1603_v8  ;;  %v1114_v8 = vld [vmem:[%s2098_s0 + $0x60] sm:$0xf] }
  0x4b   :  { %v1115_v16 = vor.u32 %v1365_v9, %v1114_v8 }
  0x4e   :  { %1538 = vmatpush.bf16.msra.mxu3 %v1615_v11  ;;  %v1388_v11 = vld [vmem:[%s2098_s0 + $0x124] sm:$0xf] }
  0x51   :  { %621 = vmatmul.bf16.gmra.mxu0 %v1103_v4  ;;  %681 = vmatmul.bf16.gmra.mxu3 %v1247_v5  ;;  %v1171_v4 = vor.u32 %v1378_v63, %v1170_v62 }
  0x52   :  { %1539 = vmatpush.bf16.msra.mxu3 %v1627_v14  ;;  %710 = vmatmul.bf16.gmra.mxu1 %v1107_v6  ;;  %v1122_v14 = vld [vmem:[%s2098_s0 + $0x68] sm:$0xf] }
  0x53   :  { %799 = vmatmul.bf16.gmra.mxu2 %v1111_v7  ;;  %v1123_v19 = vor.u32 %v1366_v15, %v1122_v14  ;;  %v1379_v15 = vld [vmem:[%s2098_s0 + $0xdc] sm:$0xf] }
  0x56   :  { %1540 = vmatpush.bf16.msra.mxu3 %v1639_v17  ;;  %v1215_v17 = vor.u32 %v1388_v11, %v1212_v12  ;;  %v1897_v11 = vld [vmem:[%s2099_s2] ss:$0 sm:$0xff]  ;;  %v1174_v12 = vld [vmem:[%s2098_s0 + $0xd8] sm:$0xf] }
  0x5a   :  { %1541 = vmatpush.bf16.msra.mxu3 %v1651_v20  ;;  %v1126_v20 = vld [vmem:[%s2098_s0 + $0x78] sm:$0xf] }
  0x5b   :  { %v1127_v28 = vor.u32 %v1368_v21, %v1126_v20  ;;  %v1381_v20 = vld [vmem:[%s2098_s0 + $0xe8] sm:$0xf0] }
  0x5e   :  { %1542 = vmatpush.bf16.msra.mxu3 %v1662_v23  ;;  %v1391_v23 = vld [vmem:[%s2098_s0 + $0x13c] sm:$0xf] }
  0x5f   :  { %v1227_v29 = vor.u32 %v1391_v23, %v1224_v24  ;;  %v1175_v24 = vor.u32 %v1380_v13, %v1174_v12  ;;  %v1254_v12 = vld [vmem:[%s2098_s0 + $0x170] sm:$0xf]  ;;  %v1399_v13 = vld [vmem:[%s2098_s0 + $0x178] sm:$0xf0] }
  0x61   :  { %626 = vmatmul.bf16.gmra.mxu0 %v1115_v16  ;;  %755 = vmatmul.bf16.vlgmr.msrb.gmra.mxu3 %v1215_v17  ;;  %v1230_v16 = vld [vmem:[%s2098_s0 + $0x140] sm:$0xf]  ;;  %v1393_v17 = vld [vmem:[%s2098_s0 + $0x148] sm:$0xf0] }
  0x62   :  { %715 = vmatmul.bf16.gmra.mxu1 %v1119_v18  ;;  %v1176_v18 = vld [vmem:[%s2098_s0 + $0xe4] sm:$0xf0]  ;;  %v1231_v25 = vor.u32 %v1393_v17, %v1230_v16  ;;  %v1387_v16 = vld [vmem:[%s2098_s0 + $0x118] sm:$0xf0] }
  0x63   :  { %804 = vmatmul.bf16.gmra.mxu2 %v1123_v19  ;;  %v1182_v19 = vld [vmem:[%s2098_s0 + $0xe0] sm:$0xf] }
  0x71   :  { %631 = vmatmul.bf16.gmra.mxu0 %v1127_v28  ;;  %760 = vmatmul.bf16.gmra.mxu3 %v1227_v29  ;;  %v1179_v29 = vor.u32 %v1379_v15, %v1176_v18  ;;  %v1206_v15 = vld [vmem:[%s2098_s0 + $0x110] sm:$0xf] }
  0x72   :  { %720 = vmatmul.bf16.gmra.mxu1 %v1131_v30  ;;  %v1183_v30 = vor.u32 %v1381_v20, %v1182_v19 }
  0x73   :  { %809 = vmatmul.bf16.gmra.mxu2 %v1135_v31 }
  0x81   :  { %636 = vmatmul.bf16.gmra.mxu0 %v1139_v40  ;;  %765 = vmatmul.bf16.gmra.mxu3 %v1239_v41  ;;  %v1186_v41 = vld [vmem:[%s2098_s0 + $0xf0] sm:$0xf] }
  0x82   :  { %725 = vmatmul.bf16.gmra.mxu1 %v1143_v42  ;;  %v1383_v42 = vld [vmem:[%s2098_s0 + $0xf8] sm:$0xf0] }
  0x83   :  { %814 = vmatmul.bf16.gmra.mxu2 %v1147_v43 }
  0x91   :  { %641 = vmatmul.bf16.gmra.mxu0 %v1151_v52  ;;  %770 = vmatmul.bf16.gmra.mxu3 %v1251_v53  ;;  %v1187_v53 = vor.u32 %v1383_v42, %v1186_v41 }
  0x92   :  { %730 = vmatmul.bf16.gmra.mxu1 %v1155_v54  ;;  %v1243_v54 = vor.u32 %v1396_v46, %v1242_v45 }
  0x93   :  { %819 = vmatmul.bf16.gmra.mxu2 %v1159_v55 }
  0x9e   :  { %v607_v2 = vpop.f32.mrf.mxu0 }
  0x9f   :  { %v696_v5 = vpop.f32.mrf.mxu1 }
  0xa0   :  { %v697_v8 = vadd.f32 %v696_v5, %v607_v2 }
  0xa1   :  { %646 = vmatmul.bf16.gmra.mxu0 %v1163_v0  ;;  %844 = vmatmul.bf16.vlgmr.msra.gmra.mxu3 %v1219_v1 }
  0xa2   :  { %735 = vmatmul.bf16.gmra.mxu1 %v1167_v3 }
  0xa3   :  { %824 = vmatmul.bf16.gmra.mxu2 %v1171_v4 }
  0xa4   :  { %v1892_v6 = vpop.f32.mrf.mxu3 }
  0xa6   :  { %v785_v7 = vpop.f32.mrf.mxu2  ;;  %v609_v9 = vpop.f32.mrf.mxu0 }
  0xa7   :  { %v698_v10 = vpop.f32.mrf.mxu1  ;;  %v786_v14 = vadd.f32 %v785_v7, %v697_v8  ;;  %v1198_v7 = vld [vmem:[%s2098_s0 + $0x108] sm:$0xf]  ;;  %v1386_v8 = vld [vmem:[%s2098_s0 + $0x110] sm:$0xf0] }
  0xa8   :  { %v699_v21 = vadd.f32 %v698_v10, %v609_v9  ;;  %v1385_v10 = vld [vmem:[%s2098_s0 + $0x10c] sm:$0xf]  ;;  %v1199_v20 = vor.u32 %v1386_v8, %v1198_v7 }
  0xa9   :  { %v865_v26 = vadd.f32 %v1897_v11, %v786_v14  ;;  %v1200_v14 = vld [vmem:[%s2098_s0 + $0x114] sm:$0xf0] }
  0xab   :  { %v964_v33 = vmax.f32 %v865_v26, 0.0  ;;  %v1203_v26 = vor.u32 %v1385_v10, %v1200_v14 }
  0xac   :  { %v1923_v22 = vpop.f32.mrf.mxu3 }
  0xae   :  { %v787_v23 = vpop.f32.mrf.mxu2  ;;  %v612_v28 = vpop.f32.mrf.mxu0 }
  0xaf   :  { %v788_v27 = vadd.f32 %v787_v23, %v699_v21  ;;  %v701_v31 = vpop.f32.mrf.mxu1  ;;  %v1255_v21 = vor.u32 %v1399_v13, %v1254_v12 }
  0xb0   :  { %v702_v38 = vadd.f32 %v701_v31, %v612_v28 }
  0xb1   :  { %v866_v32 = vadd.f32 %v1897_v11, %v788_v27  ;;  %651 = vmatmul.bf16.gmra.mxu0 %v1175_v24  ;;  %849 = vmatmul.bf16.gmra.mxu3 %v1231_v25  ;;  %v1207_v27 = vor.u32 %v1387_v16, %v1206_v15 }
  0xb2   :  { %740 = vmatmul.bf16.gmra.mxu1 %v1179_v29 }
  0xb3   :  { %v965_v34 = vmax.f32 %v866_v32, 0.0  ;;  %829 = vmatmul.bf16.gmra.mxu2 %v1183_v30 }
  0xb4   :  { %v1927_v36 = vpop.f32.mrf.mxu3 }
  0xb5   :  { %v1427_v35 = vpack.c.bf16 %v965_v34, %v964_v33 }
  0xb6   :  { %v790_v37 = vpop.f32.mrf.mxu2  ;;  %v614_v39 = vpop.f32.mrf.mxu0 }
  0xb7   :  { %1428 = vst [vmem:[%s2100_s3] sm:$0xff] %v1427_v35   ;;  %v703_v40 = vpop.f32.mrf.mxu1  ;;  %v791_v43 = vadd.f32 %v790_v37, %v702_v38 }
  0xb8   :  { %v704_v50 = vadd.f32 %v703_v40, %v614_v39 }
  0xb9   :  { %v867_v55 = vadd.f32 %v1897_v11, %v791_v43 }
  0xbb   :  { %v966_v62 = vmax.f32 %v867_v55, 0.0 }
  0xbc   :  { %v1956_v51 = vpop.f32.mrf.mxu3 }
  0xbe   :  { %v792_v52 = vpop.f32.mrf.mxu2  ;;  %v617_v57 = vpop.f32.mrf.mxu0 }
  0xbf   :  { %v793_v56 = vadd.f32 %v792_v52, %v704_v50  ;;  %v706_v60 = vpop.f32.mrf.mxu1 }
  0xc0   :  { %v707_v3 = vadd.f32 %v706_v60, %v617_v57 }
  0xc1   :  { %v868_v61 = vadd.f32 %v1897_v11, %v793_v56  ;;  %656 = vmatmul.bf16.gmra.mxu0 %v1187_v53  ;;  %854 = vmatmul.bf16.gmra.mxu3 %v1243_v54 }
  0xc2   :  { %745 = vmatmul.bf16.gmra.mxu1 %v1191_v58 }
  0xc3   :  { %v967_v63 = vmax.f32 %v868_v61, 0.0  ;;  %834 = vmatmul.bf16.gmra.mxu2 %v1195_v59 }
  0xc4   :  { %v1960_v1 = vpop.f32.mrf.mxu3 }
  0xc5   :  { %v1432_v0 = vpack.c.bf16 %v967_v63, %v966_v62 }
  0xc6   :  { %v795_v2 = vpop.f32.mrf.mxu2  ;;  %v619_v4 = vpop.f32.mrf.mxu0 }
  0xc7   :  { %1504 = vst [vmem:[%s2100_s3 + $0x8] sm:$0xff] %v1432_v0   ;;  %v708_v5 = vpop.f32.mrf.mxu1  ;;  %v796_v9 = vadd.f32 %v795_v2, %v707_v3 }
  0xc8   :  { %v709_v17 = vadd.f32 %v708_v5, %v619_v4 }
  0xc9   :  { %v869_v23 = vadd.f32 %v1897_v11, %v796_v9 }
  0xcb   :  { %v968_v30 = vmax.f32 %v869_v23, 0.0 }
  0xcc   :  { %v1989_v18 = vpop.f32.mrf.mxu3 }
  0xce   :  { %v797_v19 = vpop.f32.mrf.mxu2  ;;  %v622_v25 = vpop.f32.mrf.mxu0 }
  0xcf   :  { %v798_v24 = vadd.f32 %v797_v19, %v709_v17  ;;  %v711_v28 = vpop.f32.mrf.mxu1 }
  0xd0   :  { %v712_v35 = vadd.f32 %v711_v28, %v622_v25 }
  0xd1   :  { %v870_v29 = vadd.f32 %v1897_v11, %v798_v24  ;;  %661 = vmatmul.bf16.gmra.mxu0 %v1199_v20  ;;  %859 = vmatmul.bf16.gmra.mxu3 %v1255_v21 }
  0xd2   :  { %750 = vmatmul.bf16.gmra.mxu1 %v1203_v26 }
  0xd3   :  { %v969_v31 = vmax.f32 %v870_v29, 0.0  ;;  %839 = vmatmul.bf16.gmra.mxu2 %v1207_v27 }
  0xd4   :  { %v1993_v33 = vpop.f32.mrf.mxu3 }
  0xd5   :  { %v1437_v32 = vpack.c.bf16 %v969_v31, %v968_v30 }
  0xd6   :  { %v800_v34 = vpop.f32.mrf.mxu2  ;;  %v624_v37 = vpop.f32.mrf.mxu0 }
  0xd7   :  { %1505 = vst [vmem:[%s2100_s3 + $0x10] sm:$0xff] %v1437_v32   ;;  %v713_v38 = vpop.f32.mrf.mxu1  ;;  %v801_v39 = vadd.f32 %v800_v34, %v712_v35 }
  0xd8   :  { %v714_v40 = vadd.f32 %v713_v38, %v624_v37 }
  0xd9   :  { %v871_v43 = vadd.f32 %v1897_v11, %v801_v39 }
  0xdb   :  { %v970_v48 = vmax.f32 %v871_v43, 0.0 }
  0xdc   :  { %v1998_v41 = vpop.f32.mrf.mxu3 }
  0xde   :  { %v802_v42 = vpop.f32.mrf.mxu2  ;;  %v627_v45 = vpop.f32.mrf.mxu0 }
  0xdf   :  { %v803_v44 = vadd.f32 %v802_v42, %v714_v40  ;;  %v716_v46 = vpop.f32.mrf.mxu1 }
  0xe0   :  { %v717_v55 = vadd.f32 %v716_v46, %v627_v45 }
  0xe1   :  { %v872_v47 = vadd.f32 %v1897_v11, %v803_v44 }
  0xe3   :  { %v971_v49 = vmax.f32 %v872_v47, 0.0 }
  0xe4   :  { %v756_v52 = vpop.f32.mrf.mxu3 }
  0xe5   :  { %v1442_v50 = vpack.c.bf16 %v971_v49, %v970_v48  ;;  %v2003_v53 = vadd.f32 %v756_v52, %v1892_v6 }
  0xe6   :  { %v805_v54 = vpop.f32.mrf.mxu2  ;;  %v629_v56 = vpop.f32.mrf.mxu0 }
  0xe7   :  { %1506 = vst [vmem:[%s2100_s3 + $0x18] sm:$0xff] %v1442_v50   ;;  %v718_v57 = vpop.f32.mrf.mxu1  ;;  %v806_v58 = vadd.f32 %v805_v54, %v717_v55 }
  0xe8   :  { %v719_v59 = vadd.f32 %v718_v57, %v629_v56 }
  0xe9   :  { %v873_v62 = vadd.f32 %v1897_v11, %v806_v58 }
  0xeb   :  { %v972_v3 = vmax.f32 %v873_v62, 0.0 }
  0xec   :  { %v2008_v60 = vpop.f32.mrf.mxu3 }
  0xee   :  { %v807_v61 = vpop.f32.mrf.mxu2  ;;  %v632_v0 = vpop.f32.mrf.mxu0 }
  0xef   :  { %v808_v63 = vadd.f32 %v807_v61, %v719_v59  ;;  %v721_v2 = vpop.f32.mrf.mxu1 }
  0xf0   :  { %v722_v10 = vadd.f32 %v721_v2, %v632_v0 }
  0xf1   :  { %v874_v6 = vadd.f32 %v1897_v11, %v808_v63 }
  0xf3   :  { %v973_v4 = vmax.f32 %v874_v6, 0.0 }
  0xf4   :  { %v761_v7 = vpop.f32.mrf.mxu3 }
  0xf5   :  { %v1447_v5 = vpack.c.bf16 %v973_v4, %v972_v3  ;;  %v2013_v8 = vadd.f32 %v761_v7, %v1927_v36 }
  0xf6   :  { %v810_v9 = vpop.f32.mrf.mxu2  ;;  %v634_v12 = vpop.f32.mrf.mxu0 }
  0xf7   :  { %1507 = vst [vmem:[%s2100_s3 + $0x20] sm:$0xff] %v1447_v5   ;;  %v723_v13 = vpop.f32.mrf.mxu1  ;;  %v811_v14 = vadd.f32 %v810_v9, %v722_v10 }
  0xf8   :  { %v724_v15 = vadd.f32 %v723_v13, %v634_v12  ;;  %v759_v13 = vadd.f32 %v2008_v60, %v1923_v22 }
  0xf9   :  { %v875_v19 = vadd.f32 %v1897_v11, %v811_v14 }
  0xfb   :  { %v974_v24 = vmax.f32 %v875_v19, 0.0 }
  0xfc   :  { %v2018_v16 = vpop.f32.mrf.mxu3 }
  0xfe   :  { %v812_v17 = vpop.f32.mrf.mxu2  ;;  %v637_v21 = vpop.f32.mrf.mxu0 }
  0xff   :  { %v813_v20 = vadd.f32 %v812_v17, %v724_v15  ;;  %v726_v23 = vpop.f32.mrf.mxu1 }
 0x100   :  { %v727_v30 = vadd.f32 %v726_v23, %v637_v21 }
 0x101   :  { %v876_v36 = vadd.f32 %v1897_v11, %v813_v20 }
 0x103   :  { %v975_v25 = vmax.f32 %v876_v36, 0.0 }
 0x104   :  { %v766_v27 = vpop.f32.mrf.mxu3 }
 0x105   :  { %v1452_v26 = vpack.c.bf16 %v975_v25, %v974_v24  ;;  %v2023_v28 = vadd.f32 %v766_v27, %v1960_v1 }
 0x106   :  { %v815_v29 = vpop.f32.mrf.mxu2  ;;  %v639_v31 = vpop.f32.mrf.mxu0 }
 0x107   :  { %1508 = vst [vmem:[%s2100_s3 + $0x28] sm:$0xff] %v1452_v26   ;;  %v728_v32 = vpop.f32.mrf.mxu1  ;;  %v816_v34 = vadd.f32 %v815_v29, %v727_v30 }
 0x108   :  { %v729_v35 = vadd.f32 %v728_v32, %v639_v31 }
 0x109   :  { %v877_v39 = vadd.f32 %v1897_v11, %v816_v34 }
 0x10b   :  { %v976_v44 = vmax.f32 %v877_v39, 0.0 }
 0x10c   :  { %v2028_v37 = vpop.f32.mrf.mxu3 }
 0x10e   :  { %v817_v38 = vpop.f32.mrf.mxu2  ;;  %v642_v42 = vpop.f32.mrf.mxu0 }
 0x10f   :  { %v818_v40 = vadd.f32 %v817_v38, %v729_v35  ;;  %v731_v43 = vpop.f32.mrf.mxu1 }
 0x110   :  { %v732_v50 = vadd.f32 %v731_v43, %v642_v42  ;;  %v764_v42 = vadd.f32 %v2018_v16, %v1956_v51 }
 0x111   :  { %v878_v1 = vadd.f32 %v1897_v11, %v818_v40 }
 0x113   :  { %v977_v45 = vmax.f32 %v878_v1, 0.0 }
 0x114   :  { %v771_v47 = vpop.f32.mrf.mxu3 }
 0x115   :  { %v1457_v46 = vpack.c.bf16 %v977_v45, %v976_v44  ;;  %v2033_v48 = vadd.f32 %v771_v47, %v1993_v33 }
 0x116   :  { %v820_v49 = vpop.f32.mrf.mxu2  ;;  %v644_v52 = vpop.f32.mrf.mxu0 }
 0x117   :  { %1509 = vst [vmem:[%s2100_s3 + $0x30] sm:$0xff] %v1457_v46   ;;  %v733_v54 = vpop.f32.mrf.mxu1  ;;  %v821_v55 = vadd.f32 %v820_v49, %v732_v50 }
 0x118   :  { %v734_v56 = vadd.f32 %v733_v54, %v644_v52 }
 0x119   :  { %v879_v59 = vadd.f32 %v1897_v11, %v821_v55 }
 0x11b   :  { %v978_v0 = vmax.f32 %v879_v59, 0.0 }
 0x11c   :  { %v2038_v57 = vpop.f32.mrf.mxu3 }
 0x11e   :  { %v822_v58 = vpop.f32.mrf.mxu2  ;;  %v647_v62 = vpop.f32.mrf.mxu0 }
 0x11f   :  { %v823_v61 = vadd.f32 %v822_v58, %v734_v56  ;;  %v736_v63 = vpop.f32.mrf.mxu1 }
 0x120   :  { %v737_v5 = vadd.f32 %v736_v63, %v647_v62 }
 0x121   :  { %v880_v33 = vadd.f32 %v1897_v11, %v823_v61 }
 0x123   :  { %v979_v2 = vmax.f32 %v880_v33, 0.0 }
 0x124   :  { %v845_v3 = vpop.f32.mrf.mxu3 }
 0x125   :  { %v1462_v6 = vpack.c.bf16 %v979_v2, %v978_v0  ;;  %v846_v10 = vadd.f32 %v845_v3, %v2003_v53  ;;  %v769_v3 = vadd.f32 %v2028_v37, %v1989_v18 }
 0x126   :  { %v825_v4 = vpop.f32.mrf.mxu2  ;;  %v649_v7 = vpop.f32.mrf.mxu0 }
 0x127   :  { %1510 = vst [vmem:[%s2100_s3 + $0x38] sm:$0xff] %v1462_v6   ;;  %v738_v9 = vpop.f32.mrf.mxu1  ;;  %v826_v12 = vadd.f32 %v825_v4, %v737_v5  ;;  %v889_v17 = vadd.f32 %v1897_v11, %v846_v10 }
 0x128   :  { %v739_v14 = vadd.f32 %v738_v9, %v649_v7 }
 0x129   :  { %v881_v21 = vadd.f32 %v1897_v11, %v826_v12  ;;  %v988_v53 = vmax.f32 %v889_v17, 0.0 }
 0x12b   :  { %v980_v29 = vmax.f32 %v881_v21, 0.0 }
 0x12c   :  { %v847_v15 = vpop.f32.mrf.mxu3 }
 0x12d   :  { %v848_v20 = vadd.f32 %v847_v15, %v759_v13 }
 0x12e   :  { %v827_v19 = vpop.f32.mrf.mxu2  ;;  %v652_v36 = vpop.f32.mrf.mxu0 }
 0x12f   :  { %v828_v23 = vadd.f32 %v827_v19, %v739_v14  ;;  %v890_v24 = vadd.f32 %v1897_v11, %v848_v20  ;;  %v741_v25 = vpop.f32.mrf.mxu1 }
 0x130   :  { %v742_v34 = vadd.f32 %v741_v25, %v652_v36 }
 0x131   :  { %v882_v26 = vadd.f32 %v1897_v11, %v828_v23  ;;  %v989_v27 = vmax.f32 %v890_v24, 0.0 }
 0x133   :  { %v981_v30 = vmax.f32 %v882_v26, 0.0  ;;  %v1487_v22 = vpack.c.bf16 %v989_v27, %v988_v53 }
 0x134   :  { %v850_v31 = vpop.f32.mrf.mxu3 }
 0x135   :  { %v1467_v60 = vpack.c.bf16 %v981_v30, %v980_v29  ;;  %1515 = vst [vmem:[%s2100_s3 + $0x60] sm:$0xff] %v1487_v22   ;;  %v851_v39 = vadd.f32 %v850_v31, %v2013_v8  ;;  %v774_v30 = vadd.f32 %v2038_v57, %v1998_v41 }
 0x136   :  { %v830_v32 = vpop.f32.mrf.mxu2  ;;  %v654_v35 = vpop.f32.mrf.mxu0 }
 0x137   :  { %1511 = vst [vmem:[%s2100_s3 + $0x40] sm:$0xff] %v1467_v60   ;;  %v743_v38 = vpop.f32.mrf.mxu1  ;;  %v831_v40 = vadd.f32 %v830_v32, %v742_v34  ;;  %v891_v44 = vadd.f32 %v1897_v11, %v851_v39 }
 0x138   :  { %v744_v43 = vadd.f32 %v743_v38, %v654_v35 }
 0x139   :  { %v883_v47 = vadd.f32 %v1897_v11, %v831_v40  ;;  %v990_v8 = vmax.f32 %v891_v44, 0.0 }
 0x13b   :  { %v982_v58 = vmax.f32 %v883_v47, 0.0 }
 0x13c   :  { %v852_v1 = vpop.f32.mrf.mxu3 }
 0x13d   :  { %v853_v46 = vadd.f32 %v852_v1, %v764_v42 }
 0x13e   :  { %v832_v45 = vpop.f32.mrf.mxu2  ;;  %v657_v50 = vpop.f32.mrf.mxu0 }
 0x13f   :  { %v833_v49 = vadd.f32 %v832_v45, %v744_v43  ;;  %v892_v52 = vadd.f32 %v1897_v11, %v853_v46  ;;  %v746_v54 = vpop.f32.mrf.mxu1 }
 0x140   :  { %v747_v63 = vadd.f32 %v746_v54, %v657_v50 }
 0x141   :  { %v884_v55 = vadd.f32 %v1897_v11, %v833_v49  ;;  %v991_v56 = vmax.f32 %v892_v52, 0.0 }
 0x143   :  { %v983_v59 = vmax.f32 %v884_v55, 0.0  ;;  %v1492_v51 = vpack.c.bf16 %v991_v56, %v990_v8 }
 0x144   :  { %v855_v61 = vpop.f32.mrf.mxu3 }
 0x145   :  { %v1472_v16 = vpack.c.bf16 %v983_v59, %v982_v58  ;;  %1516 = vst [vmem:[%s2100_s3 + $0x68] sm:$0xff] %v1492_v51   ;;  %v856_v2 = vadd.f32 %v855_v61, %v2023_v28 }
 0x146   :  { %v835_v62 = vpop.f32.mrf.mxu2  ;;  %v659_v33 = vpop.f32.mrf.mxu0 }
 0x147   :  { %1512 = vst [vmem:[%s2100_s3 + $0x48] sm:$0xff] %v1472_v16   ;;  %v748_v0 = vpop.f32.mrf.mxu1  ;;  %v836_v6 = vadd.f32 %v835_v62, %v747_v63  ;;  %v893_v7 = vadd.f32 %v1897_v11, %v856_v2 }
 0x148   :  { %v749_v4 = vadd.f32 %v748_v0, %v659_v33 }
 0x149   :  { %v885_v12 = vadd.f32 %v1897_v11, %v836_v6  ;;  %v992_v28 = vmax.f32 %v893_v7, 0.0 }
 0x14b   :  { %v984_v21 = vmax.f32 %v885_v12, 0.0 }
 0x14c   :  { %v857_v5 = vpop.f32.mrf.mxu3 }
 0x14d   :  { %v858_v10 = vadd.f32 %v857_v5, %v769_v3 }
 0x14e   :  { %v837_v9 = vpop.f32.mrf.mxu2  ;;  %v662_v15 = vpop.f32.mrf.mxu0 }
 0x14f   :  { %v838_v13 = vadd.f32 %v837_v9, %v749_v4  ;;  %v894_v14 = vadd.f32 %v1897_v11, %v858_v10  ;;  %v751_v17 = vpop.f32.mrf.mxu1 }
 0x150   :  { %v752_v25 = vadd.f32 %v751_v17, %v662_v15 }
 0x151   :  { %v886_v19 = vadd.f32 %v1897_v11, %v838_v13  ;;  %v993_v20 = vmax.f32 %v894_v14, 0.0 }
 0x153   :  { %v985_v23 = vmax.f32 %v886_v19, 0.0  ;;  %v1497_v18 = vpack.c.bf16 %v993_v20, %v992_v28 }
 0x154   :  { %v860_v36 = vpop.f32.mrf.mxu3 }
 0x155   :  { %v1477_v37 = vpack.c.bf16 %v985_v23, %v984_v21  ;;  %1517 = vst [vmem:[%s2100_s3 + $0x70] sm:$0xff] %v1497_v18   ;;  %v861_v26 = vadd.f32 %v860_v36, %v2033_v48 }
 0x156   :  { %v840_v24 = vpop.f32.mrf.mxu2  ;;  %v664_v53 = vpop.f32.mrf.mxu0 }
 0x157   :  { %1513 = vst [vmem:[%s2100_s3 + $0x50] sm:$0xff] %v1477_v37   ;;  %v753_v27 = vpop.f32.mrf.mxu1  ;;  %v841_v29 = vadd.f32 %v840_v24, %v752_v25  ;;  %v895_v31 = vadd.f32 %v1897_v11, %v861_v26 }
 0x158   :  { %v754_v22 = vadd.f32 %v753_v27, %v664_v53 }
 0x159   :  { %v887_v35 = vadd.f32 %v1897_v11, %v841_v29  ;;  %v994_v48 = vmax.f32 %v895_v31, 0.0 }
 0x15b   :  { %v986_v43 = vmax.f32 %v887_v35, 0.0 }
 0x15c   :  { %v862_v60 = vpop.f32.mrf.mxu3 }
 0x15d   :  { %v863_v34 = vadd.f32 %v862_v60, %v774_v30 }
 0x15e   :  { %v842_v32 = vpop.f32.mrf.mxu2 }
 0x15f   :  { %v843_v38 = vadd.f32 %v842_v32, %v754_v22  ;;  %v896_v39 = vadd.f32 %v1897_v11, %v863_v34 }
 0x161   :  { %v888_v40 = vadd.f32 %v1897_v11, %v843_v38  ;;  %v995_v42 = vmax.f32 %v896_v39, 0.0 }
 0x163   :  { %v987_v1 = vmax.f32 %v888_v40, 0.0  ;;  %v1502_v44 = vpack.c.bf16 %v995_v42, %v994_v48 }
 0x165   :  { %v1482_v45 = vpack.c.bf16 %v987_v1, %v986_v43  ;;  %1518 = vst [vmem:[%s2100_s3 + $0x78] sm:$0xff] %v1502_v44  }
 0x167   :  { %1514 = vst [vmem:[%s2100_s3 + $0x58] sm:$0xff] %v1482_v45  }

// kernel: feature_extraction_forward.61
= control target key start
LH: loop header
LB: loop body
LE: loop exit
PB: predicated region body
PF: predicated region fallthrough
CT: control target
= control target key end

     0   :  { %s2296_s1 = inlined_call_operand.vmem [shape: bf16[384,128], index: 1, kind: input, shape index: {}]   ;;  %s2297_s0 = inlined_call_operand.vmem [shape: bf16[256,384], index: 0, kind: input, shape index: {}]   ;;  %s2298_s2 = inlined_call_operand.vmem [shape: f32[1,128], index: 2, kind: input, shape index: {}]   ;;  %s2299_s3 = inlined_call_operand.vmem [shape: bf16[256,128], index: 3, kind: input, shape index: {}]   ;;  %s2300_s4 = inlined_call_operand.vmem [shape: bf16[256,128], index: 4, kind: output, shape index: {}]  }
   0x1   :  { %v1474_v0 = vld [vmem:[%s2296_s1 + $0x38] sm:$0xff]  ;;  %v1473_v3 = vld [vmem:[%s2296_s1 + $0x30] sm:$0xff]  ;;  %v1472_v6 = vld [vmem:[%s2296_s1 + $0x28] sm:$0xff] }
   0x2   :  { %v1721_v1 = vld [vmem:[%s2296_s1 + $0x78] sm:$0xff]  ;;  %601 = vmatpush.bf16.msra.mxu0 %v1474_v0  ;;  %1665 = vmatpush.bf16.msra.mxu3 %v1474_v0  ;;  %v1736_v4 = vld [vmem:[%s2296_s1 + $0x70] sm:$0xff]  ;;  %v1480_v7 = vld [vmem:[%s2296_s1 + $0x68] sm:$0xff] }
   0x3   :  { %v1726_v2 = vld [vmem:[%s2296_s1 + $0xb8] sm:$0xff]  ;;  %690 = vmatpush.bf16.msra.mxu1 %v1721_v1  ;;  %v1741_v5 = vld [vmem:[%s2296_s1 + $0xb0] sm:$0xff]  ;;  %v1754_v8 = vld [vmem:[%s2296_s1 + $0xa8] sm:$0xff] }
   0x4   :  { %779 = vmatpush.bf16.msra.mxu2 %v1726_v2  ;;  %v1471_v9 = vld [vmem:[%s2296_s1 + $0x20] sm:$0xff]  ;;  %v1470_v12 = vld [vmem:[%s2296_s1 + $0x18] sm:$0xff]  ;;  %v1469_v15 = vld [vmem:[%s2296_s1 + $0x10] sm:$0xff] }
   0x5   :  { %v1479_v10 = vld [vmem:[%s2296_s1 + $0x60] sm:$0xff]  ;;  %v1478_v13 = vld [vmem:[%s2296_s1 + $0x58] sm:$0xff]  ;;  %v1477_v16 = vld [vmem:[%s2296_s1 + $0x50] sm:$0xff] }
   0x6   :  { %602 = vmatpush.bf16.msra.mxu0 %v1473_v3  ;;  %1666 = vmatpush.bf16.msra.mxu3 %v1473_v3  ;;  %v1766_v11 = vld [vmem:[%s2296_s1 + $0xa0] sm:$0xff]  ;;  %v1778_v14 = vld [vmem:[%s2296_s1 + $0x98] sm:$0xff]  ;;  %v1790_v17 = vld [vmem:[%s2296_s1 + $0x90] sm:$0xff] }
   0x7   :  { %691 = vmatpush.bf16.msra.mxu1 %v1736_v4  ;;  %v1468_v18 = vld [vmem:[%s2296_s1 + $0x8] sm:$0xff]  ;;  %v1467_v21 = vld [vmem:[%s2296_s1] sm:$0xff]  ;;  %v1135_v29 = vld [vmem:[%s2297_s0 + $0xc] sm:$0xf0] }
   0x8   :  { %780 = vmatpush.bf16.msra.mxu2 %v1741_v5  ;;  %v1476_v19 = vld [vmem:[%s2296_s1 + $0x48] sm:$0xff]  ;;  %v1475_v22 = vld [vmem:[%s2296_s1 + $0x40] sm:$0xff]  ;;  %v1421_v31 = vld [vmem:[%s2297_s0 + $0x10] sm:$0xf0] }
   0x9   :  { %v1802_v20 = vld [vmem:[%s2296_s1 + $0x88] sm:$0xff]  ;;  %v1813_v23 = vld [vmem:[%s2296_s1 + $0x80] sm:$0xff]  ;;  %v1145_v36 = vld [vmem:[%s2297_s0 + $0x18] sm:$0xf] }
   0xa   :  { %603 = vmatpush.bf16.msra.mxu0 %v1472_v6  ;;  %1667 = vmatpush.bf16.msra.mxu3 %v1472_v6  ;;  %v1133_v24 = vld [vmem:[%s2297_s0] sm:$0xf]  ;;  %v1420_v25 = vld [vmem:[%s2297_s0 + $0x8] sm:$0xf0]  ;;  %v1419_v28 = vld [vmem:[%s2297_s0 + $0x4] sm:$0xf] }
   0xb   :  { %692 = vmatpush.bf16.msra.mxu1 %v1480_v7  ;;  %v1277_v26 = vld [vmem:[%s2297_s0 + $0x120] sm:$0xf]  ;;  %v1456_v27 = vld [vmem:[%s2297_s0 + $0x128] sm:$0xf0]  ;;  %v1141_v30 = vld [vmem:[%s2297_s0 + $0x8] sm:$0xf]  ;;  %v1134_v32 = vor.u32 %v1420_v25, %v1133_v24  ;;  %v1138_v34 = vor.u32 %v1419_v28, %v1135_v29 }
   0xc   :  { %781 = vmatpush.bf16.msra.mxu2 %v1754_v8  ;;  %v1278_v33 = vor.u32 %v1456_v27, %v1277_v26  ;;  %v1142_v35 = vor.u32 %v1421_v31, %v1141_v30  ;;  %v1423_v37 = vld [vmem:[%s2297_s0 + $0x20] sm:$0xf0]  ;;  %v1289_v38 = vld [vmem:[%s2297_s0 + $0x138] sm:$0xf]  ;;  %v1422_v40 = vld [vmem:[%s2297_s0 + $0x1c] sm:$0xf] }
   0xd   :  { %v1459_v39 = vld [vmem:[%s2297_s0 + $0x140] sm:$0xf0]  ;;  %v1147_v41 = vld [vmem:[%s2297_s0 + $0x24] sm:$0xf0]  ;;  %v1153_v42 = vld [vmem:[%s2297_s0 + $0x20] sm:$0xf]  ;;  %v1146_v44 = vor.u32 %v1423_v37, %v1145_v36 }
   0xe   :  { %604 = vmatpush.bf16.msra.mxu0 %v1471_v9  ;;  %1668 = vmatpush.bf16.msra.mxu3 %v1471_v9  ;;  %v1424_v43 = vld [vmem:[%s2297_s0 + $0x28] sm:$0xf0]  ;;  %v1290_v45 = vor.u32 %v1459_v39, %v1289_v38  ;;  %v1150_v46 = vor.u32 %v1422_v40, %v1147_v41  ;;  %v1157_v48 = vld [vmem:[%s2297_s0 + $0x30] sm:$0xf]  ;;  %v1426_v49 = vld [vmem:[%s2297_s0 + $0x38] sm:$0xf0] }
   0xf   :  { %693 = vmatpush.bf16.msra.mxu1 %v1479_v10  ;;  %v1154_v47 = vor.u32 %v1424_v43, %v1153_v42  ;;  %v1301_v50 = vld [vmem:[%s2297_s0 + $0x150] sm:$0xf]  ;;  %v1462_v51 = vld [vmem:[%s2297_s0 + $0x158] sm:$0xf0]  ;;  %v1425_v52 = vld [vmem:[%s2297_s0 + $0x34] sm:$0xf]  ;;  %v1158_v56 = vor.u32 %v1426_v49, %v1157_v48 }
  0x10   :  { %782 = vmatpush.bf16.msra.mxu2 %v1766_v11  ;;  %v1159_v53 = vld [vmem:[%s2297_s0 + $0x3c] sm:$0xf0]  ;;  %v1165_v54 = vld [vmem:[%s2297_s0 + $0x38] sm:$0xf]  ;;  %v1427_v55 = vld [vmem:[%s2297_s0 + $0x40] sm:$0xf0]  ;;  %v1302_v57 = vor.u32 %v1462_v51, %v1301_v50 }
  0x11   :  { %v1162_v58 = vor.u32 %v1425_v52, %v1159_v53  ;;  %v1166_v59 = vor.u32 %v1427_v55, %v1165_v54  ;;  %v1169_v60 = vld [vmem:[%s2297_s0 + $0x48] sm:$0xf]  ;;  %v1429_v61 = vld [vmem:[%s2297_s0 + $0x50] sm:$0xf0]  ;;  %v1428_v0 = vld [vmem:[%s2297_s0 + $0x4c] sm:$0xf] }
  0x12   :  { %605 = vmatpush.bf16.msra.mxu0 %v1470_v12  ;;  %1669 = vmatpush.bf16.msra.mxu3 %v1470_v12  ;;  %v1313_v62 = vld [vmem:[%s2297_s0 + $0x168] sm:$0xf]  ;;  %v1465_v63 = vld [vmem:[%s2297_s0 + $0x170] sm:$0xf0]  ;;  %v1430_v3 = vld [vmem:[%s2297_s0 + $0x58] sm:$0xf0] }
  0x13   :  { %694 = vmatpush.bf16.msra.mxu1 %v1478_v13  ;;  %v1432_v9 = vld [vmem:[%s2297_s0 + $0x68] sm:$0xf0]  ;;  %v1279_v12 = vld [vmem:[%s2297_s0 + $0x12c] sm:$0xf0]  ;;  %v1291_v24 = vld [vmem:[%s2297_s0 + $0x144] sm:$0xf0] }
  0x14   :  { %783 = vmatpush.bf16.msra.mxu2 %v1778_v14  ;;  %v1195_v25 = vld [vmem:[%s2297_s0 + $0x84] sm:$0xf0]  ;;  %v1201_v26 = vld [vmem:[%s2297_s0 + $0x80] sm:$0xf]  ;;  %v1436_v27 = vld [vmem:[%s2297_s0 + $0x88] sm:$0xf0] }
  0x15   :  { %v1202_v31 = vor.u32 %v1436_v27, %v1201_v26  ;;  %v1303_v36 = vld [vmem:[%s2297_s0 + $0x15c] sm:$0xf0]  ;;  %v1213_v38 = vld [vmem:[%s2297_s0 + $0x98] sm:$0xf]  ;;  %v1439_v39 = vld [vmem:[%s2297_s0 + $0xa0] sm:$0xf0] }
  0x16   :  { %606 = vmatpush.bf16.msra.mxu0 %v1469_v15  ;;  %1670 = vmatpush.bf16.msra.mxu3 %v1469_v15  ;;  %v1433_v15 = vld [vmem:[%s2297_s0 + $0x70] sm:$0xf0]  ;;  %v1207_v37 = vld [vmem:[%s2297_s0 + $0x9c] sm:$0xf0]  ;;  %v1214_v43 = vor.u32 %v1439_v39, %v1213_v38  ;;  %v1315_v48 = vld [vmem:[%s2297_s0 + $0x174] sm:$0xf0] }
  0x17   :  { %695 = vmatpush.bf16.msra.mxu1 %v1477_v16  ;;  %v1219_v49 = vld [vmem:[%s2297_s0 + $0xb4] sm:$0xf0]  ;;  %v1225_v50 = vld [vmem:[%s2297_s0 + $0xb0] sm:$0xf]  ;;  %v1442_v51 = vld [vmem:[%s2297_s0 + $0xb8] sm:$0xf0] }
  0x18   :  { %784 = vmatpush.bf16.msra.mxu2 %v1790_v17  ;;  %v1226_v55 = vor.u32 %v1442_v51, %v1225_v50  ;;  %v1463_v50 = vld [vmem:[%s2297_s0 + $0x160] sm:$0xf0]  ;;  %v1255_v51 = vld [vmem:[%s2297_s0 + $0xfc] sm:$0xf0] }
  0x1a   :  { %607 = vmatpush.bf16.msra.mxu0 %v1468_v18  ;;  %1671 = vmatpush.bf16.msra.mxu3 %v1468_v18 }
  0x1b   :  { %696 = vmatpush.bf16.msra.mxu1 %v1476_v19 }
  0x1c   :  { %785 = vmatpush.bf16.msra.mxu2 %v1802_v20 }
  0x1e   :  { %608 = vmatpush.bf16.msra.mxu0 %v1467_v21  ;;  %1672 = vmatpush.bf16.msra.mxu3 %v1467_v21  ;;  %v1435_v21 = vld [vmem:[%s2297_s0 + $0x80] sm:$0xf0] }
  0x1f   :  { %697 = vmatpush.bf16.msra.mxu1 %v1475_v22 }
  0x20   :  { %786 = vmatpush.bf16.msra.mxu2 %v1813_v23 }
  0x21   :  { %609 = vmatmul.bf16.vlgmr.msra.gmra.mxu0 %v1134_v32  ;;  %669 = vmatmul.bf16.vlgmr.msra.gmra.mxu3 %v1278_v33  ;;  %v1205_v32 = vld [vmem:[%s2297_s0 + $0x90] sm:$0xf]  ;;  %v1438_v33 = vld [vmem:[%s2297_s0 + $0x98] sm:$0xf0] }
  0x22   :  { %1673 = vmatpush.bf16.msrb.mxu3 %v1721_v1  ;;  %698 = vmatmul.bf16.vlgmr.msra.gmra.mxu1 %v1138_v34  ;;  %v1171_v1 = vld [vmem:[%s2297_s0 + $0x54] sm:$0xf0]  ;;  %v1437_v34 = vld [vmem:[%s2297_s0 + $0x94] sm:$0xf]  ;;  %v1206_v40 = vor.u32 %v1438_v33, %v1205_v32 }
  0x23   :  { %787 = vmatmul.bf16.vlgmr.msra.gmra.mxu2 %v1142_v35  ;;  %v1174_v6 = vor.u32 %v1428_v0, %v1171_v1  ;;  %v1461_v35 = vld [vmem:[%s2297_s0 + $0x154] sm:$0xf]  ;;  %v1210_v42 = vor.u32 %v1437_v34, %v1207_v37 }
  0x24   :  { %v1306_v41 = vor.u32 %v1461_v35, %v1303_v36 }
  0x26   :  { %1674 = vmatpush.bf16.msrb.mxu3 %v1736_v4  ;;  %v1170_v4 = vor.u32 %v1429_v61, %v1169_v60  ;;  %v1457_v60 = vld [vmem:[%s2297_s0 + $0x130] sm:$0xf0]  ;;  %v1231_v61 = vld [vmem:[%s2297_s0 + $0xcc] sm:$0xf0] }
  0x2a   :  { %1675 = vmatpush.bf16.msrb.mxu3 %v1480_v7 }
  0x2e   :  { %1676 = vmatpush.bf16.msrb.mxu3 %v1479_v10  ;;  %v1431_v10 = vld [vmem:[%s2297_s0 + $0x64] sm:$0xf] }
  0x31   :  { %614 = vmatmul.bf16.gmra.mxu0 %v1146_v44  ;;  %674 = vmatmul.bf16.gmra.mxu3 %v1290_v45  ;;  %v1217_v44 = vld [vmem:[%s2297_s0 + $0xa8] sm:$0xf]  ;;  %v1441_v45 = vld [vmem:[%s2297_s0 + $0xb0] sm:$0xf0] }
  0x32   :  { %1677 = vmatpush.bf16.msrb.mxu3 %v1478_v13  ;;  %703 = vmatmul.bf16.gmra.mxu1 %v1150_v46  ;;  %v1183_v13 = vld [vmem:[%s2297_s0 + $0x6c] sm:$0xf0]  ;;  %v1440_v46 = vld [vmem:[%s2297_s0 + $0xac] sm:$0xf]  ;;  %v1218_v52 = vor.u32 %v1441_v45, %v1217_v44 }
  0x33   :  { %792 = vmatmul.bf16.gmra.mxu2 %v1154_v47  ;;  %v1186_v18 = vor.u32 %v1431_v10, %v1183_v13  ;;  %v1464_v47 = vld [vmem:[%s2297_s0 + $0x16c] sm:$0xf]  ;;  %v1222_v54 = vor.u32 %v1440_v46, %v1219_v49  ;;  %v1241_v13 = vld [vmem:[%s2297_s0 + $0xd8] sm:$0xf]  ;;  %v1253_v45 = vld [vmem:[%s2297_s0 + $0xf0] sm:$0xf] }
  0x34   :  { %v1318_v53 = vor.u32 %v1464_v47, %v1315_v48  ;;  %v1635_v44 = vld [vmem:[%s2299_s3 + $0x8] sm:$0xff]   ;;  %v1450_v46 = vld [vmem:[%s2297_s0 + $0xf8] sm:$0xf0]  ;;  %v1449_v48 = vld [vmem:[%s2297_s0 + $0xf4] sm:$0xf] }
  0x35   :  { %v1309_v49 = vld [vmem:[%s2297_s0 + $0x158] sm:$0xf] }
  0x36   :  { %1678 = vmatpush.bf16.msrb.mxu3 %v1477_v16 }
  0x3a   :  { %1679 = vmatpush.bf16.msrb.mxu3 %v1476_v19 }
  0x3e   :  { %1680 = vmatpush.bf16.msrb.mxu3 %v1475_v22  ;;  %v1434_v22 = vld [vmem:[%s2297_s0 + $0x7c] sm:$0xf] }
  0x3f   :  { %v1198_v30 = vor.u32 %v1434_v22, %v1195_v25 }
  0x41   :  { %619 = vmatmul.bf16.gmra.mxu0 %v1158_v56  ;;  %679 = vmatmul.bf16.gmra.mxu3 %v1302_v57  ;;  %v1229_v56 = vld [vmem:[%s2297_s0 + $0xc0] sm:$0xf]  ;;  %v1444_v57 = vld [vmem:[%s2297_s0 + $0xc8] sm:$0xf0] }
  0x42   :  { %1681 = vmatpush.bf16.msra.mxu3 %v1726_v2  ;;  %708 = vmatmul.bf16.gmra.mxu1 %v1162_v58  ;;  %v1177_v2 = vld [vmem:[%s2297_s0 + $0x50] sm:$0xf]  ;;  %v1443_v58 = vld [vmem:[%s2297_s0 + $0xc4] sm:$0xf]  ;;  %v1230_v0 = vor.u32 %v1444_v57, %v1229_v56  ;;  %v1497_v56 = vunpack.c.l.bf16 %v1635_v44 }
  0x43   :  { %797 = vmatmul.bf16.gmra.mxu2 %v1166_v59  ;;  %v1178_v7 = vor.u32 %v1430_v3, %v1177_v2  ;;  %v1285_v59 = vld [vmem:[%s2297_s0 + $0x128] sm:$0xf]  ;;  %v1234_v3 = vor.u32 %v1443_v58, %v1231_v61  ;;  %v1498_v58 = vunpack.c.h.bf16 %v1635_v44 }
  0x44   :  { %v1286_v1 = vor.u32 %v1457_v60, %v1285_v59  ;;  %v1254_v59 = vor.u32 %v1450_v46, %v1253_v45  ;;  %v1310_v60 = vor.u32 %v1463_v50, %v1309_v49  ;;  %v1637_v49 = vld [vmem:[%s2299_s3 + $0x18] sm:$0xff]  }
  0x46   :  { %1682 = vmatpush.bf16.msra.mxu3 %v1741_v5  ;;  %v1314_v5 = vor.u32 %v1465_v63, %v1313_v62  ;;  %v1237_v62 = vld [vmem:[%s2297_s0 + $0xc8] sm:$0xf]  ;;  %v1445_v63 = vld [vmem:[%s2297_s0 + $0xd0] sm:$0xf0] }
  0x4a   :  { %1683 = vmatpush.bf16.msra.mxu3 %v1754_v8  ;;  %v1181_v8 = vld [vmem:[%s2297_s0 + $0x60] sm:$0xf] }
  0x4b   :  { %v1182_v16 = vor.u32 %v1432_v9, %v1181_v8 }
  0x4e   :  { %1684 = vmatpush.bf16.msra.mxu3 %v1766_v11  ;;  %v1455_v11 = vld [vmem:[%s2297_s0 + $0x124] sm:$0xf] }
  0x51   :  { %624 = vmatmul.bf16.gmra.mxu0 %v1170_v4  ;;  %684 = vmatmul.bf16.gmra.mxu3 %v1314_v5  ;;  %v1238_v4 = vor.u32 %v1445_v63, %v1237_v62 }
  0x52   :  { %1685 = vmatpush.bf16.msra.mxu3 %v1778_v14  ;;  %713 = vmatmul.bf16.gmra.mxu1 %v1174_v6  ;;  %v1189_v14 = vld [vmem:[%s2297_s0 + $0x68] sm:$0xf] }
  0x53   :  { %802 = vmatmul.bf16.gmra.mxu2 %v1178_v7  ;;  %v1190_v19 = vor.u32 %v1433_v15, %v1189_v14  ;;  %v1447_v14 = vld [vmem:[%s2297_s0 + $0xe0] sm:$0xf0] }
  0x54   :  { %v1242_v27 = vor.u32 %v1447_v14, %v1241_v13  ;;  %v1636_v14 = vld [vmem:[%s2299_s3 + $0x10] sm:$0xff]  }
  0x56   :  { %1686 = vmatpush.bf16.msra.mxu3 %v1790_v17  ;;  %v1282_v17 = vor.u32 %v1455_v11, %v1279_v12  ;;  %v2048_v11 = vld [vmem:[%s2298_s2] ss:$0 sm:$0xff] }
  0x57   :  { %v1492_v12 = vld [vmem:[%s2299_s3] sm:$0xff]  }
  0x58   :  { %v1494_v26 = vunpack.c.h.bf16 %v1492_v12 }
  0x5a   :  { %1687 = vmatpush.bf16.msra.mxu3 %v1802_v20  ;;  %v1193_v20 = vld [vmem:[%s2297_s0 + $0x78] sm:$0xf] }
  0x5b   :  { %v1194_v28 = vor.u32 %v1435_v21, %v1193_v20  ;;  %v1249_v20 = vld [vmem:[%s2297_s0 + $0xe0] sm:$0xf]  ;;  %v1448_v21 = vld [vmem:[%s2297_s0 + $0xe8] sm:$0xf0] }
  0x5c   :  { %v1250_v33 = vor.u32 %v1448_v21, %v1249_v20  ;;  %v1466_v20 = vld [vmem:[%s2297_s0 + $0x178] sm:$0xf0]  ;;  %v1267_v21 = vld [vmem:[%s2297_s0 + $0x114] sm:$0xf0] }
  0x5e   :  { %1688 = vmatpush.bf16.msra.mxu3 %v1813_v23  ;;  %v1458_v23 = vld [vmem:[%s2297_s0 + $0x13c] sm:$0xf] }
  0x5f   :  { %v1294_v29 = vor.u32 %v1458_v23, %v1291_v24  ;;  %v1493_v24 = vunpack.c.l.bf16 %v1492_v12 }
  0x61   :  { %629 = vmatmul.bf16.gmra.mxu0 %v1182_v16  ;;  %758 = vmatmul.bf16.vlgmr.msrb.gmra.mxu3 %v1282_v17  ;;  %v1446_v16 = vld [vmem:[%s2297_s0 + $0xdc] sm:$0xf]  ;;  %v1297_v17 = vld [vmem:[%s2297_s0 + $0x140] sm:$0xf] }
  0x62   :  { %718 = vmatmul.bf16.gmra.mxu1 %v1186_v18  ;;  %v1460_v18 = vld [vmem:[%s2297_s0 + $0x148] sm:$0xf0] }
  0x63   :  { %807 = vmatmul.bf16.gmra.mxu2 %v1190_v19  ;;  %v1243_v19 = vld [vmem:[%s2297_s0 + $0xe4] sm:$0xf0] }
  0x64   :  { %v1246_v32 = vor.u32 %v1446_v16, %v1243_v19  ;;  %v1453_v16 = vld [vmem:[%s2297_s0 + $0x110] sm:$0xf0]  ;;  %v1321_v19 = vld [vmem:[%s2297_s0 + $0x170] sm:$0xf] }
  0x71   :  { %634 = vmatmul.bf16.gmra.mxu0 %v1194_v28  ;;  %763 = vmatmul.bf16.gmra.mxu3 %v1294_v29  ;;  %v1298_v28 = vor.u32 %v1460_v18, %v1297_v17  ;;  %v1452_v18 = vld [vmem:[%s2297_s0 + $0x10c] sm:$0xf] }
  0x72   :  { %723 = vmatmul.bf16.gmra.mxu1 %v1198_v30 }
  0x73   :  { %812 = vmatmul.bf16.gmra.mxu2 %v1202_v31 }
  0x81   :  { %639 = vmatmul.bf16.gmra.mxu0 %v1206_v40  ;;  %768 = vmatmul.bf16.gmra.mxu3 %v1306_v41 }
  0x82   :  { %728 = vmatmul.bf16.gmra.mxu1 %v1210_v42 }
  0x83   :  { %817 = vmatmul.bf16.gmra.mxu2 %v1214_v43 }
  0x91   :  { %644 = vmatmul.bf16.gmra.mxu0 %v1218_v52  ;;  %773 = vmatmul.bf16.gmra.mxu3 %v1318_v53  ;;  %v1261_v52 = vld [vmem:[%s2297_s0 + $0xf8] sm:$0xf]  ;;  %v1451_v53 = vld [vmem:[%s2297_s0 + $0x100] sm:$0xf0] }
  0x92   :  { %733 = vmatmul.bf16.gmra.mxu1 %v1222_v54 }
  0x93   :  { %822 = vmatmul.bf16.gmra.mxu2 %v1226_v55 }
  0x9e   :  { %v610_v2 = vpop.f32.mrf.mxu0 }
  0x9f   :  { %v699_v5 = vpop.f32.mrf.mxu1 }
  0xa0   :  { %v700_v8 = vadd.f32 %v699_v5, %v610_v2 }
  0xa1   :  { %649 = vmatmul.bf16.gmra.mxu0 %v1230_v0  ;;  %847 = vmatmul.bf16.vlgmr.msra.gmra.mxu3 %v1286_v1  ;;  %v1258_v0 = vor.u32 %v1449_v48, %v1255_v51  ;;  %v1262_v1 = vor.u32 %v1451_v53, %v1261_v52 }
  0xa2   :  { %738 = vmatmul.bf16.gmra.mxu1 %v1234_v3 }
  0xa3   :  { %827 = vmatmul.bf16.gmra.mxu2 %v1238_v4 }
  0xa4   :  { %v2043_v6 = vpop.f32.mrf.mxu3 }
  0xa6   :  { %v788_v7 = vpop.f32.mrf.mxu2  ;;  %v612_v9 = vpop.f32.mrf.mxu0 }
  0xa7   :  { %v701_v10 = vpop.f32.mrf.mxu1  ;;  %v789_v15 = vadd.f32 %v788_v7, %v700_v8 }
  0xa8   :  { %v702_v22 = vadd.f32 %v701_v10, %v612_v9 }
  0xa9   :  { %v868_v29 = vadd.f32 %v2048_v11, %v789_v15  ;;  %v1265_v15 = vld [vmem:[%s2297_s0 + $0x108] sm:$0xf] }
  0xab   :  { %v1031_v36 = vadd.f32 %v1493_v24, %v868_v29  ;;  %v1454_v24 = vld [vmem:[%s2297_s0 + $0x118] sm:$0xf0]  ;;  %v1502_v29 = vunpack.c.h.bf16 %v1636_v14 }
  0xac   :  { %v2077_v23 = vpop.f32.mrf.mxu3 }
  0xae   :  { %v790_v25 = vpop.f32.mrf.mxu2  ;;  %v615_v31 = vpop.f32.mrf.mxu0 }
  0xaf   :  { %v791_v30 = vadd.f32 %v790_v25, %v702_v22  ;;  %v704_v34 = vpop.f32.mrf.mxu1  ;;  %v1273_v22 = vld [vmem:[%s2297_s0 + $0x110] sm:$0xf] }
  0xb0   :  { %v705_v41 = vadd.f32 %v704_v34, %v615_v31  ;;  %v1322_v31 = vor.u32 %v1466_v20, %v1321_v19 }
  0xb1   :  { %v869_v35 = vadd.f32 %v2048_v11, %v791_v30  ;;  %654 = vmatmul.bf16.gmra.mxu0 %v1242_v27  ;;  %852 = vmatmul.bf16.gmra.mxu3 %v1298_v28  ;;  %v1501_v27 = vunpack.c.l.bf16 %v1636_v14  ;;  %v1266_v30 = vor.u32 %v1453_v16, %v1265_v15 }
  0xb2   :  { %743 = vmatmul.bf16.gmra.mxu1 %v1246_v32 }
  0xb3   :  { %v1032_v37 = vadd.f32 %v1494_v26, %v869_v35  ;;  %832 = vmatmul.bf16.gmra.mxu2 %v1250_v33  ;;  %v1270_v35 = vor.u32 %v1452_v18, %v1267_v21 }
  0xb4   :  { %v2081_v39 = vpop.f32.mrf.mxu3 }
  0xb5   :  { %v1558_v38 = vpack.c.bf16 %v1032_v37, %v1031_v36  ;;  %v1274_v36 = vor.u32 %v1454_v24, %v1273_v22 }
  0xb6   :  { %v793_v40 = vpop.f32.mrf.mxu2  ;;  %v617_v42 = vpop.f32.mrf.mxu0 }
  0xb7   :  { %1559 = vst [vmem:[%s2300_s4] sm:$0xff] %v1558_v38   ;;  %v706_v43 = vpop.f32.mrf.mxu1  ;;  %v794_v47 = vadd.f32 %v793_v40, %v705_v41 }
  0xb8   :  { %v707_v54 = vadd.f32 %v706_v43, %v617_v42 }
  0xb9   :  { %v870_v61 = vadd.f32 %v2048_v11, %v794_v47 }
  0xbb   :  { %v1033_v4 = vadd.f32 %v1497_v56, %v870_v61 }
  0xbc   :  { %v2113_v55 = vpop.f32.mrf.mxu3 }
  0xbe   :  { %v795_v57 = vpop.f32.mrf.mxu2  ;;  %v620_v63 = vpop.f32.mrf.mxu0 }
  0xbf   :  { %v796_v62 = vadd.f32 %v795_v57, %v707_v54  ;;  %v709_v2 = vpop.f32.mrf.mxu1  ;;  %v1505_v54 = vunpack.c.l.bf16 %v1637_v49  ;;  %v1506_v57 = vunpack.c.h.bf16 %v1637_v49 }
  0xc0   :  { %v710_v10 = vadd.f32 %v709_v2, %v620_v63 }
  0xc1   :  { %v871_v3 = vadd.f32 %v2048_v11, %v796_v62  ;;  %659 = vmatmul.bf16.gmra.mxu0 %v1254_v59  ;;  %857 = vmatmul.bf16.gmra.mxu3 %v1310_v60 }
  0xc2   :  { %748 = vmatmul.bf16.gmra.mxu1 %v1258_v0 }
  0xc3   :  { %v1034_v5 = vadd.f32 %v1498_v58, %v871_v3  ;;  %837 = vmatmul.bf16.gmra.mxu2 %v1262_v1 }
  0xc4   :  { %v2117_v8 = vpop.f32.mrf.mxu3 }
  0xc5   :  { %v1563_v7 = vpack.c.bf16 %v1034_v5, %v1033_v4 }
  0xc6   :  { %v798_v9 = vpop.f32.mrf.mxu2  ;;  %v622_v12 = vpop.f32.mrf.mxu0 }
  0xc7   :  { %1650 = vst [vmem:[%s2300_s4 + $0x8] sm:$0xff] %v1563_v7   ;;  %v711_v13 = vpop.f32.mrf.mxu1  ;;  %v799_v17 = vadd.f32 %v798_v9, %v710_v10  ;;  %v1638_v9 = vld [vmem:[%s2299_s3 + $0x20] sm:$0xff]  }
  0xc8   :  { %v712_v25 = vadd.f32 %v711_v13, %v622_v12  ;;  %v1509_v14 = vunpack.c.l.bf16 %v1638_v9  ;;  %v1510_v16 = vunpack.c.h.bf16 %v1638_v9 }
  0xc9   :  { %v872_v32 = vadd.f32 %v2048_v11, %v799_v17 }
  0xcb   :  { %v1035_v40 = vadd.f32 %v1501_v27, %v872_v32  ;;  %v1639_v32 = vld [vmem:[%s2299_s3 + $0x28] sm:$0xff]  }
  0xcc   :  { %v2149_v26 = vpop.f32.mrf.mxu3 }
  0xce   :  { %v800_v28 = vpop.f32.mrf.mxu2  ;;  %v625_v34 = vpop.f32.mrf.mxu0 }
  0xcf   :  { %v801_v33 = vadd.f32 %v800_v28, %v712_v25  ;;  %v714_v37 = vpop.f32.mrf.mxu1 }
  0xd0   :  { %v715_v45 = vadd.f32 %v714_v37, %v625_v34 }
  0xd1   :  { %v873_v38 = vadd.f32 %v2048_v11, %v801_v33  ;;  %664 = vmatmul.bf16.gmra.mxu0 %v1266_v30  ;;  %862 = vmatmul.bf16.gmra.mxu3 %v1322_v31 }
  0xd2   :  { %753 = vmatmul.bf16.gmra.mxu1 %v1270_v35 }
  0xd3   :  { %v1036_v41 = vadd.f32 %v1502_v29, %v873_v38  ;;  %842 = vmatmul.bf16.gmra.mxu2 %v1274_v36  ;;  %v1513_v36 = vunpack.c.l.bf16 %v1639_v32  ;;  %v1514_v38 = vunpack.c.h.bf16 %v1639_v32 }
  0xd4   :  { %v2153_v43 = vpop.f32.mrf.mxu3 }
  0xd5   :  { %v1568_v42 = vpack.c.bf16 %v1036_v41, %v1035_v40 }
  0xd6   :  { %v803_v44 = vpop.f32.mrf.mxu2  ;;  %v627_v46 = vpop.f32.mrf.mxu0 }
  0xd7   :  { %1651 = vst [vmem:[%s2300_s4 + $0x10] sm:$0xff] %v1568_v42   ;;  %v716_v47 = vpop.f32.mrf.mxu1  ;;  %v804_v48 = vadd.f32 %v803_v44, %v715_v45 }
  0xd8   :  { %v717_v50 = vadd.f32 %v716_v47, %v627_v46 }
  0xd9   :  { %v874_v53 = vadd.f32 %v2048_v11, %v804_v48 }
  0xdb   :  { %v1037_v61 = vadd.f32 %v1505_v54, %v874_v53 }
  0xdc   :  { %v2161_v51 = vpop.f32.mrf.mxu3 }
  0xde   :  { %v805_v52 = vpop.f32.mrf.mxu2  ;;  %v630_v58 = vpop.f32.mrf.mxu0 }
  0xdf   :  { %v806_v56 = vadd.f32 %v805_v52, %v717_v50  ;;  %v719_v59 = vpop.f32.mrf.mxu1 }
  0xe0   :  { %v720_v3 = vadd.f32 %v719_v59, %v630_v58 }
  0xe1   :  { %v875_v60 = vadd.f32 %v2048_v11, %v806_v56  ;;  %v1640_v56 = vld [vmem:[%s2299_s3 + $0x30] sm:$0xff]  }
  0xe3   :  { %v1038_v62 = vadd.f32 %v1506_v57, %v875_v60  ;;  %v1517_v60 = vunpack.c.l.bf16 %v1640_v56 }
  0xe4   :  { %v759_v0 = vpop.f32.mrf.mxu3 }
  0xe5   :  { %v1573_v63 = vpack.c.bf16 %v1038_v62, %v1037_v61  ;;  %v2166_v1 = vadd.f32 %v759_v0, %v2043_v6  ;;  %v1518_v62 = vunpack.c.h.bf16 %v1640_v56 }
  0xe6   :  { %v808_v2 = vpop.f32.mrf.mxu2  ;;  %v632_v4 = vpop.f32.mrf.mxu0 }
  0xe7   :  { %1652 = vst [vmem:[%s2300_s4 + $0x18] sm:$0xff] %v1573_v63   ;;  %v721_v5 = vpop.f32.mrf.mxu1  ;;  %v809_v7 = vadd.f32 %v808_v2, %v720_v3 }
  0xe8   :  { %v722_v10 = vadd.f32 %v721_v5, %v632_v4 }
  0xe9   :  { %v876_v6 = vadd.f32 %v2048_v11, %v809_v7 }
  0xeb   :  { %v1039_v20 = vadd.f32 %v1509_v14, %v876_v6 }
  0xec   :  { %v2174_v12 = vpop.f32.mrf.mxu3 }
  0xee   :  { %v810_v13 = vpop.f32.mrf.mxu2  ;;  %v635_v17 = vpop.f32.mrf.mxu0 }
  0xef   :  { %v811_v15 = vadd.f32 %v810_v13, %v722_v10  ;;  %v724_v18 = vpop.f32.mrf.mxu1 }
  0xf0   :  { %v725_v28 = vadd.f32 %v724_v18, %v635_v17 }
  0xf1   :  { %v877_v19 = vadd.f32 %v2048_v11, %v811_v15 }
  0xf3   :  { %v1040_v21 = vadd.f32 %v1510_v16, %v877_v19  ;;  %v1641_v16 = vld [vmem:[%s2299_s3 + $0x38] sm:$0xff]  }
  0xf4   :  { %v764_v24 = vpop.f32.mrf.mxu3 }
  0xf5   :  { %v1578_v22 = vpack.c.bf16 %v1040_v21, %v1039_v20  ;;  %v2179_v25 = vadd.f32 %v764_v24, %v2081_v39  ;;  %v1521_v20 = vunpack.c.l.bf16 %v1641_v16 }
  0xf6   :  { %v813_v27 = vpop.f32.mrf.mxu2  ;;  %v637_v29 = vpop.f32.mrf.mxu0 }
  0xf7   :  { %1653 = vst [vmem:[%s2300_s4 + $0x20] sm:$0xff] %v1578_v22   ;;  %v726_v30 = vpop.f32.mrf.mxu1  ;;  %v814_v31 = vadd.f32 %v813_v27, %v725_v28  ;;  %v1522_v22 = vunpack.c.h.bf16 %v1641_v16 }
  0xf8   :  { %v727_v33 = vadd.f32 %v726_v30, %v637_v29 }
  0xf9   :  { %v878_v39 = vadd.f32 %v2048_v11, %v814_v31 }
  0xfb   :  { %v1041_v44 = vadd.f32 %v1513_v36, %v878_v39 }
  0xfc   :  { %v2187_v34 = vpop.f32.mrf.mxu3 }
  0xfe   :  { %v815_v35 = vpop.f32.mrf.mxu2  ;;  %v640_v40 = vpop.f32.mrf.mxu0 }
  0xff   :  { %v816_v37 = vadd.f32 %v815_v35, %v727_v33  ;;  %v729_v41 = vpop.f32.mrf.mxu1 }
 0x100   :  { %v730_v50 = vadd.f32 %v729_v41, %v640_v40  ;;  %v1646_v40 = vld [vmem:[%s2299_s3 + $0x60] sm:$0xff]   ;;  %v762_v41 = vadd.f32 %v2174_v12, %v2077_v23 }
 0x101   :  { %v879_v42 = vadd.f32 %v2048_v11, %v816_v37 }
 0x103   :  { %v1042_v45 = vadd.f32 %v1514_v38, %v879_v42  ;;  %v1642_v42 = vld [vmem:[%s2299_s3 + $0x40] sm:$0xff]  }
 0x104   :  { %v769_v47 = vpop.f32.mrf.mxu3  ;;  %v1526_v56 = vunpack.c.h.bf16 %v1642_v42 }
 0x105   :  { %v1583_v46 = vpack.c.bf16 %v1042_v45, %v1041_v44  ;;  %v2192_v48 = vadd.f32 %v769_v47, %v2117_v8  ;;  %v1541_v47 = vunpack.c.l.bf16 %v1646_v40 }
 0x106   :  { %v818_v49 = vpop.f32.mrf.mxu2  ;;  %v642_v52 = vpop.f32.mrf.mxu0 }
 0x107   :  { %1654 = vst [vmem:[%s2300_s4 + $0x28] sm:$0xff] %v1583_v46   ;;  %v731_v53 = vpop.f32.mrf.mxu1  ;;  %v819_v54 = vadd.f32 %v818_v49, %v730_v50 }
 0x108   :  { %v732_v57 = vadd.f32 %v731_v53, %v642_v52  ;;  %v1525_v53 = vunpack.c.l.bf16 %v1642_v42 }
 0x109   :  { %v880_v8 = vadd.f32 %v2048_v11, %v819_v54 }
 0x10b   :  { %v1043_v3 = vadd.f32 %v1517_v60, %v880_v8 }
 0x10c   :  { %v2200_v58 = vpop.f32.mrf.mxu3 }
 0x10e   :  { %v820_v59 = vpop.f32.mrf.mxu2  ;;  %v645_v63 = vpop.f32.mrf.mxu0 }
 0x10f   :  { %v821_v61 = vadd.f32 %v820_v59, %v732_v57  ;;  %v734_v0 = vpop.f32.mrf.mxu1 }
 0x110   :  { %v735_v13 = vadd.f32 %v734_v0, %v645_v63 }
 0x111   :  { %v881_v2 = vadd.f32 %v2048_v11, %v821_v61 }
 0x113   :  { %v1044_v4 = vadd.f32 %v1518_v62, %v881_v2 }
 0x114   :  { %v774_v7 = vpop.f32.mrf.mxu3 }
 0x115   :  { %v1588_v5 = vpack.c.bf16 %v1044_v4, %v1043_v3  ;;  %v2205_v9 = vadd.f32 %v774_v7, %v2153_v43 }
 0x116   :  { %v823_v10 = vpop.f32.mrf.mxu2  ;;  %v647_v6 = vpop.f32.mrf.mxu0 }
 0x117   :  { %1655 = vst [vmem:[%s2300_s4 + $0x30] sm:$0xff] %v1588_v5   ;;  %v736_v14 = vpop.f32.mrf.mxu1  ;;  %v824_v15 = vadd.f32 %v823_v10, %v735_v13 }
 0x118   :  { %v737_v17 = vadd.f32 %v736_v14, %v647_v6  ;;  %v1647_v6 = vld [vmem:[%s2299_s3 + $0x68] sm:$0xff]   ;;  %v767_v14 = vadd.f32 %v2187_v34, %v2113_v55 }
 0x119   :  { %v882_v43 = vadd.f32 %v2048_v11, %v824_v15  ;;  %v1643_v15 = vld [vmem:[%s2299_s3 + $0x48] sm:$0xff]  }
 0x11b   :  { %v1045_v29 = vadd.f32 %v1521_v20, %v882_v43  ;;  %v1545_v43 = vunpack.c.l.bf16 %v1647_v6 }
 0x11c   :  { %v2213_v18 = vpop.f32.mrf.mxu3 }
 0x11e   :  { %v825_v19 = vpop.f32.mrf.mxu2  ;;  %v650_v24 = vpop.f32.mrf.mxu0 }
 0x11f   :  { %v826_v21 = vadd.f32 %v825_v19, %v737_v17  ;;  %v739_v27 = vpop.f32.mrf.mxu1 }
 0x120   :  { %v740_v35 = vadd.f32 %v739_v27, %v650_v24  ;;  %v1529_v24 = vunpack.c.l.bf16 %v1643_v15 }
 0x121   :  { %v883_v28 = vadd.f32 %v2048_v11, %v826_v21 }
 0x123   :  { %v1046_v30 = vadd.f32 %v1522_v22, %v883_v28  ;;  %v1530_v28 = vunpack.c.h.bf16 %v1643_v15  ;;  %v1649_v15 = vld [vmem:[%s2299_s3 + $0x78] sm:$0xff]  }
 0x124   :  { %v848_v32 = vpop.f32.mrf.mxu3 }
 0x125   :  { %v1593_v31 = vpack.c.bf16 %v1046_v30, %v1045_v29  ;;  %v849_v37 = vadd.f32 %v848_v32, %v2166_v1  ;;  %v1542_v1 = vunpack.c.h.bf16 %v1646_v40 }
 0x126   :  { %v828_v33 = vpop.f32.mrf.mxu2  ;;  %v652_v39 = vpop.f32.mrf.mxu0 }
 0x127   :  { %1656 = vst [vmem:[%s2300_s4 + $0x38] sm:$0xff] %v1593_v31   ;;  %v741_v36 = vpop.f32.mrf.mxu1  ;;  %v829_v38 = vadd.f32 %v828_v33, %v740_v35  ;;  %v892_v46 = vadd.f32 %v2048_v11, %v849_v37 }
 0x128   :  { %v742_v44 = vadd.f32 %v741_v36, %v652_v39 }
 0x129   :  { %v884_v52 = vadd.f32 %v2048_v11, %v829_v38  ;;  %v1055_v8 = vadd.f32 %v1541_v47, %v892_v46  ;;  %v1648_v46 = vld [vmem:[%s2299_s3 + $0x70] sm:$0xff]   ;;  %v772_v47 = vadd.f32 %v2200_v58, %v2149_v26 }
 0x12b   :  { %v1047_v61 = vadd.f32 %v1525_v53, %v884_v52  ;;  %v1549_v53 = vunpack.c.l.bf16 %v1648_v46 }
 0x12c   :  { %v850_v45 = vpop.f32.mrf.mxu3 }
 0x12d   :  { %v851_v50 = vadd.f32 %v850_v45, %v762_v41 }
 0x12e   :  { %v830_v49 = vpop.f32.mrf.mxu2  ;;  %v655_v57 = vpop.f32.mrf.mxu0 }
 0x12f   :  { %v831_v54 = vadd.f32 %v830_v49, %v742_v44  ;;  %v893_v23 = vadd.f32 %v2048_v11, %v851_v50  ;;  %v744_v12 = vpop.f32.mrf.mxu1  ;;  %v1644_v49 = vld [vmem:[%s2299_s3 + $0x50] sm:$0xff]  }
 0x130   :  { %v745_v4 = vadd.f32 %v744_v12, %v655_v57 }
 0x131   :  { %v885_v59 = vadd.f32 %v2048_v11, %v831_v54  ;;  %v1056_v60 = vadd.f32 %v1542_v1, %v893_v23  ;;  %v1533_v23 = vunpack.c.l.bf16 %v1644_v49 }
 0x133   :  { %v1048_v62 = vadd.f32 %v1526_v56, %v885_v59  ;;  %v1618_v63 = vpack.c.bf16 %v1056_v60, %v1055_v8  ;;  %v1534_v59 = vunpack.c.h.bf16 %v1644_v49 }
 0x134   :  { %v853_v2 = vpop.f32.mrf.mxu3 }
 0x135   :  { %v1598_v0 = vpack.c.bf16 %v1048_v62, %v1047_v61  ;;  %1661 = vst [vmem:[%s2300_s4 + $0x60] sm:$0xff] %v1618_v63   ;;  %v854_v10 = vadd.f32 %v853_v2, %v2179_v25  ;;  %v1546_v25 = vunpack.c.h.bf16 %v1647_v6 }
 0x136   :  { %v833_v3 = vpop.f32.mrf.mxu2  ;;  %v657_v5 = vpop.f32.mrf.mxu0 }
 0x137   :  { %1657 = vst [vmem:[%s2300_s4 + $0x40] sm:$0xff] %v1598_v0   ;;  %v746_v7 = vpop.f32.mrf.mxu1  ;;  %v834_v13 = vadd.f32 %v833_v3, %v745_v4  ;;  %v894_v19 = vadd.f32 %v2048_v11, %v854_v10 }
 0x138   :  { %v747_v16 = vadd.f32 %v746_v7, %v657_v5 }
 0x139   :  { %v886_v22 = vadd.f32 %v2048_v11, %v834_v13  ;;  %v1057_v31 = vadd.f32 %v1545_v43, %v894_v19 }
 0x13b   :  { %v1049_v33 = vadd.f32 %v1529_v24, %v886_v22  ;;  %v1554_v22 = vunpack.c.h.bf16 %v1649_v15 }
 0x13c   :  { %v855_v17 = vpop.f32.mrf.mxu3 }
 0x13d   :  { %v856_v21 = vadd.f32 %v855_v17, %v767_v14  ;;  %v1645_v17 = vld [vmem:[%s2299_s3 + $0x58] sm:$0xff]  }
 0x13e   :  { %v835_v20 = vpop.f32.mrf.mxu2  ;;  %v660_v29 = vpop.f32.mrf.mxu0 }
 0x13f   :  { %v836_v27 = vadd.f32 %v835_v20, %v747_v16  ;;  %v895_v55 = vadd.f32 %v2048_v11, %v856_v21  ;;  %v749_v34 = vpop.f32.mrf.mxu1  ;;  %v777_v16 = vadd.f32 %v2213_v18, %v2161_v51  ;;  %v1553_v21 = vunpack.c.l.bf16 %v1649_v15 }
 0x140   :  { %v750_v40 = vadd.f32 %v749_v34, %v660_v29  ;;  %v1538_v29 = vunpack.c.h.bf16 %v1645_v17 }
 0x141   :  { %v887_v30 = vadd.f32 %v2048_v11, %v836_v27  ;;  %v1058_v32 = vadd.f32 %v1546_v25, %v895_v55  ;;  %v1537_v27 = vunpack.c.l.bf16 %v1645_v17 }
 0x143   :  { %v1050_v35 = vadd.f32 %v1530_v28, %v887_v30  ;;  %v1623_v39 = vpack.c.bf16 %v1058_v32, %v1057_v31 }
 0x144   :  { %v858_v37 = vpop.f32.mrf.mxu3 }
 0x145   :  { %v1603_v36 = vpack.c.bf16 %v1050_v35, %v1049_v33  ;;  %1662 = vst [vmem:[%s2300_s4 + $0x68] sm:$0xff] %v1623_v39   ;;  %v859_v44 = vadd.f32 %v858_v37, %v2192_v48  ;;  %v1550_v48 = vunpack.c.h.bf16 %v1648_v46 }
 0x146   :  { %v838_v38 = vpop.f32.mrf.mxu2  ;;  %v662_v41 = vpop.f32.mrf.mxu0 }
 0x147   :  { %1658 = vst [vmem:[%s2300_s4 + $0x48] sm:$0xff] %v1603_v36   ;;  %v751_v42 = vpop.f32.mrf.mxu1  ;;  %v839_v45 = vadd.f32 %v838_v38, %v750_v40  ;;  %v896_v52 = vadd.f32 %v2048_v11, %v859_v44 }
 0x148   :  { %v752_v50 = vadd.f32 %v751_v42, %v662_v41 }
 0x149   :  { %v888_v57 = vadd.f32 %v2048_v11, %v839_v45  ;;  %v1059_v61 = vadd.f32 %v1549_v53, %v896_v52 }
 0x14b   :  { %v1051_v63 = vadd.f32 %v1533_v23, %v888_v57 }
 0x14c   :  { %v860_v1 = vpop.f32.mrf.mxu3 }
 0x14d   :  { %v861_v56 = vadd.f32 %v860_v1, %v772_v47 }
 0x14e   :  { %v840_v54 = vpop.f32.mrf.mxu2  ;;  %v665_v26 = vpop.f32.mrf.mxu0 }
 0x14f   :  { %v841_v12 = vadd.f32 %v840_v54, %v752_v50  ;;  %v897_v8 = vadd.f32 %v2048_v11, %v861_v56  ;;  %v754_v58 = vpop.f32.mrf.mxu1 }
 0x150   :  { %v755_v7 = vadd.f32 %v754_v58, %v665_v26 }
 0x151   :  { %v889_v60 = vadd.f32 %v2048_v11, %v841_v12  ;;  %v1060_v62 = vadd.f32 %v1550_v48, %v897_v8 }
 0x153   :  { %v1052_v0 = vadd.f32 %v1534_v59, %v889_v60  ;;  %v1628_v2 = vpack.c.bf16 %v1060_v62, %v1059_v61 }
 0x154   :  { %v863_v4 = vpop.f32.mrf.mxu3 }
 0x155   :  { %v1608_v3 = vpack.c.bf16 %v1052_v0, %v1051_v63  ;;  %1663 = vst [vmem:[%s2300_s4 + $0x70] sm:$0xff] %v1628_v2   ;;  %v864_v10 = vadd.f32 %v863_v4, %v2205_v9 }
 0x156   :  { %v843_v5 = vpop.f32.mrf.mxu2  ;;  %v667_v13 = vpop.f32.mrf.mxu0 }
 0x157   :  { %1659 = vst [vmem:[%s2300_s4 + $0x50] sm:$0xff] %v1608_v3   ;;  %v756_v6 = vpop.f32.mrf.mxu1  ;;  %v844_v14 = vadd.f32 %v843_v5, %v755_v7  ;;  %v898_v20 = vadd.f32 %v2048_v11, %v864_v10 }
 0x158   :  { %v757_v19 = vadd.f32 %v756_v6, %v667_v13 }
 0x159   :  { %v890_v24 = vadd.f32 %v2048_v11, %v844_v14  ;;  %v1061_v18 = vadd.f32 %v1553_v21, %v898_v20 }
 0x15b   :  { %v1053_v30 = vadd.f32 %v1537_v27, %v890_v24 }
 0x15c   :  { %v865_v43 = vpop.f32.mrf.mxu3 }
 0x15d   :  { %v866_v25 = vadd.f32 %v865_v43, %v777_v16 }
 0x15e   :  { %v845_v9 = vpop.f32.mrf.mxu2 }
 0x15f   :  { %v846_v28 = vadd.f32 %v845_v9, %v757_v19  ;;  %v899_v55 = vadd.f32 %v2048_v11, %v866_v25 }
 0x161   :  { %v891_v51 = vadd.f32 %v2048_v11, %v846_v28  ;;  %v1062_v34 = vadd.f32 %v1554_v22, %v899_v55 }
 0x163   :  { %v1054_v31 = vadd.f32 %v1538_v29, %v891_v51  ;;  %v1633_v32 = vpack.c.bf16 %v1062_v34, %v1061_v18 }
 0x165   :  { %v1613_v33 = vpack.c.bf16 %v1054_v31, %v1053_v30  ;;  %1664 = vst [vmem:[%s2300_s4 + $0x78] sm:$0xff] %v1633_v32  }
 0x167   :  { %1660 = vst [vmem:[%s2300_s4 + $0x58] sm:$0xff] %v1613_v33  }

// kernel: feature_extraction_forward.66
= control target key start
LH: loop header
LB: loop body
LE: loop exit
PB: predicated region body
PF: predicated region fallthrough
CT: control target
= control target key end

     0   :  { %s951_s1 = inlined_call_operand.vmem [shape: bf16[128,128], index: 1, kind: input, shape index: {}]   ;;  %s952_s2 = inlined_call_operand.vmem [shape: f32[1,128], index: 2, kind: input, shape index: {}]   ;;  %s953_s0 = inlined_call_operand.vmem [shape: bf16[256,128], index: 0, kind: input, shape index: {}]   ;;  %s954_s3 = inlined_call_operand.vmem [shape: bf16[256,128], index: 3, kind: output, shape index: {}]  }
   0x1   :  { %v653_v0 = vld [vmem:[%s951_s1 + $0x38] sm:$0xff]  ;;  %v652_v1 = vld [vmem:[%s951_s1 + $0x30] sm:$0xff]  ;;  %v651_v2 = vld [vmem:[%s951_s1 + $0x28] sm:$0xff] }
   0x2   :  { %278 = vmatpush.bf16.msra.mxu0 %v653_v0  ;;  %749 = vmatpush.bf16.msra.mxu1 %v653_v0  ;;  %v650_v3 = vld [vmem:[%s951_s1 + $0x20] sm:$0xff]  ;;  %v649_v4 = vld [vmem:[%s951_s1 + $0x18] sm:$0xff]  ;;  %v648_v5 = vld [vmem:[%s951_s1 + $0x10] sm:$0xff] }
   0x3   :  { %750 = vmatpush.bf16.msra.mxu2 %v653_v0  ;;  %751 = vmatpush.bf16.msra.mxu3 %v653_v0  ;;  %v647_v6 = vld [vmem:[%s951_s1 + $0x8] sm:$0xff]  ;;  %v646_v7 = vld [vmem:[%s951_s1] sm:$0xff]  ;;  %v632_v16 = vld [vmem:[%s953_s0 + $0x10] sm:$0xff] }
   0x4   :  { %v630_v8 = vld [vmem:[%s953_s0] sm:$0xff]  ;;  %v631_v12 = vld [vmem:[%s953_s0 + $0x8] sm:$0xff]  ;;  %v636_v17 = vld [vmem:[%s953_s0 + $0x30] sm:$0xff] }
   0x5   :  { %v634_v9 = vld [vmem:[%s953_s0 + $0x20] sm:$0xff]  ;;  %v635_v13 = vld [vmem:[%s953_s0 + $0x28] sm:$0xff]  ;;  %v640_v18 = vld [vmem:[%s953_s0 + $0x50] sm:$0xff] }
   0x6   :  { %279 = vmatpush.bf16.msra.mxu0 %v652_v1  ;;  %752 = vmatpush.bf16.msra.mxu1 %v652_v1  ;;  %v638_v10 = vld [vmem:[%s953_s0 + $0x40] sm:$0xff]  ;;  %v639_v14 = vld [vmem:[%s953_s0 + $0x48] sm:$0xff]  ;;  %v644_v19 = vld [vmem:[%s953_s0 + $0x70] sm:$0xff] }
   0x7   :  { %753 = vmatpush.bf16.msra.mxu2 %v652_v1  ;;  %754 = vmatpush.bf16.msra.mxu3 %v652_v1  ;;  %v642_v11 = vld [vmem:[%s953_s0 + $0x60] sm:$0xff]  ;;  %v643_v15 = vld [vmem:[%s953_s0 + $0x68] sm:$0xff]  ;;  %v633_v20 = vld [vmem:[%s953_s0 + $0x18] sm:$0xff] }
   0x8   :  { %v637_v21 = vld [vmem:[%s953_s0 + $0x38] sm:$0xff]  ;;  %v869_v26 = vld [vmem:[%s952_s2] ss:$0 sm:$0xff] }
   0x9   :  { %v641_v22 = vld [vmem:[%s953_s0 + $0x58] sm:$0xff] }
   0xa   :  { %280 = vmatpush.bf16.msra.mxu0 %v651_v2  ;;  %755 = vmatpush.bf16.msra.mxu1 %v651_v2  ;;  %v645_v23 = vld [vmem:[%s953_s0 + $0x78] sm:$0xff] }
   0xb   :  { %756 = vmatpush.bf16.msra.mxu2 %v651_v2  ;;  %757 = vmatpush.bf16.msra.mxu3 %v651_v2 }
   0xe   :  { %281 = vmatpush.bf16.msra.mxu0 %v650_v3  ;;  %758 = vmatpush.bf16.msra.mxu1 %v650_v3 }
   0xf   :  { %759 = vmatpush.bf16.msra.mxu2 %v650_v3  ;;  %760 = vmatpush.bf16.msra.mxu3 %v650_v3 }
  0x12   :  { %282 = vmatpush.bf16.msra.mxu0 %v649_v4  ;;  %761 = vmatpush.bf16.msra.mxu1 %v649_v4 }
  0x13   :  { %762 = vmatpush.bf16.msra.mxu2 %v649_v4  ;;  %763 = vmatpush.bf16.msra.mxu3 %v649_v4 }
  0x16   :  { %283 = vmatpush.bf16.msra.mxu0 %v648_v5  ;;  %764 = vmatpush.bf16.msra.mxu1 %v648_v5 }
  0x17   :  { %765 = vmatpush.bf16.msra.mxu2 %v648_v5  ;;  %766 = vmatpush.bf16.msra.mxu3 %v648_v5 }
  0x1a   :  { %284 = vmatpush.bf16.msra.mxu0 %v647_v6  ;;  %767 = vmatpush.bf16.msra.mxu1 %v647_v6 }
  0x1b   :  { %768 = vmatpush.bf16.msra.mxu2 %v647_v6  ;;  %769 = vmatpush.bf16.msra.mxu3 %v647_v6 }
  0x1e   :  { %285 = vmatpush.bf16.msra.mxu0 %v646_v7  ;;  %770 = vmatpush.bf16.msra.mxu1 %v646_v7 }
  0x1f   :  { %771 = vmatpush.bf16.msra.mxu2 %v646_v7  ;;  %772 = vmatpush.bf16.msra.mxu3 %v646_v7 }
  0x21   :  { %286 = vmatmul.bf16.vlgmr.msra.gmra.mxu0 %v630_v8  ;;  %306 = vmatmul.bf16.vlgmr.msra.gmra.mxu1 %v634_v9 }
  0x22   :  { %326 = vmatmul.bf16.vlgmr.msra.gmra.mxu2 %v638_v10  ;;  %346 = vmatmul.bf16.vlgmr.msra.gmra.mxu3 %v642_v11 }
  0x31   :  { %291 = vmatmul.bf16.gmra.mxu0 %v631_v12  ;;  %311 = vmatmul.bf16.gmra.mxu1 %v635_v13 }
  0x32   :  { %331 = vmatmul.bf16.gmra.mxu2 %v639_v14  ;;  %351 = vmatmul.bf16.gmra.mxu3 %v643_v15 }
  0x41   :  { %296 = vmatmul.bf16.gmra.mxu0 %v632_v16  ;;  %316 = vmatmul.bf16.gmra.mxu1 %v636_v17 }
  0x42   :  { %336 = vmatmul.bf16.gmra.mxu2 %v640_v18  ;;  %356 = vmatmul.bf16.gmra.mxu3 %v644_v19 }
  0x51   :  { %301 = vmatmul.bf16.gmra.mxu0 %v633_v20  ;;  %321 = vmatmul.bf16.gmra.mxu1 %v637_v21 }
  0x52   :  { %341 = vmatmul.bf16.gmra.mxu2 %v641_v22  ;;  %361 = vmatmul.bf16.gmra.mxu3 %v645_v23 }
  0x9e   :  { %v287_v24 = vpop.f32.mrf.mxu0  ;;  %v307_v25 = vpop.f32.mrf.mxu1 }
  0x9f   :  { %v367_v31 = vadd.f32 %v869_v26, %v287_v24  ;;  %v375_v32 = vadd.f32 %v869_v26, %v307_v25 }
  0xa5   :  { %v327_v27 = vpop.f32.mrf.mxu2  ;;  %v347_v28 = vpop.f32.mrf.mxu3 }
  0xa6   :  { %v289_v29 = vpop.f32.mrf.mxu0  ;;  %v309_v30 = vpop.f32.mrf.mxu1  ;;  %v383_v39 = vadd.f32 %v869_v26, %v327_v27  ;;  %v391_v40 = vadd.f32 %v869_v26, %v347_v28 }
  0xa7   :  { %v368_v33 = vadd.f32 %v869_v26, %v289_v29  ;;  %v376_v34 = vadd.f32 %v869_v26, %v309_v30 }
  0xa9   :  { %v657_v35 = vpack.c.bf16 %v368_v33, %v367_v31  ;;  %v677_v36 = vpack.c.bf16 %v376_v34, %v375_v32 }
  0xab   :  { %658 = vst [vmem:[%s954_s3] sm:$0xff] %v657_v35  }
  0xac   :  { %737 = vst [vmem:[%s954_s3 + $0x20] sm:$0xff] %v677_v36  }
  0xad   :  { %v329_v37 = vpop.f32.mrf.mxu2  ;;  %v349_v38 = vpop.f32.mrf.mxu3 }
  0xae   :  { %v384_v41 = vadd.f32 %v869_v26, %v329_v37  ;;  %v392_v42 = vadd.f32 %v869_v26, %v349_v38  ;;  %v292_v43 = vpop.f32.mrf.mxu0  ;;  %v312_v44 = vpop.f32.mrf.mxu1 }
  0xaf   :  { %v369_v51 = vadd.f32 %v869_v26, %v292_v43  ;;  %v377_v52 = vadd.f32 %v869_v26, %v312_v44 }
  0xb0   :  { %v697_v45 = vpack.c.bf16 %v384_v41, %v383_v39  ;;  %v717_v46 = vpack.c.bf16 %v392_v42, %v391_v40 }
  0xb2   :  { %741 = vst [vmem:[%s954_s3 + $0x40] sm:$0xff] %v697_v45  }
  0xb3   :  { %745 = vst [vmem:[%s954_s3 + $0x60] sm:$0xff] %v717_v46  }
  0xb5   :  { %v332_v47 = vpop.f32.mrf.mxu2  ;;  %v352_v48 = vpop.f32.mrf.mxu3 }
  0xb6   :  { %v294_v49 = vpop.f32.mrf.mxu0  ;;  %v314_v50 = vpop.f32.mrf.mxu1  ;;  %v385_v59 = vadd.f32 %v869_v26, %v332_v47  ;;  %v393_v60 = vadd.f32 %v869_v26, %v352_v48 }
  0xb7   :  { %v370_v53 = vadd.f32 %v869_v26, %v294_v49  ;;  %v378_v54 = vadd.f32 %v869_v26, %v314_v50 }
  0xb9   :  { %v662_v55 = vpack.c.bf16 %v370_v53, %v369_v51  ;;  %v682_v56 = vpack.c.bf16 %v378_v54, %v377_v52 }
  0xbb   :  { %734 = vst [vmem:[%s954_s3 + $0x8] sm:$0xff] %v662_v55  }
  0xbc   :  { %738 = vst [vmem:[%s954_s3 + $0x28] sm:$0xff] %v682_v56  }
  0xbd   :  { %v334_v57 = vpop.f32.mrf.mxu2  ;;  %v354_v58 = vpop.f32.mrf.mxu3 }
  0xbe   :  { %v386_v61 = vadd.f32 %v869_v26, %v334_v57  ;;  %v394_v62 = vadd.f32 %v869_v26, %v354_v58  ;;  %v297_v63 = vpop.f32.mrf.mxu0  ;;  %v317_v0 = vpop.f32.mrf.mxu1 }
  0xbf   :  { %v371_v7 = vadd.f32 %v869_v26, %v297_v63  ;;  %v379_v8 = vadd.f32 %v869_v26, %v317_v0 }
  0xc0   :  { %v702_v1 = vpack.c.bf16 %v386_v61, %v385_v59  ;;  %v722_v2 = vpack.c.bf16 %v394_v62, %v393_v60 }
  0xc2   :  { %742 = vst [vmem:[%s954_s3 + $0x48] sm:$0xff] %v702_v1  }
  0xc3   :  { %746 = vst [vmem:[%s954_s3 + $0x68] sm:$0xff] %v722_v2  }
  0xc5   :  { %v337_v3 = vpop.f32.mrf.mxu2  ;;  %v357_v4 = vpop.f32.mrf.mxu3 }
  0xc6   :  { %v299_v5 = vpop.f32.mrf.mxu0  ;;  %v319_v6 = vpop.f32.mrf.mxu1  ;;  %v387_v15 = vadd.f32 %v869_v26, %v337_v3  ;;  %v395_v16 = vadd.f32 %v869_v26, %v357_v4 }
  0xc7   :  { %v372_v9 = vadd.f32 %v869_v26, %v299_v5  ;;  %v380_v10 = vadd.f32 %v869_v26, %v319_v6 }
  0xc9   :  { %v667_v11 = vpack.c.bf16 %v372_v9, %v371_v7  ;;  %v687_v12 = vpack.c.bf16 %v380_v10, %v379_v8 }
  0xcb   :  { %735 = vst [vmem:[%s954_s3 + $0x10] sm:$0xff] %v667_v11  }
  0xcc   :  { %739 = vst [vmem:[%s954_s3 + $0x30] sm:$0xff] %v687_v12  }
  0xcd   :  { %v339_v13 = vpop.f32.mrf.mxu2  ;;  %v359_v14 = vpop.f32.mrf.mxu3 }
  0xce   :  { %v388_v17 = vadd.f32 %v869_v26, %v339_v13  ;;  %v396_v18 = vadd.f32 %v869_v26, %v359_v14  ;;  %v302_v19 = vpop.f32.mrf.mxu0  ;;  %v322_v20 = vpop.f32.mrf.mxu1 }
  0xcf   :  { %v373_v28 = vadd.f32 %v869_v26, %v302_v19  ;;  %v381_v29 = vadd.f32 %v869_v26, %v322_v20 }
  0xd0   :  { %v707_v21 = vpack.c.bf16 %v388_v17, %v387_v15  ;;  %v727_v22 = vpack.c.bf16 %v396_v18, %v395_v16 }
  0xd2   :  { %743 = vst [vmem:[%s954_s3 + $0x50] sm:$0xff] %v707_v21  }
  0xd3   :  { %747 = vst [vmem:[%s954_s3 + $0x70] sm:$0xff] %v727_v22  }
  0xd5   :  { %v342_v23 = vpop.f32.mrf.mxu2  ;;  %v362_v24 = vpop.f32.mrf.mxu3 }
  0xd6   :  { %v304_v25 = vpop.f32.mrf.mxu0  ;;  %v324_v27 = vpop.f32.mrf.mxu1  ;;  %v389_v36 = vadd.f32 %v869_v26, %v342_v23  ;;  %v397_v37 = vadd.f32 %v869_v26, %v362_v24 }
  0xd7   :  { %v374_v30 = vadd.f32 %v869_v26, %v304_v25  ;;  %v382_v31 = vadd.f32 %v869_v26, %v324_v27 }
  0xd9   :  { %v672_v32 = vpack.c.bf16 %v374_v30, %v373_v28  ;;  %v692_v33 = vpack.c.bf16 %v382_v31, %v381_v29 }
  0xdb   :  { %736 = vst [vmem:[%s954_s3 + $0x18] sm:$0xff] %v672_v32  }
  0xdc   :  { %740 = vst [vmem:[%s954_s3 + $0x38] sm:$0xff] %v692_v33  }
  0xdd   :  { %v344_v34 = vpop.f32.mrf.mxu2  ;;  %v364_v35 = vpop.f32.mrf.mxu3 }
  0xde   :  { %v390_v38 = vadd.f32 %v869_v26, %v344_v34  ;;  %v398_v39 = vadd.f32 %v869_v26, %v364_v35 }
  0xe0   :  { %v712_v40 = vpack.c.bf16 %v390_v38, %v389_v36  ;;  %v732_v41 = vpack.c.bf16 %v398_v39, %v397_v37 }
  0xe2   :  { %744 = vst [vmem:[%s954_s3 + $0x58] sm:$0xff] %v712_v40  }
  0xe3   :  { %748 = vst [vmem:[%s954_s3 + $0x78] sm:$0xff] %v732_v41  }

// kernel: feature_extraction_forward.69
= control target key start
LH: loop header
LB: loop body
LE: loop exit
PB: predicated region body
PF: predicated region fallthrough
CT: control target
= control target key end

     0   :  { %s3083_s1 = inlined_call_operand.vmem [shape: bf16[640,128], index: 1, kind: input, shape index: {}]   ;;  %s3084_s0 = inlined_call_operand.vmem [shape: bf16[256,640], index: 0, kind: input, shape index: {}]   ;;  %s3085_s2 = inlined_call_operand.vmem [shape: f32[1,128], index: 2, kind: input, shape index: {}]   ;;  %s3086_s3 = inlined_call_operand.vmem [shape: bf16[256,128], index: 3, kind: output, shape index: {}]  }
   0x1   :  { %v2129_v0 = vld [vmem:[%s3083_s1 + $0x38] sm:$0xff]  ;;  %v2128_v1 = vld [vmem:[%s3083_s1 + $0x30] sm:$0xff]  ;;  %v2127_v2 = vld [vmem:[%s3083_s1 + $0x28] sm:$0xff] }
   0x2   :  { %2257 = vmatpush.bf16.msra.mxu1 %v2129_v0  ;;  %2258 = vmatpush.bf16.msra.mxu2 %v2129_v0  ;;  %v2126_v3 = vld [vmem:[%s3083_s1 + $0x20] sm:$0xff]  ;;  %v2125_v4 = vld [vmem:[%s3083_s1 + $0x18] sm:$0xff]  ;;  %v2124_v5 = vld [vmem:[%s3083_s1 + $0x10] sm:$0xff] }
   0x3   :  { %2259 = vmatpush.bf16.msra.mxu3 %v2129_v0  ;;  %918 = vmatpush.bf16.msra.mxu0 %v2129_v0  ;;  %v2123_v6 = vld [vmem:[%s3083_s1 + $0x8] sm:$0xff]  ;;  %v2122_v7 = vld [vmem:[%s3083_s1] sm:$0xff]  ;;  %v2064_v9 = vld [vmem:[%s3084_s0 + $0xb0] sm:$0xf0] }
   0x4   :  { %v1644_v8 = vld [vmem:[%s3084_s0 + $0xa0] sm:$0xf]  ;;  %v2084_v11 = vld [vmem:[%s3084_s0 + $0x150] sm:$0xf0]  ;;  %v2145_v16 = vld [vmem:[%s3083_s1 + $0xb8] sm:$0xff] }
   0x5   :  { %v1724_v10 = vld [vmem:[%s3084_s0 + $0x140] sm:$0xf]  ;;  %v2104_v13 = vld [vmem:[%s3084_s0 + $0x1f0] sm:$0xf0]  ;;  %v2153_v17 = vld [vmem:[%s3083_s1 + $0xf8] sm:$0xff]  ;;  %v1645_v18 = vor.u32 %v2064_v9, %v1644_v8 }
   0x6   :  { %2260 = vmatpush.bf16.msra.mxu1 %v2128_v1  ;;  %2261 = vmatpush.bf16.msra.mxu2 %v2128_v1  ;;  %v1804_v12 = vld [vmem:[%s3084_s0 + $0x1e0] sm:$0xf]  ;;  %v2044_v15 = vld [vmem:[%s3084_s0 + $0x10] sm:$0xf0]  ;;  %v1725_v19 = vor.u32 %v2084_v11, %v1724_v10  ;;  %v2137_v22 = vld [vmem:[%s3083_s1 + $0x78] sm:$0xff] }
   0x7   :  { %2262 = vmatpush.bf16.msra.mxu3 %v2128_v1  ;;  %919 = vmatpush.bf16.msra.mxu0 %v2128_v1  ;;  %v1564_v14 = vld [vmem:[%s3084_s0] sm:$0xf]  ;;  %v1805_v20 = vor.u32 %v2104_v13, %v1804_v12  ;;  %v2161_v23 = vld [vmem:[%s3083_s1 + $0x138] sm:$0xff]  ;;  %v2144_v24 = vld [vmem:[%s3083_s1 + $0xb0] sm:$0xff] }
   0x8   :  { %v1565_v21 = vor.u32 %v2044_v15, %v1564_v14  ;;  %v2152_v25 = vld [vmem:[%s3083_s1 + $0xf0] sm:$0xff]  ;;  %v2143_v28 = vld [vmem:[%s3083_s1 + $0xa8] sm:$0xff]  ;;  %v2142_v33 = vld [vmem:[%s3083_s1 + $0xa0] sm:$0xff] }
   0x9   :  { %v2136_v26 = vld [vmem:[%s3083_s1 + $0x70] sm:$0xff]  ;;  %v2151_v29 = vld [vmem:[%s3083_s1 + $0xe8] sm:$0xff]  ;;  %v2150_v34 = vld [vmem:[%s3083_s1 + $0xe0] sm:$0xff] }
   0xa   :  { %2263 = vmatpush.bf16.msra.mxu1 %v2127_v2  ;;  %2264 = vmatpush.bf16.msra.mxu2 %v2127_v2  ;;  %v2160_v27 = vld [vmem:[%s3083_s1 + $0x130] sm:$0xff]  ;;  %v2135_v30 = vld [vmem:[%s3083_s1 + $0x68] sm:$0xff]  ;;  %v2069_v35 = vld [vmem:[%s3084_s0 + $0xd8] sm:$0xf0] }
   0xb   :  { %2265 = vmatpush.bf16.msra.mxu3 %v2127_v2  ;;  %920 = vmatpush.bf16.msra.mxu0 %v2127_v2  ;;  %v2159_v31 = vld [vmem:[%s3083_s1 + $0x128] sm:$0xff]  ;;  %v2089_v37 = vld [vmem:[%s3084_s0 + $0x178] sm:$0xf0]  ;;  %v2134_v42 = vld [vmem:[%s3083_s1 + $0x60] sm:$0xff] }
   0xc   :  { %v1664_v32 = vld [vmem:[%s3084_s0 + $0xc8] sm:$0xf]  ;;  %v2109_v39 = vld [vmem:[%s3084_s0 + $0x218] sm:$0xf0]  ;;  %v2158_v43 = vld [vmem:[%s3083_s1 + $0x120] sm:$0xff] }
   0xd   :  { %v1744_v36 = vld [vmem:[%s3084_s0 + $0x168] sm:$0xf]  ;;  %v2049_v41 = vld [vmem:[%s3084_s0 + $0x38] sm:$0xf0]  ;;  %v1665_v46 = vor.u32 %v2069_v35, %v1664_v32  ;;  %v2140_v52 = vld [vmem:[%s3083_s1 + $0x90] sm:$0xff] }
   0xe   :  { %2266 = vmatpush.bf16.msra.mxu1 %v2126_v3  ;;  %2267 = vmatpush.bf16.msra.mxu2 %v2126_v3  ;;  %v1824_v38 = vld [vmem:[%s3084_s0 + $0x208] sm:$0xf]  ;;  %v2141_v44 = vld [vmem:[%s3083_s1 + $0x98] sm:$0xff]  ;;  %v1745_v47 = vor.u32 %v2089_v37, %v1744_v36  ;;  %v2148_v53 = vld [vmem:[%s3083_s1 + $0xd0] sm:$0xff] }
   0xf   :  { %2268 = vmatpush.bf16.msra.mxu3 %v2126_v3  ;;  %921 = vmatpush.bf16.msra.mxu0 %v2126_v3  ;;  %v1584_v40 = vld [vmem:[%s3084_s0 + $0x28] sm:$0xf]  ;;  %v2149_v45 = vld [vmem:[%s3083_s1 + $0xd8] sm:$0xff]  ;;  %v1825_v48 = vor.u32 %v2109_v39, %v1824_v38  ;;  %v2132_v54 = vld [vmem:[%s3083_s1 + $0x50] sm:$0xff] }
  0x10   :  { %v1585_v49 = vor.u32 %v2049_v41, %v1584_v40  ;;  %v2133_v50 = vld [vmem:[%s3083_s1 + $0x58] sm:$0xff]  ;;  %v2156_v55 = vld [vmem:[%s3083_s1 + $0x110] sm:$0xff]  ;;  %v2139_v56 = vld [vmem:[%s3083_s1 + $0x88] sm:$0xff] }
  0x11   :  { %v2157_v51 = vld [vmem:[%s3083_s1 + $0x118] sm:$0xff]  ;;  %v2147_v57 = vld [vmem:[%s3083_s1 + $0xc8] sm:$0xff]  ;;  %v1684_v60 = vld [vmem:[%s3084_s0 + $0xf0] sm:$0xf] }
  0x12   :  { %2269 = vmatpush.bf16.msra.mxu1 %v2125_v4  ;;  %2270 = vmatpush.bf16.msra.mxu2 %v2125_v4  ;;  %v2131_v58 = vld [vmem:[%s3083_s1 + $0x48] sm:$0xff]  ;;  %v2138_v61 = vld [vmem:[%s3083_s1 + $0x80] sm:$0xff]  ;;  %v1764_v0 = vld [vmem:[%s3084_s0 + $0x190] sm:$0xf] }
  0x13   :  { %2271 = vmatpush.bf16.msra.mxu3 %v2125_v4  ;;  %922 = vmatpush.bf16.msra.mxu0 %v2125_v4  ;;  %v2155_v59 = vld [vmem:[%s3083_s1 + $0x108] sm:$0xff]  ;;  %v2146_v62 = vld [vmem:[%s3083_s1 + $0xc0] sm:$0xff]  ;;  %v1844_v2 = vld [vmem:[%s3084_s0 + $0x230] sm:$0xf] }
  0x14   :  { %v2074_v63 = vld [vmem:[%s3084_s0 + $0x100] sm:$0xf0]  ;;  %v1604_v4 = vld [vmem:[%s3084_s0 + $0x50] sm:$0xf]  ;;  %v1704_v12 = vld [vmem:[%s3084_s0 + $0x118] sm:$0xf] }
  0x15   :  { %v2094_v1 = vld [vmem:[%s3084_s0 + $0x1a0] sm:$0xf0]  ;;  %v1685_v8 = vor.u32 %v2074_v63, %v1684_v60  ;;  %v2079_v13 = vld [vmem:[%s3084_s0 + $0x128] sm:$0xf0]  ;;  %v1784_v14 = vld [vmem:[%s3084_s0 + $0x1b8] sm:$0xf] }
  0x16   :  { %2272 = vmatpush.bf16.msra.mxu1 %v2124_v5  ;;  %2273 = vmatpush.bf16.msra.mxu2 %v2124_v5  ;;  %v2114_v3 = vld [vmem:[%s3084_s0 + $0x240] sm:$0xf0]  ;;  %v1765_v9 = vor.u32 %v2094_v1, %v1764_v0  ;;  %v2099_v15 = vld [vmem:[%s3084_s0 + $0x1c8] sm:$0xf0]  ;;  %v1586_v37 = vld [vmem:[%s3084_s0 + $0x3c] sm:$0xf0] }
  0x17   :  { %2274 = vmatpush.bf16.msra.mxu3 %v2124_v5  ;;  %923 = vmatpush.bf16.msra.mxu0 %v2124_v5  ;;  %v2054_v5 = vld [vmem:[%s3084_s0 + $0x60] sm:$0xf0]  ;;  %v1845_v10 = vor.u32 %v2114_v3, %v1844_v2  ;;  %v2047_v36 = vld [vmem:[%s3084_s0 + $0x2c] sm:$0xf]  ;;  %v1592_v38 = vld [vmem:[%s3084_s0 + $0x30] sm:$0xf] }
  0x18   :  { %v1605_v11 = vor.u32 %v2054_v5, %v1604_v4  ;;  %v2050_v39 = vld [vmem:[%s3084_s0 + $0x40] sm:$0xf0]  ;;  %v2048_v40 = vld [vmem:[%s3084_s0 + $0x34] sm:$0xf]  ;;  %v1594_v41 = vld [vmem:[%s3084_s0 + $0x44] sm:$0xf0] }
  0x19   :  { %v2057_v60 = vld [vmem:[%s3084_s0 + $0x7c] sm:$0xf]  ;;  %v2060_v63 = vld [vmem:[%s3084_s0 + $0x90] sm:$0xf0]  ;;  %v2058_v0 = vld [vmem:[%s3084_s0 + $0x84] sm:$0xf] }
  0x1a   :  { %2275 = vmatpush.bf16.msra.mxu1 %v2123_v6  ;;  %2276 = vmatpush.bf16.msra.mxu2 %v2123_v6  ;;  %v1634_v1 = vld [vmem:[%s3084_s0 + $0x94] sm:$0xf0]  ;;  %v1640_v2 = vld [vmem:[%s3084_s0 + $0x88] sm:$0xf]  ;;  %v2061_v3 = vld [vmem:[%s3084_s0 + $0x98] sm:$0xf0] }
  0x1b   :  { %2277 = vmatpush.bf16.msra.mxu3 %v2123_v6  ;;  %924 = vmatpush.bf16.msra.mxu0 %v2123_v6  ;;  %v2130_v6 = vld [vmem:[%s3083_s1 + $0x40] sm:$0xff] }
  0x1e   :  { %2278 = vmatpush.bf16.msra.mxu1 %v2122_v7  ;;  %2279 = vmatpush.bf16.msra.mxu2 %v2122_v7 }
  0x1f   :  { %2280 = vmatpush.bf16.msra.mxu3 %v2122_v7  ;;  %925 = vmatpush.bf16.msra.mxu0 %v2122_v7  ;;  %v2154_v7 = vld [vmem:[%s3083_s1 + $0x100] sm:$0xff] }
  0x21   :  { %946 = vmatmul.bf16.vlgmr.msra.gmra.mxu1 %v1645_v18  ;;  %966 = vmatmul.bf16.vlgmr.msra.gmra.mxu2 %v1725_v19  ;;  %v1624_v18 = vld [vmem:[%s3084_s0 + $0x78] sm:$0xf]  ;;  %v2059_v19 = vld [vmem:[%s3084_s0 + $0x88] sm:$0xf0] }
  0x22   :  { %1096 = vmatpush.bf16.msrb.mxu2 %v2145_v16  ;;  %986 = vmatmul.bf16.vlgmr.msra.gmra.mxu3 %v1805_v20  ;;  %v1864_v16 = vld [vmem:[%s3084_s0 + $0x258] sm:$0xf]  ;;  %v1705_v20 = vor.u32 %v2079_v13, %v1704_v12  ;;  %v2063_v12 = vld [vmem:[%s3084_s0 + $0xac] sm:$0xf]  ;;  %v1654_v13 = vld [vmem:[%s3084_s0 + $0xbc] sm:$0xf0] }
  0x23   :  { %1185 = vmatpush.bf16.msrb.mxu3 %v2153_v17  ;;  %926 = vmatmul.bf16.vlgmr.msra.gmra.mxu0 %v1565_v21  ;;  %v2119_v17 = vld [vmem:[%s3084_s0 + $0x268] sm:$0xf0]  ;;  %v1785_v21 = vor.u32 %v2099_v15, %v1784_v14  ;;  %v1660_v14 = vld [vmem:[%s3084_s0 + $0xb0] sm:$0xf]  ;;  %v2066_v15 = vld [vmem:[%s3084_s0 + $0xc0] sm:$0xf0] }
  0x24   :  { %1007 = vmatpush.bf16.msrb.mxu1 %v2137_v22  ;;  %1274 = vmatpush.bf16.msrb.mxu0 %v2161_v23  ;;  %v1865_v22 = vor.u32 %v2119_v17, %v1864_v16  ;;  %v1625_v23 = vor.u32 %v2059_v19, %v1624_v18  ;;  %v1657_v19 = vor.u32 %v2063_v12, %v1654_v13 }
  0x26   :  { %1097 = vmatpush.bf16.msrb.mxu2 %v2144_v24  ;;  %v2042_v24 = vld [vmem:[%s3084_s0 + $0x4] sm:$0xf] }
  0x27   :  { %1186 = vmatpush.bf16.msrb.mxu3 %v2152_v25  ;;  %v1566_v25 = vld [vmem:[%s3084_s0 + $0x14] sm:$0xf0] }
  0x28   :  { %1008 = vmatpush.bf16.msrb.mxu1 %v2136_v26  ;;  %1275 = vmatpush.bf16.msrb.mxu0 %v2160_v27  ;;  %v1572_v26 = vld [vmem:[%s3084_s0 + $0x8] sm:$0xf]  ;;  %v2045_v27 = vld [vmem:[%s3084_s0 + $0x18] sm:$0xf0]  ;;  %v1569_v32 = vor.u32 %v2042_v24, %v1566_v25 }
  0x2a   :  { %1098 = vmatpush.bf16.msrb.mxu2 %v2143_v28  ;;  %v2043_v28 = vld [vmem:[%s3084_s0 + $0xc] sm:$0xf] }
  0x2b   :  { %1187 = vmatpush.bf16.msrb.mxu3 %v2151_v29  ;;  %v1574_v29 = vld [vmem:[%s3084_s0 + $0x1c] sm:$0xf0] }
  0x2c   :  { %1009 = vmatpush.bf16.msrb.mxu1 %v2135_v30  ;;  %1276 = vmatpush.bf16.msrb.mxu0 %v2159_v31  ;;  %v1580_v30 = vld [vmem:[%s3084_s0 + $0x10] sm:$0xf]  ;;  %v2046_v31 = vld [vmem:[%s3084_s0 + $0x20] sm:$0xf0] }
  0x2d   :  { %v1581_v35 = vor.u32 %v2046_v31, %v1580_v30  ;;  %v2068_v30 = vld [vmem:[%s3084_s0 + $0xd4] sm:$0xf]  ;;  %v1674_v31 = vld [vmem:[%s3084_s0 + $0xe4] sm:$0xf0] }
  0x2e   :  { %1099 = vmatpush.bf16.msrb.mxu2 %v2142_v33  ;;  %v1573_v33 = vor.u32 %v2045_v27, %v1572_v26  ;;  %v2067_v26 = vld [vmem:[%s3084_s0 + $0xcc] sm:$0xf]  ;;  %v1666_v27 = vld [vmem:[%s3084_s0 + $0xdc] sm:$0xf0] }
  0x2f   :  { %1188 = vmatpush.bf16.msrb.mxu3 %v2150_v34  ;;  %v1577_v34 = vor.u32 %v2043_v28, %v1574_v29  ;;  %v1672_v28 = vld [vmem:[%s3084_s0 + $0xd0] sm:$0xf]  ;;  %v2070_v29 = vld [vmem:[%s3084_s0 + $0xe0] sm:$0xf0] }
  0x30   :  { %1010 = vmatpush.bf16.msrb.mxu1 %v2134_v42  ;;  %1277 = vmatpush.bf16.msrb.mxu0 %v2158_v43  ;;  %v1600_v42 = vld [vmem:[%s3084_s0 + $0x38] sm:$0xf]  ;;  %v2051_v43 = vld [vmem:[%s3084_s0 + $0x48] sm:$0xf0] }
  0x31   :  { %951 = vmatmul.bf16.gmra.mxu1 %v1665_v46  ;;  %971 = vmatmul.bf16.gmra.mxu2 %v1745_v47  ;;  %v1597_v46 = vor.u32 %v2048_v40, %v1594_v41  ;;  %v1601_v47 = vor.u32 %v2051_v43, %v1600_v42 }
  0x32   :  { %1100 = vmatpush.bf16.msrb.mxu2 %v2141_v44  ;;  %991 = vmatmul.bf16.gmra.mxu3 %v1825_v48  ;;  %v1589_v44 = vor.u32 %v2047_v36, %v1586_v37  ;;  %v2052_v48 = vld [vmem:[%s3084_s0 + $0x54] sm:$0xf]  ;;  %v1669_v36 = vor.u32 %v2067_v26, %v1666_v27  ;;  %v1673_v37 = vor.u32 %v2070_v29, %v1672_v28  ;;  %v2082_v28 = vld [vmem:[%s3084_s0 + $0x144] sm:$0xf]  ;;  %v1726_v29 = vld [vmem:[%s3084_s0 + $0x154] sm:$0xf0] }
  0x33   :  { %1189 = vmatpush.bf16.msrb.mxu3 %v2149_v45  ;;  %931 = vmatmul.bf16.gmra.mxu0 %v1585_v49  ;;  %v1593_v45 = vor.u32 %v2050_v39, %v1592_v38  ;;  %v1606_v49 = vld [vmem:[%s3084_s0 + $0x64] sm:$0xf0]  ;;  %v1677_v39 = vor.u32 %v2068_v30, %v1674_v31  ;;  %v2085_v31 = vld [vmem:[%s3084_s0 + $0x158] sm:$0xf0] }
  0x34   :  { %1011 = vmatpush.bf16.msrb.mxu1 %v2133_v50  ;;  %1278 = vmatpush.bf16.msrb.mxu0 %v2157_v51  ;;  %v1612_v50 = vld [vmem:[%s3084_s0 + $0x58] sm:$0xf]  ;;  %v2055_v51 = vld [vmem:[%s3084_s0 + $0x68] sm:$0xf0]  ;;  %v1732_v30 = vld [vmem:[%s3084_s0 + $0x148] sm:$0xf] }
  0x36   :  { %1101 = vmatpush.bf16.msrb.mxu2 %v2140_v52  ;;  %v2053_v52 = vld [vmem:[%s3084_s0 + $0x5c] sm:$0xf] }
  0x37   :  { %1190 = vmatpush.bf16.msrb.mxu3 %v2148_v53  ;;  %v1614_v53 = vld [vmem:[%s3084_s0 + $0x6c] sm:$0xf0] }
  0x38   :  { %1012 = vmatpush.bf16.msrb.mxu1 %v2132_v54  ;;  %1279 = vmatpush.bf16.msrb.mxu0 %v2156_v55  ;;  %v1620_v54 = vld [vmem:[%s3084_s0 + $0x60] sm:$0xf]  ;;  %v2056_v55 = vld [vmem:[%s3084_s0 + $0x70] sm:$0xf0] }
  0x3a   :  { %1102 = vmatpush.bf16.msrb.mxu2 %v2139_v56  ;;  %v1609_v56 = vor.u32 %v2052_v48, %v1606_v49  ;;  %v1692_v48 = vld [vmem:[%s3084_s0 + $0xf8] sm:$0xf]  ;;  %v2075_v49 = vld [vmem:[%s3084_s0 + $0x108] sm:$0xf0] }
  0x3b   :  { %1191 = vmatpush.bf16.msrb.mxu3 %v2147_v57  ;;  %v1613_v57 = vor.u32 %v2055_v51, %v1612_v50  ;;  %v2073_v50 = vld [vmem:[%s3084_s0 + $0xfc] sm:$0xf]  ;;  %v1694_v51 = vld [vmem:[%s3084_s0 + $0x10c] sm:$0xf0] }
  0x3c   :  { %1013 = vmatpush.bf16.msrb.mxu1 %v2131_v58  ;;  %1280 = vmatpush.bf16.msrb.mxu0 %v2155_v59  ;;  %v1617_v58 = vor.u32 %v2053_v52, %v1614_v53  ;;  %v1621_v59 = vor.u32 %v2056_v55, %v1620_v54  ;;  %v1700_v52 = vld [vmem:[%s3084_s0 + $0x100] sm:$0xf]  ;;  %v2076_v53 = vld [vmem:[%s3084_s0 + $0x110] sm:$0xf0] }
  0x3e   :  { %1103 = vmatpush.bf16.msrb.mxu2 %v2138_v61  ;;  %v1626_v61 = vld [vmem:[%s3084_s0 + $0x8c] sm:$0xf0] }
  0x3f   :  { %1192 = vmatpush.bf16.msrb.mxu3 %v2146_v62  ;;  %v1632_v62 = vld [vmem:[%s3084_s0 + $0x80] sm:$0xf]  ;;  %v1629_v4 = vor.u32 %v2057_v60, %v1626_v61  ;;  %v1701_v60 = vor.u32 %v2076_v53, %v1700_v52 }
  0x40   :  { %1014 = vmatpush.bf16.msrb.mxu1 %v2130_v6  ;;  %1281 = vmatpush.bf16.msrb.mxu0 %v2154_v7  ;;  %v1633_v5 = vor.u32 %v2060_v63, %v1632_v62  ;;  %v1637_v6 = vor.u32 %v2058_v0, %v1634_v1  ;;  %v1641_v7 = vor.u32 %v2061_v3, %v1640_v2  ;;  %v2077_v2 = vld [vmem:[%s3084_s0 + $0x11c] sm:$0xf]  ;;  %v1706_v3 = vld [vmem:[%s3084_s0 + $0x12c] sm:$0xf0] }
  0x41   :  { %956 = vmatmul.bf16.gmra.mxu1 %v1685_v8  ;;  %976 = vmatmul.bf16.gmra.mxu2 %v1765_v9  ;;  %v2062_v8 = vld [vmem:[%s3084_s0 + $0xa4] sm:$0xf]  ;;  %v1646_v9 = vld [vmem:[%s3084_s0 + $0xb4] sm:$0xf0]  ;;  %v1709_v12 = vor.u32 %v2077_v2, %v1706_v3  ;;  %v2087_v3 = vld [vmem:[%s3084_s0 + $0x16c] sm:$0xf] }
  0x42   :  { %996 = vmatmul.bf16.gmra.mxu3 %v1845_v10  ;;  %v1652_v10 = vld [vmem:[%s3084_s0 + $0xa8] sm:$0xf]  ;;  %v1649_v16 = vor.u32 %v2062_v8, %v1646_v9  ;;  %v2081_v9 = vld [vmem:[%s3084_s0 + $0x138] sm:$0xf0] }
  0x43   :  { %936 = vmatmul.bf16.gmra.mxu0 %v1605_v11  ;;  %v2065_v11 = vld [vmem:[%s3084_s0 + $0xb8] sm:$0xf0]  ;;  %v1720_v8 = vld [vmem:[%s3084_s0 + $0x128] sm:$0xf] }
  0x44   :  { %v1653_v17 = vor.u32 %v2065_v11, %v1652_v10 }
  0x51   :  { %961 = vmatmul.bf16.gmra.mxu1 %v1705_v20  ;;  %981 = vmatmul.bf16.gmra.mxu2 %v1785_v21  ;;  %v1661_v20 = vor.u32 %v2066_v15, %v1660_v14 }
  0x52   :  { %1001 = vmatmul.bf16.gmra.mxu3 %v1865_v22 }
  0x53   :  { %941 = vmatmul.bf16.gmra.mxu0 %v1625_v23 }
  0x61   :  { %1015 = vmatmul.bf16.vlgmr.msrb.gmra.mxu1 %v1569_v32  ;;  %1104 = vmatmul.bf16.vlgmr.msrb.gmra.mxu2 %v1573_v33  ;;  %v1680_v32 = vld [vmem:[%s3084_s0 + $0xd8] sm:$0xf]  ;;  %v2071_v33 = vld [vmem:[%s3084_s0 + $0xe8] sm:$0xf0] }
  0x62   :  { %1193 = vmatmul.bf16.vlgmr.msrb.gmra.mxu3 %v1577_v34  ;;  %v1681_v40 = vor.u32 %v2071_v33, %v1680_v32  ;;  %v2083_v32 = vld [vmem:[%s3084_s0 + $0x14c] sm:$0xf]  ;;  %v1734_v33 = vld [vmem:[%s3084_s0 + $0x15c] sm:$0xf0] }
  0x63   :  { %1282 = vmatmul.bf16.vlgmr.msrb.gmra.mxu0 %v1581_v35 }
  0x71   :  { %1020 = vmatmul.bf16.gmra.mxu1 %v1589_v44  ;;  %1109 = vmatmul.bf16.gmra.mxu2 %v1593_v45 }
  0x72   :  { %1198 = vmatmul.bf16.gmra.mxu3 %v1597_v46  ;;  %v2072_v46 = vld [vmem:[%s3084_s0 + $0xf4] sm:$0xf] }
  0x73   :  { %1287 = vmatmul.bf16.gmra.mxu0 %v1601_v47  ;;  %v1686_v47 = vld [vmem:[%s3084_s0 + $0x104] sm:$0xf0] }
  0x81   :  { %1025 = vmatmul.bf16.gmra.mxu1 %v1609_v56  ;;  %1114 = vmatmul.bf16.gmra.mxu2 %v1613_v57  ;;  %v1689_v56 = vor.u32 %v2072_v46, %v1686_v47  ;;  %v1693_v57 = vor.u32 %v2075_v49, %v1692_v48  ;;  %v1729_v46 = vor.u32 %v2082_v28, %v1726_v29 }
  0x82   :  { %1203 = vmatmul.bf16.gmra.mxu3 %v1617_v58  ;;  %v1733_v47 = vor.u32 %v2085_v31, %v1732_v30  ;;  %v1737_v49 = vor.u32 %v2083_v32, %v1734_v33 }
  0x83   :  { %1292 = vmatmul.bf16.gmra.mxu0 %v1621_v59  ;;  %v1697_v59 = vor.u32 %v2073_v50, %v1694_v51 }
  0x91   :  { %1030 = vmatmul.bf16.gmra.mxu1 %v1629_v4  ;;  %1119 = vmatmul.bf16.gmra.mxu2 %v1633_v5  ;;  %v1712_v4 = vld [vmem:[%s3084_s0 + $0x120] sm:$0xf]  ;;  %v2080_v5 = vld [vmem:[%s3084_s0 + $0x130] sm:$0xf0] }
  0x92   :  { %1208 = vmatmul.bf16.gmra.mxu3 %v1637_v6  ;;  %v2078_v6 = vld [vmem:[%s3084_s0 + $0x124] sm:$0xf]  ;;  %v1713_v13 = vor.u32 %v2080_v5, %v1712_v4  ;;  %v1746_v4 = vld [vmem:[%s3084_s0 + $0x17c] sm:$0xf0]  ;;  %v1752_v5 = vld [vmem:[%s3084_s0 + $0x170] sm:$0xf] }
  0x93   :  { %1297 = vmatmul.bf16.gmra.mxu0 %v1641_v7  ;;  %v1714_v7 = vld [vmem:[%s3084_s0 + $0x134] sm:$0xf0]  ;;  %v1749_v29 = vor.u32 %v2087_v3, %v1746_v4  ;;  %v2092_v3 = vld [vmem:[%s3084_s0 + $0x194] sm:$0xf] }
  0x94   :  { %v1717_v15 = vor.u32 %v2078_v6, %v1714_v7  ;;  %v2088_v6 = vld [vmem:[%s3084_s0 + $0x174] sm:$0xf]  ;;  %v1772_v4 = vld [vmem:[%s3084_s0 + $0x198] sm:$0xf] }
  0x9e   :  { %v2638_v18 = vpop.f32.mrf.mxu1 }
  0xa0   :  { %v2640_v21 = vpop.f32.mrf.mxu0 }
  0xa1   :  { %1035 = vmatmul.bf16.gmra.mxu1 %v1649_v16  ;;  %1124 = vmatmul.bf16.gmra.mxu2 %v1653_v17  ;;  %v1721_v16 = vor.u32 %v2081_v9, %v1720_v8  ;;  %v1754_v8 = vld [vmem:[%s3084_s0 + $0x184] sm:$0xf0]  ;;  %v1760_v9 = vld [vmem:[%s3084_s0 + $0x178] sm:$0xf] }
  0xa2   :  { %1213 = vmatmul.bf16.gmra.mxu3 %v1657_v19  ;;  %v1757_v32 = vor.u32 %v2088_v6, %v1754_v8  ;;  %v1780_v8 = vld [vmem:[%s3084_s0 + $0x1a0] sm:$0xf] }
  0xa3   :  { %1302 = vmatmul.bf16.gmra.mxu0 %v1661_v20 }
  0xa4   :  { %v2642_v22 = vpop.f32.mrf.mxu2 }
  0xa5   :  { %v2644_v23 = vpop.f32.mrf.mxu3 }
  0xa6   :  { %v2646_v24 = vpop.f32.mrf.mxu1 }
  0xa8   :  { %v2648_v25 = vpop.f32.mrf.mxu0 }
  0xac   :  { %v2674_v34 = vpop.f32.mrf.mxu2 }
  0xad   :  { %v2676_v35 = vpop.f32.mrf.mxu3 }
  0xae   :  { %v2678_v38 = vpop.f32.mrf.mxu1 }
  0xb0   :  { %v2680_v41 = vpop.f32.mrf.mxu0 }
  0xb1   :  { %1040 = vmatmul.bf16.gmra.mxu1 %v1669_v36  ;;  %1129 = vmatmul.bf16.gmra.mxu2 %v1673_v37  ;;  %v1740_v36 = vld [vmem:[%s3084_s0 + $0x150] sm:$0xf]  ;;  %v2086_v37 = vld [vmem:[%s3084_s0 + $0x160] sm:$0xf0] }
  0xb2   :  { %1218 = vmatmul.bf16.gmra.mxu3 %v1677_v39  ;;  %v1741_v50 = vor.u32 %v2086_v37, %v1740_v36 }
  0xb3   :  { %1307 = vmatmul.bf16.gmra.mxu0 %v1681_v40 }
  0xb4   :  { %v2682_v42 = vpop.f32.mrf.mxu2 }
  0xb5   :  { %v2684_v43 = vpop.f32.mrf.mxu3 }
  0xb6   :  { %v2686_v44 = vpop.f32.mrf.mxu1 }
  0xb8   :  { %v2688_v45 = vpop.f32.mrf.mxu0 }
  0xbc   :  { %v2714_v54 = vpop.f32.mrf.mxu2 }
  0xbd   :  { %v2716_v55 = vpop.f32.mrf.mxu3 }
  0xbe   :  { %v2718_v58 = vpop.f32.mrf.mxu1 }
  0xc0   :  { %v2720_v61 = vpop.f32.mrf.mxu0 }
  0xc1   :  { %1045 = vmatmul.bf16.gmra.mxu1 %v1689_v56  ;;  %1134 = vmatmul.bf16.gmra.mxu2 %v1693_v57 }
  0xc2   :  { %1223 = vmatmul.bf16.gmra.mxu3 %v1697_v59 }
  0xc3   :  { %1312 = vmatmul.bf16.gmra.mxu0 %v1701_v60 }
  0xc4   :  { %v2722_v62 = vpop.f32.mrf.mxu2 }
  0xc5   :  { %v2724_v63 = vpop.f32.mrf.mxu3 }
  0xc6   :  { %v2726_v0 = vpop.f32.mrf.mxu1 }
  0xc8   :  { %v2728_v1 = vpop.f32.mrf.mxu0 }
  0xcc   :  { %v2754_v10 = vpop.f32.mrf.mxu2 }
  0xcd   :  { %v2756_v11 = vpop.f32.mrf.mxu3 }
  0xce   :  { %v2758_v14 = vpop.f32.mrf.mxu1 }
  0xd0   :  { %v2760_v17 = vpop.f32.mrf.mxu0 }
  0xd1   :  { %1050 = vmatmul.bf16.gmra.mxu1 %v1709_v12  ;;  %1139 = vmatmul.bf16.gmra.mxu2 %v1713_v13  ;;  %v2091_v12 = vld [vmem:[%s3084_s0 + $0x188] sm:$0xf0] }
  0xd2   :  { %1228 = vmatmul.bf16.gmra.mxu3 %v1717_v15  ;;  %v2827_v15 = vld [vmem:[%s3085_s2] ss:$0 sm:$0xff]  ;;  %v1761_v33 = vor.u32 %v2091_v12, %v1760_v9  ;;  %v2096_v9 = vld [vmem:[%s3084_s0 + $0x1b0] sm:$0xf0] }
  0xd3   :  { %1317 = vmatmul.bf16.gmra.mxu0 %v1721_v16 }
  0xd4   :  { %v2762_v19 = vpop.f32.mrf.mxu2 }
  0xd5   :  { %v2764_v20 = vpop.f32.mrf.mxu3 }
  0xd6   :  { %v2766_v26 = vpop.f32.mrf.mxu1 }
  0xd8   :  { %v2768_v27 = vpop.f32.mrf.mxu0 }
  0xdc   :  { %v2794_v39 = vpop.f32.mrf.mxu2 }
  0xdd   :  { %v2796_v40 = vpop.f32.mrf.mxu3 }
  0xde   :  { %v1016_v48 = vpop.f32.mrf.mxu1 }
  0xdf   :  { %v1017_v52 = vadd.f32 %v1016_v48, %v2640_v21  ;;  %v2090_v21 = vld [vmem:[%s3084_s0 + $0x180] sm:$0xf0] }
  0xe0   :  { %v1283_v51 = vpop.f32.mrf.mxu0  ;;  %v1753_v30 = vor.u32 %v2090_v21, %v1752_v5  ;;  %v2095_v5 = vld [vmem:[%s3084_s0 + $0x1a8] sm:$0xf0]  ;;  %v2093_v21 = vld [vmem:[%s3084_s0 + $0x19c] sm:$0xf] }
  0xe1   :  { %1055 = vmatmul.bf16.gmra.mxu1 %v1729_v46  ;;  %1144 = vmatmul.bf16.gmra.mxu2 %v1733_v47 }
  0xe2   :  { %1233 = vmatmul.bf16.gmra.mxu3 %v1737_v49 }
  0xe3   :  { %1322 = vmatmul.bf16.gmra.mxu0 %v1741_v50 }
  0xe4   :  { %v1105_v53 = vpop.f32.mrf.mxu2 }
  0xe5   :  { %v1106_v56 = vadd.f32 %v1105_v53, %v1017_v52  ;;  %v1194_v57 = vpop.f32.mrf.mxu3 }
  0xe6   :  { %v1018_v59 = vpop.f32.mrf.mxu1 }
  0xe7   :  { %v1195_v2 = vadd.f32 %v1194_v57, %v1106_v56  ;;  %v1019_v7 = vadd.f32 %v1018_v59, %v2648_v25 }
  0xe8   :  { %v1285_v60 = vpop.f32.mrf.mxu0 }
  0xe9   :  { %v1284_v16 = vadd.f32 %v1283_v51, %v1195_v2 }
  0xeb   :  { %v1363_v46 = vadd.f32 %v2827_v15, %v1284_v16 }
  0xec   :  { %v1107_v13 = vpop.f32.mrf.mxu2 }
  0xed   :  { %v1108_v25 = vadd.f32 %v1107_v13, %v1019_v7  ;;  %v1196_v28 = vpop.f32.mrf.mxu3  ;;  %v1462_v51 = vmax.f32 %v1363_v46, 0.0  ;;  %v1774_v7 = vld [vmem:[%s3084_s0 + $0x1ac] sm:$0xf0] }
  0xee   :  { %v1021_v31 = vpop.f32.mrf.mxu1 }
  0xef   :  { %v1197_v36 = vadd.f32 %v1196_v28, %v1108_v25  ;;  %v1022_v49 = vadd.f32 %v1021_v31, %v2680_v41  ;;  %v1766_v41 = vld [vmem:[%s3084_s0 + $0x1a4] sm:$0xf0]  ;;  %v1781_v31 = vor.u32 %v2096_v9, %v1780_v8 }
  0xf0   :  { %v1288_v37 = vpop.f32.mrf.mxu0  ;;  %v1769_v28 = vor.u32 %v2092_v3, %v1766_v41  ;;  %v2100_v3 = vld [vmem:[%s3084_s0 + $0x1d0] sm:$0xf0]  ;;  %v2098_v41 = vld [vmem:[%s3084_s0 + $0x1c4] sm:$0xf] }
  0xf1   :  { %v1286_v47 = vadd.f32 %v1285_v60, %v1197_v36  ;;  %1060 = vmatmul.bf16.gmra.mxu1 %v1749_v29  ;;  %1149 = vmatmul.bf16.gmra.mxu2 %v1753_v30  ;;  %v1773_v29 = vor.u32 %v2095_v5, %v1772_v4  ;;  %v1794_v5 = vld [vmem:[%s3084_s0 + $0x1d4] sm:$0xf0] }
  0xf2   :  { %1238 = vmatmul.bf16.gmra.mxu3 %v1757_v32 }
  0xf3   :  { %1327 = vmatmul.bf16.gmra.mxu0 %v1761_v33  ;;  %v1364_v48 = vadd.f32 %v2827_v15, %v1286_v47 }
  0xf4   :  { %v1110_v50 = vpop.f32.mrf.mxu2 }
  0xf5   :  { %v1463_v52 = vmax.f32 %v1364_v48, 0.0  ;;  %v1111_v53 = vadd.f32 %v1110_v50, %v1022_v49  ;;  %v1199_v56 = vpop.f32.mrf.mxu3 }
  0xf6   :  { %v1023_v57 = vpop.f32.mrf.mxu1 }
  0xf7   :  { %v2165_v59 = vpack.c.bf16 %v1463_v52, %v1462_v51  ;;  %v1200_v60 = vadd.f32 %v1199_v56, %v1111_v53  ;;  %v1024_v6 = vadd.f32 %v1023_v57, %v2688_v45  ;;  %v1777_v45 = vor.u32 %v2093_v21, %v1774_v7  ;;  %v1800_v21 = vld [vmem:[%s3084_s0 + $0x1c8] sm:$0xf] }
  0xf8   :  { %v1290_v2 = vpop.f32.mrf.mxu0 }
  0xf9   :  { %2166 = vst [vmem:[%s3086_s3] sm:$0xff] %v2165_v59   ;;  %v1289_v13 = vadd.f32 %v1288_v37, %v1200_v60  ;;  %v1792_v60 = vld [vmem:[%s3084_s0 + $0x1c0] sm:$0xf] }
  0xfb   :  { %v1365_v36 = vadd.f32 %v2827_v15, %v1289_v13 }
  0xfc   :  { %v1112_v12 = vpop.f32.mrf.mxu2 }
  0xfd   :  { %v1113_v16 = vadd.f32 %v1112_v12, %v1024_v6  ;;  %v1201_v25 = vpop.f32.mrf.mxu3  ;;  %v1464_v49 = vmax.f32 %v1365_v36, 0.0  ;;  %v2101_v6 = vld [vmem:[%s3084_s0 + $0x1d8] sm:$0xf0] }
  0xfe   :  { %v1026_v30 = vpop.f32.mrf.mxu1 }
  0xff   :  { %v1202_v32 = vadd.f32 %v1201_v25, %v1113_v16  ;;  %v1027_v37 = vadd.f32 %v1026_v30, %v2720_v61  ;;  %v1786_v61 = vld [vmem:[%s3084_s0 + $0x1cc] sm:$0xf0]  ;;  %v1793_v16 = vor.u32 %v2100_v3, %v1792_v60  ;;  %v2106_v3 = vld [vmem:[%s3084_s0 + $0x200] sm:$0xf0] }
 0x100   :  { %v1293_v33 = vpop.f32.mrf.mxu0  ;;  %v1820_v60 = vld [vmem:[%s3084_s0 + $0x1f0] sm:$0xf] }
 0x101   :  { %v1291_v46 = vadd.f32 %v1290_v2, %v1202_v32  ;;  %1065 = vmatmul.bf16.gmra.mxu1 %v1769_v28  ;;  %1154 = vmatmul.bf16.gmra.mxu2 %v1773_v29  ;;  %v2097_v2 = vld [vmem:[%s3084_s0 + $0x1bc] sm:$0xf]  ;;  %v1801_v28 = vor.u32 %v2101_v6, %v1800_v21 }
 0x102   :  { %1243 = vmatmul.bf16.gmra.mxu3 %v1777_v45  ;;  %v1789_v13 = vor.u32 %v2097_v2, %v1786_v61  ;;  %v1814_v61 = vld [vmem:[%s3084_s0 + $0x1fc] sm:$0xf0] }
 0x103   :  { %1332 = vmatmul.bf16.gmra.mxu0 %v1781_v31  ;;  %v1366_v47 = vadd.f32 %v2827_v15, %v1291_v46 }
 0x104   :  { %v1115_v48 = vpop.f32.mrf.mxu2 }
 0x105   :  { %v1465_v50 = vmax.f32 %v1366_v47, 0.0  ;;  %v1116_v51 = vadd.f32 %v1115_v48, %v1027_v37  ;;  %v1204_v52 = vpop.f32.mrf.mxu3 }
 0x106   :  { %v1028_v53 = vpop.f32.mrf.mxu1 }
 0x107   :  { %v2170_v56 = vpack.c.bf16 %v1465_v50, %v1464_v49  ;;  %v1205_v59 = vadd.f32 %v1204_v52, %v1116_v51  ;;  %v1029_v4 = vadd.f32 %v1028_v53, %v2728_v1  ;;  %v1797_v1 = vor.u32 %v2098_v41, %v1794_v5  ;;  %v2102_v53 = vld [vmem:[%s3084_s0 + $0x1e4] sm:$0xf] }
 0x108   :  { %v1295_v57 = vpop.f32.mrf.mxu0 }
 0x109   :  { %2242 = vst [vmem:[%s3086_s3 + $0x8] sm:$0xff] %v2170_v56   ;;  %v1294_v8 = vadd.f32 %v1293_v33, %v1205_v59  ;;  %v1812_v56 = vld [vmem:[%s3084_s0 + $0x1e8] sm:$0xf]  ;;  %v2103_v59 = vld [vmem:[%s3084_s0 + $0x1ec] sm:$0xf] }
 0x10b   :  { %v1367_v45 = vadd.f32 %v2827_v15, %v1294_v8 }
 0x10c   :  { %v1117_v7 = vpop.f32.mrf.mxu2 }
 0x10d   :  { %v1118_v9 = vadd.f32 %v1117_v7, %v1029_v4  ;;  %v1206_v12 = vpop.f32.mrf.mxu3  ;;  %v1466_v46 = vmax.f32 %v1367_v45, 0.0 }
 0x10e   :  { %v1031_v25 = vpop.f32.mrf.mxu1 }
 0x10f   :  { %v1207_v29 = vadd.f32 %v1206_v12, %v1118_v9  ;;  %v1032_v33 = vadd.f32 %v1031_v25, %v2760_v17  ;;  %v1806_v17 = vld [vmem:[%s3084_s0 + $0x1f4] sm:$0xf0]  ;;  %v1821_v9 = vor.u32 %v2106_v3, %v1820_v60 }
 0x110   :  { %v1298_v30 = vpop.f32.mrf.mxu0  ;;  %v1809_v6 = vor.u32 %v2102_v53, %v1806_v17  ;;  %v1840_v53 = vld [vmem:[%s3084_s0 + $0x218] sm:$0xf]  ;;  %v2111_v17 = vld [vmem:[%s3084_s0 + $0x228] sm:$0xf0] }
 0x111   :  { %v1296_v31 = vadd.f32 %v1295_v57, %v1207_v29  ;;  %1070 = vmatmul.bf16.gmra.mxu1 %v1789_v13  ;;  %1159 = vmatmul.bf16.gmra.mxu2 %v1793_v16  ;;  %v2105_v57 = vld [vmem:[%s3084_s0 + $0x1f8] sm:$0xf0] }
 0x112   :  { %1248 = vmatmul.bf16.gmra.mxu3 %v1797_v1  ;;  %v1813_v7 = vor.u32 %v2105_v57, %v1812_v56 }
 0x113   :  { %1337 = vmatmul.bf16.gmra.mxu0 %v1801_v28  ;;  %v1368_v32 = vadd.f32 %v2827_v15, %v1296_v31 }
 0x114   :  { %v1120_v36 = vpop.f32.mrf.mxu2 }
 0x115   :  { %v1467_v47 = vmax.f32 %v1368_v32, 0.0  ;;  %v1121_v37 = vadd.f32 %v1120_v36, %v1032_v33  ;;  %v1209_v48 = vpop.f32.mrf.mxu3 }
 0x116   :  { %v1033_v49 = vpop.f32.mrf.mxu1 }
 0x117   :  { %v2175_v50 = vpack.c.bf16 %v1467_v47, %v1466_v46  ;;  %v1210_v52 = vadd.f32 %v1209_v48, %v1121_v37  ;;  %v1034_v2 = vadd.f32 %v1033_v49, %v2768_v27  ;;  %v1817_v27 = vor.u32 %v2103_v59, %v1814_v61  ;;  %v2107_v37 = vld [vmem:[%s3084_s0 + $0x20c] sm:$0xf]  ;;  %v1832_v48 = vld [vmem:[%s3084_s0 + $0x210] sm:$0xf]  ;;  %v2110_v49 = vld [vmem:[%s3084_s0 + $0x220] sm:$0xf0] }
 0x118   :  { %v1300_v51 = vpop.f32.mrf.mxu0  ;;  %v1833_v60 = vor.u32 %v2110_v49, %v1832_v48 }
 0x119   :  { %2243 = vst [vmem:[%s3086_s3 + $0x10] sm:$0xff] %v2175_v50   ;;  %v1299_v4 = vadd.f32 %v1298_v30, %v1210_v52  ;;  %v2108_v50 = vld [vmem:[%s3084_s0 + $0x214] sm:$0xf]  ;;  %v1834_v52 = vld [vmem:[%s3084_s0 + $0x224] sm:$0xf0] }
 0x11b   :  { %v1369_v16 = vadd.f32 %v2827_v15, %v1299_v4 }
 0x11c   :  { %v1122_v41 = vpop.f32.mrf.mxu2 }
 0x11d   :  { %v1123_v5 = vadd.f32 %v1122_v41, %v1034_v2  ;;  %v1211_v21 = vpop.f32.mrf.mxu3  ;;  %v1468_v30 = vmax.f32 %v1369_v16, 0.0  ;;  %v1841_v41 = vor.u32 %v2111_v17, %v1840_v53 }
 0x11e   :  { %v1036_v8 = vpop.f32.mrf.mxu1 }
 0x11f   :  { %v1212_v12 = vadd.f32 %v1211_v21, %v1123_v5  ;;  %v1037_v28 = vadd.f32 %v1036_v8, %v2638_v18  ;;  %v1826_v18 = vld [vmem:[%s3084_s0 + $0x21c] sm:$0xf0] }
 0x120   :  { %v1303_v13 = vpop.f32.mrf.mxu0  ;;  %v1829_v61 = vor.u32 %v2107_v37, %v1826_v18 }
 0x121   :  { %v1301_v25 = vadd.f32 %v1300_v51, %v1212_v12  ;;  %1075 = vmatmul.bf16.gmra.mxu1 %v1809_v6  ;;  %1164 = vmatmul.bf16.gmra.mxu2 %v1813_v7 }
 0x122   :  { %1253 = vmatmul.bf16.gmra.mxu3 %v1817_v27 }
 0x123   :  { %1342 = vmatmul.bf16.gmra.mxu0 %v1821_v9  ;;  %v1370_v1 = vadd.f32 %v2827_v15, %v1301_v25 }
 0x124   :  { %v1125_v29 = vpop.f32.mrf.mxu2 }
 0x125   :  { %v1469_v45 = vmax.f32 %v1370_v1, 0.0  ;;  %v1126_v31 = vadd.f32 %v1125_v29, %v1037_v28  ;;  %v1214_v32 = vpop.f32.mrf.mxu3 }
 0x126   :  { %v1038_v33 = vpop.f32.mrf.mxu1 }
 0x127   :  { %v2180_v36 = vpack.c.bf16 %v1469_v45, %v1468_v30  ;;  %v1215_v47 = vadd.f32 %v1214_v32, %v1126_v31  ;;  %v1039_v51 = vadd.f32 %v1038_v33, %v2646_v24  ;;  %v1837_v24 = vor.u32 %v2108_v50, %v1834_v52  ;;  %v2112_v30 = vld [vmem:[%s3084_s0 + $0x234] sm:$0xf]  ;;  %v1852_v45 = vld [vmem:[%s3084_s0 + $0x238] sm:$0xf]  ;;  %v2115_v31 = vld [vmem:[%s3084_s0 + $0x248] sm:$0xf0] }
 0x128   :  { %v1305_v46 = vpop.f32.mrf.mxu0  ;;  %v2113_v32 = vld [vmem:[%s3084_s0 + $0x23c] sm:$0xf] }
 0x129   :  { %2244 = vst [vmem:[%s3086_s3 + $0x18] sm:$0xff] %v2180_v36   ;;  %v1304_v57 = vadd.f32 %v1303_v13, %v1215_v47  ;;  %v1854_v36 = vld [vmem:[%s3084_s0 + $0x24c] sm:$0xf0]  ;;  %v2116_v47 = vld [vmem:[%s3084_s0 + $0x250] sm:$0xf0] }
 0x12b   :  { %v1371_v21 = vadd.f32 %v2827_v15, %v1304_v57 }
 0x12c   :  { %v1127_v56 = vpop.f32.mrf.mxu2 }
 0x12d   :  { %v1128_v59 = vadd.f32 %v1127_v56, %v1039_v51  ;;  %v1216_v2 = vpop.f32.mrf.mxu3  ;;  %v1470_v9 = vmax.f32 %v1371_v21, 0.0  ;;  %v1853_v51 = vor.u32 %v2115_v31, %v1852_v45 }
 0x12e   :  { %v1041_v3 = vpop.f32.mrf.mxu1 }
 0x12f   :  { %v1217_v4 = vadd.f32 %v1216_v2, %v1128_v59  ;;  %v1042_v8 = vadd.f32 %v1041_v3, %v2678_v38  ;;  %v1846_v38 = vld [vmem:[%s3084_s0 + $0x244] sm:$0xf0] }
 0x130   :  { %v1308_v5 = vpop.f32.mrf.mxu0  ;;  %v1849_v50 = vor.u32 %v2112_v30, %v1846_v38 }
 0x131   :  { %v1306_v6 = vadd.f32 %v1305_v46, %v1217_v4  ;;  %1080 = vmatmul.bf16.gmra.mxu1 %v1829_v61  ;;  %1169 = vmatmul.bf16.gmra.mxu2 %v1833_v60  ;;  %v1860_v46 = vld [vmem:[%s3084_s0 + $0x240] sm:$0xf] }
 0x132   :  { %1258 = vmatmul.bf16.gmra.mxu3 %v1837_v24  ;;  %v1861_v53 = vor.u32 %v2116_v47, %v1860_v46 }
 0x133   :  { %1347 = vmatmul.bf16.gmra.mxu0 %v1841_v41  ;;  %v1372_v7 = vadd.f32 %v2827_v15, %v1306_v6 }
 0x134   :  { %v1130_v27 = vpop.f32.mrf.mxu2 }
 0x135   :  { %v1471_v12 = vmax.f32 %v1372_v7, 0.0  ;;  %v1131_v13 = vadd.f32 %v1130_v27, %v1042_v8  ;;  %v1219_v16 = vpop.f32.mrf.mxu3  ;;  %v2117_v8 = vld [vmem:[%s3084_s0 + $0x25c] sm:$0xf]  ;;  %v1872_v27 = vld [vmem:[%s3084_s0 + $0x260] sm:$0xf] }
 0x136   :  { %v1043_v25 = vpop.f32.mrf.mxu1 }
 0x137   :  { %v2185_v1 = vpack.c.bf16 %v1471_v12, %v1470_v9  ;;  %v1220_v29 = vadd.f32 %v1219_v16, %v1131_v13  ;;  %v1044_v33 = vadd.f32 %v1043_v25, %v2686_v44  ;;  %v1857_v44 = vor.u32 %v2113_v32, %v1854_v36  ;;  %v2120_v9 = vld [vmem:[%s3084_s0 + $0x270] sm:$0xf0]  ;;  %v2118_v12 = vld [vmem:[%s3084_s0 + $0x264] sm:$0xf]  ;;  %v1874_v16 = vld [vmem:[%s3084_s0 + $0x274] sm:$0xf0] }
 0x138   :  { %v1310_v28 = vpop.f32.mrf.mxu0  ;;  %v1880_v25 = vld [vmem:[%s3084_s0 + $0x268] sm:$0xf]  ;;  %v1873_v31 = vor.u32 %v2120_v9, %v1872_v27 }
 0x139   :  { %2245 = vst [vmem:[%s3086_s3 + $0x20] sm:$0xff] %v2185_v1   ;;  %v1309_v18 = vadd.f32 %v1308_v5, %v1220_v29  ;;  %v2121_v1 = vld [vmem:[%s3084_s0 + $0x278] sm:$0xf0] }
 0x13b   :  { %v1373_v57 = vadd.f32 %v2827_v15, %v1309_v18 }
 0x13c   :  { %v1132_v37 = vpop.f32.mrf.mxu2 }
 0x13d   :  { %v1133_v48 = vadd.f32 %v1132_v37, %v1044_v33  ;;  %v1221_v49 = vpop.f32.mrf.mxu3  ;;  %v1472_v3 = vmax.f32 %v1373_v57, 0.0  ;;  %v1881_v33 = vor.u32 %v2121_v1, %v1880_v25 }
 0x13e   :  { %v1046_v52 = vpop.f32.mrf.mxu1 }
 0x13f   :  { %v1222_v17 = vadd.f32 %v1221_v49, %v1133_v48  ;;  %v1047_v61 = vadd.f32 %v1046_v52, %v2718_v58  ;;  %v1866_v58 = vld [vmem:[%s3084_s0 + $0x26c] sm:$0xf0] }
 0x140   :  { %v1313_v56 = vpop.f32.mrf.mxu0  ;;  %v1869_v45 = vor.u32 %v2117_v8, %v1866_v58 }
 0x141   :  { %v1311_v59 = vadd.f32 %v1310_v28, %v1222_v17  ;;  %1085 = vmatmul.bf16.gmra.mxu1 %v1849_v50  ;;  %1174 = vmatmul.bf16.gmra.mxu2 %v1853_v51 }
 0x142   :  { %1263 = vmatmul.bf16.gmra.mxu3 %v1857_v44 }
 0x143   :  { %1352 = vmatmul.bf16.gmra.mxu0 %v1861_v53  ;;  %v1374_v2 = vadd.f32 %v2827_v15, %v1311_v59 }
 0x144   :  { %v1135_v60 = vpop.f32.mrf.mxu2 }
 0x145   :  { %v1473_v24 = vmax.f32 %v1374_v2, 0.0  ;;  %v1136_v41 = vadd.f32 %v1135_v60, %v1047_v61  ;;  %v1224_v4 = vpop.f32.mrf.mxu3 }
 0x146   :  { %v1048_v5 = vpop.f32.mrf.mxu1 }
 0x147   :  { %v2190_v21 = vpack.c.bf16 %v1473_v24, %v1472_v3  ;;  %v1225_v7 = vadd.f32 %v1224_v4, %v1136_v41  ;;  %v1049_v13 = vadd.f32 %v1048_v5, %v2726_v0  ;;  %v1877_v0 = vor.u32 %v2118_v12, %v1874_v16 }
 0x148   :  { %v1315_v6 = vpop.f32.mrf.mxu0 }
 0x149   :  { %2246 = vst [vmem:[%s3086_s3 + $0x28] sm:$0xff] %v2190_v21   ;;  %v1314_v29 = vadd.f32 %v1313_v56, %v1225_v7 }
 0x14b   :  { %v1375_v47 = vadd.f32 %v2827_v15, %v1314_v29 }
 0x14c   :  { %v1137_v28 = vpop.f32.mrf.mxu2 }
 0x14d   :  { %v1138_v30 = vadd.f32 %v1137_v28, %v1049_v13  ;;  %v1226_v38 = vpop.f32.mrf.mxu3  ;;  %v1474_v50 = vmax.f32 %v1375_v47, 0.0 }
 0x14e   :  { %v1051_v32 = vpop.f32.mrf.mxu1 }
 0x14f   :  { %v1227_v36 = vadd.f32 %v1226_v38, %v1138_v30  ;;  %v1052_v48 = vadd.f32 %v1051_v32, %v2758_v14 }
 0x150   :  { %v1318_v46 = vpop.f32.mrf.mxu0 }
 0x151   :  { %v1316_v37 = vadd.f32 %v1315_v6, %v1227_v36  ;;  %1090 = vmatmul.bf16.gmra.mxu1 %v1869_v45  ;;  %1179 = vmatmul.bf16.gmra.mxu2 %v1873_v31 }
 0x152   :  { %1268 = vmatmul.bf16.gmra.mxu3 %v1877_v0 }
 0x153   :  { %1357 = vmatmul.bf16.gmra.mxu0 %v1881_v33  ;;  %v1376_v18 = vadd.f32 %v2827_v15, %v1316_v37 }
 0x154   :  { %v1140_v49 = vpop.f32.mrf.mxu2 }
 0x155   :  { %v1475_v51 = vmax.f32 %v1376_v18, 0.0  ;;  %v1141_v52 = vadd.f32 %v1140_v49, %v1052_v48  ;;  %v1229_v44 = vpop.f32.mrf.mxu3 }
 0x156   :  { %v1053_v53 = vpop.f32.mrf.mxu1 }
 0x157   :  { %v2195_v17 = vpack.c.bf16 %v1475_v51, %v1474_v50  ;;  %v1230_v57 = vadd.f32 %v1229_v44, %v1141_v52  ;;  %v1054_v59 = vadd.f32 %v1053_v53, %v2766_v26 }
 0x158   :  { %v1320_v56 = vpop.f32.mrf.mxu0 }
 0x159   :  { %2247 = vst [vmem:[%s3086_s3 + $0x30] sm:$0xff] %v2195_v17   ;;  %v1319_v61 = vadd.f32 %v1318_v46, %v1230_v57 }
 0x15b   :  { %v1377_v4 = vadd.f32 %v2827_v15, %v1319_v61 }
 0x15c   :  { %v1142_v2 = vpop.f32.mrf.mxu2 }
 0x15d   :  { %v1143_v60 = vadd.f32 %v1142_v2, %v1054_v59  ;;  %v1231_v3 = vpop.f32.mrf.mxu3  ;;  %v1476_v8 = vmax.f32 %v1377_v4, 0.0 }
 0x15e   :  { %v1056_v14 = vpop.f32.mrf.mxu1 }
 0x15f   :  { %v1232_v24 = vadd.f32 %v1231_v3, %v1143_v60  ;;  %v1057_v6 = vadd.f32 %v1056_v14, %v2642_v22 }
 0x160   :  { %v1323_v41 = vpop.f32.mrf.mxu0 }
 0x161   :  { %v1321_v5 = vadd.f32 %v1320_v56, %v1232_v24 }
 0x163   :  { %v1378_v21 = vadd.f32 %v2827_v15, %v1321_v5 }
 0x164   :  { %v1145_v7 = vpop.f32.mrf.mxu2 }
 0x165   :  { %v1477_v58 = vmax.f32 %v1378_v21, 0.0  ;;  %v1146_v27 = vadd.f32 %v1145_v7, %v1057_v6  ;;  %v1234_v9 = vpop.f32.mrf.mxu3 }
 0x166   :  { %v1058_v26 = vpop.f32.mrf.mxu1 }
 0x167   :  { %v2200_v12 = vpack.c.bf16 %v1477_v58, %v1476_v8  ;;  %v1235_v16 = vadd.f32 %v1234_v9, %v1146_v27  ;;  %v1059_v25 = vadd.f32 %v1058_v26, %v2674_v34 }
 0x168   :  { %v1325_v13 = vpop.f32.mrf.mxu0 }
 0x169   :  { %2248 = vst [vmem:[%s3086_s3 + $0x38] sm:$0xff] %v2200_v12   ;;  %v1324_v28 = vadd.f32 %v1323_v41, %v1235_v16 }
 0x16b   :  { %v1379_v31 = vadd.f32 %v2827_v15, %v1324_v28 }
 0x16c   :  { %v1147_v1 = vpop.f32.mrf.mxu2 }
 0x16d   :  { %v1148_v29 = vadd.f32 %v1147_v1, %v1059_v25  ;;  %v1236_v30 = vpop.f32.mrf.mxu3  ;;  %v1478_v46 = vmax.f32 %v1379_v31, 0.0 }
 0x16e   :  { %v1061_v22 = vpop.f32.mrf.mxu1 }
 0x16f   :  { %v1237_v38 = vadd.f32 %v1236_v30, %v1148_v29  ;;  %v1062_v33 = vadd.f32 %v1061_v22, %v2682_v42 }
 0x170   :  { %v1328_v45 = vpop.f32.mrf.mxu0 }
 0x171   :  { %v1326_v32 = vadd.f32 %v1325_v13, %v1237_v38 }
 0x173   :  { %v1380_v0 = vadd.f32 %v2827_v15, %v1326_v32 }
 0x174   :  { %v1150_v36 = vpop.f32.mrf.mxu2 }
 0x175   :  { %v1479_v47 = vmax.f32 %v1380_v0, 0.0  ;;  %v1151_v37 = vadd.f32 %v1150_v36, %v1062_v33  ;;  %v1239_v18 = vpop.f32.mrf.mxu3 }
 0x176   :  { %v1063_v34 = vpop.f32.mrf.mxu1 }
 0x177   :  { %v2205_v48 = vpack.c.bf16 %v1479_v47, %v1478_v46  ;;  %v1240_v50 = vadd.f32 %v1239_v18, %v1151_v37  ;;  %v1064_v51 = vadd.f32 %v1063_v34, %v2714_v54 }
 0x178   :  { %v1330_v49 = vpop.f32.mrf.mxu0 }
 0x179   :  { %2249 = vst [vmem:[%s3086_s3 + $0x40] sm:$0xff] %v2205_v48   ;;  %v1329_v44 = vadd.f32 %v1328_v45, %v1240_v50 }
 0x17b   :  { %v1381_v59 = vadd.f32 %v2827_v15, %v1329_v44 }
 0x17c   :  { %v1152_v52 = vpop.f32.mrf.mxu2 }
 0x17d   :  { %v1153_v53 = vadd.f32 %v1152_v52, %v1064_v51  ;;  %v1241_v17 = vpop.f32.mrf.mxu3  ;;  %v1480_v14 = vmax.f32 %v1381_v59, 0.0 }
 0x17e   :  { %v1066_v42 = vpop.f32.mrf.mxu1 }
 0x17f   :  { %v1242_v56 = vadd.f32 %v1241_v17, %v1153_v53  ;;  %v1067_v60 = vadd.f32 %v1066_v42, %v2722_v62 }
 0x180   :  { %v1333_v57 = vpop.f32.mrf.mxu0 }
 0x181   :  { %v1331_v2 = vadd.f32 %v1330_v49, %v1242_v56 }
 0x183   :  { %v1382_v61 = vadd.f32 %v2827_v15, %v1331_v2 }
 0x184   :  { %v1155_v3 = vpop.f32.mrf.mxu2 }
 0x185   :  { %v1481_v24 = vmax.f32 %v1382_v61, 0.0  ;;  %v1156_v41 = vadd.f32 %v1155_v3, %v1067_v60  ;;  %v1244_v4 = vpop.f32.mrf.mxu3 }
 0x186   :  { %v1068_v54 = vpop.f32.mrf.mxu1 }
 0x187   :  { %v2210_v5 = vpack.c.bf16 %v1481_v24, %v1480_v14  ;;  %v1245_v6 = vadd.f32 %v1244_v4, %v1156_v41  ;;  %v1069_v7 = vadd.f32 %v1068_v54, %v2754_v10 }
 0x188   :  { %v1335_v21 = vpop.f32.mrf.mxu0 }
 0x189   :  { %2250 = vst [vmem:[%s3086_s3 + $0x48] sm:$0xff] %v2210_v5   ;;  %v1334_v58 = vadd.f32 %v1333_v57, %v1245_v6 }
 0x18b   :  { %v1383_v13 = vadd.f32 %v2827_v15, %v1334_v58 }
 0x18c   :  { %v1157_v8 = vpop.f32.mrf.mxu2 }
 0x18d   :  { %v1158_v27 = vadd.f32 %v1157_v8, %v1069_v7  ;;  %v1246_v9 = vpop.f32.mrf.mxu3  ;;  %v1482_v29 = vmax.f32 %v1383_v13, 0.0 }
 0x18e   :  { %v1071_v62 = vpop.f32.mrf.mxu1 }
 0x18f   :  { %v1247_v26 = vadd.f32 %v1246_v9, %v1158_v27  ;;  %v1072_v1 = vadd.f32 %v1071_v62, %v2762_v19 }
 0x190   :  { %v1338_v12 = vpop.f32.mrf.mxu0 }
 0x191   :  { %v1336_v16 = vadd.f32 %v1335_v21, %v1247_v26 }
 0x193   :  { %v1384_v25 = vadd.f32 %v2827_v15, %v1336_v16 }
 0x194   :  { %v1160_v28 = vpop.f32.mrf.mxu2 }
 0x195   :  { %v1483_v30 = vmax.f32 %v1384_v25, 0.0  ;;  %v1161_v22 = vadd.f32 %v1160_v28, %v1072_v1  ;;  %v1249_v38 = vpop.f32.mrf.mxu3 }
 0x196   :  { %v1073_v10 = vpop.f32.mrf.mxu1 }
 0x197   :  { %v2215_v45 = vpack.c.bf16 %v1483_v30, %v1482_v29  ;;  %v1250_v32 = vadd.f32 %v1249_v38, %v1161_v22  ;;  %v1074_v0 = vadd.f32 %v1073_v10, %v2794_v39 }
 0x198   :  { %v1340_v31 = vpop.f32.mrf.mxu0 }
 0x199   :  { %2251 = vst [vmem:[%s3086_s3 + $0x50] sm:$0xff] %v2215_v45   ;;  %v1339_v36 = vadd.f32 %v1338_v12, %v1250_v32 }
 0x19b   :  { %v1385_v34 = vadd.f32 %v2827_v15, %v1339_v36 }
 0x19c   :  { %v1162_v33 = vpop.f32.mrf.mxu2 }
 0x19d   :  { %v1163_v46 = vadd.f32 %v1162_v33, %v1074_v0  ;;  %v1251_v47 = vpop.f32.mrf.mxu3  ;;  %v1484_v52 = vmax.f32 %v1385_v34, 0.0 }
 0x19e   :  { %v1076_v19 = vpop.f32.mrf.mxu1 }
 0x19f   :  { %v1252_v37 = vadd.f32 %v1251_v47, %v1163_v46  ;;  %v1077_v50 = vadd.f32 %v1076_v19, %v2644_v23 }
 0x1a0   :  { %v1343_v18 = vpop.f32.mrf.mxu0 }
 0x1a1   :  { %v1341_v48 = vadd.f32 %v1340_v31, %v1252_v37 }
 0x1a3   :  { %v1386_v49 = vadd.f32 %v2827_v15, %v1341_v48 }
 0x1a4   :  { %v1165_v51 = vpop.f32.mrf.mxu2 }
 0x1a5   :  { %v1485_v44 = vmax.f32 %v1386_v49, 0.0  ;;  %v1166_v53 = vadd.f32 %v1165_v51, %v1077_v50  ;;  %v1254_v17 = vpop.f32.mrf.mxu3 }
 0x1a6   :  { %v1078_v39 = vpop.f32.mrf.mxu1 }
 0x1a7   :  { %v2220_v42 = vpack.c.bf16 %v1485_v44, %v1484_v52  ;;  %v1255_v57 = vadd.f32 %v1254_v17, %v1166_v53  ;;  %v1079_v59 = vadd.f32 %v1078_v39, %v2676_v35 }
 0x1a8   :  { %v1345_v56 = vpop.f32.mrf.mxu0 }
 0x1a9   :  { %2252 = vst [vmem:[%s3086_s3 + $0x58] sm:$0xff] %v2220_v42   ;;  %v1344_v61 = vadd.f32 %v1343_v18, %v1255_v57 }
 0x1ab   :  { %v1387_v41 = vadd.f32 %v2827_v15, %v1344_v61 }
 0x1ac   :  { %v1167_v2 = vpop.f32.mrf.mxu2 }
 0x1ad   :  { %v1168_v60 = vadd.f32 %v1167_v2, %v1079_v59  ;;  %v1256_v3 = vpop.f32.mrf.mxu3  ;;  %v1486_v6 = vmax.f32 %v1387_v41, 0.0 }
 0x1ae   :  { %v1081_v23 = vpop.f32.mrf.mxu1 }
 0x1af   :  { %v1257_v14 = vadd.f32 %v1256_v3, %v1168_v60  ;;  %v1082_v5 = vadd.f32 %v1081_v23, %v2684_v43 }
 0x1b0   :  { %v1348_v24 = vpop.f32.mrf.mxu0 }
 0x1b1   :  { %v1346_v4 = vadd.f32 %v1345_v56, %v1257_v14 }
 0x1b3   :  { %v1388_v54 = vadd.f32 %v2827_v15, %v1346_v4 }
 0x1b4   :  { %v1170_v21 = vpop.f32.mrf.mxu2 }
 0x1b5   :  { %v1487_v7 = vmax.f32 %v1388_v54, 0.0  ;;  %v1171_v8 = vadd.f32 %v1170_v21, %v1082_v5  ;;  %v1259_v58 = vpop.f32.mrf.mxu3 }
 0x1b6   :  { %v1083_v35 = vpop.f32.mrf.mxu1 }
 0x1b7   :  { %v2225_v27 = vpack.c.bf16 %v1487_v7, %v1486_v6  ;;  %v1260_v62 = vadd.f32 %v1259_v58, %v1171_v8  ;;  %v1084_v26 = vadd.f32 %v1083_v35, %v2716_v55 }
 0x1b8   :  { %v1350_v9 = vpop.f32.mrf.mxu0 }
 0x1b9   :  { %2253 = vst [vmem:[%s3086_s3 + $0x60] sm:$0xff] %v2225_v27   ;;  %v1349_v13 = vadd.f32 %v1348_v24, %v1260_v62 }
 0x1bb   :  { %v1389_v28 = vadd.f32 %v2827_v15, %v1349_v13 }
 0x1bc   :  { %v1172_v12 = vpop.f32.mrf.mxu2 }
 0x1bd   :  { %v1173_v16 = vadd.f32 %v1172_v12, %v1084_v26  ;;  %v1261_v25 = vpop.f32.mrf.mxu3  ;;  %v1488_v45 = vmax.f32 %v1389_v28, 0.0 }
 0x1be   :  { %v1086_v43 = vpop.f32.mrf.mxu1 }
 0x1bf   :  { %v1262_v1 = vadd.f32 %v1261_v25, %v1173_v16  ;;  %v1087_v38 = vadd.f32 %v1086_v43, %v2724_v63 }
 0x1c0   :  { %v1353_v30 = vpop.f32.mrf.mxu0 }
 0x1c1   :  { %v1351_v29 = vadd.f32 %v1350_v9, %v1262_v1 }
 0x1c3   :  { %v1390_v22 = vadd.f32 %v2827_v15, %v1351_v29 }
 0x1c4   :  { %v1175_v10 = vpop.f32.mrf.mxu2 }
 0x1c5   :  { %v1489_v31 = vmax.f32 %v1390_v22, 0.0  ;;  %v1176_v32 = vadd.f32 %v1175_v10, %v1087_v38  ;;  %v1264_v0 = vpop.f32.mrf.mxu3 }
 0x1c6   :  { %v1088_v55 = vpop.f32.mrf.mxu1 }
 0x1c7   :  { %v2230_v33 = vpack.c.bf16 %v1489_v31, %v1488_v45  ;;  %v1265_v36 = vadd.f32 %v1264_v0, %v1176_v32  ;;  %v1089_v46 = vadd.f32 %v1088_v55, %v2756_v11 }
 0x1c8   :  { %v1355_v47 = vpop.f32.mrf.mxu0 }
 0x1c9   :  { %2254 = vst [vmem:[%s3086_s3 + $0x68] sm:$0xff] %v2230_v33   ;;  %v1354_v37 = vadd.f32 %v1353_v30, %v1265_v36 }
 0x1cb   :  { %v1391_v49 = vadd.f32 %v2827_v15, %v1354_v37 }
 0x1cc   :  { %v1177_v19 = vpop.f32.mrf.mxu2 }
 0x1cd   :  { %v1178_v18 = vadd.f32 %v1177_v19, %v1089_v46  ;;  %v1266_v34 = vpop.f32.mrf.mxu3  ;;  %v1490_v53 = vmax.f32 %v1391_v49, 0.0 }
 0x1ce   :  { %v1091_v63 = vpop.f32.mrf.mxu1 }
 0x1cf   :  { %v1267_v48 = vadd.f32 %v1266_v34, %v1178_v18  ;;  %v1092_v52 = vadd.f32 %v1091_v63, %v2764_v20 }
 0x1d0   :  { %v1358_v11 = vpop.f32.mrf.mxu0 }
 0x1d1   :  { %v1356_v50 = vadd.f32 %v1355_v47, %v1267_v48 }
 0x1d3   :  { %v1392_v51 = vadd.f32 %v2827_v15, %v1356_v50 }
 0x1d4   :  { %v1180_v44 = vpop.f32.mrf.mxu2 }
 0x1d5   :  { %v1491_v17 = vmax.f32 %v1392_v51, 0.0  ;;  %v1181_v39 = vadd.f32 %v1180_v44, %v1092_v52  ;;  %v1269_v42 = vpop.f32.mrf.mxu3 }
 0x1d6   :  { %v1093_v57 = vpop.f32.mrf.mxu1 }
 0x1d7   :  { %v2235_v56 = vpack.c.bf16 %v1491_v17, %v1490_v53  ;;  %v1270_v59 = vadd.f32 %v1269_v42, %v1181_v39  ;;  %v1094_v2 = vadd.f32 %v1093_v57, %v2796_v40 }
 0x1d8   :  { %v1360_v14 = vpop.f32.mrf.mxu0 }
 0x1d9   :  { %2255 = vst [vmem:[%s3086_s3 + $0x70] sm:$0xff] %v2235_v56   ;;  %v1359_v60 = vadd.f32 %v1358_v11, %v1270_v59 }
 0x1db   :  { %v1393_v24 = vadd.f32 %v2827_v15, %v1359_v60 }
 0x1dc   :  { %v1182_v61 = vpop.f32.mrf.mxu2 }
 0x1dd   :  { %v1183_v3 = vadd.f32 %v1182_v61, %v1094_v2  ;;  %v1271_v23 = vpop.f32.mrf.mxu3  ;;  %v1492_v54 = vmax.f32 %v1393_v24, 0.0 }
 0x1df   :  { %v1272_v20 = vadd.f32 %v1271_v23, %v1183_v3 }
 0x1e1   :  { %v1361_v41 = vadd.f32 %v1360_v14, %v1272_v20 }
 0x1e3   :  { %v1394_v4 = vadd.f32 %v2827_v15, %v1361_v41 }
 0x1e5   :  { %v1493_v5 = vmax.f32 %v1394_v4, 0.0 }
 0x1e7   :  { %v2240_v21 = vpack.c.bf16 %v1493_v5, %v1492_v54 }
 0x1e9   :  { %2256 = vst [vmem:[%s3086_s3 + $0x78] sm:$0xff] %v2240_v21  }

// kernel: feature_extraction_forward.68
= control target key start
LH: loop header
LB: loop body
LE: loop exit
PB: predicated region body
PF: predicated region fallthrough
CT: control target
= control target key end

     0   :  { %s3282_s1 = inlined_call_operand.vmem [shape: bf16[640,128], index: 1, kind: input, shape index: {}]   ;;  %s3283_s0 = inlined_call_operand.vmem [shape: bf16[256,640], index: 0, kind: input, shape index: {}]   ;;  %s3284_s2 = inlined_call_operand.vmem [shape: f32[1,128], index: 2, kind: input, shape index: {}]   ;;  %s3285_s3 = inlined_call_operand.vmem [shape: bf16[256,128], index: 3, kind: input, shape index: {}]   ;;  %s3286_s4 = inlined_call_operand.vmem [shape: bf16[256,128], index: 4, kind: output, shape index: {}]  }
   0x1   :  { %v2196_v0 = vld [vmem:[%s3282_s1 + $0x38] sm:$0xff]  ;;  %v2195_v1 = vld [vmem:[%s3282_s1 + $0x30] sm:$0xff]  ;;  %v2194_v2 = vld [vmem:[%s3282_s1 + $0x28] sm:$0xff] }
   0x2   :  { %2403 = vmatpush.bf16.msra.mxu1 %v2196_v0  ;;  %2404 = vmatpush.bf16.msra.mxu2 %v2196_v0  ;;  %v2193_v3 = vld [vmem:[%s3282_s1 + $0x20] sm:$0xff]  ;;  %v2192_v4 = vld [vmem:[%s3282_s1 + $0x18] sm:$0xff]  ;;  %v2191_v5 = vld [vmem:[%s3282_s1 + $0x10] sm:$0xff] }
   0x3   :  { %2405 = vmatpush.bf16.msra.mxu3 %v2196_v0  ;;  %921 = vmatpush.bf16.msra.mxu0 %v2196_v0  ;;  %v2190_v6 = vld [vmem:[%s3282_s1 + $0x8] sm:$0xff]  ;;  %v2189_v7 = vld [vmem:[%s3282_s1] sm:$0xff]  ;;  %v2131_v9 = vld [vmem:[%s3283_s0 + $0xb0] sm:$0xf0] }
   0x4   :  { %v1711_v8 = vld [vmem:[%s3283_s0 + $0xa0] sm:$0xf]  ;;  %v2151_v11 = vld [vmem:[%s3283_s0 + $0x150] sm:$0xf0]  ;;  %v2212_v16 = vld [vmem:[%s3282_s1 + $0xb8] sm:$0xff] }
   0x5   :  { %v1791_v10 = vld [vmem:[%s3283_s0 + $0x140] sm:$0xf]  ;;  %v2171_v13 = vld [vmem:[%s3283_s0 + $0x1f0] sm:$0xf0]  ;;  %v2220_v17 = vld [vmem:[%s3282_s1 + $0xf8] sm:$0xff]  ;;  %v1712_v18 = vor.u32 %v2131_v9, %v1711_v8 }
   0x6   :  { %2406 = vmatpush.bf16.msra.mxu1 %v2195_v1  ;;  %2407 = vmatpush.bf16.msra.mxu2 %v2195_v1  ;;  %v1871_v12 = vld [vmem:[%s3283_s0 + $0x1e0] sm:$0xf]  ;;  %v2111_v15 = vld [vmem:[%s3283_s0 + $0x10] sm:$0xf0]  ;;  %v1792_v19 = vor.u32 %v2151_v11, %v1791_v10  ;;  %v2204_v22 = vld [vmem:[%s3282_s1 + $0x78] sm:$0xff] }
   0x7   :  { %2408 = vmatpush.bf16.msra.mxu3 %v2195_v1  ;;  %922 = vmatpush.bf16.msra.mxu0 %v2195_v1  ;;  %v1631_v14 = vld [vmem:[%s3283_s0] sm:$0xf]  ;;  %v1872_v20 = vor.u32 %v2171_v13, %v1871_v12  ;;  %v2228_v23 = vld [vmem:[%s3282_s1 + $0x138] sm:$0xff]  ;;  %v2211_v24 = vld [vmem:[%s3282_s1 + $0xb0] sm:$0xff] }
   0x8   :  { %v1632_v21 = vor.u32 %v2111_v15, %v1631_v14  ;;  %v2219_v25 = vld [vmem:[%s3282_s1 + $0xf0] sm:$0xff]  ;;  %v2210_v28 = vld [vmem:[%s3282_s1 + $0xa8] sm:$0xff]  ;;  %v2209_v33 = vld [vmem:[%s3282_s1 + $0xa0] sm:$0xff] }
   0x9   :  { %v2203_v26 = vld [vmem:[%s3282_s1 + $0x70] sm:$0xff]  ;;  %v2218_v29 = vld [vmem:[%s3282_s1 + $0xe8] sm:$0xff]  ;;  %v2217_v34 = vld [vmem:[%s3282_s1 + $0xe0] sm:$0xff] }
   0xa   :  { %2409 = vmatpush.bf16.msra.mxu1 %v2194_v2  ;;  %2410 = vmatpush.bf16.msra.mxu2 %v2194_v2  ;;  %v2227_v27 = vld [vmem:[%s3282_s1 + $0x130] sm:$0xff]  ;;  %v2202_v30 = vld [vmem:[%s3282_s1 + $0x68] sm:$0xff]  ;;  %v2136_v35 = vld [vmem:[%s3283_s0 + $0xd8] sm:$0xf0] }
   0xb   :  { %2411 = vmatpush.bf16.msra.mxu3 %v2194_v2  ;;  %923 = vmatpush.bf16.msra.mxu0 %v2194_v2  ;;  %v2226_v31 = vld [vmem:[%s3282_s1 + $0x128] sm:$0xff]  ;;  %v2156_v37 = vld [vmem:[%s3283_s0 + $0x178] sm:$0xf0]  ;;  %v2201_v42 = vld [vmem:[%s3282_s1 + $0x60] sm:$0xff] }
   0xc   :  { %v1731_v32 = vld [vmem:[%s3283_s0 + $0xc8] sm:$0xf]  ;;  %v2176_v39 = vld [vmem:[%s3283_s0 + $0x218] sm:$0xf0]  ;;  %v2225_v43 = vld [vmem:[%s3282_s1 + $0x120] sm:$0xff] }
   0xd   :  { %v1811_v36 = vld [vmem:[%s3283_s0 + $0x168] sm:$0xf]  ;;  %v2116_v41 = vld [vmem:[%s3283_s0 + $0x38] sm:$0xf0]  ;;  %v1732_v46 = vor.u32 %v2136_v35, %v1731_v32  ;;  %v2207_v52 = vld [vmem:[%s3282_s1 + $0x90] sm:$0xff] }
   0xe   :  { %2412 = vmatpush.bf16.msra.mxu1 %v2193_v3  ;;  %2413 = vmatpush.bf16.msra.mxu2 %v2193_v3  ;;  %v1891_v38 = vld [vmem:[%s3283_s0 + $0x208] sm:$0xf]  ;;  %v2208_v44 = vld [vmem:[%s3282_s1 + $0x98] sm:$0xff]  ;;  %v1812_v47 = vor.u32 %v2156_v37, %v1811_v36  ;;  %v2215_v53 = vld [vmem:[%s3282_s1 + $0xd0] sm:$0xff] }
   0xf   :  { %2414 = vmatpush.bf16.msra.mxu3 %v2193_v3  ;;  %924 = vmatpush.bf16.msra.mxu0 %v2193_v3  ;;  %v1651_v40 = vld [vmem:[%s3283_s0 + $0x28] sm:$0xf]  ;;  %v2216_v45 = vld [vmem:[%s3282_s1 + $0xd8] sm:$0xff]  ;;  %v1892_v48 = vor.u32 %v2176_v39, %v1891_v38  ;;  %v2199_v54 = vld [vmem:[%s3282_s1 + $0x50] sm:$0xff] }
  0x10   :  { %v1652_v49 = vor.u32 %v2116_v41, %v1651_v40  ;;  %v2200_v50 = vld [vmem:[%s3282_s1 + $0x58] sm:$0xff]  ;;  %v2223_v55 = vld [vmem:[%s3282_s1 + $0x110] sm:$0xff]  ;;  %v2206_v56 = vld [vmem:[%s3282_s1 + $0x88] sm:$0xff] }
  0x11   :  { %v2224_v51 = vld [vmem:[%s3282_s1 + $0x118] sm:$0xff]  ;;  %v2214_v57 = vld [vmem:[%s3282_s1 + $0xc8] sm:$0xff]  ;;  %v1751_v60 = vld [vmem:[%s3283_s0 + $0xf0] sm:$0xf] }
  0x12   :  { %2415 = vmatpush.bf16.msra.mxu1 %v2192_v4  ;;  %2416 = vmatpush.bf16.msra.mxu2 %v2192_v4  ;;  %v2198_v58 = vld [vmem:[%s3282_s1 + $0x48] sm:$0xff]  ;;  %v2205_v61 = vld [vmem:[%s3282_s1 + $0x80] sm:$0xff]  ;;  %v1831_v0 = vld [vmem:[%s3283_s0 + $0x190] sm:$0xf] }
  0x13   :  { %2417 = vmatpush.bf16.msra.mxu3 %v2192_v4  ;;  %925 = vmatpush.bf16.msra.mxu0 %v2192_v4  ;;  %v2222_v59 = vld [vmem:[%s3282_s1 + $0x108] sm:$0xff]  ;;  %v2213_v62 = vld [vmem:[%s3282_s1 + $0xc0] sm:$0xff]  ;;  %v1911_v2 = vld [vmem:[%s3283_s0 + $0x230] sm:$0xf] }
  0x14   :  { %v2141_v63 = vld [vmem:[%s3283_s0 + $0x100] sm:$0xf0]  ;;  %v1671_v4 = vld [vmem:[%s3283_s0 + $0x50] sm:$0xf]  ;;  %v1771_v12 = vld [vmem:[%s3283_s0 + $0x118] sm:$0xf] }
  0x15   :  { %v2161_v1 = vld [vmem:[%s3283_s0 + $0x1a0] sm:$0xf0]  ;;  %v1752_v8 = vor.u32 %v2141_v63, %v1751_v60  ;;  %v2146_v13 = vld [vmem:[%s3283_s0 + $0x128] sm:$0xf0]  ;;  %v1851_v14 = vld [vmem:[%s3283_s0 + $0x1b8] sm:$0xf] }
  0x16   :  { %2418 = vmatpush.bf16.msra.mxu1 %v2191_v5  ;;  %2419 = vmatpush.bf16.msra.mxu2 %v2191_v5  ;;  %v2181_v3 = vld [vmem:[%s3283_s0 + $0x240] sm:$0xf0]  ;;  %v1832_v9 = vor.u32 %v2161_v1, %v1831_v0  ;;  %v2166_v15 = vld [vmem:[%s3283_s0 + $0x1c8] sm:$0xf0]  ;;  %v1653_v37 = vld [vmem:[%s3283_s0 + $0x3c] sm:$0xf0] }
  0x17   :  { %2420 = vmatpush.bf16.msra.mxu3 %v2191_v5  ;;  %926 = vmatpush.bf16.msra.mxu0 %v2191_v5  ;;  %v2121_v5 = vld [vmem:[%s3283_s0 + $0x60] sm:$0xf0]  ;;  %v1912_v10 = vor.u32 %v2181_v3, %v1911_v2  ;;  %v2114_v36 = vld [vmem:[%s3283_s0 + $0x2c] sm:$0xf]  ;;  %v1659_v38 = vld [vmem:[%s3283_s0 + $0x30] sm:$0xf] }
  0x18   :  { %v1672_v11 = vor.u32 %v2121_v5, %v1671_v4  ;;  %v2117_v39 = vld [vmem:[%s3283_s0 + $0x40] sm:$0xf0]  ;;  %v2115_v40 = vld [vmem:[%s3283_s0 + $0x34] sm:$0xf]  ;;  %v1661_v41 = vld [vmem:[%s3283_s0 + $0x44] sm:$0xf0] }
  0x19   :  { %v2124_v60 = vld [vmem:[%s3283_s0 + $0x7c] sm:$0xf]  ;;  %v2127_v63 = vld [vmem:[%s3283_s0 + $0x90] sm:$0xf0]  ;;  %v2125_v0 = vld [vmem:[%s3283_s0 + $0x84] sm:$0xf] }
  0x1a   :  { %2421 = vmatpush.bf16.msra.mxu1 %v2190_v6  ;;  %2422 = vmatpush.bf16.msra.mxu2 %v2190_v6  ;;  %v1701_v1 = vld [vmem:[%s3283_s0 + $0x94] sm:$0xf0]  ;;  %v1707_v2 = vld [vmem:[%s3283_s0 + $0x88] sm:$0xf]  ;;  %v2128_v3 = vld [vmem:[%s3283_s0 + $0x98] sm:$0xf0] }
  0x1b   :  { %2423 = vmatpush.bf16.msra.mxu3 %v2190_v6  ;;  %927 = vmatpush.bf16.msra.mxu0 %v2190_v6  ;;  %v2197_v6 = vld [vmem:[%s3282_s1 + $0x40] sm:$0xff] }
  0x1e   :  { %2424 = vmatpush.bf16.msra.mxu1 %v2189_v7  ;;  %2425 = vmatpush.bf16.msra.mxu2 %v2189_v7 }
  0x1f   :  { %2426 = vmatpush.bf16.msra.mxu3 %v2189_v7  ;;  %928 = vmatpush.bf16.msra.mxu0 %v2189_v7  ;;  %v2221_v7 = vld [vmem:[%s3282_s1 + $0x100] sm:$0xff] }
  0x21   :  { %949 = vmatmul.bf16.vlgmr.msra.gmra.mxu1 %v1712_v18  ;;  %969 = vmatmul.bf16.vlgmr.msra.gmra.mxu2 %v1792_v19  ;;  %v1691_v18 = vld [vmem:[%s3283_s0 + $0x78] sm:$0xf]  ;;  %v2126_v19 = vld [vmem:[%s3283_s0 + $0x88] sm:$0xf0] }
  0x22   :  { %1099 = vmatpush.bf16.msrb.mxu2 %v2212_v16  ;;  %989 = vmatmul.bf16.vlgmr.msra.gmra.mxu3 %v1872_v20  ;;  %v1931_v16 = vld [vmem:[%s3283_s0 + $0x258] sm:$0xf]  ;;  %v1772_v20 = vor.u32 %v2146_v13, %v1771_v12  ;;  %v2130_v12 = vld [vmem:[%s3283_s0 + $0xac] sm:$0xf]  ;;  %v1721_v13 = vld [vmem:[%s3283_s0 + $0xbc] sm:$0xf0] }
  0x23   :  { %1188 = vmatpush.bf16.msrb.mxu3 %v2220_v17  ;;  %929 = vmatmul.bf16.vlgmr.msra.gmra.mxu0 %v1632_v21  ;;  %v2186_v17 = vld [vmem:[%s3283_s0 + $0x268] sm:$0xf0]  ;;  %v1852_v21 = vor.u32 %v2166_v15, %v1851_v14  ;;  %v1727_v14 = vld [vmem:[%s3283_s0 + $0xb0] sm:$0xf]  ;;  %v2133_v15 = vld [vmem:[%s3283_s0 + $0xc0] sm:$0xf0] }
  0x24   :  { %1010 = vmatpush.bf16.msrb.mxu1 %v2204_v22  ;;  %1277 = vmatpush.bf16.msrb.mxu0 %v2228_v23  ;;  %v1932_v22 = vor.u32 %v2186_v17, %v1931_v16  ;;  %v1692_v23 = vor.u32 %v2126_v19, %v1691_v18  ;;  %v1724_v19 = vor.u32 %v2130_v12, %v1721_v13 }
  0x26   :  { %1100 = vmatpush.bf16.msrb.mxu2 %v2211_v24  ;;  %v2109_v24 = vld [vmem:[%s3283_s0 + $0x4] sm:$0xf] }
  0x27   :  { %1189 = vmatpush.bf16.msrb.mxu3 %v2219_v25  ;;  %v1633_v25 = vld [vmem:[%s3283_s0 + $0x14] sm:$0xf0] }
  0x28   :  { %1011 = vmatpush.bf16.msrb.mxu1 %v2203_v26  ;;  %1278 = vmatpush.bf16.msrb.mxu0 %v2227_v27  ;;  %v1639_v26 = vld [vmem:[%s3283_s0 + $0x8] sm:$0xf]  ;;  %v2112_v27 = vld [vmem:[%s3283_s0 + $0x18] sm:$0xf0]  ;;  %v1636_v32 = vor.u32 %v2109_v24, %v1633_v25 }
  0x2a   :  { %1101 = vmatpush.bf16.msrb.mxu2 %v2210_v28  ;;  %v2110_v28 = vld [vmem:[%s3283_s0 + $0xc] sm:$0xf] }
  0x2b   :  { %1190 = vmatpush.bf16.msrb.mxu3 %v2218_v29  ;;  %v1641_v29 = vld [vmem:[%s3283_s0 + $0x1c] sm:$0xf0] }
  0x2c   :  { %1012 = vmatpush.bf16.msrb.mxu1 %v2202_v30  ;;  %1279 = vmatpush.bf16.msrb.mxu0 %v2226_v31  ;;  %v1647_v30 = vld [vmem:[%s3283_s0 + $0x10] sm:$0xf]  ;;  %v2113_v31 = vld [vmem:[%s3283_s0 + $0x20] sm:$0xf0] }
  0x2d   :  { %v1648_v35 = vor.u32 %v2113_v31, %v1647_v30  ;;  %v2135_v30 = vld [vmem:[%s3283_s0 + $0xd4] sm:$0xf]  ;;  %v1741_v31 = vld [vmem:[%s3283_s0 + $0xe4] sm:$0xf0] }
  0x2e   :  { %1102 = vmatpush.bf16.msrb.mxu2 %v2209_v33  ;;  %v1640_v33 = vor.u32 %v2112_v27, %v1639_v26  ;;  %v2134_v26 = vld [vmem:[%s3283_s0 + $0xcc] sm:$0xf]  ;;  %v1733_v27 = vld [vmem:[%s3283_s0 + $0xdc] sm:$0xf0] }
  0x2f   :  { %1191 = vmatpush.bf16.msrb.mxu3 %v2217_v34  ;;  %v1644_v34 = vor.u32 %v2110_v28, %v1641_v29  ;;  %v1739_v28 = vld [vmem:[%s3283_s0 + $0xd0] sm:$0xf]  ;;  %v2137_v29 = vld [vmem:[%s3283_s0 + $0xe0] sm:$0xf0] }
  0x30   :  { %1013 = vmatpush.bf16.msrb.mxu1 %v2201_v42  ;;  %1280 = vmatpush.bf16.msrb.mxu0 %v2225_v43  ;;  %v1667_v42 = vld [vmem:[%s3283_s0 + $0x38] sm:$0xf]  ;;  %v2118_v43 = vld [vmem:[%s3283_s0 + $0x48] sm:$0xf0] }
  0x31   :  { %954 = vmatmul.bf16.gmra.mxu1 %v1732_v46  ;;  %974 = vmatmul.bf16.gmra.mxu2 %v1812_v47  ;;  %v1664_v46 = vor.u32 %v2115_v40, %v1661_v41  ;;  %v1668_v47 = vor.u32 %v2118_v43, %v1667_v42 }
  0x32   :  { %1103 = vmatpush.bf16.msrb.mxu2 %v2208_v44  ;;  %994 = vmatmul.bf16.gmra.mxu3 %v1892_v48  ;;  %v1656_v44 = vor.u32 %v2114_v36, %v1653_v37  ;;  %v2119_v48 = vld [vmem:[%s3283_s0 + $0x54] sm:$0xf]  ;;  %v1736_v36 = vor.u32 %v2134_v26, %v1733_v27  ;;  %v1740_v37 = vor.u32 %v2137_v29, %v1739_v28  ;;  %v2149_v28 = vld [vmem:[%s3283_s0 + $0x144] sm:$0xf]  ;;  %v1793_v29 = vld [vmem:[%s3283_s0 + $0x154] sm:$0xf0] }
  0x33   :  { %1192 = vmatpush.bf16.msrb.mxu3 %v2216_v45  ;;  %934 = vmatmul.bf16.gmra.mxu0 %v1652_v49  ;;  %v1660_v45 = vor.u32 %v2117_v39, %v1659_v38  ;;  %v1673_v49 = vld [vmem:[%s3283_s0 + $0x64] sm:$0xf0]  ;;  %v1744_v39 = vor.u32 %v2135_v30, %v1741_v31  ;;  %v2152_v31 = vld [vmem:[%s3283_s0 + $0x158] sm:$0xf0] }
  0x34   :  { %1014 = vmatpush.bf16.msrb.mxu1 %v2200_v50  ;;  %1281 = vmatpush.bf16.msrb.mxu0 %v2224_v51  ;;  %v1679_v50 = vld [vmem:[%s3283_s0 + $0x58] sm:$0xf]  ;;  %v2122_v51 = vld [vmem:[%s3283_s0 + $0x68] sm:$0xf0]  ;;  %v1799_v30 = vld [vmem:[%s3283_s0 + $0x148] sm:$0xf] }
  0x36   :  { %1104 = vmatpush.bf16.msrb.mxu2 %v2207_v52  ;;  %v2120_v52 = vld [vmem:[%s3283_s0 + $0x5c] sm:$0xf] }
  0x37   :  { %1193 = vmatpush.bf16.msrb.mxu3 %v2215_v53  ;;  %v1681_v53 = vld [vmem:[%s3283_s0 + $0x6c] sm:$0xf0] }
  0x38   :  { %1015 = vmatpush.bf16.msrb.mxu1 %v2199_v54  ;;  %1282 = vmatpush.bf16.msrb.mxu0 %v2223_v55  ;;  %v1687_v54 = vld [vmem:[%s3283_s0 + $0x60] sm:$0xf]  ;;  %v2123_v55 = vld [vmem:[%s3283_s0 + $0x70] sm:$0xf0] }
  0x3a   :  { %1105 = vmatpush.bf16.msrb.mxu2 %v2206_v56  ;;  %v1676_v56 = vor.u32 %v2119_v48, %v1673_v49  ;;  %v1759_v48 = vld [vmem:[%s3283_s0 + $0xf8] sm:$0xf]  ;;  %v2142_v49 = vld [vmem:[%s3283_s0 + $0x108] sm:$0xf0] }
  0x3b   :  { %1194 = vmatpush.bf16.msrb.mxu3 %v2214_v57  ;;  %v1680_v57 = vor.u32 %v2122_v51, %v1679_v50  ;;  %v2140_v50 = vld [vmem:[%s3283_s0 + $0xfc] sm:$0xf]  ;;  %v1761_v51 = vld [vmem:[%s3283_s0 + $0x10c] sm:$0xf0] }
  0x3c   :  { %1016 = vmatpush.bf16.msrb.mxu1 %v2198_v58  ;;  %1283 = vmatpush.bf16.msrb.mxu0 %v2222_v59  ;;  %v1684_v58 = vor.u32 %v2120_v52, %v1681_v53  ;;  %v1688_v59 = vor.u32 %v2123_v55, %v1687_v54  ;;  %v1767_v52 = vld [vmem:[%s3283_s0 + $0x100] sm:$0xf]  ;;  %v2143_v53 = vld [vmem:[%s3283_s0 + $0x110] sm:$0xf0] }
  0x3e   :  { %1106 = vmatpush.bf16.msrb.mxu2 %v2205_v61  ;;  %v1693_v61 = vld [vmem:[%s3283_s0 + $0x8c] sm:$0xf0] }
  0x3f   :  { %1195 = vmatpush.bf16.msrb.mxu3 %v2213_v62  ;;  %v1699_v62 = vld [vmem:[%s3283_s0 + $0x80] sm:$0xf]  ;;  %v1696_v4 = vor.u32 %v2124_v60, %v1693_v61  ;;  %v1768_v60 = vor.u32 %v2143_v53, %v1767_v52 }
  0x40   :  { %1017 = vmatpush.bf16.msrb.mxu1 %v2197_v6  ;;  %1284 = vmatpush.bf16.msrb.mxu0 %v2221_v7  ;;  %v1700_v5 = vor.u32 %v2127_v63, %v1699_v62  ;;  %v1704_v6 = vor.u32 %v2125_v0, %v1701_v1  ;;  %v1708_v7 = vor.u32 %v2128_v3, %v1707_v2  ;;  %v2144_v2 = vld [vmem:[%s3283_s0 + $0x11c] sm:$0xf]  ;;  %v1773_v3 = vld [vmem:[%s3283_s0 + $0x12c] sm:$0xf0] }
  0x41   :  { %959 = vmatmul.bf16.gmra.mxu1 %v1752_v8  ;;  %979 = vmatmul.bf16.gmra.mxu2 %v1832_v9  ;;  %v2129_v8 = vld [vmem:[%s3283_s0 + $0xa4] sm:$0xf]  ;;  %v1713_v9 = vld [vmem:[%s3283_s0 + $0xb4] sm:$0xf0]  ;;  %v1776_v12 = vor.u32 %v2144_v2, %v1773_v3  ;;  %v2154_v3 = vld [vmem:[%s3283_s0 + $0x16c] sm:$0xf] }
  0x42   :  { %999 = vmatmul.bf16.gmra.mxu3 %v1912_v10  ;;  %v1719_v10 = vld [vmem:[%s3283_s0 + $0xa8] sm:$0xf]  ;;  %v1716_v16 = vor.u32 %v2129_v8, %v1713_v9  ;;  %v2148_v9 = vld [vmem:[%s3283_s0 + $0x138] sm:$0xf0] }
  0x43   :  { %939 = vmatmul.bf16.gmra.mxu0 %v1672_v11  ;;  %v2132_v11 = vld [vmem:[%s3283_s0 + $0xb8] sm:$0xf0]  ;;  %v1787_v8 = vld [vmem:[%s3283_s0 + $0x128] sm:$0xf] }
  0x44   :  { %v1720_v17 = vor.u32 %v2132_v11, %v1719_v10 }
  0x51   :  { %964 = vmatmul.bf16.gmra.mxu1 %v1772_v20  ;;  %984 = vmatmul.bf16.gmra.mxu2 %v1852_v21  ;;  %v1728_v20 = vor.u32 %v2133_v15, %v1727_v14 }
  0x52   :  { %1004 = vmatmul.bf16.gmra.mxu3 %v1932_v22 }
  0x53   :  { %944 = vmatmul.bf16.gmra.mxu0 %v1692_v23 }
  0x61   :  { %1018 = vmatmul.bf16.vlgmr.msrb.gmra.mxu1 %v1636_v32  ;;  %1107 = vmatmul.bf16.vlgmr.msrb.gmra.mxu2 %v1640_v33  ;;  %v1747_v32 = vld [vmem:[%s3283_s0 + $0xd8] sm:$0xf]  ;;  %v2138_v33 = vld [vmem:[%s3283_s0 + $0xe8] sm:$0xf0] }
  0x62   :  { %1196 = vmatmul.bf16.vlgmr.msrb.gmra.mxu3 %v1644_v34  ;;  %v1748_v40 = vor.u32 %v2138_v33, %v1747_v32  ;;  %v2150_v32 = vld [vmem:[%s3283_s0 + $0x14c] sm:$0xf]  ;;  %v1801_v33 = vld [vmem:[%s3283_s0 + $0x15c] sm:$0xf0] }
  0x63   :  { %1285 = vmatmul.bf16.vlgmr.msrb.gmra.mxu0 %v1648_v35 }
  0x71   :  { %1023 = vmatmul.bf16.gmra.mxu1 %v1656_v44  ;;  %1112 = vmatmul.bf16.gmra.mxu2 %v1660_v45 }
  0x72   :  { %1201 = vmatmul.bf16.gmra.mxu3 %v1664_v46  ;;  %v2139_v46 = vld [vmem:[%s3283_s0 + $0xf4] sm:$0xf] }
  0x73   :  { %1290 = vmatmul.bf16.gmra.mxu0 %v1668_v47  ;;  %v1753_v47 = vld [vmem:[%s3283_s0 + $0x104] sm:$0xf0] }
  0x81   :  { %1028 = vmatmul.bf16.gmra.mxu1 %v1676_v56  ;;  %1117 = vmatmul.bf16.gmra.mxu2 %v1680_v57  ;;  %v1756_v56 = vor.u32 %v2139_v46, %v1753_v47  ;;  %v1760_v57 = vor.u32 %v2142_v49, %v1759_v48  ;;  %v1796_v46 = vor.u32 %v2149_v28, %v1793_v29 }
  0x82   :  { %1206 = vmatmul.bf16.gmra.mxu3 %v1684_v58  ;;  %v1800_v47 = vor.u32 %v2152_v31, %v1799_v30  ;;  %v1804_v49 = vor.u32 %v2150_v32, %v1801_v33  ;;  %v2230_v31 = vld [vmem:[%s3285_s3] sm:$0xff]  }
  0x83   :  { %1295 = vmatmul.bf16.gmra.mxu0 %v1688_v59  ;;  %v1764_v59 = vor.u32 %v2140_v50, %v1761_v51 }
  0x91   :  { %1033 = vmatmul.bf16.gmra.mxu1 %v1696_v4  ;;  %1122 = vmatmul.bf16.gmra.mxu2 %v1700_v5  ;;  %v1779_v4 = vld [vmem:[%s3283_s0 + $0x120] sm:$0xf]  ;;  %v2147_v5 = vld [vmem:[%s3283_s0 + $0x130] sm:$0xf0] }
  0x92   :  { %1211 = vmatmul.bf16.gmra.mxu3 %v1704_v6  ;;  %v2145_v6 = vld [vmem:[%s3283_s0 + $0x124] sm:$0xf]  ;;  %v1780_v13 = vor.u32 %v2147_v5, %v1779_v4  ;;  %v1813_v4 = vld [vmem:[%s3283_s0 + $0x17c] sm:$0xf0]  ;;  %v1819_v5 = vld [vmem:[%s3283_s0 + $0x170] sm:$0xf] }
  0x93   :  { %1300 = vmatmul.bf16.gmra.mxu0 %v1708_v7  ;;  %v1781_v7 = vld [vmem:[%s3283_s0 + $0x134] sm:$0xf0]  ;;  %v1816_v29 = vor.u32 %v2154_v3, %v1813_v4 }
  0x94   :  { %v1784_v15 = vor.u32 %v2145_v6, %v1781_v7  ;;  %v2155_v6 = vld [vmem:[%s3283_s0 + $0x174] sm:$0xf] }
  0x9e   :  { %v2789_v18 = vpop.f32.mrf.mxu1 }
  0xa0   :  { %v2791_v21 = vpop.f32.mrf.mxu0 }
  0xa1   :  { %1038 = vmatmul.bf16.gmra.mxu1 %v1716_v16  ;;  %1127 = vmatmul.bf16.gmra.mxu2 %v1720_v17  ;;  %v1788_v16 = vor.u32 %v2148_v9, %v1787_v8  ;;  %v1821_v8 = vld [vmem:[%s3283_s0 + $0x184] sm:$0xf0]  ;;  %v1827_v9 = vld [vmem:[%s3283_s0 + $0x178] sm:$0xf] }
  0xa2   :  { %1216 = vmatmul.bf16.gmra.mxu3 %v1724_v19  ;;  %v1824_v33 = vor.u32 %v2155_v6, %v1821_v8  ;;  %v1839_v6 = vld [vmem:[%s3283_s0 + $0x198] sm:$0xf]  ;;  %v2160_v8 = vld [vmem:[%s3283_s0 + $0x19c] sm:$0xf] }
  0xa3   :  { %1305 = vmatmul.bf16.gmra.mxu0 %v1728_v20 }
  0xa4   :  { %v2793_v22 = vpop.f32.mrf.mxu2 }
  0xa5   :  { %v2795_v23 = vpop.f32.mrf.mxu3 }
  0xa6   :  { %v2797_v24 = vpop.f32.mrf.mxu1 }
  0xa8   :  { %v2799_v25 = vpop.f32.mrf.mxu0 }
  0xac   :  { %v2825_v34 = vpop.f32.mrf.mxu2 }
  0xad   :  { %v2827_v35 = vpop.f32.mrf.mxu3 }
  0xae   :  { %v2829_v38 = vpop.f32.mrf.mxu1 }
  0xb0   :  { %v2831_v41 = vpop.f32.mrf.mxu0 }
  0xb1   :  { %1043 = vmatmul.bf16.gmra.mxu1 %v1736_v36  ;;  %1132 = vmatmul.bf16.gmra.mxu2 %v1740_v37  ;;  %v1807_v36 = vld [vmem:[%s3283_s0 + $0x150] sm:$0xf]  ;;  %v2153_v37 = vld [vmem:[%s3283_s0 + $0x160] sm:$0xf0] }
  0xb2   :  { %1221 = vmatmul.bf16.gmra.mxu3 %v1744_v39  ;;  %v1808_v50 = vor.u32 %v2153_v37, %v1807_v36 }
  0xb3   :  { %1310 = vmatmul.bf16.gmra.mxu0 %v1748_v40 }
  0xb4   :  { %v2833_v42 = vpop.f32.mrf.mxu2 }
  0xb5   :  { %v2835_v43 = vpop.f32.mrf.mxu3 }
  0xb6   :  { %v2837_v44 = vpop.f32.mrf.mxu1 }
  0xb8   :  { %v2839_v45 = vpop.f32.mrf.mxu0 }
  0xbc   :  { %v2865_v54 = vpop.f32.mrf.mxu2 }
  0xbd   :  { %v2867_v55 = vpop.f32.mrf.mxu3 }
  0xbe   :  { %v2869_v58 = vpop.f32.mrf.mxu1 }
  0xc0   :  { %v2871_v61 = vpop.f32.mrf.mxu0 }
  0xc1   :  { %1048 = vmatmul.bf16.gmra.mxu1 %v1756_v56  ;;  %1137 = vmatmul.bf16.gmra.mxu2 %v1760_v57 }
  0xc2   :  { %1226 = vmatmul.bf16.gmra.mxu3 %v1764_v59 }
  0xc3   :  { %1315 = vmatmul.bf16.gmra.mxu0 %v1768_v60 }
  0xc4   :  { %v2873_v62 = vpop.f32.mrf.mxu2 }
  0xc5   :  { %v2875_v63 = vpop.f32.mrf.mxu3 }
  0xc6   :  { %v2877_v0 = vpop.f32.mrf.mxu1 }
  0xc8   :  { %v2879_v1 = vpop.f32.mrf.mxu0 }
  0xcc   :  { %v2905_v10 = vpop.f32.mrf.mxu2 }
  0xcd   :  { %v2907_v11 = vpop.f32.mrf.mxu3 }
  0xce   :  { %v2909_v14 = vpop.f32.mrf.mxu1 }
  0xd0   :  { %v2911_v17 = vpop.f32.mrf.mxu0 }
  0xd1   :  { %1053 = vmatmul.bf16.gmra.mxu1 %v1776_v12  ;;  %1142 = vmatmul.bf16.gmra.mxu2 %v1780_v13  ;;  %v2158_v12 = vld [vmem:[%s3283_s0 + $0x188] sm:$0xf0] }
  0xd2   :  { %1231 = vmatmul.bf16.gmra.mxu3 %v1784_v15  ;;  %v2978_v15 = vld [vmem:[%s3284_s2] ss:$0 sm:$0xff]  ;;  %v1828_v36 = vor.u32 %v2158_v12, %v1827_v9  ;;  %v1841_v12 = vld [vmem:[%s3283_s0 + $0x1ac] sm:$0xf0] }
  0xd3   :  { %1320 = vmatmul.bf16.gmra.mxu0 %v1788_v16 }
  0xd4   :  { %v2913_v19 = vpop.f32.mrf.mxu2 }
  0xd5   :  { %v2915_v20 = vpop.f32.mrf.mxu3 }
  0xd6   :  { %v2917_v26 = vpop.f32.mrf.mxu1 }
  0xd8   :  { %v2919_v27 = vpop.f32.mrf.mxu0 }
  0xdc   :  { %v2945_v39 = vpop.f32.mrf.mxu2 }
  0xdd   :  { %v2947_v40 = vpop.f32.mrf.mxu3 }
  0xde   :  { %v1019_v48 = vpop.f32.mrf.mxu1 }
  0xdf   :  { %v1020_v52 = vadd.f32 %v1019_v48, %v2791_v21  ;;  %v2157_v21 = vld [vmem:[%s3283_s0 + $0x180] sm:$0xf0]  ;;  %v2231_v48 = vunpack.c.l.bf16 %v2230_v31 }
  0xe0   :  { %v1286_v51 = vpop.f32.mrf.mxu0  ;;  %v1820_v30 = vor.u32 %v2157_v21, %v1819_v5  ;;  %v2159_v21 = vld [vmem:[%s3283_s0 + $0x194] sm:$0xf] }
  0xe1   :  { %1058 = vmatmul.bf16.gmra.mxu1 %v1796_v46  ;;  %1147 = vmatmul.bf16.gmra.mxu2 %v1800_v47 }
  0xe2   :  { %1236 = vmatmul.bf16.gmra.mxu3 %v1804_v49 }
  0xe3   :  { %1325 = vmatmul.bf16.gmra.mxu0 %v1808_v50  ;;  %v2232_v50 = vunpack.c.h.bf16 %v2230_v31 }
  0xe4   :  { %v1108_v53 = vpop.f32.mrf.mxu2 }
  0xe5   :  { %v1109_v56 = vadd.f32 %v1108_v53, %v1020_v52  ;;  %v1197_v57 = vpop.f32.mrf.mxu3 }
  0xe6   :  { %v1021_v59 = vpop.f32.mrf.mxu1 }
  0xe7   :  { %v1198_v2 = vadd.f32 %v1197_v57, %v1109_v56  ;;  %v1022_v7 = vadd.f32 %v1021_v59, %v2799_v25 }
  0xe8   :  { %v1288_v60 = vpop.f32.mrf.mxu0 }
  0xe9   :  { %v1287_v16 = vadd.f32 %v1286_v51, %v1198_v2 }
  0xeb   :  { %v1366_v47 = vadd.f32 %v2978_v15, %v1287_v16  ;;  %v2163_v16 = vld [vmem:[%s3283_s0 + $0x1b0] sm:$0xf0] }
  0xec   :  { %v1110_v13 = vpop.f32.mrf.mxu2 }
  0xed   :  { %v1111_v25 = vadd.f32 %v1110_v13, %v1022_v7  ;;  %v1199_v28 = vpop.f32.mrf.mxu3  ;;  %v1529_v56 = vadd.f32 %v2231_v48, %v1366_v47  ;;  %v2162_v7 = vld [vmem:[%s3283_s0 + $0x1a8] sm:$0xf0]  ;;  %v1847_v13 = vld [vmem:[%s3283_s0 + $0x1a0] sm:$0xf] }
  0xee   :  { %v1024_v32 = vpop.f32.mrf.mxu1 }
  0xef   :  { %v1200_v37 = vadd.f32 %v1199_v28, %v1111_v25  ;;  %v1025_v52 = vadd.f32 %v1024_v32, %v2831_v41  ;;  %v1833_v41 = vld [vmem:[%s3283_s0 + $0x1a4] sm:$0xf0]  ;;  %v1840_v32 = vor.u32 %v2162_v7, %v1839_v6  ;;  %v1859_v6 = vld [vmem:[%s3283_s0 + $0x1c0] sm:$0xf]  ;;  %v2167_v7 = vld [vmem:[%s3283_s0 + $0x1d0] sm:$0xf0] }
  0xf0   :  { %v1291_v46 = vpop.f32.mrf.mxu0  ;;  %v1836_v31 = vor.u32 %v2159_v21, %v1833_v41  ;;  %v2164_v41 = vld [vmem:[%s3283_s0 + $0x1bc] sm:$0xf] }
  0xf1   :  { %v1289_v49 = vadd.f32 %v1288_v60, %v1200_v37  ;;  %1063 = vmatmul.bf16.gmra.mxu1 %v1816_v29  ;;  %1152 = vmatmul.bf16.gmra.mxu2 %v1820_v30  ;;  %v1848_v37 = vor.u32 %v2163_v16, %v1847_v13  ;;  %v1867_v13 = vld [vmem:[%s3283_s0 + $0x1c8] sm:$0xf]  ;;  %v2168_v16 = vld [vmem:[%s3283_s0 + $0x1d8] sm:$0xf0] }
  0xf2   :  { %1241 = vmatmul.bf16.gmra.mxu3 %v1824_v33 }
  0xf3   :  { %1330 = vmatmul.bf16.gmra.mxu0 %v1828_v36  ;;  %v1367_v51 = vadd.f32 %v2978_v15, %v1289_v49  ;;  %v1844_v36 = vor.u32 %v2160_v8, %v1841_v12  ;;  %v2165_v8 = vld [vmem:[%s3283_s0 + $0x1c4] sm:$0xf]  ;;  %v1861_v12 = vld [vmem:[%s3283_s0 + $0x1d4] sm:$0xf0] }
  0xf4   :  { %v1113_v53 = vpop.f32.mrf.mxu2 }
  0xf5   :  { %v1530_v57 = vadd.f32 %v2232_v50, %v1367_v51  ;;  %v1114_v59 = vadd.f32 %v1113_v53, %v1025_v52  ;;  %v1202_v2 = vpop.f32.mrf.mxu3 }
  0xf6   :  { %v1026_v3 = vpop.f32.mrf.mxu1 }
  0xf7   :  { %v2296_v4 = vpack.c.bf16 %v1530_v57, %v1529_v56  ;;  %v1203_v60 = vadd.f32 %v1202_v2, %v1114_v59  ;;  %v1027_v9 = vadd.f32 %v1026_v3, %v2839_v45  ;;  %v2373_v45 = vld [vmem:[%s3285_s3 + $0x8] sm:$0xff]  }
  0xf8   :  { %v1293_v5 = vpop.f32.mrf.mxu0  ;;  %v2235_v50 = vunpack.c.l.bf16 %v2373_v45  ;;  %v2236_v52 = vunpack.c.h.bf16 %v2373_v45 }
  0xf9   :  { %2297 = vst [vmem:[%s3286_s4] sm:$0xff] %v2296_v4   ;;  %v1292_v28 = vadd.f32 %v1291_v46, %v1203_v60 }
  0xfb   :  { %v1368_v49 = vadd.f32 %v2978_v15, %v1292_v28 }
  0xfc   :  { %v1115_v25 = vpop.f32.mrf.mxu2 }
  0xfd   :  { %v1116_v29 = vadd.f32 %v1115_v25, %v1027_v9  ;;  %v1204_v30 = vpop.f32.mrf.mxu3  ;;  %v1531_v57 = vadd.f32 %v2235_v50, %v1368_v49 }
  0xfe   :  { %v1029_v33 = vpop.f32.mrf.mxu1 }
  0xff   :  { %v1205_v47 = vadd.f32 %v1204_v30, %v1116_v29  ;;  %v1030_v53 = vadd.f32 %v1029_v33, %v2871_v61  ;;  %v1853_v61 = vld [vmem:[%s3283_s0 + $0x1cc] sm:$0xf0]  ;;  %v1864_v33 = vor.u32 %v2165_v8, %v1861_v12  ;;  %v1881_v8 = vld [vmem:[%s3283_s0 + $0x1fc] sm:$0xf0]  ;;  %v2173_v12 = vld [vmem:[%s3283_s0 + $0x200] sm:$0xf0] }
 0x100   :  { %v1296_v48 = vpop.f32.mrf.mxu0 }
 0x101   :  { %v1294_v51 = vadd.f32 %v1293_v5, %v1205_v47  ;;  %1068 = vmatmul.bf16.gmra.mxu1 %v1836_v31  ;;  %1157 = vmatmul.bf16.gmra.mxu2 %v1840_v32  ;;  %v1856_v31 = vor.u32 %v2164_v41, %v1853_v61  ;;  %v1860_v32 = vor.u32 %v2167_v7, %v1859_v6  ;;  %v1879_v41 = vld [vmem:[%s3283_s0 + $0x1e8] sm:$0xf]  ;;  %v2172_v61 = vld [vmem:[%s3283_s0 + $0x1f8] sm:$0xf0]  ;;  %v2170_v6 = vld [vmem:[%s3283_s0 + $0x1ec] sm:$0xf] }
 0x102   :  { %1246 = vmatmul.bf16.gmra.mxu3 %v1844_v36  ;;  %v1868_v36 = vor.u32 %v2168_v16, %v1867_v13 }
 0x103   :  { %1335 = vmatmul.bf16.gmra.mxu0 %v1848_v37  ;;  %v1369_v46 = vadd.f32 %v2978_v15, %v1294_v51 }
 0x104   :  { %v1118_v56 = vpop.f32.mrf.mxu2 }
 0x105   :  { %v1532_v59 = vadd.f32 %v2236_v52, %v1369_v46  ;;  %v1119_v2 = vadd.f32 %v1118_v56, %v1030_v53  ;;  %v1207_v3 = vpop.f32.mrf.mxu3 }
 0x106   :  { %v1031_v4 = vpop.f32.mrf.mxu1 }
 0x107   :  { %v2301_v60 = vpack.c.bf16 %v1532_v59, %v1531_v57  ;;  %v1208_v5 = vadd.f32 %v1207_v3, %v1119_v2  ;;  %v1032_v9 = vadd.f32 %v1031_v4, %v2879_v1  ;;  %v2374_v1 = vld [vmem:[%s3285_s3 + $0x10] sm:$0xff]  }
 0x108   :  { %v1298_v21 = vpop.f32.mrf.mxu0  ;;  %v2239_v50 = vunpack.c.l.bf16 %v2374_v1  ;;  %v2240_v52 = vunpack.c.h.bf16 %v2374_v1 }
 0x109   :  { %2388 = vst [vmem:[%s3286_s4 + $0x8] sm:$0xff] %v2301_v60   ;;  %v1297_v28 = vadd.f32 %v1296_v48, %v1208_v5  ;;  %v2169_v5 = vld [vmem:[%s3283_s0 + $0x1e4] sm:$0xf] }
 0x10b   :  { %v1370_v49 = vadd.f32 %v2978_v15, %v1297_v28 }
 0x10c   :  { %v1120_v25 = vpop.f32.mrf.mxu2 }
 0x10d   :  { %v1121_v29 = vadd.f32 %v1120_v25, %v1032_v9  ;;  %v1209_v30 = vpop.f32.mrf.mxu3  ;;  %v1533_v56 = vadd.f32 %v2239_v50, %v1370_v49  ;;  %v1887_v9 = vld [vmem:[%s3283_s0 + $0x1f0] sm:$0xf] }
 0x10e   :  { %v1034_v45 = vpop.f32.mrf.mxu1  ;;  %v1888_v1 = vor.u32 %v2173_v12, %v1887_v9 }
 0x10f   :  { %v1210_v37 = vadd.f32 %v1209_v30, %v1121_v29  ;;  %v1035_v46 = vadd.f32 %v1034_v45, %v2911_v17  ;;  %v1873_v17 = vld [vmem:[%s3283_s0 + $0x1f4] sm:$0xf0]  ;;  %v1880_v30 = vor.u32 %v2172_v61, %v1879_v41  ;;  %v1901_v41 = vld [vmem:[%s3283_s0 + $0x224] sm:$0xf0] }
 0x110   :  { %v1301_v47 = vpop.f32.mrf.mxu0  ;;  %v1876_v29 = vor.u32 %v2169_v5, %v1873_v17  ;;  %v2175_v5 = vld [vmem:[%s3283_s0 + $0x214] sm:$0xf]  ;;  %v1907_v61 = vld [vmem:[%s3283_s0 + $0x218] sm:$0xf] }
 0x111   :  { %v1299_v51 = vadd.f32 %v1298_v21, %v1210_v37  ;;  %1073 = vmatmul.bf16.gmra.mxu1 %v1856_v31  ;;  %1162 = vmatmul.bf16.gmra.mxu2 %v1860_v32  ;;  %v1884_v32 = vor.u32 %v2170_v6, %v1881_v8  ;;  %v2178_v6 = vld [vmem:[%s3283_s0 + $0x228] sm:$0xf0] }
 0x112   :  { %1251 = vmatmul.bf16.gmra.mxu3 %v1864_v33 }
 0x113   :  { %1340 = vmatmul.bf16.gmra.mxu0 %v1868_v36  ;;  %v1371_v48 = vadd.f32 %v2978_v15, %v1299_v51 }
 0x114   :  { %v1123_v53 = vpop.f32.mrf.mxu2 }
 0x115   :  { %v1534_v57 = vadd.f32 %v2240_v52, %v1371_v48  ;;  %v1124_v59 = vadd.f32 %v1123_v53, %v1035_v46  ;;  %v1212_v2 = vpop.f32.mrf.mxu3 }
 0x116   :  { %v1036_v3 = vpop.f32.mrf.mxu1 }
 0x117   :  { %v2306_v4 = vpack.c.bf16 %v1534_v57, %v1533_v56  ;;  %v1213_v21 = vadd.f32 %v1212_v2, %v1124_v59  ;;  %v1037_v7 = vadd.f32 %v1036_v3, %v2919_v27  ;;  %v2375_v27 = vld [vmem:[%s3285_s3 + $0x18] sm:$0xff]  }
 0x118   :  { %v1303_v60 = vpop.f32.mrf.mxu0  ;;  %v2243_v37 = vunpack.c.l.bf16 %v2375_v27  ;;  %v2244_v50 = vunpack.c.h.bf16 %v2375_v27 }
 0x119   :  { %2389 = vst [vmem:[%s3286_s4 + $0x10] sm:$0xff] %v2306_v4   ;;  %v1302_v16 = vadd.f32 %v1301_v47, %v1213_v21  ;;  %v2174_v4 = vld [vmem:[%s3283_s0 + $0x20c] sm:$0xf]  ;;  %v2177_v21 = vld [vmem:[%s3283_s0 + $0x220] sm:$0xf0] }
 0x11b   :  { %v1372_v36 = vadd.f32 %v2978_v15, %v1302_v16 }
 0x11c   :  { %v1125_v13 = vpop.f32.mrf.mxu2 }
 0x11d   :  { %v1126_v25 = vadd.f32 %v1125_v13, %v1037_v7  ;;  %v1214_v28 = vpop.f32.mrf.mxu3  ;;  %v1535_v48 = vadd.f32 %v2243_v37, %v1372_v36 }
 0x11e   :  { %v1039_v31 = vpop.f32.mrf.mxu1 }
 0x11f   :  { %v1215_v45 = vadd.f32 %v1214_v28, %v1126_v25  ;;  %v1040_v51 = vadd.f32 %v1039_v31, %v2789_v18  ;;  %v1893_v18 = vld [vmem:[%s3283_s0 + $0x21c] sm:$0xf0]  ;;  %v1904_v28 = vor.u32 %v2175_v5, %v1901_v41 }
 0x120   :  { %v1306_v33 = vpop.f32.mrf.mxu0  ;;  %v1896_v13 = vor.u32 %v2174_v4, %v1893_v18  ;;  %v1921_v4 = vld [vmem:[%s3283_s0 + $0x24c] sm:$0xf0]  ;;  %v1927_v18 = vld [vmem:[%s3283_s0 + $0x240] sm:$0xf] }
 0x121   :  { %v1304_v49 = vadd.f32 %v1303_v60, %v1215_v45  ;;  %1078 = vmatmul.bf16.gmra.mxu1 %v1876_v29  ;;  %1167 = vmatmul.bf16.gmra.mxu2 %v1880_v30  ;;  %v1899_v60 = vld [vmem:[%s3283_s0 + $0x210] sm:$0xf]  ;;  %v1908_v29 = vor.u32 %v2178_v6, %v1907_v61 }
 0x122   :  { %1256 = vmatmul.bf16.gmra.mxu3 %v1884_v32  ;;  %v1900_v16 = vor.u32 %v2177_v21, %v1899_v60  ;;  %v2183_v60 = vld [vmem:[%s3283_s0 + $0x250] sm:$0xf0] }
 0x123   :  { %1345 = vmatmul.bf16.gmra.mxu0 %v1888_v1  ;;  %v1373_v47 = vadd.f32 %v2978_v15, %v1304_v49 }
 0x124   :  { %v1128_v52 = vpop.f32.mrf.mxu2 }
 0x125   :  { %v1536_v46 = vadd.f32 %v2244_v50, %v1373_v47  ;;  %v1129_v53 = vadd.f32 %v1128_v52, %v1040_v51  ;;  %v1217_v56 = vpop.f32.mrf.mxu3 }
 0x126   :  { %v1041_v57 = vpop.f32.mrf.mxu1 }
 0x127   :  { %v2311_v59 = vpack.c.bf16 %v1536_v46, %v1535_v48  ;;  %v1218_v3 = vadd.f32 %v1217_v56, %v1129_v53  ;;  %v1042_v17 = vadd.f32 %v1041_v57, %v2797_v24  ;;  %v2376_v24 = vld [vmem:[%s3285_s3 + $0x20] sm:$0xff]   ;;  %v2179_v56 = vld [vmem:[%s3283_s0 + $0x234] sm:$0xf]  ;;  %v1919_v57 = vld [vmem:[%s3283_s0 + $0x238] sm:$0xf] }
 0x128   :  { %v1308_v2 = vpop.f32.mrf.mxu0  ;;  %v2247_v32 = vunpack.c.l.bf16 %v2376_v24  ;;  %v2248_v45 = vunpack.c.h.bf16 %v2376_v24 }
 0x129   :  { %2390 = vst [vmem:[%s3286_s4 + $0x18] sm:$0xff] %v2311_v59   ;;  %v1307_v8 = vadd.f32 %v1306_v33, %v1218_v3  ;;  %v2182_v59 = vld [vmem:[%s3283_s0 + $0x248] sm:$0xf0] }
 0x12a   :  { %v1920_v6 = vor.u32 %v2182_v59, %v1919_v57 }
 0x12b   :  { %v1374_v31 = vadd.f32 %v2978_v15, %v1307_v8 }
 0x12c   :  { %v1130_v7 = vpop.f32.mrf.mxu2 }
 0x12d   :  { %v1131_v9 = vadd.f32 %v1130_v7, %v1042_v17  ;;  %v1219_v12 = vpop.f32.mrf.mxu3  ;;  %v1537_v49 = vadd.f32 %v2247_v32, %v1374_v31 }
 0x12e   :  { %v1044_v25 = vpop.f32.mrf.mxu1 }
 0x12f   :  { %v1220_v30 = vadd.f32 %v1219_v12, %v1131_v9  ;;  %v1045_v36 = vadd.f32 %v1044_v25, %v2829_v38  ;;  %v1913_v38 = vld [vmem:[%s3283_s0 + $0x244] sm:$0xf0]  ;;  %v1928_v9 = vor.u32 %v2183_v60, %v1927_v18 }
 0x130   :  { %v1311_v27 = vpop.f32.mrf.mxu0  ;;  %v1916_v61 = vor.u32 %v2179_v56, %v1913_v38  ;;  %v2188_v56 = vld [vmem:[%s3283_s0 + $0x278] sm:$0xf0] }
 0x131   :  { %v1309_v1 = vadd.f32 %v1308_v2, %v1220_v30  ;;  %1083 = vmatmul.bf16.gmra.mxu1 %v1896_v13  ;;  %1172 = vmatmul.bf16.gmra.mxu2 %v1900_v16  ;;  %v2180_v2 = vld [vmem:[%s3283_s0 + $0x23c] sm:$0xf] }
 0x132   :  { %1261 = vmatmul.bf16.gmra.mxu3 %v1904_v28  ;;  %v1924_v8 = vor.u32 %v2180_v2, %v1921_v4 }
 0x133   :  { %1350 = vmatmul.bf16.gmra.mxu0 %v1908_v29  ;;  %v1375_v33 = vadd.f32 %v2978_v15, %v1309_v1 }
 0x134   :  { %v1133_v37 = vpop.f32.mrf.mxu2 }
 0x135   :  { %v1538_v50 = vadd.f32 %v2248_v45, %v1375_v33  ;;  %v1134_v47 = vadd.f32 %v1133_v37, %v1045_v36  ;;  %v1222_v51 = vpop.f32.mrf.mxu3 }
 0x136   :  { %v1046_v52 = vpop.f32.mrf.mxu1 }
 0x137   :  { %v2316_v48 = vpack.c.bf16 %v1538_v50, %v1537_v49  ;;  %v1223_v53 = vadd.f32 %v1222_v51, %v1134_v47  ;;  %v1047_v3 = vadd.f32 %v1046_v52, %v2837_v44  ;;  %v2377_v44 = vld [vmem:[%s3285_s3 + $0x28] sm:$0xff]   ;;  %v2184_v50 = vld [vmem:[%s3283_s0 + $0x25c] sm:$0xf]  ;;  %v1939_v47 = vld [vmem:[%s3283_s0 + $0x260] sm:$0xf] }
 0x138   :  { %v1313_v46 = vpop.f32.mrf.mxu0  ;;  %v2251_v24 = vunpack.c.l.bf16 %v2377_v44  ;;  %v2252_v28 = vunpack.c.h.bf16 %v2377_v44  ;;  %v2187_v51 = vld [vmem:[%s3283_s0 + $0x270] sm:$0xf0]  ;;  %v2185_v52 = vld [vmem:[%s3283_s0 + $0x264] sm:$0xf] }
 0x139   :  { %2391 = vst [vmem:[%s3286_s4 + $0x20] sm:$0xff] %v2316_v48   ;;  %v1312_v5 = vadd.f32 %v1311_v27, %v1223_v53  ;;  %v1947_v53 = vld [vmem:[%s3283_s0 + $0x268] sm:$0xf]  ;;  %v1940_v4 = vor.u32 %v2187_v51, %v1939_v47 }
 0x13b   :  { %v1376_v16 = vadd.f32 %v2978_v15, %v1312_v5 }
 0x13c   :  { %v1135_v21 = vpop.f32.mrf.mxu2 }
 0x13d   :  { %v1136_v17 = vadd.f32 %v1135_v21, %v1047_v3  ;;  %v1224_v41 = vpop.f32.mrf.mxu3  ;;  %v1539_v31 = vadd.f32 %v2251_v24, %v1376_v16  ;;  %v1948_v21 = vor.u32 %v2188_v56, %v1947_v53 }
 0x13e   :  { %v1049_v7 = vpop.f32.mrf.mxu1 }
 0x13f   :  { %v1225_v12 = vadd.f32 %v1224_v41, %v1136_v17  ;;  %v1050_v30 = vadd.f32 %v1049_v7, %v2869_v58  ;;  %v1933_v58 = vld [vmem:[%s3283_s0 + $0x26c] sm:$0xf0] }
 0x140   :  { %v1316_v13 = vpop.f32.mrf.mxu0  ;;  %v1936_v3 = vor.u32 %v2184_v50, %v1933_v58 }
 0x141   :  { %v1314_v25 = vadd.f32 %v1313_v46, %v1225_v12  ;;  %1088 = vmatmul.bf16.gmra.mxu1 %v1916_v61  ;;  %1177 = vmatmul.bf16.gmra.mxu2 %v1920_v6  ;;  %v1941_v46 = vld [vmem:[%s3283_s0 + $0x274] sm:$0xf0] }
 0x142   :  { %1266 = vmatmul.bf16.gmra.mxu3 %v1924_v8  ;;  %v1944_v60 = vor.u32 %v2185_v52, %v1941_v46 }
 0x143   :  { %1355 = vmatmul.bf16.gmra.mxu0 %v1928_v9  ;;  %v1377_v29 = vadd.f32 %v2978_v15, %v1314_v25 }
 0x144   :  { %v1138_v27 = vpop.f32.mrf.mxu2 }
 0x145   :  { %v1540_v32 = vadd.f32 %v2252_v28, %v1377_v29  ;;  %v1139_v1 = vadd.f32 %v1138_v27, %v1050_v30  ;;  %v1227_v45 = vpop.f32.mrf.mxu3 }
 0x146   :  { %v1051_v33 = vpop.f32.mrf.mxu1 }
 0x147   :  { %v2321_v36 = vpack.c.bf16 %v1540_v32, %v1539_v31  ;;  %v1228_v49 = vadd.f32 %v1227_v45, %v1139_v1  ;;  %v1052_v48 = vadd.f32 %v1051_v33, %v2877_v0  ;;  %v2378_v0 = vld [vmem:[%s3285_s3 + $0x30] sm:$0xff]  }
 0x148   :  { %v1318_v37 = vpop.f32.mrf.mxu0  ;;  %v2255_v61 = vunpack.c.l.bf16 %v2378_v0  ;;  %v2256_v44 = vunpack.c.h.bf16 %v2378_v0 }
 0x149   :  { %2392 = vst [vmem:[%s3286_s4 + $0x28] sm:$0xff] %v2321_v36   ;;  %v1317_v57 = vadd.f32 %v1316_v13, %v1228_v49 }
 0x14b   :  { %v1378_v41 = vadd.f32 %v2978_v15, %v1317_v57 }
 0x14c   :  { %v1140_v38 = vpop.f32.mrf.mxu2 }
 0x14d   :  { %v1141_v59 = vadd.f32 %v1140_v38, %v1052_v48  ;;  %v1229_v2 = vpop.f32.mrf.mxu3  ;;  %v1541_v12 = vadd.f32 %v2255_v61, %v1378_v41 }
 0x14e   :  { %v1054_v18 = vpop.f32.mrf.mxu1 }
 0x14f   :  { %v1230_v5 = vadd.f32 %v1229_v2, %v1141_v59  ;;  %v1055_v8 = vadd.f32 %v1054_v18, %v2909_v14  ;;  %v2379_v14 = vld [vmem:[%s3285_s3 + $0x38] sm:$0xff]  }
 0x150   :  { %v1321_v17 = vpop.f32.mrf.mxu0  ;;  %v2259_v50 = vunpack.c.l.bf16 %v2379_v14  ;;  %v2260_v47 = vunpack.c.h.bf16 %v2379_v14 }
 0x151   :  { %v1319_v6 = vadd.f32 %v1318_v37, %v1230_v5  ;;  %1093 = vmatmul.bf16.gmra.mxu1 %v1936_v3  ;;  %1182 = vmatmul.bf16.gmra.mxu2 %v1940_v4 }
 0x152   :  { %1271 = vmatmul.bf16.gmra.mxu3 %v1944_v60 }
 0x153   :  { %1360 = vmatmul.bf16.gmra.mxu0 %v1948_v21  ;;  %v1379_v7 = vadd.f32 %v2978_v15, %v1319_v6 }
 0x154   :  { %v1143_v9 = vpop.f32.mrf.mxu2 }
 0x155   :  { %v1542_v13 = vadd.f32 %v2256_v44, %v1379_v7  ;;  %v1144_v16 = vadd.f32 %v1143_v9, %v1055_v8  ;;  %v1232_v24 = vpop.f32.mrf.mxu3 }
 0x156   :  { %v1056_v25 = vpop.f32.mrf.mxu1 }
 0x157   :  { %v2326_v28 = vpack.c.bf16 %v1542_v13, %v1541_v12  ;;  %v1233_v30 = vadd.f32 %v1232_v24, %v1144_v16  ;;  %v1057_v27 = vadd.f32 %v1056_v25, %v2917_v26 }
 0x158   :  { %v1323_v29 = vpop.f32.mrf.mxu0 }
 0x159   :  { %2393 = vst [vmem:[%s3286_s4 + $0x30] sm:$0xff] %v2326_v28   ;;  %v1322_v32 = vadd.f32 %v1321_v17, %v1233_v30 }
 0x15b   :  { %v1380_v49 = vadd.f32 %v2978_v15, %v1322_v32 }
 0x15c   :  { %v1145_v31 = vpop.f32.mrf.mxu2 }
 0x15d   :  { %v1146_v1 = vadd.f32 %v1145_v31, %v1057_v27  ;;  %v1234_v45 = vpop.f32.mrf.mxu3  ;;  %v1543_v48 = vadd.f32 %v2259_v50, %v1380_v49 }
 0x15e   :  { %v1059_v33 = vpop.f32.mrf.mxu1 }
 0x15f   :  { %v1235_v36 = vadd.f32 %v1234_v45, %v1146_v1  ;;  %v1060_v26 = vadd.f32 %v1059_v33, %v2793_v22  ;;  %v2380_v22 = vld [vmem:[%s3285_s3 + $0x40] sm:$0xff]  }
 0x160   :  { %v1326_v37 = vpop.f32.mrf.mxu0  ;;  %v2263_v61 = vunpack.c.l.bf16 %v2380_v22  ;;  %v2264_v44 = vunpack.c.h.bf16 %v2380_v22 }
 0x161   :  { %v1324_v58 = vadd.f32 %v1323_v29, %v1235_v36 }
 0x163   :  { %v1381_v51 = vadd.f32 %v2978_v15, %v1324_v58 }
 0x164   :  { %v1148_v52 = vpop.f32.mrf.mxu2 }
 0x165   :  { %v1544_v46 = vadd.f32 %v2260_v47, %v1381_v51  ;;  %v1149_v53 = vadd.f32 %v1148_v52, %v1060_v26  ;;  %v1237_v56 = vpop.f32.mrf.mxu3 }
 0x166   :  { %v1061_v38 = vpop.f32.mrf.mxu1 }
 0x167   :  { %v2331_v57 = vpack.c.bf16 %v1544_v46, %v1543_v48  ;;  %v1238_v2 = vadd.f32 %v1237_v56, %v1149_v53  ;;  %v1062_v3 = vadd.f32 %v1061_v38, %v2825_v34 }
 0x168   :  { %v1328_v59 = vpop.f32.mrf.mxu0 }
 0x169   :  { %2394 = vst [vmem:[%s3286_s4 + $0x38] sm:$0xff] %v2331_v57   ;;  %v1327_v0 = vadd.f32 %v1326_v37, %v1238_v2 }
 0x16b   :  { %v1382_v41 = vadd.f32 %v2978_v15, %v1327_v0 }
 0x16c   :  { %v1150_v4 = vpop.f32.mrf.mxu2 }
 0x16d   :  { %v1151_v18 = vadd.f32 %v1150_v4, %v1062_v3  ;;  %v1239_v60 = vpop.f32.mrf.mxu3  ;;  %v1545_v9 = vadd.f32 %v2263_v61, %v1382_v41 }
 0x16e   :  { %v1064_v21 = vpop.f32.mrf.mxu1 }
 0x16f   :  { %v1240_v5 = vadd.f32 %v1239_v60, %v1151_v18  ;;  %v1065_v34 = vadd.f32 %v1064_v21, %v2833_v42  ;;  %v2381_v42 = vld [vmem:[%s3285_s3 + $0x48] sm:$0xff]  }
 0x170   :  { %v1331_v17 = vpop.f32.mrf.mxu0  ;;  %v2267_v37 = vunpack.c.l.bf16 %v2381_v42  ;;  %v2268_v50 = vunpack.c.h.bf16 %v2381_v42 }
 0x171   :  { %v1329_v6 = vadd.f32 %v1328_v59, %v1240_v5 }
 0x173   :  { %v1383_v7 = vadd.f32 %v2978_v15, %v1329_v6 }
 0x174   :  { %v1153_v8 = vpop.f32.mrf.mxu2 }
 0x175   :  { %v1546_v12 = vadd.f32 %v2264_v44, %v1383_v7  ;;  %v1154_v13 = vadd.f32 %v1153_v8, %v1065_v34  ;;  %v1242_v16 = vpop.f32.mrf.mxu3 }
 0x176   :  { %v1066_v24 = vpop.f32.mrf.mxu1 }
 0x177   :  { %v2336_v25 = vpack.c.bf16 %v1546_v12, %v1545_v9  ;;  %v1243_v29 = vadd.f32 %v1242_v16, %v1154_v13  ;;  %v1067_v30 = vadd.f32 %v1066_v24, %v2865_v54 }
 0x178   :  { %v1333_v28 = vpop.f32.mrf.mxu0 }
 0x179   :  { %2395 = vst [vmem:[%s3286_s4 + $0x40] sm:$0xff] %v2336_v25   ;;  %v1332_v31 = vadd.f32 %v1331_v17, %v1243_v29 }
 0x17b   :  { %v1384_v36 = vadd.f32 %v2978_v15, %v1332_v31 }
 0x17c   :  { %v1155_v27 = vpop.f32.mrf.mxu2 }
 0x17d   :  { %v1156_v32 = vadd.f32 %v1155_v27, %v1067_v30  ;;  %v1244_v1 = vpop.f32.mrf.mxu3  ;;  %v1547_v51 = vadd.f32 %v2267_v37, %v1384_v36 }
 0x17e   :  { %v1069_v45 = vpop.f32.mrf.mxu1 }
 0x17f   :  { %v1245_v14 = vadd.f32 %v1244_v1, %v1156_v32  ;;  %v1070_v54 = vadd.f32 %v1069_v45, %v2873_v62  ;;  %v2382_v62 = vld [vmem:[%s3285_s3 + $0x50] sm:$0xff]  }
 0x180   :  { %v1336_v33 = vpop.f32.mrf.mxu0  ;;  %v2271_v21 = vunpack.c.l.bf16 %v2382_v62  ;;  %v2272_v17 = vunpack.c.h.bf16 %v2382_v62 }
 0x181   :  { %v1334_v49 = vadd.f32 %v1333_v28, %v1245_v14 }
 0x183   :  { %v1385_v58 = vadd.f32 %v2978_v15, %v1334_v49 }
 0x184   :  { %v1158_v47 = vpop.f32.mrf.mxu2 }
 0x185   :  { %v1548_v26 = vadd.f32 %v2268_v50, %v1385_v58  ;;  %v1159_v52 = vadd.f32 %v1158_v47, %v1070_v54  ;;  %v1247_v48 = vpop.f32.mrf.mxu3 }
 0x186   :  { %v1071_v46 = vpop.f32.mrf.mxu1 }
 0x187   :  { %v2341_v53 = vpack.c.bf16 %v1548_v26, %v1547_v51  ;;  %v1248_v38 = vadd.f32 %v1247_v48, %v1159_v52  ;;  %v1072_v57 = vadd.f32 %v1071_v46, %v2905_v10 }
 0x188   :  { %v1338_v56 = vpop.f32.mrf.mxu0 }
 0x189   :  { %2396 = vst [vmem:[%s3286_s4 + $0x48] sm:$0xff] %v2341_v53   ;;  %v1337_v2 = vadd.f32 %v1336_v33, %v1248_v38 }
 0x18b   :  { %v1386_v22 = vadd.f32 %v2978_v15, %v1337_v2 }
 0x18c   :  { %v1160_v59 = vpop.f32.mrf.mxu2 }
 0x18d   :  { %v1161_v3 = vadd.f32 %v1160_v59, %v1072_v57  ;;  %v1249_v4 = vpop.f32.mrf.mxu3  ;;  %v1549_v6 = vadd.f32 %v2271_v21, %v1386_v22 }
 0x18e   :  { %v1074_v0 = vpop.f32.mrf.mxu1 }
 0x18f   :  { %v1250_v18 = vadd.f32 %v1249_v4, %v1161_v3  ;;  %v1075_v10 = vadd.f32 %v1074_v0, %v2913_v19  ;;  %v2383_v19 = vld [vmem:[%s3285_s3 + $0x58] sm:$0xff]  }
 0x190   :  { %v1341_v60 = vpop.f32.mrf.mxu0  ;;  %v2275_v1 = vunpack.c.l.bf16 %v2383_v19  ;;  %v2276_v45 = vunpack.c.h.bf16 %v2383_v19 }
 0x191   :  { %v1339_v5 = vadd.f32 %v1338_v56, %v1250_v18 }
 0x193   :  { %v1387_v41 = vadd.f32 %v2978_v15, %v1339_v5 }
 0x194   :  { %v1163_v61 = vpop.f32.mrf.mxu2 }
 0x195   :  { %v1550_v44 = vadd.f32 %v2272_v17, %v1387_v41  ;;  %v1164_v7 = vadd.f32 %v1163_v61, %v1075_v10  ;;  %v1252_v34 = vpop.f32.mrf.mxu3 }
 0x196   :  { %v1076_v8 = vpop.f32.mrf.mxu1 }
 0x197   :  { %v2346_v9 = vpack.c.bf16 %v1550_v44, %v1549_v6  ;;  %v1253_v13 = vadd.f32 %v1252_v34, %v1164_v7  ;;  %v1077_v16 = vadd.f32 %v1076_v8, %v2945_v39 }
 0x198   :  { %v1343_v12 = vpop.f32.mrf.mxu0 }
 0x199   :  { %2397 = vst [vmem:[%s3286_s4 + $0x50] sm:$0xff] %v2346_v9   ;;  %v1342_v25 = vadd.f32 %v1341_v60, %v1253_v13 }
 0x19b   :  { %v1388_v32 = vadd.f32 %v2978_v15, %v1342_v25 }
 0x19c   :  { %v1165_v24 = vpop.f32.mrf.mxu2 }
 0x19d   :  { %v1166_v28 = vadd.f32 %v1165_v24, %v1077_v16  ;;  %v1254_v29 = vpop.f32.mrf.mxu3  ;;  %v1551_v36 = vadd.f32 %v2275_v1, %v1388_v32 }
 0x19e   :  { %v1079_v30 = vpop.f32.mrf.mxu1 }
 0x19f   :  { %v1255_v27 = vadd.f32 %v1254_v29, %v1166_v28  ;;  %v1080_v39 = vadd.f32 %v1079_v30, %v2795_v23  ;;  %v2384_v23 = vld [vmem:[%s3285_s3 + $0x60] sm:$0xff]  }
 0x1a0   :  { %v1346_v31 = vpop.f32.mrf.mxu0  ;;  %v2279_v2 = vunpack.c.l.bf16 %v2384_v23  ;;  %v2280_v4 = vunpack.c.h.bf16 %v2384_v23 }
 0x1a1   :  { %v1344_v42 = vadd.f32 %v1343_v12, %v1255_v27 }
 0x1a3   :  { %v1389_v14 = vadd.f32 %v2978_v15, %v1344_v42 }
 0x1a4   :  { %v1168_v33 = vpop.f32.mrf.mxu2 }
 0x1a5   :  { %v1552_v37 = vadd.f32 %v2276_v45, %v1389_v14  ;;  %v1169_v49 = vadd.f32 %v1168_v33, %v1080_v39  ;;  %v1257_v50 = vpop.f32.mrf.mxu3 }
 0x1a6   :  { %v1081_v58 = vpop.f32.mrf.mxu1 }
 0x1a7   :  { %v2351_v54 = vpack.c.bf16 %v1552_v37, %v1551_v36  ;;  %v1258_v51 = vadd.f32 %v1257_v50, %v1169_v49  ;;  %v1082_v26 = vadd.f32 %v1081_v58, %v2827_v35 }
 0x1a8   :  { %v1348_v47 = vpop.f32.mrf.mxu0 }
 0x1a9   :  { %2398 = vst [vmem:[%s3286_s4 + $0x58] sm:$0xff] %v2351_v54   ;;  %v1347_v48 = vadd.f32 %v1346_v31, %v1258_v51 }
 0x1ab   :  { %v1390_v59 = vadd.f32 %v2978_v15, %v1347_v48 }
 0x1ac   :  { %v1170_v52 = vpop.f32.mrf.mxu2 }
 0x1ad   :  { %v1171_v46 = vadd.f32 %v1170_v52, %v1082_v26  ;;  %v1259_v53 = vpop.f32.mrf.mxu3  ;;  %v1553_v18 = vadd.f32 %v2279_v2, %v1390_v59 }
 0x1ae   :  { %v1084_v56 = vpop.f32.mrf.mxu1 }
 0x1af   :  { %v1260_v38 = vadd.f32 %v1259_v53, %v1171_v46  ;;  %v1085_v35 = vadd.f32 %v1084_v56, %v2835_v43  ;;  %v2385_v43 = vld [vmem:[%s3285_s3 + $0x68] sm:$0xff]  }
 0x1b0   :  { %v1351_v57 = vpop.f32.mrf.mxu0  ;;  %v2283_v13 = vunpack.c.l.bf16 %v2385_v43  ;;  %v2284_v24 = vunpack.c.h.bf16 %v2385_v43 }
 0x1b1   :  { %v1349_v3 = vadd.f32 %v1348_v47, %v1260_v38 }
 0x1b3   :  { %v1391_v62 = vadd.f32 %v2978_v15, %v1349_v3 }
 0x1b4   :  { %v1173_v0 = vpop.f32.mrf.mxu2 }
 0x1b5   :  { %v1554_v60 = vadd.f32 %v2280_v4, %v1391_v62  ;;  %v1174_v22 = vadd.f32 %v1173_v0, %v1085_v35  ;;  %v1262_v21 = vpop.f32.mrf.mxu3 }
 0x1b6   :  { %v1086_v5 = vpop.f32.mrf.mxu1 }
 0x1b7   :  { %v2356_v17 = vpack.c.bf16 %v1554_v60, %v1553_v18  ;;  %v1263_v10 = vadd.f32 %v1262_v21, %v1174_v22  ;;  %v1087_v61 = vadd.f32 %v1086_v5, %v2867_v55 }
 0x1b8   :  { %v1353_v41 = vpop.f32.mrf.mxu0 }
 0x1b9   :  { %2399 = vst [vmem:[%s3286_s4 + $0x60] sm:$0xff] %v2356_v17   ;;  %v1352_v44 = vadd.f32 %v1351_v57, %v1263_v10 }
 0x1bb   :  { %v1392_v12 = vadd.f32 %v2978_v15, %v1352_v44 }
 0x1bc   :  { %v1175_v6 = vpop.f32.mrf.mxu2 }
 0x1bd   :  { %v1176_v7 = vadd.f32 %v1175_v6, %v1087_v61  ;;  %v1264_v34 = vpop.f32.mrf.mxu3  ;;  %v1555_v19 = vadd.f32 %v2283_v13, %v1392_v12 }
 0x1be   :  { %v1089_v8 = vpop.f32.mrf.mxu1 }
 0x1bf   :  { %v1265_v9 = vadd.f32 %v1264_v34, %v1176_v7  ;;  %v1090_v55 = vadd.f32 %v1089_v8, %v2875_v63  ;;  %v2386_v63 = vld [vmem:[%s3285_s3 + $0x70] sm:$0xff]  }
 0x1c0   :  { %v1356_v25 = vpop.f32.mrf.mxu0  ;;  %v2287_v54 = vunpack.c.l.bf16 %v2386_v63  ;;  %v2288_v51 = vunpack.c.h.bf16 %v2386_v63 }
 0x1c1   :  { %v1354_v16 = vadd.f32 %v1353_v41, %v1265_v9 }
 0x1c3   :  { %v1393_v28 = vadd.f32 %v2978_v15, %v1354_v16 }
 0x1c4   :  { %v1178_v29 = vpop.f32.mrf.mxu2 }
 0x1c5   :  { %v1556_v30 = vadd.f32 %v2284_v24, %v1393_v28  ;;  %v1179_v27 = vadd.f32 %v1178_v29, %v1090_v55  ;;  %v1267_v31 = vpop.f32.mrf.mxu3 }
 0x1c6   :  { %v1091_v32 = vpop.f32.mrf.mxu1 }
 0x1c7   :  { %v2361_v1 = vpack.c.bf16 %v1556_v30, %v1555_v19  ;;  %v1268_v42 = vadd.f32 %v1267_v31, %v1179_v27  ;;  %v1092_v45 = vadd.f32 %v1091_v32, %v2907_v11 }
 0x1c8   :  { %v1358_v14 = vpop.f32.mrf.mxu0 }
 0x1c9   :  { %2400 = vst [vmem:[%s3286_s4 + $0x68] sm:$0xff] %v2361_v1   ;;  %v1357_v33 = vadd.f32 %v1356_v25, %v1268_v42 }
 0x1cb   :  { %v1394_v58 = vadd.f32 %v2978_v15, %v1357_v33 }
 0x1cc   :  { %v1180_v39 = vpop.f32.mrf.mxu2 }
 0x1cd   :  { %v1181_v36 = vadd.f32 %v1180_v39, %v1092_v45  ;;  %v1269_v37 = vpop.f32.mrf.mxu3  ;;  %v1557_v48 = vadd.f32 %v2287_v54, %v1394_v58 }
 0x1ce   :  { %v1094_v49 = vpop.f32.mrf.mxu1 }
 0x1cf   :  { %v1270_v50 = vadd.f32 %v1269_v37, %v1181_v36  ;;  %v1095_v11 = vadd.f32 %v1094_v49, %v2915_v20  ;;  %v2387_v20 = vld [vmem:[%s3285_s3 + $0x78] sm:$0xff]  }
 0x1d0   :  { %v1361_v56 = vpop.f32.mrf.mxu0  ;;  %v2291_v22 = vunpack.c.l.bf16 %v2387_v20  ;;  %v2292_v5 = vunpack.c.h.bf16 %v2387_v20 }
 0x1d1   :  { %v1359_v47 = vadd.f32 %v1358_v14, %v1270_v50 }
 0x1d3   :  { %v1395_v26 = vadd.f32 %v2978_v15, %v1359_v47 }
 0x1d4   :  { %v1183_v52 = vpop.f32.mrf.mxu2 }
 0x1d5   :  { %v1558_v46 = vadd.f32 %v2288_v51, %v1395_v26  ;;  %v1184_v53 = vadd.f32 %v1183_v52, %v1095_v11  ;;  %v1272_v23 = vpop.f32.mrf.mxu3 }
 0x1d6   :  { %v1096_v57 = vpop.f32.mrf.mxu1 }
 0x1d7   :  { %v2366_v38 = vpack.c.bf16 %v1558_v46, %v1557_v48  ;;  %v1273_v59 = vadd.f32 %v1272_v23, %v1184_v53  ;;  %v1097_v2 = vadd.f32 %v1096_v57, %v2947_v40 }
 0x1d8   :  { %v1363_v18 = vpop.f32.mrf.mxu0 }
 0x1d9   :  { %2401 = vst [vmem:[%s3286_s4 + $0x70] sm:$0xff] %v2366_v38   ;;  %v1362_v4 = vadd.f32 %v1361_v56, %v1273_v59 }
 0x1db   :  { %v1396_v60 = vadd.f32 %v2978_v15, %v1362_v4 }
 0x1dc   :  { %v1185_v3 = vpop.f32.mrf.mxu2 }
 0x1dd   :  { %v1186_v62 = vadd.f32 %v1185_v3, %v1097_v2  ;;  %v1274_v35 = vpop.f32.mrf.mxu3  ;;  %v1559_v41 = vadd.f32 %v2291_v22, %v1396_v60 }
 0x1df   :  { %v1275_v0 = vadd.f32 %v1274_v35, %v1186_v62 }
 0x1e1   :  { %v1364_v21 = vadd.f32 %v1363_v18, %v1275_v0 }
 0x1e3   :  { %v1397_v17 = vadd.f32 %v2978_v15, %v1364_v21 }
 0x1e5   :  { %v1560_v10 = vadd.f32 %v2292_v5, %v1397_v17 }
 0x1e7   :  { %v2371_v40 = vpack.c.bf16 %v1560_v10, %v1559_v41 }
 0x1e9   :  { %2402 = vst [vmem:[%s3286_s4 + $0x78] sm:$0xff] %v2371_v40  }

// kernel: feature_extraction_forward.101
= control target key start
LH: loop header
LB: loop body
LE: loop exit
PB: predicated region body
PF: predicated region fallthrough
CT: control target
= control target key end

     0   :  { %s5334_s1 = inlined_call_operand.vmem [shape: bf16[1152,128], index: 1, kind: input, shape index: {}]   ;;  %s5335_s0 = inlined_call_operand.vmem [shape: bf16[256,1152], index: 0, kind: input, shape index: {}]   ;;  %s5336_s2 = inlined_call_operand.vmem [shape: f32[1,128], index: 2, kind: input, shape index: {}]   ;;  %s5337_s3 = inlined_call_operand.vmem [shape: bf16[256,128], index: 3, kind: input, shape index: {}]   ;;  %s5338_s4 = inlined_call_operand.vmem [shape: bf16[256,128], index: 4, kind: output, shape index: {}]  }
   0x1   :  { %v3640_v0 = vld [vmem:[%s5334_s1 + $0x38] sm:$0xff]  ;;  %v3639_v1 = vld [vmem:[%s5334_s1 + $0x30] sm:$0xff]  ;;  %v3638_v2 = vld [vmem:[%s5334_s1 + $0x28] sm:$0xff] }
   0x2   :  { %3879 = vmatpush.bf16.msra.mxu1 %v3640_v0  ;;  %3880 = vmatpush.bf16.msra.mxu2 %v3640_v0  ;;  %v3637_v3 = vld [vmem:[%s5334_s1 + $0x20] sm:$0xff]  ;;  %v3636_v4 = vld [vmem:[%s5334_s1 + $0x18] sm:$0xff]  ;;  %v3635_v5 = vld [vmem:[%s5334_s1 + $0x10] sm:$0xff] }
   0x3   :  { %3881 = vmatpush.bf16.msra.mxu3 %v3640_v0  ;;  %1561 = vmatpush.bf16.msra.mxu0 %v3640_v0  ;;  %v3634_v6 = vld [vmem:[%s5334_s1 + $0x8] sm:$0xff]  ;;  %v3633_v7 = vld [vmem:[%s5334_s1] sm:$0xff]  ;;  %v3656_v16 = vld [vmem:[%s5334_s1 + $0xb8] sm:$0xff] }
   0x4   :  { %v2771_v8 = vld [vmem:[%s5335_s0 + $0x120] sm:$0xf]  ;;  %v3529_v9 = vld [vmem:[%s5335_s0 + $0x140] sm:$0xf0]  ;;  %v3664_v17 = vld [vmem:[%s5334_s1 + $0xf8] sm:$0xff] }
   0x5   :  { %v2915_v10 = vld [vmem:[%s5335_s0 + $0x240] sm:$0xf]  ;;  %v3565_v11 = vld [vmem:[%s5335_s0 + $0x260] sm:$0xf0]  ;;  %v2772_v18 = vor.u32 %v3529_v9, %v2771_v8  ;;  %v3648_v22 = vld [vmem:[%s5334_s1 + $0x78] sm:$0xff] }
   0x6   :  { %3882 = vmatpush.bf16.msra.mxu1 %v3639_v1  ;;  %3883 = vmatpush.bf16.msra.mxu2 %v3639_v1  ;;  %v3059_v12 = vld [vmem:[%s5335_s0 + $0x360] sm:$0xf]  ;;  %v3601_v13 = vld [vmem:[%s5335_s0 + $0x380] sm:$0xf0]  ;;  %v2916_v19 = vor.u32 %v3565_v11, %v2915_v10  ;;  %v3672_v23 = vld [vmem:[%s5334_s1 + $0x138] sm:$0xff] }
   0x7   :  { %3884 = vmatpush.bf16.msra.mxu3 %v3639_v1  ;;  %1562 = vmatpush.bf16.msra.mxu0 %v3639_v1  ;;  %v2627_v14 = vld [vmem:[%s5335_s0] sm:$0xf]  ;;  %v3493_v15 = vld [vmem:[%s5335_s0 + $0x20] sm:$0xf0]  ;;  %v3060_v20 = vor.u32 %v3601_v13, %v3059_v12  ;;  %v3655_v24 = vld [vmem:[%s5334_s1 + $0xb0] sm:$0xff] }
   0x8   :  { %v2628_v21 = vor.u32 %v3493_v15, %v2627_v14  ;;  %v3663_v25 = vld [vmem:[%s5334_s1 + $0xf0] sm:$0xff]  ;;  %v3654_v28 = vld [vmem:[%s5334_s1 + $0xa8] sm:$0xff]  ;;  %v3653_v33 = vld [vmem:[%s5334_s1 + $0xa0] sm:$0xff] }
   0x9   :  { %v3647_v26 = vld [vmem:[%s5334_s1 + $0x70] sm:$0xff]  ;;  %v3662_v29 = vld [vmem:[%s5334_s1 + $0xe8] sm:$0xff]  ;;  %v3661_v34 = vld [vmem:[%s5334_s1 + $0xe0] sm:$0xff] }
   0xa   :  { %3885 = vmatpush.bf16.msra.mxu1 %v3638_v2  ;;  %3886 = vmatpush.bf16.msra.mxu2 %v3638_v2  ;;  %v3671_v27 = vld [vmem:[%s5334_s1 + $0x130] sm:$0xff]  ;;  %v3646_v30 = vld [vmem:[%s5334_s1 + $0x68] sm:$0xff]  ;;  %v3645_v42 = vld [vmem:[%s5334_s1 + $0x60] sm:$0xff] }
   0xb   :  { %3887 = vmatpush.bf16.msra.mxu3 %v3638_v2  ;;  %1563 = vmatpush.bf16.msra.mxu0 %v3638_v2  ;;  %v3670_v31 = vld [vmem:[%s5334_s1 + $0x128] sm:$0xff]  ;;  %v3669_v43 = vld [vmem:[%s5334_s1 + $0x120] sm:$0xff]  ;;  %v3652_v44 = vld [vmem:[%s5334_s1 + $0x98] sm:$0xff] }
   0xc   :  { %v2807_v32 = vld [vmem:[%s5335_s0 + $0x168] sm:$0xf]  ;;  %v3538_v35 = vld [vmem:[%s5335_s0 + $0x188] sm:$0xf0]  ;;  %v3660_v45 = vld [vmem:[%s5334_s1 + $0xd8] sm:$0xff] }
   0xd   :  { %v2951_v36 = vld [vmem:[%s5335_s0 + $0x288] sm:$0xf]  ;;  %v3574_v37 = vld [vmem:[%s5335_s0 + $0x2a8] sm:$0xf0]  ;;  %v2808_v46 = vor.u32 %v3538_v35, %v2807_v32  ;;  %v3644_v50 = vld [vmem:[%s5334_s1 + $0x58] sm:$0xff] }
   0xe   :  { %3888 = vmatpush.bf16.msra.mxu1 %v3637_v3  ;;  %3889 = vmatpush.bf16.msra.mxu2 %v3637_v3  ;;  %v3095_v38 = vld [vmem:[%s5335_s0 + $0x3a8] sm:$0xf]  ;;  %v3610_v39 = vld [vmem:[%s5335_s0 + $0x3c8] sm:$0xf0]  ;;  %v2952_v47 = vor.u32 %v3574_v37, %v2951_v36  ;;  %v3668_v51 = vld [vmem:[%s5334_s1 + $0x118] sm:$0xff] }
   0xf   :  { %3890 = vmatpush.bf16.msra.mxu3 %v3637_v3  ;;  %1564 = vmatpush.bf16.msra.mxu0 %v3637_v3  ;;  %v2663_v40 = vld [vmem:[%s5335_s0 + $0x48] sm:$0xf]  ;;  %v3502_v41 = vld [vmem:[%s5335_s0 + $0x68] sm:$0xf0]  ;;  %v3096_v48 = vor.u32 %v3610_v39, %v3095_v38  ;;  %v3651_v52 = vld [vmem:[%s5334_s1 + $0x90] sm:$0xff] }
  0x10   :  { %v2664_v49 = vor.u32 %v3502_v41, %v2663_v40  ;;  %v3659_v53 = vld [vmem:[%s5334_s1 + $0xd0] sm:$0xff]  ;;  %v3650_v56 = vld [vmem:[%s5334_s1 + $0x88] sm:$0xff]  ;;  %v3649_v61 = vld [vmem:[%s5334_s1 + $0x80] sm:$0xff] }
  0x11   :  { %v3643_v54 = vld [vmem:[%s5334_s1 + $0x50] sm:$0xff]  ;;  %v3658_v57 = vld [vmem:[%s5334_s1 + $0xc8] sm:$0xff]  ;;  %v3657_v62 = vld [vmem:[%s5334_s1 + $0xc0] sm:$0xff] }
  0x12   :  { %3891 = vmatpush.bf16.msra.mxu1 %v3636_v4  ;;  %3892 = vmatpush.bf16.msra.mxu2 %v3636_v4  ;;  %v3667_v55 = vld [vmem:[%s5334_s1 + $0x110] sm:$0xff]  ;;  %v3642_v58 = vld [vmem:[%s5334_s1 + $0x48] sm:$0xff]  ;;  %v3688_v12 = vld [vmem:[%s5334_s1 + $0x1b8] sm:$0xff] }
  0x13   :  { %3893 = vmatpush.bf16.msra.mxu3 %v3636_v4  ;;  %1565 = vmatpush.bf16.msra.mxu0 %v3636_v4  ;;  %v3666_v59 = vld [vmem:[%s5334_s1 + $0x108] sm:$0xff]  ;;  %v2843_v60 = vld [vmem:[%s5335_s0 + $0x1b0] sm:$0xf]  ;;  %v3547_v63 = vld [vmem:[%s5335_s0 + $0x1d0] sm:$0xf0] }
  0x14   :  { %v2987_v0 = vld [vmem:[%s5335_s0 + $0x2d0] sm:$0xf]  ;;  %v3583_v1 = vld [vmem:[%s5335_s0 + $0x2f0] sm:$0xf0]  ;;  %v2844_v8 = vor.u32 %v3547_v63, %v2843_v60  ;;  %v3696_v13 = vld [vmem:[%s5334_s1 + $0x1f8] sm:$0xff] }
  0x15   :  { %v3131_v2 = vld [vmem:[%s5335_s0 + $0x3f0] sm:$0xf]  ;;  %v3619_v3 = vld [vmem:[%s5335_s0 + $0x410] sm:$0xf0]  ;;  %v2988_v9 = vor.u32 %v3583_v1, %v2987_v0  ;;  %v3680_v14 = vld [vmem:[%s5334_s1 + $0x178] sm:$0xff] }
  0x16   :  { %3894 = vmatpush.bf16.msra.mxu1 %v3635_v5  ;;  %3895 = vmatpush.bf16.msra.mxu2 %v3635_v5  ;;  %v2699_v4 = vld [vmem:[%s5335_s0 + $0x90] sm:$0xf]  ;;  %v3132_v10 = vor.u32 %v3619_v3, %v3131_v2  ;;  %v3704_v15 = vld [vmem:[%s5334_s1 + $0x238] sm:$0xff]  ;;  %v3490_v32 = vld [vmem:[%s5335_s0 + $0xc] sm:$0xf] }
  0x17   :  { %3896 = vmatpush.bf16.msra.mxu3 %v3635_v5  ;;  %1566 = vmatpush.bf16.msra.mxu0 %v3635_v5  ;;  %v3511_v5 = vld [vmem:[%s5335_s0 + $0xb0] sm:$0xf0]  ;;  %v3508_v60 = vld [vmem:[%s5335_s0 + $0x9c] sm:$0xf]  ;;  %v3513_v63 = vld [vmem:[%s5335_s0 + $0xc0] sm:$0xf0] }
  0x18   :  { %v2700_v11 = vor.u32 %v3511_v5, %v2699_v4  ;;  %v3495_v35 = vld [vmem:[%s5335_s0 + $0x30] sm:$0xf0]  ;;  %v3686_v4 = vld [vmem:[%s5334_s1 + $0x1a8] sm:$0xff] }
  0x19   :  { %v3687_v40 = vld [vmem:[%s5334_s1 + $0x1b0] sm:$0xff]  ;;  %v3694_v5 = vld [vmem:[%s5334_s1 + $0x1e8] sm:$0xff] }
  0x1a   :  { %3897 = vmatpush.bf16.msra.mxu1 %v3634_v6  ;;  %3898 = vmatpush.bf16.msra.mxu2 %v3634_v6  ;;  %v3695_v41 = vld [vmem:[%s5334_s1 + $0x1f0] sm:$0xff] }
  0x1b   :  { %3899 = vmatpush.bf16.msra.mxu3 %v3634_v6  ;;  %1567 = vmatpush.bf16.msra.mxu0 %v3634_v6  ;;  %v3641_v6 = vld [vmem:[%s5334_s1 + $0x40] sm:$0xff] }
  0x1e   :  { %3900 = vmatpush.bf16.msra.mxu1 %v3633_v7  ;;  %3901 = vmatpush.bf16.msra.mxu2 %v3633_v7 }
  0x1f   :  { %3902 = vmatpush.bf16.msra.mxu3 %v3633_v7  ;;  %1568 = vmatpush.bf16.msra.mxu0 %v3633_v7  ;;  %v3665_v7 = vld [vmem:[%s5334_s1 + $0x100] sm:$0xff] }
  0x21   :  { %1589 = vmatmul.bf16.vlgmr.msra.gmra.mxu1 %v2772_v18  ;;  %1609 = vmatmul.bf16.vlgmr.msra.gmra.mxu2 %v2916_v19  ;;  %v3023_v18 = vld [vmem:[%s5335_s0 + $0x318] sm:$0xf]  ;;  %v3592_v19 = vld [vmem:[%s5335_s0 + $0x338] sm:$0xf0] }
  0x22   :  { %1739 = vmatpush.bf16.msrb.mxu2 %v3656_v16  ;;  %1629 = vmatmul.bf16.vlgmr.msra.gmra.mxu3 %v3060_v20  ;;  %v2879_v16 = vld [vmem:[%s5335_s0 + $0x1f8] sm:$0xf] }
  0x23   :  { %1828 = vmatpush.bf16.msrb.mxu3 %v3664_v17  ;;  %1569 = vmatmul.bf16.vlgmr.msra.gmra.mxu0 %v2628_v21  ;;  %v3556_v17 = vld [vmem:[%s5335_s0 + $0x218] sm:$0xf0]  ;;  %v3167_v20 = vld [vmem:[%s5335_s0 + $0x438] sm:$0xf] }
  0x24   :  { %1650 = vmatpush.bf16.msrb.mxu1 %v3648_v22  ;;  %1917 = vmatpush.bf16.msrb.mxu0 %v3672_v23  ;;  %v3628_v21 = vld [vmem:[%s5335_s0 + $0x458] sm:$0xf0]  ;;  %v2735_v22 = vld [vmem:[%s5335_s0 + $0xd8] sm:$0xf] }
  0x25   :  { %v3520_v23 = vld [vmem:[%s5335_s0 + $0xf8] sm:$0xf0] }
  0x26   :  { %1740 = vmatpush.bf16.msrb.mxu2 %v3655_v24  ;;  %v2880_v24 = vor.u32 %v3556_v17, %v2879_v16 }
  0x27   :  { %1829 = vmatpush.bf16.msrb.mxu3 %v3663_v25  ;;  %v3024_v25 = vor.u32 %v3592_v19, %v3023_v18 }
  0x28   :  { %1651 = vmatpush.bf16.msrb.mxu1 %v3647_v26  ;;  %1918 = vmatpush.bf16.msrb.mxu0 %v3671_v27  ;;  %v3168_v26 = vor.u32 %v3628_v21, %v3167_v20  ;;  %v2736_v27 = vor.u32 %v3520_v23, %v2735_v22  ;;  %v3525_v20 = vld [vmem:[%s5335_s0 + $0x124] sm:$0xf]  ;;  %v2773_v21 = vld [vmem:[%s5335_s0 + $0x144] sm:$0xf0]  ;;  %v3530_v23 = vld [vmem:[%s5335_s0 + $0x148] sm:$0xf0] }
  0x29   :  { %v2779_v22 = vld [vmem:[%s5335_s0 + $0x128] sm:$0xf] }
  0x2a   :  { %1741 = vmatpush.bf16.msrb.mxu2 %v3654_v28  ;;  %v3489_v28 = vld [vmem:[%s5335_s0 + $0x4] sm:$0xf] }
  0x2b   :  { %1830 = vmatpush.bf16.msrb.mxu3 %v3662_v29  ;;  %v2629_v29 = vld [vmem:[%s5335_s0 + $0x24] sm:$0xf0] }
  0x2c   :  { %1652 = vmatpush.bf16.msrb.mxu1 %v3646_v30  ;;  %1919 = vmatpush.bf16.msrb.mxu0 %v3670_v31  ;;  %v2635_v30 = vld [vmem:[%s5335_s0 + $0x8] sm:$0xf]  ;;  %v3494_v31 = vld [vmem:[%s5335_s0 + $0x28] sm:$0xf0]  ;;  %v2632_v36 = vor.u32 %v3489_v28, %v2629_v29  ;;  %v2776_v28 = vor.u32 %v3525_v20, %v2773_v21  ;;  %v2780_v29 = vor.u32 %v3530_v23, %v2779_v22  ;;  %v3676_v20 = vld [vmem:[%s5334_s1 + $0x158] sm:$0xff] }
  0x2d   :  { %v2636_v37 = vor.u32 %v3494_v31, %v2635_v30  ;;  %v3700_v21 = vld [vmem:[%s5334_s1 + $0x218] sm:$0xff]  ;;  %v2881_v23 = vld [vmem:[%s5335_s0 + $0x21c] sm:$0xf0] }
  0x2e   :  { %1742 = vmatpush.bf16.msrb.mxu2 %v3653_v33  ;;  %v2637_v33 = vld [vmem:[%s5335_s0 + $0x2c] sm:$0xf0]  ;;  %v3552_v22 = vld [vmem:[%s5335_s0 + $0x1fc] sm:$0xf] }
  0x2f   :  { %1831 = vmatpush.bf16.msrb.mxu3 %v3661_v34  ;;  %v2643_v34 = vld [vmem:[%s5335_s0 + $0x10] sm:$0xf]  ;;  %v2640_v38 = vor.u32 %v3490_v32, %v2637_v33 }
  0x30   :  { %1653 = vmatpush.bf16.msrb.mxu1 %v3645_v42  ;;  %1920 = vmatpush.bf16.msrb.mxu0 %v3669_v43  ;;  %v2644_v39 = vor.u32 %v3495_v35, %v2643_v34  ;;  %v3679_v42 = vld [vmem:[%s5334_s1 + $0x170] sm:$0xff]  ;;  %v3685_v34 = vld [vmem:[%s5334_s1 + $0x1a0] sm:$0xff] }
  0x31   :  { %1594 = vmatmul.bf16.gmra.mxu1 %v2808_v46  ;;  %1614 = vmatmul.bf16.gmra.mxu2 %v2952_v47  ;;  %v3703_v43 = vld [vmem:[%s5334_s1 + $0x230] sm:$0xff]  ;;  %v3693_v35 = vld [vmem:[%s5334_s1 + $0x1e0] sm:$0xff] }
  0x32   :  { %1743 = vmatpush.bf16.msrb.mxu2 %v3652_v44  ;;  %1634 = vmatmul.bf16.gmra.mxu3 %v3096_v48  ;;  %v3498_v44 = vld [vmem:[%s5335_s0 + $0x4c] sm:$0xf]  ;;  %v2671_v46 = vld [vmem:[%s5335_s0 + $0x50] sm:$0xf]  ;;  %v3503_v47 = vld [vmem:[%s5335_s0 + $0x70] sm:$0xf0] }
  0x33   :  { %1832 = vmatpush.bf16.msrb.mxu3 %v3660_v45  ;;  %1574 = vmatmul.bf16.gmra.mxu0 %v2664_v49  ;;  %v2665_v45 = vld [vmem:[%s5335_s0 + $0x6c] sm:$0xf0]  ;;  %v3499_v48 = vld [vmem:[%s5335_s0 + $0x54] sm:$0xf]  ;;  %v2673_v49 = vld [vmem:[%s5335_s0 + $0x74] sm:$0xf0] }
  0x34   :  { %1654 = vmatpush.bf16.msrb.mxu1 %v3644_v50  ;;  %1921 = vmatpush.bf16.msrb.mxu0 %v3668_v51  ;;  %v2679_v50 = vld [vmem:[%s5335_s0 + $0x58] sm:$0xf]  ;;  %v3504_v51 = vld [vmem:[%s5335_s0 + $0x78] sm:$0xf0] }
  0x36   :  { %1744 = vmatpush.bf16.msrb.mxu2 %v3651_v52  ;;  %v2668_v52 = vor.u32 %v3498_v44, %v2665_v45  ;;  %v2815_v44 = vld [vmem:[%s5335_s0 + $0x170] sm:$0xf]  ;;  %v3539_v45 = vld [vmem:[%s5335_s0 + $0x190] sm:$0xf0] }
  0x37   :  { %1833 = vmatpush.bf16.msrb.mxu3 %v3659_v53  ;;  %v2672_v53 = vor.u32 %v3503_v47, %v2671_v46  ;;  %v3535_v46 = vld [vmem:[%s5335_s0 + $0x174] sm:$0xf]  ;;  %v2817_v47 = vld [vmem:[%s5335_s0 + $0x194] sm:$0xf0] }
  0x38   :  { %1655 = vmatpush.bf16.msrb.mxu1 %v3643_v54  ;;  %1922 = vmatpush.bf16.msrb.mxu0 %v3667_v55  ;;  %v2676_v54 = vor.u32 %v3499_v48, %v2673_v49  ;;  %v2680_v55 = vor.u32 %v3504_v51, %v2679_v50  ;;  %v2823_v48 = vld [vmem:[%s5335_s0 + $0x178] sm:$0xf]  ;;  %v3540_v49 = vld [vmem:[%s5335_s0 + $0x198] sm:$0xf0] }
  0x3a   :  { %1745 = vmatpush.bf16.msrb.mxu2 %v3650_v56  ;;  %v3507_v56 = vld [vmem:[%s5335_s0 + $0x94] sm:$0xf] }
  0x3b   :  { %1834 = vmatpush.bf16.msrb.mxu3 %v3658_v57  ;;  %v2701_v57 = vld [vmem:[%s5335_s0 + $0xb4] sm:$0xf0] }
  0x3c   :  { %1656 = vmatpush.bf16.msrb.mxu1 %v3642_v58  ;;  %1923 = vmatpush.bf16.msrb.mxu0 %v3666_v59  ;;  %v2707_v58 = vld [vmem:[%s5335_s0 + $0x98] sm:$0xf]  ;;  %v3512_v59 = vld [vmem:[%s5335_s0 + $0xb8] sm:$0xf0]  ;;  %v2704_v0 = vor.u32 %v3507_v56, %v2701_v57  ;;  %v2824_v56 = vor.u32 %v3540_v49, %v2823_v48  ;;  %v3561_v48 = vld [vmem:[%s5335_s0 + $0x244] sm:$0xf] }
  0x3d   :  { %v2708_v1 = vor.u32 %v3512_v59, %v2707_v58  ;;  %v2917_v49 = vld [vmem:[%s5335_s0 + $0x264] sm:$0xf0] }
  0x3e   :  { %1746 = vmatpush.bf16.msrb.mxu2 %v3649_v61  ;;  %v2709_v61 = vld [vmem:[%s5335_s0 + $0xbc] sm:$0xf0] }
  0x3f   :  { %1835 = vmatpush.bf16.msrb.mxu3 %v3657_v62  ;;  %v2715_v62 = vld [vmem:[%s5335_s0 + $0xa0] sm:$0xf]  ;;  %v2712_v2 = vor.u32 %v3508_v60, %v2709_v61 }
  0x40   :  { %1657 = vmatpush.bf16.msrb.mxu1 %v3641_v6  ;;  %1924 = vmatpush.bf16.msrb.mxu0 %v3665_v7  ;;  %v2716_v3 = vor.u32 %v3513_v63, %v2715_v62  ;;  %v3678_v6 = vld [vmem:[%s5334_s1 + $0x168] sm:$0xff]  ;;  %v3543_v62 = vld [vmem:[%s5335_s0 + $0x1b4] sm:$0xf]  ;;  %v2845_v63 = vld [vmem:[%s5335_s0 + $0x1d4] sm:$0xf0] }
  0x41   :  { %1599 = vmatmul.bf16.gmra.mxu1 %v2844_v8  ;;  %1619 = vmatmul.bf16.gmra.mxu2 %v2988_v9  ;;  %v3702_v7 = vld [vmem:[%s5334_s1 + $0x228] sm:$0xff]  ;;  %v3516_v8 = vld [vmem:[%s5335_s0 + $0xdc] sm:$0xf]  ;;  %v2737_v9 = vld [vmem:[%s5335_s0 + $0xfc] sm:$0xf0] }
  0x42   :  { %1639 = vmatmul.bf16.gmra.mxu3 %v3132_v10  ;;  %2095 = vmatpush.bf16.msra.mxu2 %v3688_v12  ;;  %v2743_v10 = vld [vmem:[%s5335_s0 + $0xe0] sm:$0xf]  ;;  %v3517_v12 = vld [vmem:[%s5335_s0 + $0xe4] sm:$0xf]  ;;  %v2740_v16 = vor.u32 %v3516_v8, %v2737_v9  ;;  %v2848_v8 = vor.u32 %v3543_v62, %v2845_v63  ;;  %v2931_v62 = vld [vmem:[%s5335_s0 + $0x250] sm:$0xf] }
  0x43   :  { %1579 = vmatmul.bf16.gmra.mxu0 %v2700_v11  ;;  %2184 = vmatpush.bf16.msra.mxu3 %v3696_v13  ;;  %v3521_v11 = vld [vmem:[%s5335_s0 + $0x100] sm:$0xf0]  ;;  %v2745_v13 = vld [vmem:[%s5335_s0 + $0x104] sm:$0xf0]  ;;  %v3567_v63 = vld [vmem:[%s5335_s0 + $0x270] sm:$0xf0] }
  0x44   :  { %2006 = vmatpush.bf16.msra.mxu1 %v3680_v14  ;;  %2273 = vmatpush.bf16.msra.mxu0 %v3704_v15  ;;  %v2751_v14 = vld [vmem:[%s5335_s0 + $0xe8] sm:$0xf]  ;;  %v3522_v15 = vld [vmem:[%s5335_s0 + $0x108] sm:$0xf0]  ;;  %v2744_v17 = vor.u32 %v3521_v11, %v2743_v10  ;;  %v2748_v18 = vor.u32 %v3517_v12, %v2745_v13 }
  0x45   :  { %v2752_v19 = vor.u32 %v3522_v15, %v2751_v14  ;;  %v3684_v14 = vld [vmem:[%s5334_s1 + $0x198] sm:$0xff] }
  0x46   :  { %2096 = vmatpush.bf16.msra.mxu2 %v3687_v40  ;;  %v3692_v15 = vld [vmem:[%s5334_s1 + $0x1d8] sm:$0xff] }
  0x47   :  { %2185 = vmatpush.bf16.msra.mxu3 %v3695_v41  ;;  %v3701_v41 = vld [vmem:[%s5334_s1 + $0x220] sm:$0xff] }
  0x48   :  { %2007 = vmatpush.bf16.msra.mxu1 %v3679_v42  ;;  %2274 = vmatpush.bf16.msra.mxu0 %v3703_v43  ;;  %v3534_v42 = vld [vmem:[%s5335_s0 + $0x16c] sm:$0xf]  ;;  %v2809_v43 = vld [vmem:[%s5335_s0 + $0x18c] sm:$0xf0] }
  0x4a   :  { %2097 = vmatpush.bf16.msra.mxu2 %v3686_v4  ;;  %v2859_v4 = vld [vmem:[%s5335_s0 + $0x1c0] sm:$0xf] }
  0x4b   :  { %2186 = vmatpush.bf16.msra.mxu3 %v3694_v5  ;;  %v3549_v5 = vld [vmem:[%s5335_s0 + $0x1e0] sm:$0xf0] }
  0x4c   :  { %2008 = vmatpush.bf16.msra.mxu1 %v3678_v6  ;;  %2275 = vmatpush.bf16.msra.mxu0 %v3702_v7  ;;  %v2860_v12 = vor.u32 %v3549_v5, %v2859_v4 }
  0x4e   :  { %2098 = vmatpush.bf16.msra.mxu2 %v3685_v34  ;;  %v2884_v34 = vor.u32 %v3552_v22, %v2881_v23 }
  0x4f   :  { %2187 = vmatpush.bf16.msra.mxu3 %v3693_v35 }
  0x50   :  { %2276 = vmatpush.bf16.msra.mxu0 %v3701_v41 }
  0x51   :  { %1604 = vmatmul.bf16.gmra.mxu1 %v2880_v24  ;;  %1624 = vmatmul.bf16.gmra.mxu2 %v3024_v25  ;;  %v3526_v24 = vld [vmem:[%s5335_s0 + $0x12c] sm:$0xf]  ;;  %v2781_v25 = vld [vmem:[%s5335_s0 + $0x14c] sm:$0xf0] }
  0x52   :  { %1644 = vmatmul.bf16.gmra.mxu3 %v3168_v26  ;;  %v2787_v26 = vld [vmem:[%s5335_s0 + $0x130] sm:$0xf]  ;;  %v2784_v31 = vor.u32 %v3526_v24, %v2781_v25  ;;  %2099 = vmatpush.bf16.msra.mxu2 %v3684_v14  ;;  %v2887_v24 = vld [vmem:[%s5335_s0 + $0x200] sm:$0xf]  ;;  %v3557_v25 = vld [vmem:[%s5335_s0 + $0x220] sm:$0xf0] }
  0x53   :  { %1584 = vmatmul.bf16.gmra.mxu0 %v2736_v27  ;;  %v3531_v27 = vld [vmem:[%s5335_s0 + $0x150] sm:$0xf0]  ;;  %2188 = vmatpush.bf16.msra.mxu3 %v3692_v15  ;;  %v2888_v35 = vor.u32 %v3557_v25, %v2887_v24 }
  0x54   :  { %v2788_v32 = vor.u32 %v3531_v27, %v2787_v26  ;;  %2277 = vmatpush.bf16.msra.mxu0 %v3700_v21  ;;  %v3553_v26 = vld [vmem:[%s5335_s0 + $0x204] sm:$0xf]  ;;  %v2889_v27 = vld [vmem:[%s5335_s0 + $0x224] sm:$0xf0]  ;;  %v3691_v14 = vld [vmem:[%s5334_s1 + $0x1d0] sm:$0xff] }
  0x55   :  { %v2892_v41 = vor.u32 %v3553_v26, %v2889_v27  ;;  %v3675_v25 = vld [vmem:[%s5334_s1 + $0x150] sm:$0xff]  ;;  %v3570_v27 = vld [vmem:[%s5335_s0 + $0x28c] sm:$0xf] }
  0x56   :  { %v3699_v26 = vld [vmem:[%s5334_s1 + $0x210] sm:$0xff] }
  0x57   :  { %2189 = vmatpush.bf16.msra.mxu3 %v3691_v14 }
  0x58   :  { %2278 = vmatpush.bf16.msra.mxu0 %v3699_v26  ;;  %v3003_v26 = vld [vmem:[%s5335_s0 + $0x2e0] sm:$0xf] }
  0x61   :  { %1658 = vmatmul.bf16.vlgmr.msrb.gmra.mxu1 %v2632_v36  ;;  %1747 = vmatmul.bf16.vlgmr.msrb.gmra.mxu2 %v2636_v37 }
  0x62   :  { %1836 = vmatmul.bf16.vlgmr.msrb.gmra.mxu3 %v2640_v38  ;;  %v3677_v38 = vld [vmem:[%s5334_s1 + $0x160] sm:$0xff] }
  0x63   :  { %1925 = vmatmul.bf16.vlgmr.msrb.gmra.mxu0 %v2644_v39  ;;  %2009 = vmatpush.bf16.msra.mxu1 %v3677_v38 }
  0x67   :  { %2010 = vmatpush.bf16.msra.mxu1 %v3676_v20 }
  0x6b   :  { %2011 = vmatpush.bf16.msra.mxu1 %v3675_v25  ;;  %v2997_v25 = vld [vmem:[%s5335_s0 + $0x2fc] sm:$0xf0] }
  0x71   :  { %1663 = vmatmul.bf16.gmra.mxu1 %v2668_v52  ;;  %1752 = vmatmul.bf16.gmra.mxu2 %v2672_v53  ;;  %v2812_v52 = vor.u32 %v3534_v42, %v2809_v43  ;;  %v2816_v53 = vor.u32 %v3539_v45, %v2815_v44 }
  0x72   :  { %1841 = vmatmul.bf16.gmra.mxu3 %v2676_v54 }
  0x73   :  { %1930 = vmatmul.bf16.gmra.mxu0 %v2680_v55  ;;  %v2820_v55 = vor.u32 %v3535_v46, %v2817_v47 }
  0x81   :  { %1668 = vmatmul.bf16.gmra.mxu1 %v2704_v0  ;;  %1757 = vmatmul.bf16.gmra.mxu2 %v2708_v1  ;;  %v2851_v0 = vld [vmem:[%s5335_s0 + $0x1b8] sm:$0xf]  ;;  %v3548_v1 = vld [vmem:[%s5335_s0 + $0x1d8] sm:$0xf0] }
  0x82   :  { %1846 = vmatmul.bf16.gmra.mxu3 %v2712_v2  ;;  %v3544_v2 = vld [vmem:[%s5335_s0 + $0x1bc] sm:$0xf]  ;;  %v2852_v9 = vor.u32 %v3548_v1, %v2851_v0 }
  0x83   :  { %1935 = vmatmul.bf16.gmra.mxu0 %v2716_v3  ;;  %v2853_v3 = vld [vmem:[%s5335_s0 + $0x1dc] sm:$0xf0] }
  0x84   :  { %v2856_v11 = vor.u32 %v3544_v2, %v2853_v3  ;;  %v2920_v2 = vor.u32 %v3561_v48, %v2917_v49  ;;  %v3576_v48 = vld [vmem:[%s5335_s0 + $0x2b8] sm:$0xf0] }
  0x91   :  { %1673 = vmatmul.bf16.gmra.mxu1 %v2740_v16  ;;  %1762 = vmatmul.bf16.gmra.mxu2 %v2744_v17 }
  0x92   :  { %1851 = vmatmul.bf16.gmra.mxu3 %v2748_v18 }
  0x93   :  { %1940 = vmatmul.bf16.gmra.mxu0 %v2752_v19 }
  0x9e   :  { %v4301_v30 = vpop.f32.mrf.mxu1 }
  0xa0   :  { %v4303_v33 = vpop.f32.mrf.mxu0 }
  0xa1   :  { %1678 = vmatmul.bf16.gmra.mxu1 %v2776_v28  ;;  %1767 = vmatmul.bf16.gmra.mxu2 %v2780_v29  ;;  %v2895_v28 = vld [vmem:[%s5335_s0 + $0x208] sm:$0xf]  ;;  %v3558_v29 = vld [vmem:[%s5335_s0 + $0x228] sm:$0xf0] }
  0xa2   :  { %1856 = vmatmul.bf16.gmra.mxu3 %v2784_v31  ;;  %v2896_v42 = vor.u32 %v3558_v29, %v2895_v28  ;;  %v2953_v28 = vld [vmem:[%s5335_s0 + $0x2ac] sm:$0xf0] }
  0xa3   :  { %1945 = vmatmul.bf16.gmra.mxu0 %v2788_v32  ;;  %v2959_v29 = vld [vmem:[%s5335_s0 + $0x290] sm:$0xf] }
  0xa4   :  { %v4311_v36 = vpop.f32.mrf.mxu2 }
  0xa5   :  { %v4313_v37 = vpop.f32.mrf.mxu3 }
  0xa6   :  { %v4318_v39 = vpop.f32.mrf.mxu1 }
  0xa8   :  { %v4320_v40 = vpop.f32.mrf.mxu0 }
  0xac   :  { %v4349_v50 = vpop.f32.mrf.mxu2 }
  0xad   :  { %v4351_v51 = vpop.f32.mrf.mxu3 }
  0xae   :  { %v4353_v54 = vpop.f32.mrf.mxu1 }
  0xb0   :  { %v4355_v57 = vpop.f32.mrf.mxu0 }
  0xb1   :  { %1683 = vmatmul.bf16.gmra.mxu1 %v2812_v52  ;;  %1772 = vmatmul.bf16.gmra.mxu2 %v2816_v53  ;;  %v2923_v52 = vld [vmem:[%s5335_s0 + $0x248] sm:$0xf]  ;;  %v3566_v53 = vld [vmem:[%s5335_s0 + $0x268] sm:$0xf0] }
  0xb2   :  { %1861 = vmatmul.bf16.gmra.mxu3 %v2820_v55  ;;  %v3562_v55 = vld [vmem:[%s5335_s0 + $0x24c] sm:$0xf]  ;;  %v2924_v3 = vor.u32 %v3566_v53, %v2923_v52 }
  0xb3   :  { %1950 = vmatmul.bf16.gmra.mxu0 %v2824_v56  ;;  %v2925_v56 = vld [vmem:[%s5335_s0 + $0x26c] sm:$0xf0] }
  0xb4   :  { %v4357_v58 = vpop.f32.mrf.mxu2  ;;  %v2928_v5 = vor.u32 %v3562_v55, %v2925_v56  ;;  %v2956_v55 = vor.u32 %v3570_v27, %v2953_v28  ;;  %v3585_v27 = vld [vmem:[%s5335_s0 + $0x300] sm:$0xf0] }
  0xb5   :  { %v4359_v59 = vpop.f32.mrf.mxu3 }
  0xb6   :  { %v4361_v60 = vpop.f32.mrf.mxu1 }
  0xb8   :  { %v4363_v61 = vpop.f32.mrf.mxu0 }
  0xbc   :  { %v4389_v6 = vpop.f32.mrf.mxu2 }
  0xbd   :  { %v4391_v7 = vpop.f32.mrf.mxu3 }
  0xbe   :  { %v4393_v10 = vpop.f32.mrf.mxu1 }
  0xc0   :  { %v4395_v13 = vpop.f32.mrf.mxu0 }
  0xc1   :  { %1688 = vmatmul.bf16.gmra.mxu1 %v2848_v8  ;;  %1777 = vmatmul.bf16.gmra.mxu2 %v2852_v9  ;;  %v2932_v8 = vor.u32 %v3567_v63, %v2931_v62 }
  0xc2   :  { %1866 = vmatmul.bf16.gmra.mxu3 %v2856_v11 }
  0xc3   :  { %1955 = vmatmul.bf16.gmra.mxu0 %v2860_v12  ;;  %v3683_v12 = vld [vmem:[%s5334_s1 + $0x190] sm:$0xff] }
  0xc4   :  { %v4403_v16 = vpop.f32.mrf.mxu2  ;;  %2100 = vmatpush.bf16.msra.mxu2 %v3683_v12 }
  0xc5   :  { %v4405_v17 = vpop.f32.mrf.mxu3 }
  0xc6   :  { %v4407_v18 = vpop.f32.mrf.mxu1 }
  0xc8   :  { %v4409_v19 = vpop.f32.mrf.mxu0 }
  0xcc   :  { %v4441_v31 = vpop.f32.mrf.mxu2 }
  0xcd   :  { %v4443_v32 = vpop.f32.mrf.mxu3 }
  0xce   :  { %v4445_v38 = vpop.f32.mrf.mxu1 }
  0xd0   :  { %v4447_v43 = vpop.f32.mrf.mxu0 }
  0xd1   :  { %1693 = vmatmul.bf16.gmra.mxu1 %v2884_v34  ;;  %1782 = vmatmul.bf16.gmra.mxu2 %v2888_v35  ;;  %v3575_v34 = vld [vmem:[%s5335_s0 + $0x2b0] sm:$0xf0] }
  0xd2   :  { %1871 = vmatmul.bf16.gmra.mxu3 %v2892_v41  ;;  %v3571_v35 = vld [vmem:[%s5335_s0 + $0x294] sm:$0xf]  ;;  %v2961_v41 = vld [vmem:[%s5335_s0 + $0x2b4] sm:$0xf0]  ;;  %v2960_v56 = vor.u32 %v3575_v34, %v2959_v29 }
  0xd3   :  { %1960 = vmatmul.bf16.gmra.mxu0 %v2896_v42  ;;  %v2967_v42 = vld [vmem:[%s5335_s0 + $0x298] sm:$0xf]  ;;  %v2964_v63 = vor.u32 %v3571_v35, %v2961_v41 }
  0xd4   :  { %v4449_v44 = vpop.f32.mrf.mxu2 }
  0xd5   :  { %v4451_v45 = vpop.f32.mrf.mxu3 }
  0xd6   :  { %v4453_v46 = vpop.f32.mrf.mxu1 }
  0xd8   :  { %v4455_v47 = vpop.f32.mrf.mxu0 }
  0xdc   :  { %v4481_v0 = vpop.f32.mrf.mxu2 }
  0xdd   :  { %v4483_v1 = vpop.f32.mrf.mxu3 }
  0xde   :  { %v1659_v4 = vpop.f32.mrf.mxu1 }
  0xdf   :  { %v1660_v9 = vadd.f32 %v1659_v4, %v4303_v33 }
  0xe0   :  { %v1926_v11 = vpop.f32.mrf.mxu0 }
  0xe1   :  { %1698 = vmatmul.bf16.gmra.mxu1 %v2920_v2  ;;  %1787 = vmatmul.bf16.gmra.mxu2 %v2924_v3  ;;  %v2968_v2 = vor.u32 %v3576_v48, %v2967_v42 }
  0xe2   :  { %1876 = vmatmul.bf16.gmra.mxu3 %v2928_v5 }
  0xe3   :  { %1965 = vmatmul.bf16.gmra.mxu0 %v2932_v8 }
  0xe4   :  { %v1748_v15 = vpop.f32.mrf.mxu2 }
  0xe5   :  { %v1749_v20 = vadd.f32 %v1748_v15, %v1660_v9  ;;  %v1837_v21 = vpop.f32.mrf.mxu3 }
  0xe6   :  { %v1661_v22 = vpop.f32.mrf.mxu1 }
  0xe7   :  { %v1838_v33 = vadd.f32 %v1837_v21, %v1749_v20  ;;  %v1662_v23 = vadd.f32 %v1661_v22, %v4320_v40  ;;  %v3579_v22 = vld [vmem:[%s5335_s0 + $0x2d4] sm:$0xf] }
  0xe8   :  { %v1928_v24 = vpop.f32.mrf.mxu0 }
  0xe9   :  { %v4505_v40 = vadd.f32 %v1926_v11, %v1838_v33 }
  0xec   :  { %v1750_v49 = vpop.f32.mrf.mxu2 }
  0xed   :  { %v1751_v52 = vadd.f32 %v1750_v49, %v1662_v23  ;;  %v1839_v53 = vpop.f32.mrf.mxu3  ;;  %v2995_v23 = vld [vmem:[%s5335_s0 + $0x2d8] sm:$0xf]  ;;  %v3004_v49 = vor.u32 %v3585_v27, %v3003_v26 }
  0xee   :  { %v1664_v62 = vpop.f32.mrf.mxu1 }
  0xef   :  { %v1840_v3 = vadd.f32 %v1839_v53, %v1751_v52  ;;  %v1665_v4 = vadd.f32 %v1664_v62, %v4355_v57  ;;  %v2989_v57 = vld [vmem:[%s5335_s0 + $0x2f4] sm:$0xf0]  ;;  %v3682_v62 = vld [vmem:[%s5334_s1 + $0x188] sm:$0xff] }
  0xf0   :  { %v1931_v5 = vpop.f32.mrf.mxu0  ;;  %v2992_v35 = vor.u32 %v3579_v22, %v2989_v57  ;;  %2101 = vmatpush.bf16.msra.mxu2 %v3682_v62  ;;  %v3593_v22 = vld [vmem:[%s5335_s0 + $0x340] sm:$0xf0] }
  0xf1   :  { %1703 = vmatmul.bf16.gmra.mxu1 %v2956_v55  ;;  %1792 = vmatmul.bf16.gmra.mxu2 %v2960_v56  ;;  %v4526_v8 = vadd.f32 %v1928_v24, %v1840_v3  ;;  %v3584_v24 = vld [vmem:[%s5335_s0 + $0x2f8] sm:$0xf0]  ;;  %v3589_v57 = vld [vmem:[%s5335_s0 + $0x324] sm:$0xf] }
  0xf2   :  { %1881 = vmatmul.bf16.gmra.mxu3 %v2964_v63  ;;  %v2996_v41 = vor.u32 %v3584_v24, %v2995_v23  ;;  %v3690_v63 = vld [vmem:[%s5334_s1 + $0x1c8] sm:$0xff] }
  0xf3   :  { %1970 = vmatmul.bf16.gmra.mxu0 %v2968_v2  ;;  %2190 = vmatpush.bf16.msra.mxu3 %v3690_v63  ;;  %v3033_v23 = vld [vmem:[%s5335_s0 + $0x344] sm:$0xf0] }
  0xf4   :  { %v1753_v9 = vpop.f32.mrf.mxu2  ;;  %v3039_v24 = vld [vmem:[%s5335_s0 + $0x328] sm:$0xf] }
  0xf5   :  { %v1754_v11 = vadd.f32 %v1753_v9, %v1665_v4  ;;  %v1842_v12 = vpop.f32.mrf.mxu3 }
  0xf6   :  { %v1666_v14 = vpop.f32.mrf.mxu1 }
  0xf7   :  { %v1843_v15 = vadd.f32 %v1842_v12, %v1754_v11  ;;  %v1667_v20 = vadd.f32 %v1666_v14, %v4363_v61  ;;  %v3580_v61 = vld [vmem:[%s5335_s0 + $0x2dc] sm:$0xf]  ;;  %v3674_v12 = vld [vmem:[%s5334_s1 + $0x148] sm:$0xff] }
  0xf8   :  { %v1933_v21 = vpop.f32.mrf.mxu0  ;;  %v3000_v48 = vor.u32 %v3580_v61, %v2997_v25  ;;  %v3698_v14 = vld [vmem:[%s5334_s1 + $0x208] sm:$0xff]  ;;  %2012 = vmatpush.bf16.msra.mxu1 %v3674_v12  ;;  %v3069_v12 = vld [vmem:[%s5335_s0 + $0x38c] sm:$0xf0] }
  0xf9   :  { %v4535_v33 = vadd.f32 %v1931_v5, %v1843_v15  ;;  %v3588_v15 = vld [vmem:[%s5335_s0 + $0x31c] sm:$0xf]  ;;  %2279 = vmatpush.bf16.msra.mxu0 %v3698_v14  ;;  %v3594_v61 = vld [vmem:[%s5335_s0 + $0x348] sm:$0xf0]  ;;  %v3075_v14 = vld [vmem:[%s5335_s0 + $0x370] sm:$0xf] }
  0xfc   :  { %v1755_v28 = vpop.f32.mrf.mxu2 }
  0xfd   :  { %v1756_v29 = vadd.f32 %v1755_v28, %v1667_v20  ;;  %v1844_v34 = vpop.f32.mrf.mxu3  ;;  %v3025_v20 = vld [vmem:[%s5335_s0 + $0x33c] sm:$0xf0] }
  0xfe   :  { %v1669_v42 = vpop.f32.mrf.mxu1  ;;  %v3028_v28 = vor.u32 %v3588_v15, %v3025_v20  ;;  %v3603_v15 = vld [vmem:[%s5335_s0 + $0x390] sm:$0xf0] }
  0xff   :  { %v1845_v52 = vadd.f32 %v1844_v34, %v1756_v29  ;;  %v1670_v53 = vadd.f32 %v1669_v42, %v4395_v13 }
 0x100   :  { %v1936_v55 = vpop.f32.mrf.mxu0 }
 0x101   :  { %1708 = vmatmul.bf16.gmra.mxu1 %v2992_v35  ;;  %1797 = vmatmul.bf16.gmra.mxu2 %v2996_v41  ;;  %v4556_v56 = vadd.f32 %v1933_v21, %v1845_v52  ;;  %v3031_v21 = vld [vmem:[%s5335_s0 + $0x320] sm:$0xf]  ;;  %v3036_v35 = vor.u32 %v3589_v57, %v3033_v23  ;;  %v3040_v41 = vor.u32 %v3594_v61, %v3039_v24 }
 0x102   :  { %1886 = vmatmul.bf16.gmra.mxu3 %v3000_v48  ;;  %v3032_v29 = vor.u32 %v3593_v22, %v3031_v21 }
 0x103   :  { %1975 = vmatmul.bf16.gmra.mxu0 %v3004_v49 }
 0x104   :  { %v1758_v2 = vpop.f32.mrf.mxu2 }
 0x105   :  { %v1759_v3 = vadd.f32 %v1758_v2, %v1670_v53  ;;  %v1847_v13 = vpop.f32.mrf.mxu3 }
 0x106   :  { %v1671_v4 = vpop.f32.mrf.mxu1 }
 0x107   :  { %v1848_v5 = vadd.f32 %v1847_v13, %v1759_v3  ;;  %v1672_v9 = vadd.f32 %v1671_v4, %v4409_v19  ;;  %v3597_v4 = vld [vmem:[%s5335_s0 + $0x364] sm:$0xf] }
 0x108   :  { %v1938_v11 = vpop.f32.mrf.mxu0 }
 0x109   :  { %v4577_v19 = vadd.f32 %v1936_v55, %v1848_v5 }
 0x10c   :  { %v1760_v25 = vpop.f32.mrf.mxu2 }
 0x10d   :  { %v1761_v26 = vadd.f32 %v1760_v25, %v1672_v9  ;;  %v1849_v27 = vpop.f32.mrf.mxu3  ;;  %v3067_v9 = vld [vmem:[%s5335_s0 + $0x368] sm:$0xf]  ;;  %v3076_v25 = vor.u32 %v3603_v15, %v3075_v14 }
 0x10e   :  { %v1674_v34 = vpop.f32.mrf.mxu1 }
 0x10f   :  { %v1850_v42 = vadd.f32 %v1849_v27, %v1761_v26  ;;  %v1675_v48 = vadd.f32 %v1674_v34, %v4447_v43  ;;  %v3061_v43 = vld [vmem:[%s5335_s0 + $0x384] sm:$0xf0]  ;;  %v3689_v34 = vld [vmem:[%s5334_s1 + $0x1c0] sm:$0xff] }
 0x110   :  { %v1941_v49 = vpop.f32.mrf.mxu0  ;;  %v3064_v57 = vor.u32 %v3597_v4, %v3061_v43  ;;  %2191 = vmatpush.bf16.msra.mxu3 %v3689_v34  ;;  %v3611_v4 = vld [vmem:[%s5335_s0 + $0x3d0] sm:$0xf0] }
 0x111   :  { %1713 = vmatmul.bf16.gmra.mxu1 %v3028_v28  ;;  %1802 = vmatmul.bf16.gmra.mxu2 %v3032_v29  ;;  %v4598_v52 = vadd.f32 %v1938_v11, %v1850_v42  ;;  %v3602_v11 = vld [vmem:[%s5335_s0 + $0x388] sm:$0xf0]  ;;  %v3681_v29 = vld [vmem:[%s5334_s1 + $0x180] sm:$0xff]  ;;  %v3607_v43 = vld [vmem:[%s5335_s0 + $0x3b4] sm:$0xf] }
 0x112   :  { %1891 = vmatmul.bf16.gmra.mxu3 %v3036_v35  ;;  %v3068_v23 = vor.u32 %v3602_v11, %v3067_v9  ;;  %2102 = vmatpush.bf16.msra.mxu2 %v3681_v29  ;;  %v3105_v11 = vld [vmem:[%s5335_s0 + $0x3d4] sm:$0xf0] }
 0x113   :  { %1980 = vmatmul.bf16.gmra.mxu0 %v3040_v41 }
 0x114   :  { %v1763_v53 = vpop.f32.mrf.mxu2 }
 0x115   :  { %v1764_v55 = vadd.f32 %v1763_v53, %v1675_v48  ;;  %v1852_v62 = vpop.f32.mrf.mxu3 }
 0x116   :  { %v1676_v63 = vpop.f32.mrf.mxu1 }
 0x117   :  { %v1853_v2 = vadd.f32 %v1852_v62, %v1764_v55  ;;  %v1677_v3 = vadd.f32 %v1676_v63, %v4455_v47  ;;  %v3598_v47 = vld [vmem:[%s5335_s0 + $0x36c] sm:$0xf]  ;;  %v3673_v62 = vld [vmem:[%s5334_s1 + $0x140] sm:$0xff] }
 0x118   :  { %v1943_v13 = vpop.f32.mrf.mxu0  ;;  %v3072_v61 = vor.u32 %v3598_v47, %v3069_v12  ;;  %v3697_v63 = vld [vmem:[%s5334_s1 + $0x200] sm:$0xff]  ;;  %2013 = vmatpush.bf16.msra.mxu1 %v3673_v62  ;;  %v3111_v47 = vld [vmem:[%s5335_s0 + $0x3b8] sm:$0xf]  ;;  %v3612_v12 = vld [vmem:[%s5335_s0 + $0x3d8] sm:$0xf0] }
 0x119   :  { %v4607_v5 = vadd.f32 %v1941_v49, %v1853_v2  ;;  %v3097_v2 = vld [vmem:[%s5335_s0 + $0x3cc] sm:$0xf0]  ;;  %2280 = vmatpush.bf16.msra.mxu0 %v3697_v63  ;;  %v3616_v62 = vld [vmem:[%s5335_s0 + $0x3fc] sm:$0xf] }
 0x11c   :  { %v1765_v20 = vpop.f32.mrf.mxu2 }
 0x11d   :  { %v1766_v21 = vadd.f32 %v1765_v20, %v1677_v3  ;;  %v1854_v22 = vpop.f32.mrf.mxu3 }
 0x11e   :  { %v1679_v24 = vpop.f32.mrf.mxu1 }
 0x11f   :  { %v1855_v26 = vadd.f32 %v1854_v22, %v1766_v21  ;;  %v1680_v35 = vadd.f32 %v1679_v24, %v4301_v30  ;;  %v3606_v30 = vld [vmem:[%s5335_s0 + $0x3ac] sm:$0xf] }
 0x120   :  { %v1946_v27 = vpop.f32.mrf.mxu0  ;;  %v3100_v21 = vor.u32 %v3606_v30, %v3097_v2  ;;  %v3141_v30 = vld [vmem:[%s5335_s0 + $0x41c] sm:$0xf0] }
 0x121   :  { %1718 = vmatmul.bf16.gmra.mxu1 %v3064_v57  ;;  %1807 = vmatmul.bf16.gmra.mxu2 %v3068_v23  ;;  %v4627_v28 = vadd.f32 %v1943_v13, %v1855_v26  ;;  %v3103_v13 = vld [vmem:[%s5335_s0 + $0x3b0] sm:$0xf]  ;;  %v3108_v23 = vor.u32 %v3607_v43, %v3105_v11  ;;  %v3147_v2 = vld [vmem:[%s5335_s0 + $0x400] sm:$0xf] }
 0x122   :  { %1896 = vmatmul.bf16.gmra.mxu3 %v3072_v61  ;;  %v3104_v22 = vor.u32 %v3611_v4, %v3103_v13  ;;  %v3621_v13 = vld [vmem:[%s5335_s0 + $0x420] sm:$0xf0] }
 0x123   :  { %1985 = vmatmul.bf16.gmra.mxu0 %v3076_v25 }
 0x124   :  { %v1768_v41 = vpop.f32.mrf.mxu2 }
 0x125   :  { %v1769_v42 = vadd.f32 %v1768_v41, %v1680_v35  ;;  %v1857_v48 = vpop.f32.mrf.mxu3 }
 0x126   :  { %v1681_v49 = vpop.f32.mrf.mxu1 }
 0x127   :  { %v1858_v53 = vadd.f32 %v1857_v48, %v1769_v42  ;;  %v1682_v9 = vadd.f32 %v1681_v49, %v4318_v39  ;;  %v3112_v39 = vor.u32 %v3612_v12, %v3111_v47  ;;  %v3615_v48 = vld [vmem:[%s5335_s0 + $0x3f4] sm:$0xf]  ;;  %v3133_v49 = vld [vmem:[%s5335_s0 + $0x414] sm:$0xf0] }
 0x128   :  { %v1948_v55 = vpop.f32.mrf.mxu0  ;;  %v3136_v11 = vor.u32 %v3615_v48, %v3133_v49  ;;  %v3177_v48 = vld [vmem:[%s5335_s0 + $0x464] sm:$0xf0] }
 0x129   :  { %v4648_v3 = vadd.f32 %v1946_v27, %v1858_v53  ;;  %v3183_v49 = vld [vmem:[%s5335_s0 + $0x448] sm:$0xf] }
 0x12c   :  { %v1770_v14 = vpop.f32.mrf.mxu2 }
 0x12d   :  { %v1771_v15 = vadd.f32 %v1770_v14, %v1682_v9  ;;  %v1859_v20 = vpop.f32.mrf.mxu3  ;;  %v3144_v14 = vor.u32 %v3616_v62, %v3141_v30 }
 0x12e   :  { %v1684_v57 = vpop.f32.mrf.mxu1 }
 0x12f   :  { %v1860_v24 = vadd.f32 %v1859_v20, %v1771_v15  ;;  %v1685_v26 = vadd.f32 %v1684_v57, %v4353_v54  ;;  %v3139_v54 = vld [vmem:[%s5335_s0 + $0x3f8] sm:$0xf] }
 0x130   :  { %v1951_v61 = vpop.f32.mrf.mxu0 }
 0x131   :  { %1723 = vmatmul.bf16.gmra.mxu1 %v3100_v21  ;;  %1812 = vmatmul.bf16.gmra.mxu2 %v3104_v22  ;;  %v4669_v25 = vadd.f32 %v1948_v55, %v1860_v24  ;;  %v3620_v55 = vld [vmem:[%s5335_s0 + $0x418] sm:$0xf0] }
 0x132   :  { %1901 = vmatmul.bf16.gmra.mxu3 %v3108_v23  ;;  %v3140_v47 = vor.u32 %v3620_v55, %v3139_v54  ;;  %v3630_v54 = vld [vmem:[%s5335_s0 + $0x468] sm:$0xf0] }
 0x133   :  { %1990 = vmatmul.bf16.gmra.mxu0 %v3112_v39 }
 0x134   :  { %v1773_v27 = vpop.f32.mrf.mxu2 }
 0x135   :  { %v1774_v29 = vadd.f32 %v1773_v27, %v1685_v26  ;;  %v1862_v34 = vpop.f32.mrf.mxu3  ;;  %v3624_v27 = vld [vmem:[%s5335_s0 + $0x43c] sm:$0xf] }
 0x136   :  { %v1686_v35 = vpop.f32.mrf.mxu1 }
 0x137   :  { %v1863_v41 = vadd.f32 %v1862_v34, %v1774_v29  ;;  %v1687_v63 = vadd.f32 %v1686_v35, %v4361_v60  ;;  %v3148_v60 = vor.u32 %v3621_v13, %v3147_v2  ;;  %v3169_v29 = vld [vmem:[%s5335_s0 + $0x45c] sm:$0xf0]  ;;  %v3629_v35 = vld [vmem:[%s5335_s0 + $0x460] sm:$0xf0] }
 0x138   :  { %v1953_v42 = vpop.f32.mrf.mxu0  ;;  %v3172_v30 = vor.u32 %v3624_v27, %v3169_v29  ;;  %v2653_v27 = vld [vmem:[%s5335_s0 + $0x3c] sm:$0xf0] }
 0x139   :  { %v4678_v53 = vadd.f32 %v1951_v61, %v1863_v41  ;;  %v3625_v41 = vld [vmem:[%s5335_s0 + $0x444] sm:$0xf]  ;;  %v2659_v29 = vld [vmem:[%s5335_s0 + $0x20] sm:$0xf] }
 0x13c   :  { %v1775_v4 = vpop.f32.mrf.mxu2 }
 0x13d   :  { %v1776_v43 = vadd.f32 %v1775_v4, %v1687_v63  ;;  %v1864_v9 = vpop.f32.mrf.mxu3  ;;  %v3180_v4 = vor.u32 %v3625_v41, %v3177_v48 }
 0x13e   :  { %v1689_v12 = vpop.f32.mrf.mxu1 }
 0x13f   :  { %v1865_v15 = vadd.f32 %v1864_v9, %v1776_v43  ;;  %v1690_v22 = vadd.f32 %v1689_v12, %v4393_v10  ;;  %v3175_v10 = vld [vmem:[%s5335_s0 + $0x440] sm:$0xf] }
 0x140   :  { %v1956_v20 = vpop.f32.mrf.mxu0  ;;  %v3176_v2 = vor.u32 %v3629_v35, %v3175_v10  ;;  %v3497_v10 = vld [vmem:[%s5335_s0 + $0x40] sm:$0xf0] }
 0x141   :  { %1728 = vmatmul.bf16.gmra.mxu1 %v3136_v11  ;;  %1817 = vmatmul.bf16.gmra.mxu2 %v3140_v47  ;;  %v4699_v21 = vadd.f32 %v1953_v42, %v1865_v15 }
 0x142   :  { %1906 = vmatmul.bf16.gmra.mxu3 %v3144_v14 }
 0x143   :  { %1995 = vmatmul.bf16.gmra.mxu0 %v3148_v60 }
 0x144   :  { %v1778_v57 = vpop.f32.mrf.mxu2 }
 0x145   :  { %v1779_v23 = vadd.f32 %v1778_v57, %v1690_v22  ;;  %v1867_v39 = vpop.f32.mrf.mxu3  ;;  %v3491_v57 = vld [vmem:[%s5335_s0 + $0x14] sm:$0xf] }
 0x146   :  { %v1691_v24 = vpop.f32.mrf.mxu1 }
 0x147   :  { %v1868_v61 = vadd.f32 %v1867_v39, %v1779_v23  ;;  %v1692_v42 = vadd.f32 %v1691_v24, %v4407_v18  ;;  %v3184_v18 = vor.u32 %v3630_v54, %v3183_v49  ;;  %v2645_v23 = vld [vmem:[%s5335_s0 + $0x34] sm:$0xf0]  ;;  %v3496_v24 = vld [vmem:[%s5335_s0 + $0x38] sm:$0xf0] }
 0x148   :  { %v1958_v26 = vpop.f32.mrf.mxu0  ;;  %v2648_v48 = vor.u32 %v3491_v57, %v2645_v23  ;;  %v2689_v57 = vld [vmem:[%s5335_s0 + $0x84] sm:$0xf0] }
 0x149   :  { %v4708_v34 = vadd.f32 %v1956_v20, %v1868_v61  ;;  %v3492_v61 = vld [vmem:[%s5335_s0 + $0x1c] sm:$0xf]  ;;  %v2695_v23 = vld [vmem:[%s5335_s0 + $0x68] sm:$0xf] }
 0x14c   :  { %v1780_v55 = vpop.f32.mrf.mxu2 }
 0x14d   :  { %v1781_v62 = vadd.f32 %v1780_v55, %v1692_v42  ;;  %v1869_v63 = vpop.f32.mrf.mxu3  ;;  %v2656_v55 = vor.u32 %v3492_v61, %v2653_v27 }
 0x14e   :  { %v1694_v13 = vpop.f32.mrf.mxu1 }
 0x14f   :  { %v1870_v43 = vadd.f32 %v1869_v63, %v1781_v62  ;;  %v1695_v47 = vadd.f32 %v1694_v13, %v4445_v38  ;;  %v2651_v38 = vld [vmem:[%s5335_s0 + $0x18] sm:$0xf] }
 0x150   :  { %v1961_v9 = vpop.f32.mrf.mxu0  ;;  %v2652_v49 = vor.u32 %v3496_v24, %v2651_v38  ;;  %v3506_v38 = vld [vmem:[%s5335_s0 + $0x88] sm:$0xf0] }
 0x151   :  { %1733 = vmatmul.bf16.gmra.mxu1 %v3172_v30  ;;  %1822 = vmatmul.bf16.gmra.mxu2 %v3176_v2  ;;  %v4729_v11 = vadd.f32 %v1958_v26, %v1870_v43 }
 0x152   :  { %1911 = vmatmul.bf16.gmra.mxu3 %v3180_v4 }
 0x153   :  { %2000 = vmatmul.bf16.gmra.mxu0 %v3184_v18 }
 0x154   :  { %v1783_v12 = vpop.f32.mrf.mxu2 }
 0x155   :  { %v1784_v14 = vadd.f32 %v1783_v12, %v1695_v47  ;;  %v1872_v60 = vpop.f32.mrf.mxu3  ;;  %v3500_v12 = vld [vmem:[%s5335_s0 + $0x5c] sm:$0xf] }
 0x156   :  { %v1696_v15 = vpop.f32.mrf.mxu1 }
 0x157   :  { %v1873_v20 = vadd.f32 %v1872_v60, %v1784_v14  ;;  %v1697_v26 = vadd.f32 %v1696_v15, %v4453_v46  ;;  %v2660_v46 = vor.u32 %v3497_v10, %v2659_v29  ;;  %v2681_v14 = vld [vmem:[%s5335_s0 + $0x7c] sm:$0xf0]  ;;  %v3505_v15 = vld [vmem:[%s5335_s0 + $0x80] sm:$0xf0] }
 0x158   :  { %v1963_v22 = vpop.f32.mrf.mxu0  ;;  %v2684_v27 = vor.u32 %v3500_v12, %v2681_v14  ;;  %v2725_v12 = vld [vmem:[%s5335_s0 + $0xcc] sm:$0xf0] }
 0x159   :  { %v4738_v39 = vadd.f32 %v1961_v9, %v1873_v20  ;;  %v3501_v20 = vld [vmem:[%s5335_s0 + $0x64] sm:$0xf]  ;;  %v2731_v14 = vld [vmem:[%s5335_s0 + $0xb0] sm:$0xf] }
 0x15c   :  { %v1785_v35 = vpop.f32.mrf.mxu2 }
 0x15d   :  { %v1786_v41 = vadd.f32 %v1785_v35, %v1697_v26  ;;  %v1874_v42 = vpop.f32.mrf.mxu3  ;;  %v2692_v35 = vor.u32 %v3501_v20, %v2689_v57 }
 0x15e   :  { %v1699_v54 = vpop.f32.mrf.mxu1 }
 0x15f   :  { %v1875_v62 = vadd.f32 %v1874_v42, %v1786_v41  ;;  %v1700_v2 = vadd.f32 %v1699_v54, %v4311_v36  ;;  %v2687_v36 = vld [vmem:[%s5335_s0 + $0x60] sm:$0xf] }
 0x160   :  { %v1966_v63 = vpop.f32.mrf.mxu0  ;;  %v2688_v29 = vor.u32 %v3505_v15, %v2687_v36  ;;  %v3515_v36 = vld [vmem:[%s5335_s0 + $0xd0] sm:$0xf0] }
 0x161   :  { %2014 = vmatmul.bf16.vlgmr.msra.gmra.mxu1 %v2648_v48  ;;  %2103 = vmatmul.bf16.vlgmr.msra.gmra.mxu2 %v2652_v49  ;;  %v4759_v30 = vadd.f32 %v1963_v22, %v1875_v62 }
 0x162   :  { %2192 = vmatmul.bf16.vlgmr.msra.gmra.mxu3 %v2656_v55 }
 0x163   :  { %2281 = vmatmul.bf16.vlgmr.msra.gmra.mxu0 %v2660_v46 }
 0x164   :  { %v1788_v13 = vpop.f32.mrf.mxu2 }
 0x165   :  { %v1789_v4 = vadd.f32 %v1788_v13, %v1700_v2  ;;  %v1877_v18 = vpop.f32.mrf.mxu3  ;;  %v3509_v13 = vld [vmem:[%s5335_s0 + $0xa4] sm:$0xf] }
 0x166   :  { %v1701_v43 = vpop.f32.mrf.mxu1 }
 0x167   :  { %v1878_v9 = vadd.f32 %v1877_v18, %v1789_v4  ;;  %v1702_v22 = vadd.f32 %v1701_v43, %v4349_v50  ;;  %v2696_v50 = vor.u32 %v3506_v38, %v2695_v23  ;;  %v2717_v4 = vld [vmem:[%s5335_s0 + $0xc4] sm:$0xf0]  ;;  %v3514_v43 = vld [vmem:[%s5335_s0 + $0xc8] sm:$0xf0] }
 0x168   :  { %v1968_v47 = vpop.f32.mrf.mxu0  ;;  %v2720_v57 = vor.u32 %v3509_v13, %v2717_v4  ;;  %v2761_v13 = vld [vmem:[%s5335_s0 + $0x114] sm:$0xf0] }
 0x169   :  { %v4768_v60 = vadd.f32 %v1966_v63, %v1878_v9  ;;  %v3510_v9 = vld [vmem:[%s5335_s0 + $0xac] sm:$0xf]  ;;  %v2767_v4 = vld [vmem:[%s5335_s0 + $0xf8] sm:$0xf] }
 0x16c   :  { %v1790_v24 = vpop.f32.mrf.mxu2 }
 0x16d   :  { %v1791_v61 = vadd.f32 %v1790_v24, %v1702_v22  ;;  %v1879_v26 = vpop.f32.mrf.mxu3  ;;  %v2728_v24 = vor.u32 %v3510_v9, %v2725_v12 }
 0x16e   :  { %v1704_v10 = vpop.f32.mrf.mxu1 }
 0x16f   :  { %v1880_v41 = vadd.f32 %v1879_v26, %v1791_v61  ;;  %v1705_v49 = vadd.f32 %v1704_v10, %v4357_v58  ;;  %v2723_v58 = vld [vmem:[%s5335_s0 + $0xa8] sm:$0xf] }
 0x170   :  { %v1971_v42 = vpop.f32.mrf.mxu0  ;;  %v2724_v23 = vor.u32 %v3514_v43, %v2723_v58  ;;  %v3524_v58 = vld [vmem:[%s5335_s0 + $0x118] sm:$0xf0] }
 0x171   :  { %2019 = vmatmul.bf16.gmra.mxu1 %v2684_v27  ;;  %2108 = vmatmul.bf16.gmra.mxu2 %v2688_v29  ;;  %v4789_v48 = vadd.f32 %v1968_v47, %v1880_v41 }
 0x172   :  { %2197 = vmatmul.bf16.gmra.mxu3 %v2692_v35 }
 0x173   :  { %2286 = vmatmul.bf16.gmra.mxu0 %v2696_v50 }
 0x174   :  { %v1793_v54 = vpop.f32.mrf.mxu2 }
 0x175   :  { %v1794_v55 = vadd.f32 %v1793_v54, %v1705_v49  ;;  %v1882_v46 = vpop.f32.mrf.mxu3  ;;  %v3518_v54 = vld [vmem:[%s5335_s0 + $0xec] sm:$0xf] }
 0x176   :  { %v1706_v62 = vpop.f32.mrf.mxu1 }
 0x177   :  { %v1883_v63 = vadd.f32 %v1882_v46, %v1794_v55  ;;  %v1707_v47 = vadd.f32 %v1706_v62, %v4389_v6  ;;  %v2732_v6 = vor.u32 %v3515_v36, %v2731_v14  ;;  %v2753_v55 = vld [vmem:[%s5335_s0 + $0x10c] sm:$0xf0]  ;;  %v3523_v62 = vld [vmem:[%s5335_s0 + $0x110] sm:$0xf0] }
 0x178   :  { %v1973_v2 = vpop.f32.mrf.mxu0  ;;  %v2756_v12 = vor.u32 %v3518_v54, %v2753_v55  ;;  %v2797_v54 = vld [vmem:[%s5335_s0 + $0x15c] sm:$0xf0] }
 0x179   :  { %v4798_v18 = vadd.f32 %v1971_v42, %v1883_v63  ;;  %v3519_v63 = vld [vmem:[%s5335_s0 + $0xf4] sm:$0xf]  ;;  %v2803_v55 = vld [vmem:[%s5335_s0 + $0x140] sm:$0xf] }
 0x17c   :  { %v1795_v15 = vpop.f32.mrf.mxu2 }
 0x17d   :  { %v1796_v20 = vadd.f32 %v1795_v15, %v1707_v47  ;;  %v1884_v22 = vpop.f32.mrf.mxu3  ;;  %v2764_v15 = vor.u32 %v3519_v63, %v2761_v13 }
 0x17e   :  { %v1709_v38 = vpop.f32.mrf.mxu1 }
 0x17f   :  { %v1885_v61 = vadd.f32 %v1884_v22, %v1796_v20  ;;  %v1710_v29 = vadd.f32 %v1709_v38, %v4403_v16  ;;  %v2759_v16 = vld [vmem:[%s5335_s0 + $0xf0] sm:$0xf] }
 0x180   :  { %v1976_v26 = vpop.f32.mrf.mxu0  ;;  %v2760_v14 = vor.u32 %v3523_v62, %v2759_v16  ;;  %v3533_v16 = vld [vmem:[%s5335_s0 + $0x160] sm:$0xf0] }
 0x181   :  { %2024 = vmatmul.bf16.gmra.mxu1 %v2720_v57  ;;  %2113 = vmatmul.bf16.gmra.mxu2 %v2724_v23  ;;  %v4819_v27 = vadd.f32 %v1973_v2, %v1885_v61 }
 0x182   :  { %2202 = vmatmul.bf16.gmra.mxu3 %v2728_v24 }
 0x183   :  { %2291 = vmatmul.bf16.gmra.mxu0 %v2732_v6 }
 0x184   :  { %v1798_v10 = vpop.f32.mrf.mxu2 }
 0x185   :  { %v1799_v35 = vadd.f32 %v1798_v10, %v1710_v29  ;;  %v1887_v50 = vpop.f32.mrf.mxu3  ;;  %v3527_v10 = vld [vmem:[%s5335_s0 + $0x134] sm:$0xf] }
 0x186   :  { %v1711_v41 = vpop.f32.mrf.mxu1 }
 0x187   :  { %v1888_v42 = vadd.f32 %v1887_v50, %v1799_v35  ;;  %v1712_v2 = vadd.f32 %v1711_v41, %v4441_v31  ;;  %v2768_v31 = vor.u32 %v3524_v58, %v2767_v4  ;;  %v2789_v35 = vld [vmem:[%s5335_s0 + $0x154] sm:$0xf0]  ;;  %v3532_v41 = vld [vmem:[%s5335_s0 + $0x158] sm:$0xf0] }
 0x188   :  { %v1978_v49 = vpop.f32.mrf.mxu0  ;;  %v2792_v13 = vor.u32 %v3527_v10, %v2789_v35  ;;  %v2833_v10 = vld [vmem:[%s5335_s0 + $0x1a4] sm:$0xf0] }
 0x189   :  { %v4828_v46 = vadd.f32 %v1976_v26, %v1888_v42  ;;  %v3528_v42 = vld [vmem:[%s5335_s0 + $0x13c] sm:$0xf]  ;;  %v2839_v35 = vld [vmem:[%s5335_s0 + $0x188] sm:$0xf] }
 0x18c   :  { %v1800_v43 = vpop.f32.mrf.mxu2 }
 0x18d   :  { %v1801_v9 = vadd.f32 %v1800_v43, %v1712_v2  ;;  %v1889_v47 = vpop.f32.mrf.mxu3  ;;  %v2800_v43 = vor.u32 %v3528_v42, %v2797_v54 }
 0x18e   :  { %v1714_v36 = vpop.f32.mrf.mxu1 }
 0x18f   :  { %v1890_v20 = vadd.f32 %v1889_v47, %v1801_v9  ;;  %v1715_v23 = vadd.f32 %v1714_v36, %v4449_v44  ;;  %v2795_v44 = vld [vmem:[%s5335_s0 + $0x138] sm:$0xf] }
 0x190   :  { %v1981_v22 = vpop.f32.mrf.mxu0  ;;  %v2796_v4 = vor.u32 %v3532_v41, %v2795_v44  ;;  %v3542_v44 = vld [vmem:[%s5335_s0 + $0x1a8] sm:$0xf0] }
 0x191   :  { %2029 = vmatmul.bf16.gmra.mxu1 %v2756_v12  ;;  %2118 = vmatmul.bf16.gmra.mxu2 %v2760_v14  ;;  %v4849_v57 = vadd.f32 %v1978_v49, %v1890_v20 }
 0x192   :  { %2207 = vmatmul.bf16.gmra.mxu3 %v2764_v15 }
 0x193   :  { %2296 = vmatmul.bf16.gmra.mxu0 %v2768_v31 }
 0x194   :  { %v1803_v38 = vpop.f32.mrf.mxu2 }
 0x195   :  { %v1804_v24 = vadd.f32 %v1803_v38, %v1715_v23  ;;  %v1892_v6 = vpop.f32.mrf.mxu3  ;;  %v3536_v38 = vld [vmem:[%s5335_s0 + $0x17c] sm:$0xf] }
 0x196   :  { %v1716_v61 = vpop.f32.mrf.mxu1 }
 0x197   :  { %v1893_v26 = vadd.f32 %v1892_v6, %v1804_v24  ;;  %v1717_v49 = vadd.f32 %v1716_v61, %v4481_v0  ;;  %v2804_v0 = vor.u32 %v3533_v16, %v2803_v55  ;;  %v2825_v24 = vld [vmem:[%s5335_s0 + $0x19c] sm:$0xf0]  ;;  %v3541_v61 = vld [vmem:[%s5335_s0 + $0x1a0] sm:$0xf0] }
 0x198   :  { %v1983_v29 = vpop.f32.mrf.mxu0  ;;  %v2828_v54 = vor.u32 %v3536_v38, %v2825_v24  ;;  %v2869_v38 = vld [vmem:[%s5335_s0 + $0x1ec] sm:$0xf0] }
 0x199   :  { %v4858_v50 = vadd.f32 %v1981_v22, %v1893_v26  ;;  %v3537_v26 = vld [vmem:[%s5335_s0 + $0x184] sm:$0xf]  ;;  %v2875_v24 = vld [vmem:[%s5335_s0 + $0x1d0] sm:$0xf] }
 0x19c   :  { %v1805_v62 = vpop.f32.mrf.mxu2 }
 0x19d   :  { %v1806_v63 = vadd.f32 %v1805_v62, %v1717_v49  ;;  %v1894_v2 = vpop.f32.mrf.mxu3  ;;  %v2836_v62 = vor.u32 %v3537_v26, %v2833_v10 }
 0x19e   :  { %v1719_v58 = vpop.f32.mrf.mxu1 }
 0x19f   :  { %v1895_v9 = vadd.f32 %v1894_v2, %v1806_v63  ;;  %v1720_v14 = vadd.f32 %v1719_v58, %v4313_v37  ;;  %v2831_v37 = vld [vmem:[%s5335_s0 + $0x180] sm:$0xf] }
 0x1a0   :  { %v1986_v47 = vpop.f32.mrf.mxu0  ;;  %v2832_v55 = vor.u32 %v3541_v61, %v2831_v37  ;;  %v3551_v37 = vld [vmem:[%s5335_s0 + $0x1f0] sm:$0xf0] }
 0x1a1   :  { %2034 = vmatmul.bf16.gmra.mxu1 %v2792_v13  ;;  %2123 = vmatmul.bf16.gmra.mxu2 %v2796_v4  ;;  %v4879_v12 = vadd.f32 %v1983_v29, %v1895_v9 }
 0x1a2   :  { %2212 = vmatmul.bf16.gmra.mxu3 %v2800_v43 }
 0x1a3   :  { %2301 = vmatmul.bf16.gmra.mxu0 %v2804_v0 }
 0x1a4   :  { %v1808_v36 = vpop.f32.mrf.mxu2 }
 0x1a5   :  { %v1809_v15 = vadd.f32 %v1808_v36, %v1720_v14  ;;  %v1897_v31 = vpop.f32.mrf.mxu3  ;;  %v3545_v36 = vld [vmem:[%s5335_s0 + $0x1c4] sm:$0xf] }
 0x1a6   :  { %v1721_v20 = vpop.f32.mrf.mxu1 }
 0x1a7   :  { %v1898_v22 = vadd.f32 %v1897_v31, %v1809_v15  ;;  %v1722_v29 = vadd.f32 %v1721_v20, %v4351_v51  ;;  %v2840_v51 = vor.u32 %v3542_v44, %v2839_v35  ;;  %v2861_v15 = vld [vmem:[%s5335_s0 + $0x1e4] sm:$0xf0]  ;;  %v3550_v20 = vld [vmem:[%s5335_s0 + $0x1e8] sm:$0xf0] }
 0x1a8   :  { %v1988_v23 = vpop.f32.mrf.mxu0  ;;  %v2864_v10 = vor.u32 %v3545_v36, %v2861_v15  ;;  %v2905_v36 = vld [vmem:[%s5335_s0 + $0x234] sm:$0xf0] }
 0x1a9   :  { %v4888_v6 = vadd.f32 %v1986_v47, %v1898_v22  ;;  %v3546_v22 = vld [vmem:[%s5335_s0 + $0x1cc] sm:$0xf]  ;;  %v2911_v15 = vld [vmem:[%s5335_s0 + $0x218] sm:$0xf] }
 0x1ac   :  { %v1810_v41 = vpop.f32.mrf.mxu2 }
 0x1ad   :  { %v1811_v42 = vadd.f32 %v1810_v41, %v1722_v29  ;;  %v1899_v49 = vpop.f32.mrf.mxu3  ;;  %v2872_v41 = vor.u32 %v3546_v22, %v2869_v38 }
 0x1ae   :  { %v1724_v16 = vpop.f32.mrf.mxu1 }
 0x1af   :  { %v1900_v63 = vadd.f32 %v1899_v49, %v1811_v42  ;;  %v1725_v4 = vadd.f32 %v1724_v16, %v4359_v59  ;;  %v2867_v59 = vld [vmem:[%s5335_s0 + $0x1c8] sm:$0xf] }
 0x1b0   :  { %v1991_v2 = vpop.f32.mrf.mxu0  ;;  %v2868_v35 = vor.u32 %v3550_v20, %v2867_v59  ;;  %v3560_v59 = vld [vmem:[%s5335_s0 + $0x238] sm:$0xf0] }
 0x1b1   :  { %2039 = vmatmul.bf16.gmra.mxu1 %v2828_v54  ;;  %2128 = vmatmul.bf16.gmra.mxu2 %v2832_v55  ;;  %v4909_v13 = vadd.f32 %v1988_v23, %v1900_v63 }
 0x1b2   :  { %2217 = vmatmul.bf16.gmra.mxu3 %v2836_v62 }
 0x1b3   :  { %2306 = vmatmul.bf16.gmra.mxu0 %v2840_v51 }
 0x1b4   :  { %v1813_v58 = vpop.f32.mrf.mxu2 }
 0x1b5   :  { %v1814_v43 = vadd.f32 %v1813_v58, %v1725_v4  ;;  %v1902_v0 = vpop.f32.mrf.mxu3  ;;  %v3554_v58 = vld [vmem:[%s5335_s0 + $0x20c] sm:$0xf] }
 0x1b6   :  { %v1726_v9 = vpop.f32.mrf.mxu1 }
 0x1b7   :  { %v1903_v47 = vadd.f32 %v1902_v0, %v1814_v43  ;;  %v1727_v23 = vadd.f32 %v1726_v9, %v4391_v7  ;;  %v2876_v7 = vor.u32 %v3551_v37, %v2875_v24  ;;  %v2897_v43 = vld [vmem:[%s5335_s0 + $0x22c] sm:$0xf0]  ;;  %v3559_v9 = vld [vmem:[%s5335_s0 + $0x230] sm:$0xf0] }
 0x1b8   :  { %v1993_v14 = vpop.f32.mrf.mxu0  ;;  %v2900_v38 = vor.u32 %v3554_v58, %v2897_v43  ;;  %v2941_v58 = vld [vmem:[%s5335_s0 + $0x27c] sm:$0xf0] }
 0x1b9   :  { %v4918_v31 = vadd.f32 %v1991_v2, %v1903_v47  ;;  %v3555_v47 = vld [vmem:[%s5335_s0 + $0x214] sm:$0xf]  ;;  %v2947_v43 = vld [vmem:[%s5335_s0 + $0x260] sm:$0xf] }
 0x1bc   :  { %v1815_v61 = vpop.f32.mrf.mxu2 }
 0x1bd   :  { %v1816_v26 = vadd.f32 %v1815_v61, %v1727_v23  ;;  %v1904_v29 = vpop.f32.mrf.mxu3  ;;  %v2908_v61 = vor.u32 %v3555_v47, %v2905_v36 }
 0x1be   :  { %v1729_v44 = vpop.f32.mrf.mxu1 }
 0x1bf   :  { %v1905_v42 = vadd.f32 %v1904_v29, %v1816_v26  ;;  %v1730_v55 = vadd.f32 %v1729_v44, %v4405_v17  ;;  %v2903_v17 = vld [vmem:[%s5335_s0 + $0x210] sm:$0xf] }
 0x1c0   :  { %v1996_v49 = vpop.f32.mrf.mxu0  ;;  %v2904_v24 = vor.u32 %v3559_v9, %v2903_v17  ;;  %v3569_v17 = vld [vmem:[%s5335_s0 + $0x280] sm:$0xf0] }
 0x1c1   :  { %2044 = vmatmul.bf16.gmra.mxu1 %v2864_v10  ;;  %2133 = vmatmul.bf16.gmra.mxu2 %v2868_v35  ;;  %v4939_v54 = vadd.f32 %v1993_v14, %v1905_v42 }
 0x1c2   :  { %2222 = vmatmul.bf16.gmra.mxu3 %v2872_v41 }
 0x1c3   :  { %2311 = vmatmul.bf16.gmra.mxu0 %v2876_v7 }
 0x1c4   :  { %v1818_v16 = vpop.f32.mrf.mxu2 }
 0x1c5   :  { %v1819_v62 = vadd.f32 %v1818_v16, %v1730_v55  ;;  %v1907_v51 = vpop.f32.mrf.mxu3  ;;  %v3563_v16 = vld [vmem:[%s5335_s0 + $0x254] sm:$0xf] }
 0x1c6   :  { %v1731_v63 = vpop.f32.mrf.mxu1 }
 0x1c7   :  { %v1908_v2 = vadd.f32 %v1907_v51, %v1819_v62  ;;  %v1732_v14 = vadd.f32 %v1731_v63, %v4443_v32  ;;  %v2912_v32 = vor.u32 %v3560_v59, %v2911_v15  ;;  %v2933_v62 = vld [vmem:[%s5335_s0 + $0x274] sm:$0xf0]  ;;  %v3568_v63 = vld [vmem:[%s5335_s0 + $0x278] sm:$0xf0] }
 0x1c8   :  { %v1998_v4 = vpop.f32.mrf.mxu0  ;;  %v2936_v36 = vor.u32 %v3563_v16, %v2933_v62  ;;  %v2983_v16 = vld [vmem:[%s5335_s0 + $0x2a8] sm:$0xf]  ;;  %v3578_v62 = vld [vmem:[%s5335_s0 + $0x2c8] sm:$0xf0] }
 0x1c9   :  { %v4948_v0 = vadd.f32 %v1996_v49, %v1908_v2  ;;  %v3564_v2 = vld [vmem:[%s5335_s0 + $0x25c] sm:$0xf] }
 0x1cc   :  { %v1820_v20 = vpop.f32.mrf.mxu2 }
 0x1cd   :  { %v1821_v22 = vadd.f32 %v1820_v20, %v1732_v14  ;;  %v1909_v23 = vpop.f32.mrf.mxu3  ;;  %v2944_v20 = vor.u32 %v3564_v2, %v2941_v58 }
 0x1ce   :  { %v1734_v37 = vpop.f32.mrf.mxu1 }
 0x1cf   :  { %v1910_v26 = vadd.f32 %v1909_v23, %v1821_v22  ;;  %v1735_v35 = vadd.f32 %v1734_v37, %v4451_v45  ;;  %v2939_v45 = vld [vmem:[%s5335_s0 + $0x258] sm:$0xf] }
 0x1d0   :  { %v2001_v29 = vpop.f32.mrf.mxu0  ;;  %v2940_v15 = vor.u32 %v3568_v63, %v2939_v45  ;;  %v5030_v63 = vld [vmem:[%s5336_s2] ss:$0 sm:$0xff] }
 0x1d1   :  { %2049 = vmatmul.bf16.gmra.mxu1 %v2900_v38  ;;  %2138 = vmatmul.bf16.gmra.mxu2 %v2904_v24  ;;  %v4969_v10 = vadd.f32 %v1998_v4, %v1910_v26 }
 0x1d2   :  { %2227 = vmatmul.bf16.gmra.mxu3 %v2908_v61 }
 0x1d3   :  { %2316 = vmatmul.bf16.gmra.mxu0 %v2912_v32 }
 0x1d4   :  { %v1823_v44 = vpop.f32.mrf.mxu2 }
 0x1d5   :  { %v1824_v41 = vadd.f32 %v1823_v44, %v1735_v35  ;;  %v1912_v7 = vpop.f32.mrf.mxu3  ;;  %v3572_v44 = vld [vmem:[%s5335_s0 + $0x29c] sm:$0xf] }
 0x1d6   :  { %v1736_v42 = vpop.f32.mrf.mxu1 }
 0x1d7   :  { %v1913_v49 = vadd.f32 %v1912_v7, %v1824_v41  ;;  %v1737_v4 = vadd.f32 %v1736_v42, %v4483_v1  ;;  %v2948_v1 = vor.u32 %v3569_v17, %v2947_v43  ;;  %v2969_v41 = vld [vmem:[%s5335_s0 + $0x2bc] sm:$0xf0]  ;;  %v3573_v42 = vld [vmem:[%s5335_s0 + $0x2a4] sm:$0xf] }
 0x1d8   :  { %v2003_v55 = vpop.f32.mrf.mxu0  ;;  %v2975_v7 = vld [vmem:[%s5335_s0 + $0x2a0] sm:$0xf]  ;;  %v2972_v58 = vor.u32 %v3572_v44, %v2969_v41 }
 0x1d9   :  { %v4978_v51 = vadd.f32 %v2001_v29, %v1913_v49  ;;  %v3706_v17 = vld [vmem:[%s5337_s3] sm:$0xff]  }
 0x1dc   :  { %v1825_v9 = vpop.f32.mrf.mxu2 }
 0x1dd   :  { %v1826_v47 = vadd.f32 %v1825_v9, %v1737_v4  ;;  %v1914_v14 = vpop.f32.mrf.mxu3 }
 0x1de   :  { %v2015_v59 = vpop.f32.mrf.mxu1 }
 0x1df   :  { %v1915_v22 = vadd.f32 %v1914_v14, %v1826_v47  ;;  %v2016_v24 = vadd.f32 %v2015_v59, %v4505_v40  ;;  %v3577_v40 = vld [vmem:[%s5335_s0 + $0x2c0] sm:$0xf0]  ;;  %v2984_v14 = vor.u32 %v3578_v62, %v2983_v16  ;;  %v3013_v62 = vld [vmem:[%s5335_s0 + $0x30c] sm:$0xf0] }
 0x1e0   :  { %v2282_v23 = vpop.f32.mrf.mxu0  ;;  %v2976_v43 = vor.u32 %v3577_v40, %v2975_v7  ;;  %v3581_v40 = vld [vmem:[%s5335_s0 + $0x2e4] sm:$0xf] }
 0x1e1   :  { %2054 = vmatmul.bf16.gmra.mxu1 %v2936_v36  ;;  %2143 = vmatmul.bf16.gmra.mxu2 %v2940_v15  ;;  %v4999_v38 = vadd.f32 %v2003_v55, %v1915_v22  ;;  %v2977_v55 = vld [vmem:[%s5335_s0 + $0x2c4] sm:$0xf0]  ;;  %v3708_v22 = vunpack.c.h.bf16 %v3706_v17 }
 0x1e2   :  { %2232 = vmatmul.bf16.gmra.mxu3 %v2944_v20  ;;  %v2980_v47 = vor.u32 %v3573_v42, %v2977_v55  ;;  %v3707_v20 = vunpack.c.l.bf16 %v3706_v17  ;;  %v3011_v42 = vld [vmem:[%s5335_s0 + $0x2e8] sm:$0xf]  ;;  %v3582_v55 = vld [vmem:[%s5335_s0 + $0x2ec] sm:$0xf] }
 0x1e3   :  { %2321 = vmatmul.bf16.gmra.mxu0 %v2948_v1 }
 0x1e4   :  { %v2104_v37 = vpop.f32.mrf.mxu2 }
 0x1e5   :  { %v2105_v61 = vadd.f32 %v2104_v37, %v2016_v24  ;;  %v2193_v32 = vpop.f32.mrf.mxu3 }
 0x1e6   :  { %v2017_v26 = vpop.f32.mrf.mxu1 }
 0x1e7   :  { %v2194_v35 = vadd.f32 %v2193_v32, %v2105_v61  ;;  %v2018_v49 = vadd.f32 %v2017_v26, %v4526_v8 }
 0x1e8   :  { %v2284_v29 = vpop.f32.mrf.mxu0 }
 0x1e9   :  { %v2283_v2 = vadd.f32 %v2282_v23, %v2194_v35 }
 0x1eb   :  { %v2362_v59 = vadd.f32 %v5030_v63, %v2283_v2  ;;  %v3587_v2 = vld [vmem:[%s5335_s0 + $0x310] sm:$0xf0] }
 0x1ec   :  { %v2106_v45 = vpop.f32.mrf.mxu2 }
 0x1ed   :  { %v2107_v8 = vadd.f32 %v2106_v45, %v2018_v49  ;;  %v2195_v4 = vpop.f32.mrf.mxu3  ;;  %v2525_v61 = vadd.f32 %v3707_v20, %v2362_v59  ;;  %v3586_v49 = vld [vmem:[%s5335_s0 + $0x308] sm:$0xf0]  ;;  %v3019_v45 = vld [vmem:[%s5335_s0 + $0x2f0] sm:$0xf] }
 0x1ee   :  { %v2020_v9 = vpop.f32.mrf.mxu1 }
 0x1ef   :  { %v2196_v36 = vadd.f32 %v2195_v4, %v2107_v8  ;;  %v2021_v24 = vadd.f32 %v2020_v9, %v4535_v33  ;;  %v3005_v33 = vld [vmem:[%s5335_s0 + $0x304] sm:$0xf0]  ;;  %v3012_v9 = vor.u32 %v3586_v49, %v3011_v42  ;;  %v3047_v42 = vld [vmem:[%s5335_s0 + $0x330] sm:$0xf]  ;;  %v3595_v49 = vld [vmem:[%s5335_s0 + $0x350] sm:$0xf0] }
 0x1f0   :  { %v2287_v15 = vpop.f32.mrf.mxu0  ;;  %v3008_v17 = vor.u32 %v3581_v40, %v3005_v33  ;;  %v3590_v33 = vld [vmem:[%s5335_s0 + $0x32c] sm:$0xf] }
 0x1f1   :  { %v2285_v1 = vadd.f32 %v2284_v29, %v2196_v36  ;;  %2059 = vmatmul.bf16.gmra.mxu1 %v2972_v58  ;;  %2148 = vmatmul.bf16.gmra.mxu2 %v2976_v43  ;;  %v3020_v36 = vor.u32 %v3587_v2, %v3019_v45  ;;  %v3055_v45 = vld [vmem:[%s5335_s0 + $0x338] sm:$0xf]  ;;  %v3596_v2 = vld [vmem:[%s5335_s0 + $0x358] sm:$0xf0] }
 0x1f2   :  { %2237 = vmatmul.bf16.gmra.mxu3 %v2980_v47 }
 0x1f3   :  { %2326 = vmatmul.bf16.gmra.mxu0 %v2984_v14  ;;  %v2363_v23 = vadd.f32 %v5030_v63, %v2285_v1  ;;  %v3016_v14 = vor.u32 %v3582_v55, %v3013_v62  ;;  %v3591_v55 = vld [vmem:[%s5335_s0 + $0x334] sm:$0xf]  ;;  %v3049_v62 = vld [vmem:[%s5335_s0 + $0x354] sm:$0xf0] }
 0x1f4   :  { %v2109_v37 = vpop.f32.mrf.mxu2 }
 0x1f5   :  { %v2526_v32 = vadd.f32 %v3708_v22, %v2363_v23  ;;  %v2110_v26 = vadd.f32 %v2109_v37, %v2021_v24  ;;  %v2198_v35 = vpop.f32.mrf.mxu3 }
 0x1f6   :  { %v2022_v44 = vpop.f32.mrf.mxu1 }
 0x1f7   :  { %v3772_v41 = vpack.c.bf16 %v2526_v32, %v2525_v61  ;;  %v2199_v29 = vadd.f32 %v2198_v35, %v2110_v26  ;;  %v2023_v16 = vadd.f32 %v2022_v44, %v4556_v56  ;;  %v3849_v56 = vld [vmem:[%s5337_s3 + $0x8] sm:$0xff]  }
 0x1f8   :  { %v2289_v7 = vpop.f32.mrf.mxu0  ;;  %v3711_v22 = vunpack.c.l.bf16 %v3849_v56  ;;  %v3712_v24 = vunpack.c.h.bf16 %v3849_v56 }
 0x1f9   :  { %3773 = vst [vmem:[%s5338_s4] sm:$0xff] %v3772_v41   ;;  %v2288_v4 = vadd.f32 %v2287_v15, %v2199_v29 }
 0x1fb   :  { %v2364_v1 = vadd.f32 %v5030_v63, %v2288_v4 }
 0x1fc   :  { %v2111_v8 = vpop.f32.mrf.mxu2 }
 0x1fd   :  { %v2112_v58 = vadd.f32 %v2111_v8, %v2023_v16  ;;  %v2200_v43 = vpop.f32.mrf.mxu3  ;;  %v2527_v32 = vadd.f32 %v3711_v22, %v2364_v1 }
 0x1fe   :  { %v2025_v47 = vpop.f32.mrf.mxu1 }
 0x1ff   :  { %v2201_v59 = vadd.f32 %v2200_v43, %v2112_v58  ;;  %v2026_v37 = vadd.f32 %v2025_v47, %v4577_v19  ;;  %v3041_v19 = vld [vmem:[%s5335_s0 + $0x34c] sm:$0xf0]  ;;  %v3052_v47 = vor.u32 %v3591_v55, %v3049_v62  ;;  %v3085_v55 = vld [vmem:[%s5335_s0 + $0x39c] sm:$0xf0]  ;;  %v3605_v62 = vld [vmem:[%s5335_s0 + $0x3a0] sm:$0xf0] }
 0x200   :  { %v2292_v20 = vpop.f32.mrf.mxu0 }
 0x201   :  { %v2290_v23 = vadd.f32 %v2289_v7, %v2201_v59  ;;  %2064 = vmatmul.bf16.gmra.mxu1 %v3008_v17  ;;  %2153 = vmatmul.bf16.gmra.mxu2 %v3012_v9  ;;  %v3044_v17 = vor.u32 %v3590_v33, %v3041_v19  ;;  %v3048_v9 = vor.u32 %v3595_v49, %v3047_v42  ;;  %v3083_v33 = vld [vmem:[%s5335_s0 + $0x378] sm:$0xf]  ;;  %v3604_v19 = vld [vmem:[%s5335_s0 + $0x398] sm:$0xf0] }
 0x202   :  { %2242 = vmatmul.bf16.gmra.mxu3 %v3016_v14  ;;  %v3056_v14 = vor.u32 %v3596_v2, %v3055_v45  ;;  %v3600_v42 = vld [vmem:[%s5335_s0 + $0x37c] sm:$0xf] }
 0x203   :  { %2331 = vmatmul.bf16.gmra.mxu0 %v3020_v36  ;;  %v2365_v15 = vadd.f32 %v5030_v63, %v2290_v23 }
 0x204   :  { %v2114_v61 = vpop.f32.mrf.mxu2 }
 0x205   :  { %v2528_v26 = vadd.f32 %v3712_v24, %v2365_v15  ;;  %v2115_v35 = vadd.f32 %v2114_v61, %v2026_v37  ;;  %v2203_v44 = vpop.f32.mrf.mxu3 }
 0x206   :  { %v2027_v41 = vpop.f32.mrf.mxu1 }
 0x207   :  { %v3777_v29 = vpack.c.bf16 %v2528_v26, %v2527_v32  ;;  %v2204_v7 = vadd.f32 %v2203_v44, %v2115_v35  ;;  %v2028_v16 = vadd.f32 %v2027_v41, %v4598_v52  ;;  %v3850_v52 = vld [vmem:[%s5337_s3 + $0x10] sm:$0xff]  }
 0x208   :  { %v2294_v40 = vpop.f32.mrf.mxu0  ;;  %v3715_v22 = vunpack.c.l.bf16 %v3850_v52  ;;  %v3716_v24 = vunpack.c.h.bf16 %v3850_v52 }
 0x209   :  { %3864 = vst [vmem:[%s5338_s4 + $0x8] sm:$0xff] %v3777_v29   ;;  %v2293_v4 = vadd.f32 %v2292_v20, %v2204_v7  ;;  %v3599_v7 = vld [vmem:[%s5335_s0 + $0x374] sm:$0xf] }
 0x20b   :  { %v2366_v1 = vadd.f32 %v5030_v63, %v2293_v4 }
 0x20c   :  { %v2116_v8 = vpop.f32.mrf.mxu2 }
 0x20d   :  { %v2117_v58 = vadd.f32 %v2116_v8, %v2028_v16  ;;  %v2205_v43 = vpop.f32.mrf.mxu3  ;;  %v2529_v61 = vadd.f32 %v3715_v22, %v2366_v1  ;;  %v3091_v16 = vld [vmem:[%s5335_s0 + $0x380] sm:$0xf] }
 0x20e   :  { %v2030_v56 = vpop.f32.mrf.mxu1  ;;  %v3092_v52 = vor.u32 %v3605_v62, %v3091_v16 }
 0x20f   :  { %v2206_v36 = vadd.f32 %v2205_v43, %v2117_v58  ;;  %v2031_v15 = vadd.f32 %v2030_v56, %v4607_v5  ;;  %v3077_v5 = vld [vmem:[%s5335_s0 + $0x394] sm:$0xf0]  ;;  %v3084_v43 = vor.u32 %v3604_v19, %v3083_v33  ;;  %v3121_v33 = vld [vmem:[%s5335_s0 + $0x3e4] sm:$0xf0] }
 0x210   :  { %v2297_v59 = vpop.f32.mrf.mxu0  ;;  %v3080_v58 = vor.u32 %v3599_v7, %v3077_v5  ;;  %v3609_v7 = vld [vmem:[%s5335_s0 + $0x3c4] sm:$0xf]  ;;  %v3127_v19 = vld [vmem:[%s5335_s0 + $0x3c8] sm:$0xf] }
 0x211   :  { %v2295_v23 = vadd.f32 %v2294_v40, %v2206_v36  ;;  %2069 = vmatmul.bf16.gmra.mxu1 %v3044_v17  ;;  %2158 = vmatmul.bf16.gmra.mxu2 %v3048_v9  ;;  %v3088_v9 = vor.u32 %v3600_v42, %v3085_v55  ;;  %v3614_v42 = vld [vmem:[%s5335_s0 + $0x3e8] sm:$0xf0] }
 0x212   :  { %2247 = vmatmul.bf16.gmra.mxu3 %v3052_v47 }
 0x213   :  { %2336 = vmatmul.bf16.gmra.mxu0 %v3056_v14  ;;  %v2367_v20 = vadd.f32 %v5030_v63, %v2295_v23 }
 0x214   :  { %v2119_v37 = vpop.f32.mrf.mxu2 }
 0x215   :  { %v2530_v32 = vadd.f32 %v3716_v24, %v2367_v20  ;;  %v2120_v26 = vadd.f32 %v2119_v37, %v2031_v15  ;;  %v2208_v35 = vpop.f32.mrf.mxu3 }
 0x216   :  { %v2032_v44 = vpop.f32.mrf.mxu1 }
 0x217   :  { %v3782_v41 = vpack.c.bf16 %v2530_v32, %v2529_v61  ;;  %v2209_v40 = vadd.f32 %v2208_v35, %v2120_v26  ;;  %v2033_v49 = vadd.f32 %v2032_v44, %v4627_v28  ;;  %v3851_v28 = vld [vmem:[%s5337_s3 + $0x18] sm:$0xff]  }
 0x218   :  { %v2299_v29 = vpop.f32.mrf.mxu0  ;;  %v3719_v36 = vunpack.c.l.bf16 %v3851_v28  ;;  %v3720_v22 = vunpack.c.h.bf16 %v3851_v28 }
 0x219   :  { %3865 = vst [vmem:[%s5338_s4 + $0x10] sm:$0xff] %v3782_v41   ;;  %v2298_v2 = vadd.f32 %v2297_v59, %v2209_v40  ;;  %v3608_v41 = vld [vmem:[%s5335_s0 + $0x3bc] sm:$0xf]  ;;  %v3613_v40 = vld [vmem:[%s5335_s0 + $0x3e0] sm:$0xf0] }
 0x21b   :  { %v2368_v14 = vadd.f32 %v5030_v63, %v2298_v2 }
 0x21c   :  { %v2121_v45 = vpop.f32.mrf.mxu2 }
 0x21d   :  { %v2122_v8 = vadd.f32 %v2121_v45, %v2033_v49  ;;  %v2210_v4 = vpop.f32.mrf.mxu3  ;;  %v2531_v20 = vadd.f32 %v3719_v36, %v2368_v14 }
 0x21e   :  { %v2035_v17 = vpop.f32.mrf.mxu1 }
 0x21f   :  { %v2211_v56 = vadd.f32 %v2210_v4, %v2122_v8  ;;  %v2036_v23 = vadd.f32 %v2035_v17, %v4648_v3  ;;  %v3113_v3 = vld [vmem:[%s5335_s0 + $0x3dc] sm:$0xf0]  ;;  %v3124_v4 = vor.u32 %v3609_v7, %v3121_v33 }
 0x220   :  { %v2302_v47 = vpop.f32.mrf.mxu0  ;;  %v3116_v45 = vor.u32 %v3608_v41, %v3113_v3  ;;  %v3157_v41 = vld [vmem:[%s5335_s0 + $0x42c] sm:$0xf0] }
 0x221   :  { %v2300_v1 = vadd.f32 %v2299_v29, %v2211_v56  ;;  %2074 = vmatmul.bf16.gmra.mxu1 %v3080_v58  ;;  %2163 = vmatmul.bf16.gmra.mxu2 %v3084_v43  ;;  %v3119_v29 = vld [vmem:[%s5335_s0 + $0x3c0] sm:$0xf]  ;;  %v3128_v58 = vor.u32 %v3614_v42, %v3127_v19  ;;  %v3163_v3 = vld [vmem:[%s5335_s0 + $0x410] sm:$0xf] }
 0x222   :  { %2252 = vmatmul.bf16.gmra.mxu3 %v3088_v9  ;;  %v3120_v2 = vor.u32 %v3613_v40, %v3119_v29  ;;  %v3623_v29 = vld [vmem:[%s5335_s0 + $0x430] sm:$0xf0] }
 0x223   :  { %2341 = vmatmul.bf16.gmra.mxu0 %v3092_v52  ;;  %v2369_v59 = vadd.f32 %v5030_v63, %v2300_v1 }
 0x224   :  { %v2124_v24 = vpop.f32.mrf.mxu2 }
 0x225   :  { %v2532_v15 = vadd.f32 %v3720_v22, %v2369_v59  ;;  %v2125_v37 = vadd.f32 %v2124_v24, %v2036_v23  ;;  %v2213_v61 = vpop.f32.mrf.mxu3 }
 0x226   :  { %v2037_v32 = vpop.f32.mrf.mxu1 }
 0x227   :  { %v3787_v26 = vpack.c.bf16 %v2532_v15, %v2531_v20  ;;  %v2214_v44 = vadd.f32 %v2213_v61, %v2125_v37  ;;  %v2038_v5 = vadd.f32 %v2037_v32, %v4669_v25  ;;  %v3852_v25 = vld [vmem:[%s5337_s3 + $0x20] sm:$0xff]   ;;  %v3155_v32 = vld [vmem:[%s5335_s0 + $0x408] sm:$0xf] }
 0x228   :  { %v2304_v35 = vpop.f32.mrf.mxu0  ;;  %v3723_v9 = vunpack.c.l.bf16 %v3852_v25  ;;  %v3724_v56 = vunpack.c.h.bf16 %v3852_v25  ;;  %v3617_v61 = vld [vmem:[%s5335_s0 + $0x404] sm:$0xf] }
 0x229   :  { %3866 = vst [vmem:[%s5338_s4 + $0x18] sm:$0xff] %v3787_v26   ;;  %v2303_v55 = vadd.f32 %v2302_v47, %v2214_v44  ;;  %v3622_v26 = vld [vmem:[%s5335_s0 + $0x428] sm:$0xf0] }
 0x22a   :  { %v3156_v42 = vor.u32 %v3622_v26, %v3155_v32 }
 0x22b   :  { %v2370_v17 = vadd.f32 %v5030_v63, %v2303_v55 }
 0x22c   :  { %v2126_v49 = vpop.f32.mrf.mxu2 }
 0x22d   :  { %v2127_v16 = vadd.f32 %v2126_v49, %v2038_v5  ;;  %v2215_v62 = vpop.f32.mrf.mxu3  ;;  %v2533_v1 = vadd.f32 %v3723_v9, %v2370_v17 }
 0x22e   :  { %v2040_v8 = vpop.f32.mrf.mxu1 }
 0x22f   :  { %v2216_v43 = vadd.f32 %v2215_v62, %v2127_v16  ;;  %v2041_v14 = vadd.f32 %v2040_v8, %v4678_v53  ;;  %v3149_v53 = vld [vmem:[%s5335_s0 + $0x424] sm:$0xf0]  ;;  %v3164_v16 = vor.u32 %v3623_v29, %v3163_v3 }
 0x230   :  { %v2307_v28 = vpop.f32.mrf.mxu0  ;;  %v3152_v19 = vor.u32 %v3617_v61, %v3149_v53  ;;  %v3632_v61 = vld [vmem:[%s5335_s0 + $0x478] sm:$0xf0] }
 0x231   :  { %v2305_v52 = vadd.f32 %v2304_v35, %v2216_v43  ;;  %2079 = vmatmul.bf16.gmra.mxu1 %v3116_v45  ;;  %2168 = vmatmul.bf16.gmra.mxu2 %v3120_v2  ;;  %v3618_v35 = vld [vmem:[%s5335_s0 + $0x40c] sm:$0xf] }
 0x232   :  { %2257 = vmatmul.bf16.gmra.mxu3 %v3124_v4  ;;  %v3160_v55 = vor.u32 %v3618_v35, %v3157_v41 }
 0x233   :  { %2346 = vmatmul.bf16.gmra.mxu0 %v3128_v58  ;;  %v2371_v47 = vadd.f32 %v5030_v63, %v2305_v52 }
 0x234   :  { %v2129_v36 = vpop.f32.mrf.mxu2 }
 0x235   :  { %v2534_v22 = vadd.f32 %v3724_v56, %v2371_v47  ;;  %v2130_v59 = vadd.f32 %v2129_v36, %v2041_v14  ;;  %v2218_v23 = vpop.f32.mrf.mxu3 }
 0x236   :  { %v2042_v24 = vpop.f32.mrf.mxu1 }
 0x237   :  { %v3792_v20 = vpack.c.bf16 %v2534_v22, %v2533_v1  ;;  %v2219_v37 = vadd.f32 %v2218_v23, %v2130_v59  ;;  %v2043_v44 = vadd.f32 %v2042_v24, %v4699_v21  ;;  %v3853_v21 = vld [vmem:[%s5337_s3 + $0x28] sm:$0xff]   ;;  %v3191_v59 = vld [vmem:[%s5335_s0 + $0x450] sm:$0xf]  ;;  %v3631_v23 = vld [vmem:[%s5335_s0 + $0x470] sm:$0xf0] }
 0x238   :  { %v2309_v15 = vpop.f32.mrf.mxu0  ;;  %v3727_v25 = vunpack.c.l.bf16 %v3853_v21  ;;  %v3728_v4 = vunpack.c.h.bf16 %v3853_v21  ;;  %v3626_v22 = vld [vmem:[%s5335_s0 + $0x44c] sm:$0xf]  ;;  %v3627_v24 = vld [vmem:[%s5335_s0 + $0x454] sm:$0xf]  ;;  %v3192_v41 = vor.u32 %v3631_v23, %v3191_v59 }
 0x239   :  { %3867 = vst [vmem:[%s5338_s4 + $0x20] sm:$0xff] %v3792_v20   ;;  %v2308_v7 = vadd.f32 %v2307_v28, %v2219_v37  ;;  %v3199_v37 = vld [vmem:[%s5335_s0 + $0x458] sm:$0xf] }
 0x23b   :  { %v2372_v2 = vadd.f32 %v5030_v63, %v2308_v7 }
 0x23c   :  { %v2131_v40 = vpop.f32.mrf.mxu2 }
 0x23d   :  { %v2132_v5 = vadd.f32 %v2131_v40, %v2043_v44  ;;  %v2220_v33 = vpop.f32.mrf.mxu3  ;;  %v2535_v17 = vadd.f32 %v3727_v25, %v2372_v2  ;;  %v3200_v40 = vor.u32 %v3632_v61, %v3199_v37 }
 0x23e   :  { %v2045_v49 = vpop.f32.mrf.mxu1 }
 0x23f   :  { %v2221_v62 = vadd.f32 %v2220_v33, %v2132_v5  ;;  %v2046_v43 = vadd.f32 %v2045_v49, %v4708_v34  ;;  %v3185_v34 = vld [vmem:[%s5335_s0 + $0x46c] sm:$0xf0] }
 0x240   :  { %v2312_v45 = vpop.f32.mrf.mxu0  ;;  %v3188_v44 = vor.u32 %v3626_v22, %v3185_v34 }
 0x241   :  { %v2310_v8 = vadd.f32 %v2309_v15, %v2221_v62  ;;  %2084 = vmatmul.bf16.gmra.mxu1 %v3152_v19  ;;  %2173 = vmatmul.bf16.gmra.mxu2 %v3156_v42  ;;  %v3193_v15 = vld [vmem:[%s5335_s0 + $0x474] sm:$0xf0] }
 0x242   :  { %2262 = vmatmul.bf16.gmra.mxu3 %v3160_v55  ;;  %v3196_v29 = vor.u32 %v3627_v24, %v3193_v15 }
 0x243   :  { %2351 = vmatmul.bf16.gmra.mxu0 %v3164_v16  ;;  %v2373_v58 = vadd.f32 %v5030_v63, %v2310_v8 }
 0x244   :  { %v2134_v28 = vpop.f32.mrf.mxu2 }
 0x245   :  { %v2536_v9 = vadd.f32 %v3728_v4, %v2373_v58  ;;  %v2135_v52 = vadd.f32 %v2134_v28, %v2046_v43  ;;  %v2223_v56 = vpop.f32.mrf.mxu3 }
 0x246   :  { %v2047_v47 = vpop.f32.mrf.mxu1 }
 0x247   :  { %v3797_v14 = vpack.c.bf16 %v2536_v9, %v2535_v17  ;;  %v2224_v1 = vadd.f32 %v2223_v56, %v2135_v52  ;;  %v2048_v20 = vadd.f32 %v2047_v47, %v4729_v11  ;;  %v3854_v11 = vld [vmem:[%s5337_s3 + $0x30] sm:$0xff]  }
 0x248   :  { %v2314_v36 = vpop.f32.mrf.mxu0  ;;  %v3731_v19 = vunpack.c.l.bf16 %v3854_v11  ;;  %v3732_v21 = vunpack.c.h.bf16 %v3854_v11 }
 0x249   :  { %3868 = vst [vmem:[%s5338_s4 + $0x28] sm:$0xff] %v3797_v14   ;;  %v2313_v32 = vadd.f32 %v2312_v45, %v2224_v1 }
 0x24b   :  { %v2374_v33 = vadd.f32 %v5030_v63, %v2313_v32 }
 0x24c   :  { %v2136_v53 = vpop.f32.mrf.mxu2 }
 0x24d   :  { %v2137_v26 = vadd.f32 %v2136_v53, %v2048_v20  ;;  %v2225_v35 = vpop.f32.mrf.mxu3  ;;  %v2537_v62 = vadd.f32 %v3731_v19, %v2374_v33 }
 0x24e   :  { %v2050_v3 = vpop.f32.mrf.mxu1 }
 0x24f   :  { %v2226_v7 = vadd.f32 %v2225_v35, %v2137_v26  ;;  %v2051_v55 = vadd.f32 %v2050_v3, %v4738_v39  ;;  %v3855_v39 = vld [vmem:[%s5337_s3 + $0x38] sm:$0xff]  }
 0x250   :  { %v2317_v5 = vpop.f32.mrf.mxu0  ;;  %v3735_v22 = vunpack.c.l.bf16 %v3855_v39  ;;  %v3736_v59 = vunpack.c.h.bf16 %v3855_v39 }
 0x251   :  { %v2315_v42 = vadd.f32 %v2314_v36, %v2226_v7  ;;  %2089 = vmatmul.bf16.gmra.mxu1 %v3188_v44  ;;  %2178 = vmatmul.bf16.gmra.mxu2 %v3192_v41 }
 0x252   :  { %2267 = vmatmul.bf16.gmra.mxu3 %v3196_v29 }
 0x253   :  { %2356 = vmatmul.bf16.gmra.mxu0 %v3200_v40  ;;  %v2375_v49 = vadd.f32 %v5030_v63, %v2315_v42 }
 0x254   :  { %v2139_v16 = vpop.f32.mrf.mxu2 }
 0x255   :  { %v2538_v45 = vadd.f32 %v3732_v21, %v2375_v49  ;;  %v2140_v2 = vadd.f32 %v2139_v16, %v2051_v55  ;;  %v2228_v25 = vpop.f32.mrf.mxu3 }
 0x256   :  { %v2052_v8 = vpop.f32.mrf.mxu1 }
 0x257   :  { %v3802_v4 = vpack.c.bf16 %v2538_v45, %v2537_v62  ;;  %v2229_v43 = vadd.f32 %v2228_v25, %v2140_v2  ;;  %v2053_v28 = vadd.f32 %v2052_v8, %v4759_v30 }
 0x258   :  { %v2319_v58 = vpop.f32.mrf.mxu0 }
 0x259   :  { %3869 = vst [vmem:[%s5338_s4 + $0x30] sm:$0xff] %v3802_v4   ;;  %v2318_v9 = vadd.f32 %v2317_v5, %v2229_v43 }
 0x25b   :  { %v2376_v1 = vadd.f32 %v5030_v63, %v2318_v9 }
 0x25c   :  { %v2141_v17 = vpop.f32.mrf.mxu2 }
 0x25d   :  { %v2142_v52 = vadd.f32 %v2141_v17, %v2053_v28  ;;  %v2230_v56 = vpop.f32.mrf.mxu3  ;;  %v2539_v20 = vadd.f32 %v3735_v22, %v2376_v1 }
 0x25e   :  { %v2055_v47 = vpop.f32.mrf.mxu1 }
 0x25f   :  { %v2231_v14 = vadd.f32 %v2230_v56, %v2142_v52  ;;  %v2056_v30 = vadd.f32 %v2055_v47, %v4768_v60  ;;  %v3856_v60 = vld [vmem:[%s5337_s3 + $0x40] sm:$0xff]  }
 0x260   :  { %v2322_v36 = vpop.f32.mrf.mxu0  ;;  %v3739_v19 = vunpack.c.l.bf16 %v3856_v60  ;;  %v3740_v21 = vunpack.c.h.bf16 %v3856_v60 }
 0x261   :  { %v2320_v34 = vadd.f32 %v2319_v58, %v2231_v14 }
 0x263   :  { %v2377_v23 = vadd.f32 %v5030_v63, %v2320_v34 }
 0x264   :  { %v2144_v24 = vpop.f32.mrf.mxu2 }
 0x265   :  { %v2540_v15 = vadd.f32 %v3736_v59, %v2377_v23  ;;  %v2145_v37 = vadd.f32 %v2144_v24, %v2056_v30  ;;  %v2233_v61 = vpop.f32.mrf.mxu3 }
 0x266   :  { %v2057_v53 = vpop.f32.mrf.mxu1 }
 0x267   :  { %v3807_v32 = vpack.c.bf16 %v2540_v15, %v2539_v20  ;;  %v2234_v35 = vadd.f32 %v2233_v61, %v2145_v37  ;;  %v2058_v44 = vadd.f32 %v2057_v53, %v4789_v48 }
 0x268   :  { %v2324_v26 = vpop.f32.mrf.mxu0 }
 0x269   :  { %3870 = vst [vmem:[%s5338_s4 + $0x38] sm:$0xff] %v3807_v32   ;;  %v2323_v11 = vadd.f32 %v2322_v36, %v2234_v35 }
 0x26b   :  { %v2378_v33 = vadd.f32 %v5030_v63, %v2323_v11 }
 0x26c   :  { %v2146_v41 = vpop.f32.mrf.mxu2 }
 0x26d   :  { %v2147_v3 = vadd.f32 %v2146_v41, %v2058_v44  ;;  %v2235_v29 = vpop.f32.mrf.mxu3  ;;  %v2541_v16 = vadd.f32 %v3739_v19, %v2378_v33 }
 0x26e   :  { %v2060_v40 = vpop.f32.mrf.mxu1 }
 0x26f   :  { %v2236_v7 = vadd.f32 %v2235_v29, %v2147_v3  ;;  %v2061_v48 = vadd.f32 %v2060_v40, %v4798_v18  ;;  %v3857_v18 = vld [vmem:[%s5337_s3 + $0x48] sm:$0xff]  }
 0x270   :  { %v2327_v5 = vpop.f32.mrf.mxu0  ;;  %v3743_v36 = vunpack.c.l.bf16 %v3857_v18  ;;  %v3744_v22 = vunpack.c.h.bf16 %v3857_v18 }
 0x271   :  { %v2325_v42 = vadd.f32 %v2324_v26, %v2236_v7 }
 0x273   :  { %v2379_v49 = vadd.f32 %v5030_v63, %v2325_v42 }
 0x274   :  { %v2149_v55 = vpop.f32.mrf.mxu2 }
 0x275   :  { %v2542_v62 = vadd.f32 %v3740_v21, %v2379_v49  ;;  %v2150_v45 = vadd.f32 %v2149_v55, %v2061_v48  ;;  %v2238_v2 = vpop.f32.mrf.mxu3 }
 0x276   :  { %v2062_v25 = vpop.f32.mrf.mxu1 }
 0x277   :  { %v3812_v8 = vpack.c.bf16 %v2542_v62, %v2541_v16  ;;  %v2239_v58 = vadd.f32 %v2238_v2, %v2150_v45  ;;  %v2063_v43 = vadd.f32 %v2062_v25, %v4819_v27 }
 0x278   :  { %v2329_v4 = vpop.f32.mrf.mxu0 }
 0x279   :  { %3871 = vst [vmem:[%s5338_s4 + $0x40] sm:$0xff] %v3812_v8   ;;  %v2328_v17 = vadd.f32 %v2327_v5, %v2239_v58 }
 0x27b   :  { %v2380_v14 = vadd.f32 %v5030_v63, %v2328_v17 }
 0x27c   :  { %v2151_v28 = vpop.f32.mrf.mxu2 }
 0x27d   :  { %v2152_v9 = vadd.f32 %v2151_v28, %v2063_v43  ;;  %v2240_v52 = vpop.f32.mrf.mxu3  ;;  %v2543_v23 = vadd.f32 %v3743_v36, %v2380_v14 }
 0x27e   :  { %v2065_v56 = vpop.f32.mrf.mxu1 }
 0x27f   :  { %v2241_v39 = vadd.f32 %v2240_v52, %v2152_v9  ;;  %v2066_v27 = vadd.f32 %v2065_v56, %v4828_v46  ;;  %v3858_v46 = vld [vmem:[%s5337_s3 + $0x50] sm:$0xff]  }
 0x280   :  { %v2332_v47 = vpop.f32.mrf.mxu0  ;;  %v3747_v40 = vunpack.c.l.bf16 %v3858_v46  ;;  %v3748_v5 = vunpack.c.h.bf16 %v3858_v46 }
 0x281   :  { %v2330_v1 = vadd.f32 %v2329_v4, %v2241_v39 }
 0x283   :  { %v2381_v34 = vadd.f32 %v5030_v63, %v2330_v1 }
 0x284   :  { %v2154_v59 = vpop.f32.mrf.mxu2 }
 0x285   :  { %v2544_v30 = vadd.f32 %v3744_v22, %v2381_v34  ;;  %v2155_v24 = vadd.f32 %v2154_v59, %v2066_v27  ;;  %v2243_v20 = vpop.f32.mrf.mxu3 }
 0x286   :  { %v2067_v15 = vpop.f32.mrf.mxu1 }
 0x287   :  { %v3817_v37 = vpack.c.bf16 %v2544_v30, %v2543_v23  ;;  %v2244_v53 = vadd.f32 %v2243_v20, %v2155_v24  ;;  %v2068_v32 = vadd.f32 %v2067_v15, %v4849_v57 }
 0x288   :  { %v2334_v61 = vpop.f32.mrf.mxu0 }
 0x289   :  { %3872 = vst [vmem:[%s5338_s4 + $0x48] sm:$0xff] %v3817_v37   ;;  %v2333_v35 = vadd.f32 %v2332_v47, %v2244_v53 }
 0x28b   :  { %v2382_v60 = vadd.f32 %v5030_v63, %v2333_v35 }
 0x28c   :  { %v2156_v26 = vpop.f32.mrf.mxu2 }
 0x28d   :  { %v2157_v44 = vadd.f32 %v2156_v26, %v2068_v32  ;;  %v2245_v41 = vpop.f32.mrf.mxu3  ;;  %v2545_v42 = vadd.f32 %v3747_v40, %v2382_v60 }
 0x28e   :  { %v2070_v11 = vpop.f32.mrf.mxu1 }
 0x28f   :  { %v2246_v3 = vadd.f32 %v2245_v41, %v2157_v44  ;;  %v2071_v57 = vadd.f32 %v2070_v11, %v4858_v50  ;;  %v3859_v50 = vld [vmem:[%s5337_s3 + $0x58] sm:$0xff]  }
 0x290   :  { %v2337_v29 = vpop.f32.mrf.mxu0  ;;  %v3751_v52 = vunpack.c.l.bf16 %v3859_v50  ;;  %v3752_v56 = vunpack.c.h.bf16 %v3859_v50 }
 0x291   :  { %v2335_v7 = vadd.f32 %v2334_v61, %v2246_v3 }
 0x293   :  { %v2383_v33 = vadd.f32 %v5030_v63, %v2335_v7 }
 0x294   :  { %v2159_v19 = vpop.f32.mrf.mxu2 }
 0x295   :  { %v2546_v21 = vadd.f32 %v3748_v5, %v2383_v33  ;;  %v2160_v49 = vadd.f32 %v2159_v19, %v2071_v57  ;;  %v2248_v48 = vpop.f32.mrf.mxu3 }
 0x296   :  { %v2072_v55 = vpop.f32.mrf.mxu1 }
 0x297   :  { %v3822_v16 = vpack.c.bf16 %v2546_v21, %v2545_v42  ;;  %v2249_v45 = vadd.f32 %v2248_v48, %v2160_v49  ;;  %v2073_v2 = vadd.f32 %v2072_v55, %v4879_v12 }
 0x298   :  { %v2339_v62 = vpop.f32.mrf.mxu0 }
 0x299   :  { %3873 = vst [vmem:[%s5338_s4 + $0x50] sm:$0xff] %v3822_v16   ;;  %v2338_v8 = vadd.f32 %v2337_v29, %v2249_v45 }
 0x29b   :  { %v2384_v9 = vadd.f32 %v5030_v63, %v2338_v8 }
 0x29c   :  { %v2161_v25 = vpop.f32.mrf.mxu2 }
 0x29d   :  { %v2162_v4 = vadd.f32 %v2161_v25, %v2073_v2  ;;  %v2250_v58 = vpop.f32.mrf.mxu3  ;;  %v2547_v14 = vadd.f32 %v3751_v52, %v2384_v9 }
 0x29e   :  { %v2075_v43 = vpop.f32.mrf.mxu1 }
 0x29f   :  { %v2251_v28 = vadd.f32 %v2250_v58, %v2162_v4  ;;  %v2076_v12 = vadd.f32 %v2075_v43, %v4888_v6  ;;  %v3860_v6 = vld [vmem:[%s5337_s3 + $0x60] sm:$0xff]  }
 0x2a0   :  { %v2342_v17 = vpop.f32.mrf.mxu0  ;;  %v3755_v35 = vunpack.c.l.bf16 %v3860_v6  ;;  %v3756_v41 = vunpack.c.h.bf16 %v3860_v6 }
 0x2a1   :  { %v2340_v18 = vadd.f32 %v2339_v62, %v2251_v28 }
 0x2a3   :  { %v2385_v39 = vadd.f32 %v5030_v63, %v2340_v18 }
 0x2a4   :  { %v2164_v47 = vpop.f32.mrf.mxu2 }
 0x2a5   :  { %v2548_v36 = vadd.f32 %v3752_v56, %v2385_v39  ;;  %v2165_v1 = vadd.f32 %v2164_v47, %v2076_v12  ;;  %v2253_v22 = vpop.f32.mrf.mxu3 }
 0x2a6   :  { %v2077_v34 = vpop.f32.mrf.mxu1 }
 0x2a7   :  { %v3827_v27 = vpack.c.bf16 %v2548_v36, %v2547_v14  ;;  %v2254_v23 = vadd.f32 %v2253_v22, %v2165_v1  ;;  %v2078_v30 = vadd.f32 %v2077_v34, %v4909_v13 }
 0x2a8   :  { %v2344_v59 = vpop.f32.mrf.mxu0 }
 0x2a9   :  { %3874 = vst [vmem:[%s5338_s4 + $0x58] sm:$0xff] %v3827_v27   ;;  %v2343_v20 = vadd.f32 %v2342_v17, %v2254_v23 }
 0x2ab   :  { %v2386_v26 = vadd.f32 %v5030_v63, %v2343_v20 }
 0x2ac   :  { %v2166_v24 = vpop.f32.mrf.mxu2 }
 0x2ad   :  { %v2167_v15 = vadd.f32 %v2166_v24, %v2078_v30  ;;  %v2255_v37 = vpop.f32.mrf.mxu3  ;;  %v2549_v3 = vadd.f32 %v3755_v35, %v2386_v26 }
 0x2ae   :  { %v2080_v61 = vpop.f32.mrf.mxu1 }
 0x2af   :  { %v2256_v53 = vadd.f32 %v2255_v37, %v2167_v15  ;;  %v2081_v13 = vadd.f32 %v2080_v61, %v4918_v31  ;;  %v3861_v31 = vld [vmem:[%s5337_s3 + $0x68] sm:$0xff]  }
 0x2b0   :  { %v2347_v32 = vpop.f32.mrf.mxu0  ;;  %v3759_v45 = vunpack.c.l.bf16 %v3861_v31  ;;  %v3760_v25 = vunpack.c.h.bf16 %v3861_v31 }
 0x2b1   :  { %v2345_v44 = vadd.f32 %v2344_v59, %v2256_v53 }
 0x2b3   :  { %v2387_v46 = vadd.f32 %v5030_v63, %v2345_v44 }
 0x2b4   :  { %v2169_v11 = vpop.f32.mrf.mxu2 }
 0x2b5   :  { %v2550_v29 = vadd.f32 %v3756_v41, %v2387_v46  ;;  %v2170_v60 = vadd.f32 %v2169_v11, %v2081_v13  ;;  %v2258_v40 = vpop.f32.mrf.mxu3 }
 0x2b6   :  { %v2082_v7 = vpop.f32.mrf.mxu1 }
 0x2b7   :  { %v3832_v5 = vpack.c.bf16 %v2550_v29, %v2549_v3  ;;  %v2259_v57 = vadd.f32 %v2258_v40, %v2170_v60  ;;  %v2083_v19 = vadd.f32 %v2082_v7, %v4939_v54 }
 0x2b8   :  { %v2349_v33 = vpop.f32.mrf.mxu0 }
 0x2b9   :  { %3875 = vst [vmem:[%s5338_s4 + $0x60] sm:$0xff] %v3832_v5   ;;  %v2348_v21 = vadd.f32 %v2347_v32, %v2259_v57 }
 0x2bb   :  { %v2388_v62 = vadd.f32 %v5030_v63, %v2348_v21 }
 0x2bc   :  { %v2171_v42 = vpop.f32.mrf.mxu2 }
 0x2bd   :  { %v2172_v49 = vadd.f32 %v2171_v42, %v2083_v19  ;;  %v2260_v48 = vpop.f32.mrf.mxu3  ;;  %v2551_v50 = vadd.f32 %v3759_v45, %v2388_v62 }
 0x2be   :  { %v2085_v55 = vpop.f32.mrf.mxu1 }
 0x2bf   :  { %v2261_v16 = vadd.f32 %v2260_v48, %v2172_v49  ;;  %v2086_v54 = vadd.f32 %v2085_v55, %v4948_v0  ;;  %v3862_v0 = vld [vmem:[%s5337_s3 + $0x70] sm:$0xff]  }
 0x2c0   :  { %v2352_v8 = vpop.f32.mrf.mxu0  ;;  %v3763_v27 = vunpack.c.l.bf16 %v3862_v0  ;;  %v3764_v23 = vunpack.c.h.bf16 %v3862_v0 }
 0x2c1   :  { %v2350_v2 = vadd.f32 %v2349_v33, %v2261_v16 }
 0x2c3   :  { %v2389_v4 = vadd.f32 %v5030_v63, %v2350_v2 }
 0x2c4   :  { %v2174_v58 = vpop.f32.mrf.mxu2 }
 0x2c5   :  { %v2552_v43 = vadd.f32 %v3760_v25, %v2389_v4  ;;  %v2175_v28 = vadd.f32 %v2174_v58, %v2086_v54  ;;  %v2263_v17 = vpop.f32.mrf.mxu3 }
 0x2c6   :  { %v2087_v9 = vpop.f32.mrf.mxu1 }
 0x2c7   :  { %v3837_v52 = vpack.c.bf16 %v2552_v43, %v2551_v50  ;;  %v2264_v18 = vadd.f32 %v2263_v17, %v2175_v28  ;;  %v2088_v56 = vadd.f32 %v2087_v9, %v4969_v10 }
 0x2c8   :  { %v2354_v39 = vpop.f32.mrf.mxu0 }
 0x2c9   :  { %3876 = vst [vmem:[%s5338_s4 + $0x68] sm:$0xff] %v3837_v52   ;;  %v2353_v47 = vadd.f32 %v2352_v8, %v2264_v18 }
 0x2cb   :  { %v2390_v34 = vadd.f32 %v5030_v63, %v2353_v47 }
 0x2cc   :  { %v2176_v12 = vpop.f32.mrf.mxu2 }
 0x2cd   :  { %v2177_v14 = vadd.f32 %v2176_v12, %v2088_v56  ;;  %v2265_v36 = vpop.f32.mrf.mxu3  ;;  %v2553_v20 = vadd.f32 %v3763_v27, %v2390_v34 }
 0x2ce   :  { %v2090_v1 = vpop.f32.mrf.mxu1 }
 0x2cf   :  { %v2266_v22 = vadd.f32 %v2265_v36, %v2177_v14  ;;  %v2091_v10 = vadd.f32 %v2090_v1, %v4978_v51  ;;  %v3863_v51 = vld [vmem:[%s5337_s3 + $0x78] sm:$0xff]  }
 0x2d0   :  { %v2357_v61 = vpop.f32.mrf.mxu0  ;;  %v3767_v60 = vunpack.c.l.bf16 %v3863_v51  ;;  %v3768_v7 = vunpack.c.h.bf16 %v3863_v51 }
 0x2d1   :  { %v2355_v59 = vadd.f32 %v2354_v39, %v2266_v22 }
 0x2d3   :  { %v2391_v30 = vadd.f32 %v5030_v63, %v2355_v59 }
 0x2d4   :  { %v2179_v24 = vpop.f32.mrf.mxu2 }
 0x2d5   :  { %v2554_v15 = vadd.f32 %v3764_v23, %v2391_v30  ;;  %v2180_v37 = vadd.f32 %v2179_v24, %v2091_v10  ;;  %v2268_v6 = vpop.f32.mrf.mxu3 }
 0x2d6   :  { %v2092_v32 = vpop.f32.mrf.mxu1 }
 0x2d7   :  { %v3842_v53 = vpack.c.bf16 %v2554_v15, %v2553_v20  ;;  %v2269_v26 = vadd.f32 %v2268_v6, %v2180_v37  ;;  %v2093_v35 = vadd.f32 %v2092_v32, %v4999_v38 }
 0x2d8   :  { %v2359_v3 = vpop.f32.mrf.mxu0 }
 0x2d9   :  { %3877 = vst [vmem:[%s5338_s4 + $0x70] sm:$0xff] %v3842_v53   ;;  %v2358_v41 = vadd.f32 %v2357_v61, %v2269_v26 }
 0x2db   :  { %v2392_v29 = vadd.f32 %v5030_v63, %v2358_v41 }
 0x2dc   :  { %v2181_v44 = vpop.f32.mrf.mxu2 }
 0x2dd   :  { %v2182_v46 = vadd.f32 %v2181_v44, %v2093_v35  ;;  %v2270_v13 = vpop.f32.mrf.mxu3  ;;  %v2555_v33 = vadd.f32 %v3767_v60, %v2392_v29 }
 0x2df   :  { %v2271_v11 = vadd.f32 %v2270_v13, %v2182_v46 }
 0x2e1   :  { %v2360_v40 = vadd.f32 %v2359_v3, %v2271_v11 }
 0x2e3   :  { %v2393_v5 = vadd.f32 %v5030_v63, %v2360_v40 }
 0x2e5   :  { %v2556_v57 = vadd.f32 %v3768_v7, %v2393_v5 }
 0x2e7   :  { %v3847_v38 = vpack.c.bf16 %v2556_v57, %v2555_v33 }
 0x2e9   :  { %3878 = vst [vmem:[%s5338_s4 + $0x78] sm:$0xff] %v3847_v38  }

// kernel: feature_extraction_forward.102
= control target key start
LH: loop header
LB: loop body
LE: loop exit
PB: predicated region body
PF: predicated region fallthrough
CT: control target
= control target key end

     0   :  { %s5135_s1 = inlined_call_operand.vmem [shape: bf16[1152,128], index: 1, kind: input, shape index: {}]   ;;  %s5136_s0 = inlined_call_operand.vmem [shape: bf16[256,1152], index: 0, kind: input, shape index: {}]   ;;  %s5137_s2 = inlined_call_operand.vmem [shape: f32[1,128], index: 2, kind: input, shape index: {}]   ;;  %s5138_s3 = inlined_call_operand.vmem [shape: bf16[256,128], index: 3, kind: output, shape index: {}]  }
   0x1   :  { %v3573_v0 = vld [vmem:[%s5135_s1 + $0x38] sm:$0xff]  ;;  %v3572_v1 = vld [vmem:[%s5135_s1 + $0x30] sm:$0xff]  ;;  %v3571_v2 = vld [vmem:[%s5135_s1 + $0x28] sm:$0xff] }
   0x2   :  { %3733 = vmatpush.bf16.msra.mxu1 %v3573_v0  ;;  %3734 = vmatpush.bf16.msra.mxu2 %v3573_v0  ;;  %v3570_v3 = vld [vmem:[%s5135_s1 + $0x20] sm:$0xff]  ;;  %v3569_v4 = vld [vmem:[%s5135_s1 + $0x18] sm:$0xff]  ;;  %v3568_v5 = vld [vmem:[%s5135_s1 + $0x10] sm:$0xff] }
   0x3   :  { %3735 = vmatpush.bf16.msra.mxu3 %v3573_v0  ;;  %1558 = vmatpush.bf16.msra.mxu0 %v3573_v0  ;;  %v3567_v6 = vld [vmem:[%s5135_s1 + $0x8] sm:$0xff]  ;;  %v3566_v7 = vld [vmem:[%s5135_s1] sm:$0xff]  ;;  %v3589_v16 = vld [vmem:[%s5135_s1 + $0xb8] sm:$0xff] }
   0x4   :  { %v2704_v8 = vld [vmem:[%s5136_s0 + $0x120] sm:$0xf]  ;;  %v3462_v9 = vld [vmem:[%s5136_s0 + $0x140] sm:$0xf0]  ;;  %v3597_v17 = vld [vmem:[%s5135_s1 + $0xf8] sm:$0xff] }
   0x5   :  { %v2848_v10 = vld [vmem:[%s5136_s0 + $0x240] sm:$0xf]  ;;  %v3498_v11 = vld [vmem:[%s5136_s0 + $0x260] sm:$0xf0]  ;;  %v2705_v18 = vor.u32 %v3462_v9, %v2704_v8  ;;  %v3581_v22 = vld [vmem:[%s5135_s1 + $0x78] sm:$0xff] }
   0x6   :  { %3736 = vmatpush.bf16.msra.mxu1 %v3572_v1  ;;  %3737 = vmatpush.bf16.msra.mxu2 %v3572_v1  ;;  %v2992_v12 = vld [vmem:[%s5136_s0 + $0x360] sm:$0xf]  ;;  %v3534_v13 = vld [vmem:[%s5136_s0 + $0x380] sm:$0xf0]  ;;  %v2849_v19 = vor.u32 %v3498_v11, %v2848_v10  ;;  %v3605_v23 = vld [vmem:[%s5135_s1 + $0x138] sm:$0xff] }
   0x7   :  { %3738 = vmatpush.bf16.msra.mxu3 %v3572_v1  ;;  %1559 = vmatpush.bf16.msra.mxu0 %v3572_v1  ;;  %v2560_v14 = vld [vmem:[%s5136_s0] sm:$0xf]  ;;  %v3426_v15 = vld [vmem:[%s5136_s0 + $0x20] sm:$0xf0]  ;;  %v2993_v20 = vor.u32 %v3534_v13, %v2992_v12  ;;  %v3588_v24 = vld [vmem:[%s5135_s1 + $0xb0] sm:$0xff] }
   0x8   :  { %v2561_v21 = vor.u32 %v3426_v15, %v2560_v14  ;;  %v3596_v25 = vld [vmem:[%s5135_s1 + $0xf0] sm:$0xff]  ;;  %v3587_v28 = vld [vmem:[%s5135_s1 + $0xa8] sm:$0xff]  ;;  %v3586_v33 = vld [vmem:[%s5135_s1 + $0xa0] sm:$0xff] }
   0x9   :  { %v3580_v26 = vld [vmem:[%s5135_s1 + $0x70] sm:$0xff]  ;;  %v3595_v29 = vld [vmem:[%s5135_s1 + $0xe8] sm:$0xff]  ;;  %v3594_v34 = vld [vmem:[%s5135_s1 + $0xe0] sm:$0xff] }
   0xa   :  { %3739 = vmatpush.bf16.msra.mxu1 %v3571_v2  ;;  %3740 = vmatpush.bf16.msra.mxu2 %v3571_v2  ;;  %v3604_v27 = vld [vmem:[%s5135_s1 + $0x130] sm:$0xff]  ;;  %v3579_v30 = vld [vmem:[%s5135_s1 + $0x68] sm:$0xff]  ;;  %v3578_v42 = vld [vmem:[%s5135_s1 + $0x60] sm:$0xff] }
   0xb   :  { %3741 = vmatpush.bf16.msra.mxu3 %v3571_v2  ;;  %1560 = vmatpush.bf16.msra.mxu0 %v3571_v2  ;;  %v3603_v31 = vld [vmem:[%s5135_s1 + $0x128] sm:$0xff]  ;;  %v3602_v43 = vld [vmem:[%s5135_s1 + $0x120] sm:$0xff]  ;;  %v3585_v44 = vld [vmem:[%s5135_s1 + $0x98] sm:$0xff] }
   0xc   :  { %v2740_v32 = vld [vmem:[%s5136_s0 + $0x168] sm:$0xf]  ;;  %v3471_v35 = vld [vmem:[%s5136_s0 + $0x188] sm:$0xf0]  ;;  %v3593_v45 = vld [vmem:[%s5135_s1 + $0xd8] sm:$0xff] }
   0xd   :  { %v2884_v36 = vld [vmem:[%s5136_s0 + $0x288] sm:$0xf]  ;;  %v3507_v37 = vld [vmem:[%s5136_s0 + $0x2a8] sm:$0xf0]  ;;  %v2741_v46 = vor.u32 %v3471_v35, %v2740_v32  ;;  %v3577_v50 = vld [vmem:[%s5135_s1 + $0x58] sm:$0xff] }
   0xe   :  { %3742 = vmatpush.bf16.msra.mxu1 %v3570_v3  ;;  %3743 = vmatpush.bf16.msra.mxu2 %v3570_v3  ;;  %v3028_v38 = vld [vmem:[%s5136_s0 + $0x3a8] sm:$0xf]  ;;  %v3543_v39 = vld [vmem:[%s5136_s0 + $0x3c8] sm:$0xf0]  ;;  %v2885_v47 = vor.u32 %v3507_v37, %v2884_v36  ;;  %v3601_v51 = vld [vmem:[%s5135_s1 + $0x118] sm:$0xff] }
   0xf   :  { %3744 = vmatpush.bf16.msra.mxu3 %v3570_v3  ;;  %1561 = vmatpush.bf16.msra.mxu0 %v3570_v3  ;;  %v2596_v40 = vld [vmem:[%s5136_s0 + $0x48] sm:$0xf]  ;;  %v3435_v41 = vld [vmem:[%s5136_s0 + $0x68] sm:$0xf0]  ;;  %v3029_v48 = vor.u32 %v3543_v39, %v3028_v38  ;;  %v3584_v52 = vld [vmem:[%s5135_s1 + $0x90] sm:$0xff] }
  0x10   :  { %v2597_v49 = vor.u32 %v3435_v41, %v2596_v40  ;;  %v3592_v53 = vld [vmem:[%s5135_s1 + $0xd0] sm:$0xff]  ;;  %v3583_v56 = vld [vmem:[%s5135_s1 + $0x88] sm:$0xff]  ;;  %v3582_v61 = vld [vmem:[%s5135_s1 + $0x80] sm:$0xff] }
  0x11   :  { %v3576_v54 = vld [vmem:[%s5135_s1 + $0x50] sm:$0xff]  ;;  %v3591_v57 = vld [vmem:[%s5135_s1 + $0xc8] sm:$0xff]  ;;  %v3590_v62 = vld [vmem:[%s5135_s1 + $0xc0] sm:$0xff] }
  0x12   :  { %3745 = vmatpush.bf16.msra.mxu1 %v3569_v4  ;;  %3746 = vmatpush.bf16.msra.mxu2 %v3569_v4  ;;  %v3600_v55 = vld [vmem:[%s5135_s1 + $0x110] sm:$0xff]  ;;  %v3575_v58 = vld [vmem:[%s5135_s1 + $0x48] sm:$0xff]  ;;  %v3621_v12 = vld [vmem:[%s5135_s1 + $0x1b8] sm:$0xff] }
  0x13   :  { %3747 = vmatpush.bf16.msra.mxu3 %v3569_v4  ;;  %1562 = vmatpush.bf16.msra.mxu0 %v3569_v4  ;;  %v3599_v59 = vld [vmem:[%s5135_s1 + $0x108] sm:$0xff]  ;;  %v2776_v60 = vld [vmem:[%s5136_s0 + $0x1b0] sm:$0xf]  ;;  %v3480_v63 = vld [vmem:[%s5136_s0 + $0x1d0] sm:$0xf0] }
  0x14   :  { %v2920_v0 = vld [vmem:[%s5136_s0 + $0x2d0] sm:$0xf]  ;;  %v3516_v1 = vld [vmem:[%s5136_s0 + $0x2f0] sm:$0xf0]  ;;  %v2777_v8 = vor.u32 %v3480_v63, %v2776_v60  ;;  %v3629_v13 = vld [vmem:[%s5135_s1 + $0x1f8] sm:$0xff] }
  0x15   :  { %v3064_v2 = vld [vmem:[%s5136_s0 + $0x3f0] sm:$0xf]  ;;  %v3552_v3 = vld [vmem:[%s5136_s0 + $0x410] sm:$0xf0]  ;;  %v2921_v9 = vor.u32 %v3516_v1, %v2920_v0  ;;  %v3613_v14 = vld [vmem:[%s5135_s1 + $0x178] sm:$0xff] }
  0x16   :  { %3748 = vmatpush.bf16.msra.mxu1 %v3568_v5  ;;  %3749 = vmatpush.bf16.msra.mxu2 %v3568_v5  ;;  %v2632_v4 = vld [vmem:[%s5136_s0 + $0x90] sm:$0xf]  ;;  %v3065_v10 = vor.u32 %v3552_v3, %v3064_v2  ;;  %v3637_v15 = vld [vmem:[%s5135_s1 + $0x238] sm:$0xff]  ;;  %v3423_v32 = vld [vmem:[%s5136_s0 + $0xc] sm:$0xf] }
  0x17   :  { %3750 = vmatpush.bf16.msra.mxu3 %v3568_v5  ;;  %1563 = vmatpush.bf16.msra.mxu0 %v3568_v5  ;;  %v3444_v5 = vld [vmem:[%s5136_s0 + $0xb0] sm:$0xf0]  ;;  %v3441_v60 = vld [vmem:[%s5136_s0 + $0x9c] sm:$0xf]  ;;  %v3446_v63 = vld [vmem:[%s5136_s0 + $0xc0] sm:$0xf0] }
  0x18   :  { %v2633_v11 = vor.u32 %v3444_v5, %v2632_v4  ;;  %v3428_v35 = vld [vmem:[%s5136_s0 + $0x30] sm:$0xf0]  ;;  %v3619_v4 = vld [vmem:[%s5135_s1 + $0x1a8] sm:$0xff] }
  0x19   :  { %v3620_v40 = vld [vmem:[%s5135_s1 + $0x1b0] sm:$0xff]  ;;  %v3627_v5 = vld [vmem:[%s5135_s1 + $0x1e8] sm:$0xff] }
  0x1a   :  { %3751 = vmatpush.bf16.msra.mxu1 %v3567_v6  ;;  %3752 = vmatpush.bf16.msra.mxu2 %v3567_v6  ;;  %v3628_v41 = vld [vmem:[%s5135_s1 + $0x1f0] sm:$0xff] }
  0x1b   :  { %3753 = vmatpush.bf16.msra.mxu3 %v3567_v6  ;;  %1564 = vmatpush.bf16.msra.mxu0 %v3567_v6  ;;  %v3574_v6 = vld [vmem:[%s5135_s1 + $0x40] sm:$0xff] }
  0x1e   :  { %3754 = vmatpush.bf16.msra.mxu1 %v3566_v7  ;;  %3755 = vmatpush.bf16.msra.mxu2 %v3566_v7 }
  0x1f   :  { %3756 = vmatpush.bf16.msra.mxu3 %v3566_v7  ;;  %1565 = vmatpush.bf16.msra.mxu0 %v3566_v7  ;;  %v3598_v7 = vld [vmem:[%s5135_s1 + $0x100] sm:$0xff] }
  0x21   :  { %1586 = vmatmul.bf16.vlgmr.msra.gmra.mxu1 %v2705_v18  ;;  %1606 = vmatmul.bf16.vlgmr.msra.gmra.mxu2 %v2849_v19  ;;  %v2956_v18 = vld [vmem:[%s5136_s0 + $0x318] sm:$0xf]  ;;  %v3525_v19 = vld [vmem:[%s5136_s0 + $0x338] sm:$0xf0] }
  0x22   :  { %1736 = vmatpush.bf16.msrb.mxu2 %v3589_v16  ;;  %1626 = vmatmul.bf16.vlgmr.msra.gmra.mxu3 %v2993_v20  ;;  %v2812_v16 = vld [vmem:[%s5136_s0 + $0x1f8] sm:$0xf] }
  0x23   :  { %1825 = vmatpush.bf16.msrb.mxu3 %v3597_v17  ;;  %1566 = vmatmul.bf16.vlgmr.msra.gmra.mxu0 %v2561_v21  ;;  %v3489_v17 = vld [vmem:[%s5136_s0 + $0x218] sm:$0xf0]  ;;  %v3100_v20 = vld [vmem:[%s5136_s0 + $0x438] sm:$0xf] }
  0x24   :  { %1647 = vmatpush.bf16.msrb.mxu1 %v3581_v22  ;;  %1914 = vmatpush.bf16.msrb.mxu0 %v3605_v23  ;;  %v3561_v21 = vld [vmem:[%s5136_s0 + $0x458] sm:$0xf0]  ;;  %v2668_v22 = vld [vmem:[%s5136_s0 + $0xd8] sm:$0xf] }
  0x25   :  { %v3453_v23 = vld [vmem:[%s5136_s0 + $0xf8] sm:$0xf0] }
  0x26   :  { %1737 = vmatpush.bf16.msrb.mxu2 %v3588_v24  ;;  %v2813_v24 = vor.u32 %v3489_v17, %v2812_v16 }
  0x27   :  { %1826 = vmatpush.bf16.msrb.mxu3 %v3596_v25  ;;  %v2957_v25 = vor.u32 %v3525_v19, %v2956_v18 }
  0x28   :  { %1648 = vmatpush.bf16.msrb.mxu1 %v3580_v26  ;;  %1915 = vmatpush.bf16.msrb.mxu0 %v3604_v27  ;;  %v3101_v26 = vor.u32 %v3561_v21, %v3100_v20  ;;  %v2669_v27 = vor.u32 %v3453_v23, %v2668_v22  ;;  %v3458_v20 = vld [vmem:[%s5136_s0 + $0x124] sm:$0xf]  ;;  %v2706_v21 = vld [vmem:[%s5136_s0 + $0x144] sm:$0xf0]  ;;  %v3463_v23 = vld [vmem:[%s5136_s0 + $0x148] sm:$0xf0] }
  0x29   :  { %v2712_v22 = vld [vmem:[%s5136_s0 + $0x128] sm:$0xf] }
  0x2a   :  { %1738 = vmatpush.bf16.msrb.mxu2 %v3587_v28  ;;  %v3422_v28 = vld [vmem:[%s5136_s0 + $0x4] sm:$0xf] }
  0x2b   :  { %1827 = vmatpush.bf16.msrb.mxu3 %v3595_v29  ;;  %v2562_v29 = vld [vmem:[%s5136_s0 + $0x24] sm:$0xf0] }
  0x2c   :  { %1649 = vmatpush.bf16.msrb.mxu1 %v3579_v30  ;;  %1916 = vmatpush.bf16.msrb.mxu0 %v3603_v31  ;;  %v2568_v30 = vld [vmem:[%s5136_s0 + $0x8] sm:$0xf]  ;;  %v3427_v31 = vld [vmem:[%s5136_s0 + $0x28] sm:$0xf0]  ;;  %v2565_v36 = vor.u32 %v3422_v28, %v2562_v29  ;;  %v2709_v28 = vor.u32 %v3458_v20, %v2706_v21  ;;  %v2713_v29 = vor.u32 %v3463_v23, %v2712_v22  ;;  %v3609_v20 = vld [vmem:[%s5135_s1 + $0x158] sm:$0xff] }
  0x2d   :  { %v2569_v37 = vor.u32 %v3427_v31, %v2568_v30  ;;  %v3633_v21 = vld [vmem:[%s5135_s1 + $0x218] sm:$0xff]  ;;  %v2814_v23 = vld [vmem:[%s5136_s0 + $0x21c] sm:$0xf0] }
  0x2e   :  { %1739 = vmatpush.bf16.msrb.mxu2 %v3586_v33  ;;  %v2570_v33 = vld [vmem:[%s5136_s0 + $0x2c] sm:$0xf0]  ;;  %v3485_v22 = vld [vmem:[%s5136_s0 + $0x1fc] sm:$0xf] }
  0x2f   :  { %1828 = vmatpush.bf16.msrb.mxu3 %v3594_v34  ;;  %v2576_v34 = vld [vmem:[%s5136_s0 + $0x10] sm:$0xf]  ;;  %v2573_v38 = vor.u32 %v3423_v32, %v2570_v33 }
  0x30   :  { %1650 = vmatpush.bf16.msrb.mxu1 %v3578_v42  ;;  %1917 = vmatpush.bf16.msrb.mxu0 %v3602_v43  ;;  %v2577_v39 = vor.u32 %v3428_v35, %v2576_v34  ;;  %v3612_v42 = vld [vmem:[%s5135_s1 + $0x170] sm:$0xff]  ;;  %v3618_v34 = vld [vmem:[%s5135_s1 + $0x1a0] sm:$0xff] }
  0x31   :  { %1591 = vmatmul.bf16.gmra.mxu1 %v2741_v46  ;;  %1611 = vmatmul.bf16.gmra.mxu2 %v2885_v47  ;;  %v3636_v43 = vld [vmem:[%s5135_s1 + $0x230] sm:$0xff]  ;;  %v3626_v35 = vld [vmem:[%s5135_s1 + $0x1e0] sm:$0xff] }
  0x32   :  { %1740 = vmatpush.bf16.msrb.mxu2 %v3585_v44  ;;  %1631 = vmatmul.bf16.gmra.mxu3 %v3029_v48  ;;  %v3431_v44 = vld [vmem:[%s5136_s0 + $0x4c] sm:$0xf]  ;;  %v2604_v46 = vld [vmem:[%s5136_s0 + $0x50] sm:$0xf]  ;;  %v3436_v47 = vld [vmem:[%s5136_s0 + $0x70] sm:$0xf0] }
  0x33   :  { %1829 = vmatpush.bf16.msrb.mxu3 %v3593_v45  ;;  %1571 = vmatmul.bf16.gmra.mxu0 %v2597_v49  ;;  %v2598_v45 = vld [vmem:[%s5136_s0 + $0x6c] sm:$0xf0]  ;;  %v3432_v48 = vld [vmem:[%s5136_s0 + $0x54] sm:$0xf]  ;;  %v2606_v49 = vld [vmem:[%s5136_s0 + $0x74] sm:$0xf0] }
  0x34   :  { %1651 = vmatpush.bf16.msrb.mxu1 %v3577_v50  ;;  %1918 = vmatpush.bf16.msrb.mxu0 %v3601_v51  ;;  %v2612_v50 = vld [vmem:[%s5136_s0 + $0x58] sm:$0xf]  ;;  %v3437_v51 = vld [vmem:[%s5136_s0 + $0x78] sm:$0xf0] }
  0x36   :  { %1741 = vmatpush.bf16.msrb.mxu2 %v3584_v52  ;;  %v2601_v52 = vor.u32 %v3431_v44, %v2598_v45  ;;  %v2748_v44 = vld [vmem:[%s5136_s0 + $0x170] sm:$0xf]  ;;  %v3472_v45 = vld [vmem:[%s5136_s0 + $0x190] sm:$0xf0] }
  0x37   :  { %1830 = vmatpush.bf16.msrb.mxu3 %v3592_v53  ;;  %v2605_v53 = vor.u32 %v3436_v47, %v2604_v46  ;;  %v3468_v46 = vld [vmem:[%s5136_s0 + $0x174] sm:$0xf]  ;;  %v2750_v47 = vld [vmem:[%s5136_s0 + $0x194] sm:$0xf0] }
  0x38   :  { %1652 = vmatpush.bf16.msrb.mxu1 %v3576_v54  ;;  %1919 = vmatpush.bf16.msrb.mxu0 %v3600_v55  ;;  %v2609_v54 = vor.u32 %v3432_v48, %v2606_v49  ;;  %v2613_v55 = vor.u32 %v3437_v51, %v2612_v50  ;;  %v2756_v48 = vld [vmem:[%s5136_s0 + $0x178] sm:$0xf]  ;;  %v3473_v49 = vld [vmem:[%s5136_s0 + $0x198] sm:$0xf0] }
  0x3a   :  { %1742 = vmatpush.bf16.msrb.mxu2 %v3583_v56  ;;  %v3440_v56 = vld [vmem:[%s5136_s0 + $0x94] sm:$0xf] }
  0x3b   :  { %1831 = vmatpush.bf16.msrb.mxu3 %v3591_v57  ;;  %v2634_v57 = vld [vmem:[%s5136_s0 + $0xb4] sm:$0xf0] }
  0x3c   :  { %1653 = vmatpush.bf16.msrb.mxu1 %v3575_v58  ;;  %1920 = vmatpush.bf16.msrb.mxu0 %v3599_v59  ;;  %v2640_v58 = vld [vmem:[%s5136_s0 + $0x98] sm:$0xf]  ;;  %v3445_v59 = vld [vmem:[%s5136_s0 + $0xb8] sm:$0xf0]  ;;  %v2637_v0 = vor.u32 %v3440_v56, %v2634_v57  ;;  %v2757_v56 = vor.u32 %v3473_v49, %v2756_v48  ;;  %v3494_v48 = vld [vmem:[%s5136_s0 + $0x244] sm:$0xf] }
  0x3d   :  { %v2641_v1 = vor.u32 %v3445_v59, %v2640_v58  ;;  %v2850_v49 = vld [vmem:[%s5136_s0 + $0x264] sm:$0xf0] }
  0x3e   :  { %1743 = vmatpush.bf16.msrb.mxu2 %v3582_v61  ;;  %v2642_v61 = vld [vmem:[%s5136_s0 + $0xbc] sm:$0xf0] }
  0x3f   :  { %1832 = vmatpush.bf16.msrb.mxu3 %v3590_v62  ;;  %v2648_v62 = vld [vmem:[%s5136_s0 + $0xa0] sm:$0xf]  ;;  %v2645_v2 = vor.u32 %v3441_v60, %v2642_v61 }
  0x40   :  { %1654 = vmatpush.bf16.msrb.mxu1 %v3574_v6  ;;  %1921 = vmatpush.bf16.msrb.mxu0 %v3598_v7  ;;  %v2649_v3 = vor.u32 %v3446_v63, %v2648_v62  ;;  %v3611_v6 = vld [vmem:[%s5135_s1 + $0x168] sm:$0xff]  ;;  %v3476_v62 = vld [vmem:[%s5136_s0 + $0x1b4] sm:$0xf]  ;;  %v2778_v63 = vld [vmem:[%s5136_s0 + $0x1d4] sm:$0xf0] }
  0x41   :  { %1596 = vmatmul.bf16.gmra.mxu1 %v2777_v8  ;;  %1616 = vmatmul.bf16.gmra.mxu2 %v2921_v9  ;;  %v3635_v7 = vld [vmem:[%s5135_s1 + $0x228] sm:$0xff]  ;;  %v3449_v8 = vld [vmem:[%s5136_s0 + $0xdc] sm:$0xf]  ;;  %v2670_v9 = vld [vmem:[%s5136_s0 + $0xfc] sm:$0xf0] }
  0x42   :  { %1636 = vmatmul.bf16.gmra.mxu3 %v3065_v10  ;;  %2092 = vmatpush.bf16.msra.mxu2 %v3621_v12  ;;  %v2676_v10 = vld [vmem:[%s5136_s0 + $0xe0] sm:$0xf]  ;;  %v3450_v12 = vld [vmem:[%s5136_s0 + $0xe4] sm:$0xf]  ;;  %v2673_v16 = vor.u32 %v3449_v8, %v2670_v9  ;;  %v2781_v8 = vor.u32 %v3476_v62, %v2778_v63  ;;  %v2864_v62 = vld [vmem:[%s5136_s0 + $0x250] sm:$0xf] }
  0x43   :  { %1576 = vmatmul.bf16.gmra.mxu0 %v2633_v11  ;;  %2181 = vmatpush.bf16.msra.mxu3 %v3629_v13  ;;  %v3454_v11 = vld [vmem:[%s5136_s0 + $0x100] sm:$0xf0]  ;;  %v2678_v13 = vld [vmem:[%s5136_s0 + $0x104] sm:$0xf0]  ;;  %v3500_v63 = vld [vmem:[%s5136_s0 + $0x270] sm:$0xf0] }
  0x44   :  { %2003 = vmatpush.bf16.msra.mxu1 %v3613_v14  ;;  %2270 = vmatpush.bf16.msra.mxu0 %v3637_v15  ;;  %v2684_v14 = vld [vmem:[%s5136_s0 + $0xe8] sm:$0xf]  ;;  %v3455_v15 = vld [vmem:[%s5136_s0 + $0x108] sm:$0xf0]  ;;  %v2677_v17 = vor.u32 %v3454_v11, %v2676_v10  ;;  %v2681_v18 = vor.u32 %v3450_v12, %v2678_v13 }
  0x45   :  { %v2685_v19 = vor.u32 %v3455_v15, %v2684_v14  ;;  %v3617_v14 = vld [vmem:[%s5135_s1 + $0x198] sm:$0xff] }
  0x46   :  { %2093 = vmatpush.bf16.msra.mxu2 %v3620_v40  ;;  %v3625_v15 = vld [vmem:[%s5135_s1 + $0x1d8] sm:$0xff] }
  0x47   :  { %2182 = vmatpush.bf16.msra.mxu3 %v3628_v41  ;;  %v3634_v41 = vld [vmem:[%s5135_s1 + $0x220] sm:$0xff] }
  0x48   :  { %2004 = vmatpush.bf16.msra.mxu1 %v3612_v42  ;;  %2271 = vmatpush.bf16.msra.mxu0 %v3636_v43  ;;  %v3467_v42 = vld [vmem:[%s5136_s0 + $0x16c] sm:$0xf]  ;;  %v2742_v43 = vld [vmem:[%s5136_s0 + $0x18c] sm:$0xf0] }
  0x4a   :  { %2094 = vmatpush.bf16.msra.mxu2 %v3619_v4  ;;  %v2792_v4 = vld [vmem:[%s5136_s0 + $0x1c0] sm:$0xf] }
  0x4b   :  { %2183 = vmatpush.bf16.msra.mxu3 %v3627_v5  ;;  %v3482_v5 = vld [vmem:[%s5136_s0 + $0x1e0] sm:$0xf0] }
  0x4c   :  { %2005 = vmatpush.bf16.msra.mxu1 %v3611_v6  ;;  %2272 = vmatpush.bf16.msra.mxu0 %v3635_v7  ;;  %v2793_v12 = vor.u32 %v3482_v5, %v2792_v4 }
  0x4e   :  { %2095 = vmatpush.bf16.msra.mxu2 %v3618_v34  ;;  %v2817_v34 = vor.u32 %v3485_v22, %v2814_v23 }
  0x4f   :  { %2184 = vmatpush.bf16.msra.mxu3 %v3626_v35 }
  0x50   :  { %2273 = vmatpush.bf16.msra.mxu0 %v3634_v41 }
  0x51   :  { %1601 = vmatmul.bf16.gmra.mxu1 %v2813_v24  ;;  %1621 = vmatmul.bf16.gmra.mxu2 %v2957_v25  ;;  %v3459_v24 = vld [vmem:[%s5136_s0 + $0x12c] sm:$0xf]  ;;  %v2714_v25 = vld [vmem:[%s5136_s0 + $0x14c] sm:$0xf0] }
  0x52   :  { %1641 = vmatmul.bf16.gmra.mxu3 %v3101_v26  ;;  %v2720_v26 = vld [vmem:[%s5136_s0 + $0x130] sm:$0xf]  ;;  %v2717_v31 = vor.u32 %v3459_v24, %v2714_v25  ;;  %2096 = vmatpush.bf16.msra.mxu2 %v3617_v14  ;;  %v2820_v24 = vld [vmem:[%s5136_s0 + $0x200] sm:$0xf]  ;;  %v3490_v25 = vld [vmem:[%s5136_s0 + $0x220] sm:$0xf0] }
  0x53   :  { %1581 = vmatmul.bf16.gmra.mxu0 %v2669_v27  ;;  %v3464_v27 = vld [vmem:[%s5136_s0 + $0x150] sm:$0xf0]  ;;  %2185 = vmatpush.bf16.msra.mxu3 %v3625_v15  ;;  %v2821_v35 = vor.u32 %v3490_v25, %v2820_v24 }
  0x54   :  { %v2721_v32 = vor.u32 %v3464_v27, %v2720_v26  ;;  %2274 = vmatpush.bf16.msra.mxu0 %v3633_v21  ;;  %v3486_v26 = vld [vmem:[%s5136_s0 + $0x204] sm:$0xf]  ;;  %v2822_v27 = vld [vmem:[%s5136_s0 + $0x224] sm:$0xf0]  ;;  %v3624_v14 = vld [vmem:[%s5135_s1 + $0x1d0] sm:$0xff] }
  0x55   :  { %v2825_v41 = vor.u32 %v3486_v26, %v2822_v27  ;;  %v3608_v25 = vld [vmem:[%s5135_s1 + $0x150] sm:$0xff]  ;;  %v3503_v27 = vld [vmem:[%s5136_s0 + $0x28c] sm:$0xf] }
  0x56   :  { %v3632_v26 = vld [vmem:[%s5135_s1 + $0x210] sm:$0xff] }
  0x57   :  { %2186 = vmatpush.bf16.msra.mxu3 %v3624_v14 }
  0x58   :  { %2275 = vmatpush.bf16.msra.mxu0 %v3632_v26  ;;  %v2936_v26 = vld [vmem:[%s5136_s0 + $0x2e0] sm:$0xf] }
  0x61   :  { %1655 = vmatmul.bf16.vlgmr.msrb.gmra.mxu1 %v2565_v36  ;;  %1744 = vmatmul.bf16.vlgmr.msrb.gmra.mxu2 %v2569_v37 }
  0x62   :  { %1833 = vmatmul.bf16.vlgmr.msrb.gmra.mxu3 %v2573_v38  ;;  %v3610_v38 = vld [vmem:[%s5135_s1 + $0x160] sm:$0xff] }
  0x63   :  { %1922 = vmatmul.bf16.vlgmr.msrb.gmra.mxu0 %v2577_v39  ;;  %2006 = vmatpush.bf16.msra.mxu1 %v3610_v38 }
  0x67   :  { %2007 = vmatpush.bf16.msra.mxu1 %v3609_v20 }
  0x6b   :  { %2008 = vmatpush.bf16.msra.mxu1 %v3608_v25  ;;  %v2930_v25 = vld [vmem:[%s5136_s0 + $0x2fc] sm:$0xf0] }
  0x71   :  { %1660 = vmatmul.bf16.gmra.mxu1 %v2601_v52  ;;  %1749 = vmatmul.bf16.gmra.mxu2 %v2605_v53  ;;  %v2745_v52 = vor.u32 %v3467_v42, %v2742_v43  ;;  %v2749_v53 = vor.u32 %v3472_v45, %v2748_v44 }
  0x72   :  { %1838 = vmatmul.bf16.gmra.mxu3 %v2609_v54 }
  0x73   :  { %1927 = vmatmul.bf16.gmra.mxu0 %v2613_v55  ;;  %v2753_v55 = vor.u32 %v3468_v46, %v2750_v47 }
  0x81   :  { %1665 = vmatmul.bf16.gmra.mxu1 %v2637_v0  ;;  %1754 = vmatmul.bf16.gmra.mxu2 %v2641_v1  ;;  %v2784_v0 = vld [vmem:[%s5136_s0 + $0x1b8] sm:$0xf]  ;;  %v3481_v1 = vld [vmem:[%s5136_s0 + $0x1d8] sm:$0xf0] }
  0x82   :  { %1843 = vmatmul.bf16.gmra.mxu3 %v2645_v2  ;;  %v3477_v2 = vld [vmem:[%s5136_s0 + $0x1bc] sm:$0xf]  ;;  %v2785_v9 = vor.u32 %v3481_v1, %v2784_v0 }
  0x83   :  { %1932 = vmatmul.bf16.gmra.mxu0 %v2649_v3  ;;  %v2786_v3 = vld [vmem:[%s5136_s0 + $0x1dc] sm:$0xf0] }
  0x84   :  { %v2789_v11 = vor.u32 %v3477_v2, %v2786_v3  ;;  %v2853_v2 = vor.u32 %v3494_v48, %v2850_v49  ;;  %v3509_v48 = vld [vmem:[%s5136_s0 + $0x2b8] sm:$0xf0] }
  0x91   :  { %1670 = vmatmul.bf16.gmra.mxu1 %v2673_v16  ;;  %1759 = vmatmul.bf16.gmra.mxu2 %v2677_v17 }
  0x92   :  { %1848 = vmatmul.bf16.gmra.mxu3 %v2681_v18 }
  0x93   :  { %1937 = vmatmul.bf16.gmra.mxu0 %v2685_v19 }
  0x9e   :  { %v4150_v30 = vpop.f32.mrf.mxu1 }
  0xa0   :  { %v4152_v33 = vpop.f32.mrf.mxu0 }
  0xa1   :  { %1675 = vmatmul.bf16.gmra.mxu1 %v2709_v28  ;;  %1764 = vmatmul.bf16.gmra.mxu2 %v2713_v29  ;;  %v2828_v28 = vld [vmem:[%s5136_s0 + $0x208] sm:$0xf]  ;;  %v3491_v29 = vld [vmem:[%s5136_s0 + $0x228] sm:$0xf0] }
  0xa2   :  { %1853 = vmatmul.bf16.gmra.mxu3 %v2717_v31  ;;  %v2829_v42 = vor.u32 %v3491_v29, %v2828_v28  ;;  %v2886_v28 = vld [vmem:[%s5136_s0 + $0x2ac] sm:$0xf0] }
  0xa3   :  { %1942 = vmatmul.bf16.gmra.mxu0 %v2721_v32  ;;  %v2892_v29 = vld [vmem:[%s5136_s0 + $0x290] sm:$0xf] }
  0xa4   :  { %v4160_v36 = vpop.f32.mrf.mxu2 }
  0xa5   :  { %v4162_v37 = vpop.f32.mrf.mxu3 }
  0xa6   :  { %v4167_v39 = vpop.f32.mrf.mxu1 }
  0xa8   :  { %v4169_v40 = vpop.f32.mrf.mxu0 }
  0xac   :  { %v4198_v50 = vpop.f32.mrf.mxu2 }
  0xad   :  { %v4200_v51 = vpop.f32.mrf.mxu3 }
  0xae   :  { %v4202_v54 = vpop.f32.mrf.mxu1 }
  0xb0   :  { %v4204_v57 = vpop.f32.mrf.mxu0 }
  0xb1   :  { %1680 = vmatmul.bf16.gmra.mxu1 %v2745_v52  ;;  %1769 = vmatmul.bf16.gmra.mxu2 %v2749_v53  ;;  %v2856_v52 = vld [vmem:[%s5136_s0 + $0x248] sm:$0xf]  ;;  %v3499_v53 = vld [vmem:[%s5136_s0 + $0x268] sm:$0xf0] }
  0xb2   :  { %1858 = vmatmul.bf16.gmra.mxu3 %v2753_v55  ;;  %v3495_v55 = vld [vmem:[%s5136_s0 + $0x24c] sm:$0xf]  ;;  %v2857_v3 = vor.u32 %v3499_v53, %v2856_v52 }
  0xb3   :  { %1947 = vmatmul.bf16.gmra.mxu0 %v2757_v56  ;;  %v2858_v56 = vld [vmem:[%s5136_s0 + $0x26c] sm:$0xf0] }
  0xb4   :  { %v4206_v58 = vpop.f32.mrf.mxu2  ;;  %v2861_v5 = vor.u32 %v3495_v55, %v2858_v56  ;;  %v2889_v55 = vor.u32 %v3503_v27, %v2886_v28  ;;  %v3518_v27 = vld [vmem:[%s5136_s0 + $0x300] sm:$0xf0] }
  0xb5   :  { %v4208_v59 = vpop.f32.mrf.mxu3 }
  0xb6   :  { %v4210_v60 = vpop.f32.mrf.mxu1 }
  0xb8   :  { %v4212_v61 = vpop.f32.mrf.mxu0 }
  0xbc   :  { %v4238_v6 = vpop.f32.mrf.mxu2 }
  0xbd   :  { %v4240_v7 = vpop.f32.mrf.mxu3 }
  0xbe   :  { %v4242_v10 = vpop.f32.mrf.mxu1 }
  0xc0   :  { %v4244_v13 = vpop.f32.mrf.mxu0 }
  0xc1   :  { %1685 = vmatmul.bf16.gmra.mxu1 %v2781_v8  ;;  %1774 = vmatmul.bf16.gmra.mxu2 %v2785_v9  ;;  %v2865_v8 = vor.u32 %v3500_v63, %v2864_v62 }
  0xc2   :  { %1863 = vmatmul.bf16.gmra.mxu3 %v2789_v11 }
  0xc3   :  { %1952 = vmatmul.bf16.gmra.mxu0 %v2793_v12  ;;  %v3616_v12 = vld [vmem:[%s5135_s1 + $0x190] sm:$0xff] }
  0xc4   :  { %v4252_v16 = vpop.f32.mrf.mxu2  ;;  %2097 = vmatpush.bf16.msra.mxu2 %v3616_v12 }
  0xc5   :  { %v4254_v17 = vpop.f32.mrf.mxu3 }
  0xc6   :  { %v4256_v18 = vpop.f32.mrf.mxu1 }
  0xc8   :  { %v4258_v19 = vpop.f32.mrf.mxu0 }
  0xcc   :  { %v4290_v31 = vpop.f32.mrf.mxu2 }
  0xcd   :  { %v4292_v32 = vpop.f32.mrf.mxu3 }
  0xce   :  { %v4294_v38 = vpop.f32.mrf.mxu1 }
  0xd0   :  { %v4296_v43 = vpop.f32.mrf.mxu0 }
  0xd1   :  { %1690 = vmatmul.bf16.gmra.mxu1 %v2817_v34  ;;  %1779 = vmatmul.bf16.gmra.mxu2 %v2821_v35  ;;  %v3508_v34 = vld [vmem:[%s5136_s0 + $0x2b0] sm:$0xf0] }
  0xd2   :  { %1868 = vmatmul.bf16.gmra.mxu3 %v2825_v41  ;;  %v3504_v35 = vld [vmem:[%s5136_s0 + $0x294] sm:$0xf]  ;;  %v2894_v41 = vld [vmem:[%s5136_s0 + $0x2b4] sm:$0xf0]  ;;  %v2893_v56 = vor.u32 %v3508_v34, %v2892_v29 }
  0xd3   :  { %1957 = vmatmul.bf16.gmra.mxu0 %v2829_v42  ;;  %v2900_v42 = vld [vmem:[%s5136_s0 + $0x298] sm:$0xf]  ;;  %v2897_v63 = vor.u32 %v3504_v35, %v2894_v41 }
  0xd4   :  { %v4298_v44 = vpop.f32.mrf.mxu2 }
  0xd5   :  { %v4300_v45 = vpop.f32.mrf.mxu3 }
  0xd6   :  { %v4302_v46 = vpop.f32.mrf.mxu1 }
  0xd8   :  { %v4304_v47 = vpop.f32.mrf.mxu0 }
  0xdc   :  { %v4330_v0 = vpop.f32.mrf.mxu2 }
  0xdd   :  { %v4332_v1 = vpop.f32.mrf.mxu3 }
  0xde   :  { %v1656_v4 = vpop.f32.mrf.mxu1 }
  0xdf   :  { %v1657_v9 = vadd.f32 %v1656_v4, %v4152_v33 }
  0xe0   :  { %v1923_v11 = vpop.f32.mrf.mxu0 }
  0xe1   :  { %1695 = vmatmul.bf16.gmra.mxu1 %v2853_v2  ;;  %1784 = vmatmul.bf16.gmra.mxu2 %v2857_v3  ;;  %v2901_v2 = vor.u32 %v3509_v48, %v2900_v42 }
  0xe2   :  { %1873 = vmatmul.bf16.gmra.mxu3 %v2861_v5 }
  0xe3   :  { %1962 = vmatmul.bf16.gmra.mxu0 %v2865_v8 }
  0xe4   :  { %v1745_v15 = vpop.f32.mrf.mxu2 }
  0xe5   :  { %v1746_v20 = vadd.f32 %v1745_v15, %v1657_v9  ;;  %v1834_v21 = vpop.f32.mrf.mxu3 }
  0xe6   :  { %v1658_v22 = vpop.f32.mrf.mxu1 }
  0xe7   :  { %v1835_v33 = vadd.f32 %v1834_v21, %v1746_v20  ;;  %v1659_v23 = vadd.f32 %v1658_v22, %v4169_v40  ;;  %v3512_v22 = vld [vmem:[%s5136_s0 + $0x2d4] sm:$0xf] }
  0xe8   :  { %v1925_v24 = vpop.f32.mrf.mxu0 }
  0xe9   :  { %v4354_v40 = vadd.f32 %v1923_v11, %v1835_v33 }
  0xec   :  { %v1747_v49 = vpop.f32.mrf.mxu2 }
  0xed   :  { %v1748_v52 = vadd.f32 %v1747_v49, %v1659_v23  ;;  %v1836_v53 = vpop.f32.mrf.mxu3  ;;  %v2928_v23 = vld [vmem:[%s5136_s0 + $0x2d8] sm:$0xf]  ;;  %v2937_v49 = vor.u32 %v3518_v27, %v2936_v26 }
  0xee   :  { %v1661_v62 = vpop.f32.mrf.mxu1 }
  0xef   :  { %v1837_v3 = vadd.f32 %v1836_v53, %v1748_v52  ;;  %v1662_v4 = vadd.f32 %v1661_v62, %v4204_v57  ;;  %v2922_v57 = vld [vmem:[%s5136_s0 + $0x2f4] sm:$0xf0]  ;;  %v3615_v62 = vld [vmem:[%s5135_s1 + $0x188] sm:$0xff] }
  0xf0   :  { %v1928_v5 = vpop.f32.mrf.mxu0  ;;  %v2925_v35 = vor.u32 %v3512_v22, %v2922_v57  ;;  %2098 = vmatpush.bf16.msra.mxu2 %v3615_v62  ;;  %v3526_v22 = vld [vmem:[%s5136_s0 + $0x340] sm:$0xf0] }
  0xf1   :  { %1700 = vmatmul.bf16.gmra.mxu1 %v2889_v55  ;;  %1789 = vmatmul.bf16.gmra.mxu2 %v2893_v56  ;;  %v4375_v8 = vadd.f32 %v1925_v24, %v1837_v3  ;;  %v3517_v24 = vld [vmem:[%s5136_s0 + $0x2f8] sm:$0xf0]  ;;  %v3522_v57 = vld [vmem:[%s5136_s0 + $0x324] sm:$0xf] }
  0xf2   :  { %1878 = vmatmul.bf16.gmra.mxu3 %v2897_v63  ;;  %v2929_v41 = vor.u32 %v3517_v24, %v2928_v23  ;;  %v3623_v63 = vld [vmem:[%s5135_s1 + $0x1c8] sm:$0xff] }
  0xf3   :  { %1967 = vmatmul.bf16.gmra.mxu0 %v2901_v2  ;;  %2187 = vmatpush.bf16.msra.mxu3 %v3623_v63  ;;  %v2966_v23 = vld [vmem:[%s5136_s0 + $0x344] sm:$0xf0] }
  0xf4   :  { %v1750_v9 = vpop.f32.mrf.mxu2  ;;  %v2972_v24 = vld [vmem:[%s5136_s0 + $0x328] sm:$0xf] }
  0xf5   :  { %v1751_v11 = vadd.f32 %v1750_v9, %v1662_v4  ;;  %v1839_v12 = vpop.f32.mrf.mxu3 }
  0xf6   :  { %v1663_v14 = vpop.f32.mrf.mxu1 }
  0xf7   :  { %v1840_v15 = vadd.f32 %v1839_v12, %v1751_v11  ;;  %v1664_v20 = vadd.f32 %v1663_v14, %v4212_v61  ;;  %v3513_v61 = vld [vmem:[%s5136_s0 + $0x2dc] sm:$0xf]  ;;  %v3607_v12 = vld [vmem:[%s5135_s1 + $0x148] sm:$0xff] }
  0xf8   :  { %v1930_v21 = vpop.f32.mrf.mxu0  ;;  %v2933_v48 = vor.u32 %v3513_v61, %v2930_v25  ;;  %v3631_v14 = vld [vmem:[%s5135_s1 + $0x208] sm:$0xff]  ;;  %2009 = vmatpush.bf16.msra.mxu1 %v3607_v12  ;;  %v3002_v12 = vld [vmem:[%s5136_s0 + $0x38c] sm:$0xf0] }
  0xf9   :  { %v4384_v33 = vadd.f32 %v1928_v5, %v1840_v15  ;;  %v3521_v15 = vld [vmem:[%s5136_s0 + $0x31c] sm:$0xf]  ;;  %2276 = vmatpush.bf16.msra.mxu0 %v3631_v14  ;;  %v3527_v61 = vld [vmem:[%s5136_s0 + $0x348] sm:$0xf0]  ;;  %v3008_v14 = vld [vmem:[%s5136_s0 + $0x370] sm:$0xf] }
  0xfc   :  { %v1752_v28 = vpop.f32.mrf.mxu2 }
  0xfd   :  { %v1753_v29 = vadd.f32 %v1752_v28, %v1664_v20  ;;  %v1841_v34 = vpop.f32.mrf.mxu3  ;;  %v2958_v20 = vld [vmem:[%s5136_s0 + $0x33c] sm:$0xf0] }
  0xfe   :  { %v1666_v42 = vpop.f32.mrf.mxu1  ;;  %v2961_v28 = vor.u32 %v3521_v15, %v2958_v20  ;;  %v3536_v15 = vld [vmem:[%s5136_s0 + $0x390] sm:$0xf0] }
  0xff   :  { %v1842_v52 = vadd.f32 %v1841_v34, %v1753_v29  ;;  %v1667_v53 = vadd.f32 %v1666_v42, %v4244_v13 }
 0x100   :  { %v1933_v55 = vpop.f32.mrf.mxu0 }
 0x101   :  { %1705 = vmatmul.bf16.gmra.mxu1 %v2925_v35  ;;  %1794 = vmatmul.bf16.gmra.mxu2 %v2929_v41  ;;  %v4405_v56 = vadd.f32 %v1930_v21, %v1842_v52  ;;  %v2964_v21 = vld [vmem:[%s5136_s0 + $0x320] sm:$0xf]  ;;  %v2969_v35 = vor.u32 %v3522_v57, %v2966_v23  ;;  %v2973_v41 = vor.u32 %v3527_v61, %v2972_v24 }
 0x102   :  { %1883 = vmatmul.bf16.gmra.mxu3 %v2933_v48  ;;  %v2965_v29 = vor.u32 %v3526_v22, %v2964_v21 }
 0x103   :  { %1972 = vmatmul.bf16.gmra.mxu0 %v2937_v49 }
 0x104   :  { %v1755_v2 = vpop.f32.mrf.mxu2 }
 0x105   :  { %v1756_v3 = vadd.f32 %v1755_v2, %v1667_v53  ;;  %v1844_v13 = vpop.f32.mrf.mxu3 }
 0x106   :  { %v1668_v4 = vpop.f32.mrf.mxu1 }
 0x107   :  { %v1845_v5 = vadd.f32 %v1844_v13, %v1756_v3  ;;  %v1669_v9 = vadd.f32 %v1668_v4, %v4258_v19  ;;  %v3530_v4 = vld [vmem:[%s5136_s0 + $0x364] sm:$0xf] }
 0x108   :  { %v1935_v11 = vpop.f32.mrf.mxu0 }
 0x109   :  { %v4426_v19 = vadd.f32 %v1933_v55, %v1845_v5 }
 0x10c   :  { %v1757_v25 = vpop.f32.mrf.mxu2 }
 0x10d   :  { %v1758_v26 = vadd.f32 %v1757_v25, %v1669_v9  ;;  %v1846_v27 = vpop.f32.mrf.mxu3  ;;  %v3000_v9 = vld [vmem:[%s5136_s0 + $0x368] sm:$0xf]  ;;  %v3009_v25 = vor.u32 %v3536_v15, %v3008_v14 }
 0x10e   :  { %v1671_v34 = vpop.f32.mrf.mxu1 }
 0x10f   :  { %v1847_v42 = vadd.f32 %v1846_v27, %v1758_v26  ;;  %v1672_v48 = vadd.f32 %v1671_v34, %v4296_v43  ;;  %v2994_v43 = vld [vmem:[%s5136_s0 + $0x384] sm:$0xf0]  ;;  %v3622_v34 = vld [vmem:[%s5135_s1 + $0x1c0] sm:$0xff] }
 0x110   :  { %v1938_v49 = vpop.f32.mrf.mxu0  ;;  %v2997_v57 = vor.u32 %v3530_v4, %v2994_v43  ;;  %2188 = vmatpush.bf16.msra.mxu3 %v3622_v34  ;;  %v3544_v4 = vld [vmem:[%s5136_s0 + $0x3d0] sm:$0xf0] }
 0x111   :  { %1710 = vmatmul.bf16.gmra.mxu1 %v2961_v28  ;;  %1799 = vmatmul.bf16.gmra.mxu2 %v2965_v29  ;;  %v4447_v52 = vadd.f32 %v1935_v11, %v1847_v42  ;;  %v3535_v11 = vld [vmem:[%s5136_s0 + $0x388] sm:$0xf0]  ;;  %v3614_v29 = vld [vmem:[%s5135_s1 + $0x180] sm:$0xff]  ;;  %v3540_v43 = vld [vmem:[%s5136_s0 + $0x3b4] sm:$0xf] }
 0x112   :  { %1888 = vmatmul.bf16.gmra.mxu3 %v2969_v35  ;;  %v3001_v23 = vor.u32 %v3535_v11, %v3000_v9  ;;  %2099 = vmatpush.bf16.msra.mxu2 %v3614_v29  ;;  %v3038_v11 = vld [vmem:[%s5136_s0 + $0x3d4] sm:$0xf0] }
 0x113   :  { %1977 = vmatmul.bf16.gmra.mxu0 %v2973_v41 }
 0x114   :  { %v1760_v53 = vpop.f32.mrf.mxu2 }
 0x115   :  { %v1761_v55 = vadd.f32 %v1760_v53, %v1672_v48  ;;  %v1849_v62 = vpop.f32.mrf.mxu3 }
 0x116   :  { %v1673_v63 = vpop.f32.mrf.mxu1 }
 0x117   :  { %v1850_v2 = vadd.f32 %v1849_v62, %v1761_v55  ;;  %v1674_v3 = vadd.f32 %v1673_v63, %v4304_v47  ;;  %v3531_v47 = vld [vmem:[%s5136_s0 + $0x36c] sm:$0xf]  ;;  %v3606_v62 = vld [vmem:[%s5135_s1 + $0x140] sm:$0xff] }
 0x118   :  { %v1940_v13 = vpop.f32.mrf.mxu0  ;;  %v3005_v61 = vor.u32 %v3531_v47, %v3002_v12  ;;  %v3630_v63 = vld [vmem:[%s5135_s1 + $0x200] sm:$0xff]  ;;  %2010 = vmatpush.bf16.msra.mxu1 %v3606_v62  ;;  %v3044_v47 = vld [vmem:[%s5136_s0 + $0x3b8] sm:$0xf]  ;;  %v3545_v12 = vld [vmem:[%s5136_s0 + $0x3d8] sm:$0xf0] }
 0x119   :  { %v4456_v5 = vadd.f32 %v1938_v49, %v1850_v2  ;;  %v3030_v2 = vld [vmem:[%s5136_s0 + $0x3cc] sm:$0xf0]  ;;  %2277 = vmatpush.bf16.msra.mxu0 %v3630_v63  ;;  %v3549_v62 = vld [vmem:[%s5136_s0 + $0x3fc] sm:$0xf] }
 0x11c   :  { %v1762_v20 = vpop.f32.mrf.mxu2 }
 0x11d   :  { %v1763_v21 = vadd.f32 %v1762_v20, %v1674_v3  ;;  %v1851_v22 = vpop.f32.mrf.mxu3 }
 0x11e   :  { %v1676_v24 = vpop.f32.mrf.mxu1 }
 0x11f   :  { %v1852_v26 = vadd.f32 %v1851_v22, %v1763_v21  ;;  %v1677_v35 = vadd.f32 %v1676_v24, %v4150_v30  ;;  %v3539_v30 = vld [vmem:[%s5136_s0 + $0x3ac] sm:$0xf] }
 0x120   :  { %v1943_v27 = vpop.f32.mrf.mxu0  ;;  %v3033_v21 = vor.u32 %v3539_v30, %v3030_v2  ;;  %v3074_v30 = vld [vmem:[%s5136_s0 + $0x41c] sm:$0xf0] }
 0x121   :  { %1715 = vmatmul.bf16.gmra.mxu1 %v2997_v57  ;;  %1804 = vmatmul.bf16.gmra.mxu2 %v3001_v23  ;;  %v4476_v28 = vadd.f32 %v1940_v13, %v1852_v26  ;;  %v3036_v13 = vld [vmem:[%s5136_s0 + $0x3b0] sm:$0xf]  ;;  %v3041_v23 = vor.u32 %v3540_v43, %v3038_v11  ;;  %v3080_v2 = vld [vmem:[%s5136_s0 + $0x400] sm:$0xf] }
 0x122   :  { %1893 = vmatmul.bf16.gmra.mxu3 %v3005_v61  ;;  %v3037_v22 = vor.u32 %v3544_v4, %v3036_v13  ;;  %v3554_v13 = vld [vmem:[%s5136_s0 + $0x420] sm:$0xf0] }
 0x123   :  { %1982 = vmatmul.bf16.gmra.mxu0 %v3009_v25 }
 0x124   :  { %v1765_v41 = vpop.f32.mrf.mxu2 }
 0x125   :  { %v1766_v42 = vadd.f32 %v1765_v41, %v1677_v35  ;;  %v1854_v48 = vpop.f32.mrf.mxu3 }
 0x126   :  { %v1678_v49 = vpop.f32.mrf.mxu1 }
 0x127   :  { %v1855_v53 = vadd.f32 %v1854_v48, %v1766_v42  ;;  %v1679_v9 = vadd.f32 %v1678_v49, %v4167_v39  ;;  %v3045_v39 = vor.u32 %v3545_v12, %v3044_v47  ;;  %v3548_v48 = vld [vmem:[%s5136_s0 + $0x3f4] sm:$0xf]  ;;  %v3066_v49 = vld [vmem:[%s5136_s0 + $0x414] sm:$0xf0] }
 0x128   :  { %v1945_v55 = vpop.f32.mrf.mxu0  ;;  %v3069_v11 = vor.u32 %v3548_v48, %v3066_v49  ;;  %v3110_v48 = vld [vmem:[%s5136_s0 + $0x464] sm:$0xf0] }
 0x129   :  { %v4497_v3 = vadd.f32 %v1943_v27, %v1855_v53  ;;  %v3116_v49 = vld [vmem:[%s5136_s0 + $0x448] sm:$0xf] }
 0x12c   :  { %v1767_v14 = vpop.f32.mrf.mxu2 }
 0x12d   :  { %v1768_v15 = vadd.f32 %v1767_v14, %v1679_v9  ;;  %v1856_v20 = vpop.f32.mrf.mxu3  ;;  %v3077_v14 = vor.u32 %v3549_v62, %v3074_v30 }
 0x12e   :  { %v1681_v57 = vpop.f32.mrf.mxu1 }
 0x12f   :  { %v1857_v24 = vadd.f32 %v1856_v20, %v1768_v15  ;;  %v1682_v26 = vadd.f32 %v1681_v57, %v4202_v54  ;;  %v3072_v54 = vld [vmem:[%s5136_s0 + $0x3f8] sm:$0xf] }
 0x130   :  { %v1948_v61 = vpop.f32.mrf.mxu0 }
 0x131   :  { %1720 = vmatmul.bf16.gmra.mxu1 %v3033_v21  ;;  %1809 = vmatmul.bf16.gmra.mxu2 %v3037_v22  ;;  %v4518_v25 = vadd.f32 %v1945_v55, %v1857_v24  ;;  %v3553_v55 = vld [vmem:[%s5136_s0 + $0x418] sm:$0xf0] }
 0x132   :  { %1898 = vmatmul.bf16.gmra.mxu3 %v3041_v23  ;;  %v3073_v47 = vor.u32 %v3553_v55, %v3072_v54  ;;  %v3563_v54 = vld [vmem:[%s5136_s0 + $0x468] sm:$0xf0] }
 0x133   :  { %1987 = vmatmul.bf16.gmra.mxu0 %v3045_v39 }
 0x134   :  { %v1770_v27 = vpop.f32.mrf.mxu2 }
 0x135   :  { %v1771_v29 = vadd.f32 %v1770_v27, %v1682_v26  ;;  %v1859_v34 = vpop.f32.mrf.mxu3  ;;  %v3557_v27 = vld [vmem:[%s5136_s0 + $0x43c] sm:$0xf] }
 0x136   :  { %v1683_v35 = vpop.f32.mrf.mxu1 }
 0x137   :  { %v1860_v41 = vadd.f32 %v1859_v34, %v1771_v29  ;;  %v1684_v63 = vadd.f32 %v1683_v35, %v4210_v60  ;;  %v3081_v60 = vor.u32 %v3554_v13, %v3080_v2  ;;  %v3102_v29 = vld [vmem:[%s5136_s0 + $0x45c] sm:$0xf0]  ;;  %v3562_v35 = vld [vmem:[%s5136_s0 + $0x460] sm:$0xf0] }
 0x138   :  { %v1950_v42 = vpop.f32.mrf.mxu0  ;;  %v3105_v30 = vor.u32 %v3557_v27, %v3102_v29  ;;  %v2586_v27 = vld [vmem:[%s5136_s0 + $0x3c] sm:$0xf0] }
 0x139   :  { %v4527_v53 = vadd.f32 %v1948_v61, %v1860_v41  ;;  %v3558_v41 = vld [vmem:[%s5136_s0 + $0x444] sm:$0xf]  ;;  %v2592_v29 = vld [vmem:[%s5136_s0 + $0x20] sm:$0xf] }
 0x13c   :  { %v1772_v4 = vpop.f32.mrf.mxu2 }
 0x13d   :  { %v1773_v43 = vadd.f32 %v1772_v4, %v1684_v63  ;;  %v1861_v9 = vpop.f32.mrf.mxu3  ;;  %v3113_v4 = vor.u32 %v3558_v41, %v3110_v48 }
 0x13e   :  { %v1686_v12 = vpop.f32.mrf.mxu1 }
 0x13f   :  { %v1862_v15 = vadd.f32 %v1861_v9, %v1773_v43  ;;  %v1687_v22 = vadd.f32 %v1686_v12, %v4242_v10  ;;  %v3108_v10 = vld [vmem:[%s5136_s0 + $0x440] sm:$0xf] }
 0x140   :  { %v1953_v20 = vpop.f32.mrf.mxu0  ;;  %v3109_v2 = vor.u32 %v3562_v35, %v3108_v10  ;;  %v3430_v10 = vld [vmem:[%s5136_s0 + $0x40] sm:$0xf0] }
 0x141   :  { %1725 = vmatmul.bf16.gmra.mxu1 %v3069_v11  ;;  %1814 = vmatmul.bf16.gmra.mxu2 %v3073_v47  ;;  %v4548_v21 = vadd.f32 %v1950_v42, %v1862_v15 }
 0x142   :  { %1903 = vmatmul.bf16.gmra.mxu3 %v3077_v14 }
 0x143   :  { %1992 = vmatmul.bf16.gmra.mxu0 %v3081_v60 }
 0x144   :  { %v1775_v57 = vpop.f32.mrf.mxu2 }
 0x145   :  { %v1776_v23 = vadd.f32 %v1775_v57, %v1687_v22  ;;  %v1864_v39 = vpop.f32.mrf.mxu3  ;;  %v3424_v57 = vld [vmem:[%s5136_s0 + $0x14] sm:$0xf] }
 0x146   :  { %v1688_v24 = vpop.f32.mrf.mxu1 }
 0x147   :  { %v1865_v61 = vadd.f32 %v1864_v39, %v1776_v23  ;;  %v1689_v42 = vadd.f32 %v1688_v24, %v4256_v18  ;;  %v3117_v18 = vor.u32 %v3563_v54, %v3116_v49  ;;  %v2578_v23 = vld [vmem:[%s5136_s0 + $0x34] sm:$0xf0]  ;;  %v3429_v24 = vld [vmem:[%s5136_s0 + $0x38] sm:$0xf0] }
 0x148   :  { %v1955_v26 = vpop.f32.mrf.mxu0  ;;  %v2581_v48 = vor.u32 %v3424_v57, %v2578_v23  ;;  %v2622_v57 = vld [vmem:[%s5136_s0 + $0x84] sm:$0xf0] }
 0x149   :  { %v4557_v34 = vadd.f32 %v1953_v20, %v1865_v61  ;;  %v3425_v61 = vld [vmem:[%s5136_s0 + $0x1c] sm:$0xf]  ;;  %v2628_v23 = vld [vmem:[%s5136_s0 + $0x68] sm:$0xf] }
 0x14c   :  { %v1777_v55 = vpop.f32.mrf.mxu2 }
 0x14d   :  { %v1778_v62 = vadd.f32 %v1777_v55, %v1689_v42  ;;  %v1866_v63 = vpop.f32.mrf.mxu3  ;;  %v2589_v55 = vor.u32 %v3425_v61, %v2586_v27 }
 0x14e   :  { %v1691_v13 = vpop.f32.mrf.mxu1 }
 0x14f   :  { %v1867_v43 = vadd.f32 %v1866_v63, %v1778_v62  ;;  %v1692_v47 = vadd.f32 %v1691_v13, %v4294_v38  ;;  %v2584_v38 = vld [vmem:[%s5136_s0 + $0x18] sm:$0xf] }
 0x150   :  { %v1958_v9 = vpop.f32.mrf.mxu0  ;;  %v2585_v49 = vor.u32 %v3429_v24, %v2584_v38  ;;  %v3439_v38 = vld [vmem:[%s5136_s0 + $0x88] sm:$0xf0] }
 0x151   :  { %1730 = vmatmul.bf16.gmra.mxu1 %v3105_v30  ;;  %1819 = vmatmul.bf16.gmra.mxu2 %v3109_v2  ;;  %v4578_v11 = vadd.f32 %v1955_v26, %v1867_v43 }
 0x152   :  { %1908 = vmatmul.bf16.gmra.mxu3 %v3113_v4 }
 0x153   :  { %1997 = vmatmul.bf16.gmra.mxu0 %v3117_v18 }
 0x154   :  { %v1780_v12 = vpop.f32.mrf.mxu2 }
 0x155   :  { %v1781_v14 = vadd.f32 %v1780_v12, %v1692_v47  ;;  %v1869_v60 = vpop.f32.mrf.mxu3  ;;  %v3433_v12 = vld [vmem:[%s5136_s0 + $0x5c] sm:$0xf] }
 0x156   :  { %v1693_v15 = vpop.f32.mrf.mxu1 }
 0x157   :  { %v1870_v20 = vadd.f32 %v1869_v60, %v1781_v14  ;;  %v1694_v26 = vadd.f32 %v1693_v15, %v4302_v46  ;;  %v2593_v46 = vor.u32 %v3430_v10, %v2592_v29  ;;  %v2614_v14 = vld [vmem:[%s5136_s0 + $0x7c] sm:$0xf0]  ;;  %v3438_v15 = vld [vmem:[%s5136_s0 + $0x80] sm:$0xf0] }
 0x158   :  { %v1960_v22 = vpop.f32.mrf.mxu0  ;;  %v2617_v27 = vor.u32 %v3433_v12, %v2614_v14  ;;  %v2658_v12 = vld [vmem:[%s5136_s0 + $0xcc] sm:$0xf0] }
 0x159   :  { %v4587_v39 = vadd.f32 %v1958_v9, %v1870_v20  ;;  %v3434_v20 = vld [vmem:[%s5136_s0 + $0x64] sm:$0xf]  ;;  %v2664_v14 = vld [vmem:[%s5136_s0 + $0xb0] sm:$0xf] }
 0x15c   :  { %v1782_v35 = vpop.f32.mrf.mxu2 }
 0x15d   :  { %v1783_v41 = vadd.f32 %v1782_v35, %v1694_v26  ;;  %v1871_v42 = vpop.f32.mrf.mxu3  ;;  %v2625_v35 = vor.u32 %v3434_v20, %v2622_v57 }
 0x15e   :  { %v1696_v54 = vpop.f32.mrf.mxu1 }
 0x15f   :  { %v1872_v62 = vadd.f32 %v1871_v42, %v1783_v41  ;;  %v1697_v2 = vadd.f32 %v1696_v54, %v4160_v36  ;;  %v2620_v36 = vld [vmem:[%s5136_s0 + $0x60] sm:$0xf] }
 0x160   :  { %v1963_v63 = vpop.f32.mrf.mxu0  ;;  %v2621_v29 = vor.u32 %v3438_v15, %v2620_v36  ;;  %v3448_v36 = vld [vmem:[%s5136_s0 + $0xd0] sm:$0xf0] }
 0x161   :  { %2011 = vmatmul.bf16.vlgmr.msra.gmra.mxu1 %v2581_v48  ;;  %2100 = vmatmul.bf16.vlgmr.msra.gmra.mxu2 %v2585_v49  ;;  %v4608_v30 = vadd.f32 %v1960_v22, %v1872_v62 }
 0x162   :  { %2189 = vmatmul.bf16.vlgmr.msra.gmra.mxu3 %v2589_v55 }
 0x163   :  { %2278 = vmatmul.bf16.vlgmr.msra.gmra.mxu0 %v2593_v46 }
 0x164   :  { %v1785_v13 = vpop.f32.mrf.mxu2 }
 0x165   :  { %v1786_v4 = vadd.f32 %v1785_v13, %v1697_v2  ;;  %v1874_v18 = vpop.f32.mrf.mxu3  ;;  %v3442_v13 = vld [vmem:[%s5136_s0 + $0xa4] sm:$0xf] }
 0x166   :  { %v1698_v43 = vpop.f32.mrf.mxu1 }
 0x167   :  { %v1875_v9 = vadd.f32 %v1874_v18, %v1786_v4  ;;  %v1699_v22 = vadd.f32 %v1698_v43, %v4198_v50  ;;  %v2629_v50 = vor.u32 %v3439_v38, %v2628_v23  ;;  %v2650_v4 = vld [vmem:[%s5136_s0 + $0xc4] sm:$0xf0]  ;;  %v3447_v43 = vld [vmem:[%s5136_s0 + $0xc8] sm:$0xf0] }
 0x168   :  { %v1965_v47 = vpop.f32.mrf.mxu0  ;;  %v2653_v57 = vor.u32 %v3442_v13, %v2650_v4  ;;  %v2694_v13 = vld [vmem:[%s5136_s0 + $0x114] sm:$0xf0] }
 0x169   :  { %v4617_v60 = vadd.f32 %v1963_v63, %v1875_v9  ;;  %v3443_v9 = vld [vmem:[%s5136_s0 + $0xac] sm:$0xf]  ;;  %v2700_v4 = vld [vmem:[%s5136_s0 + $0xf8] sm:$0xf] }
 0x16c   :  { %v1787_v24 = vpop.f32.mrf.mxu2 }
 0x16d   :  { %v1788_v61 = vadd.f32 %v1787_v24, %v1699_v22  ;;  %v1876_v26 = vpop.f32.mrf.mxu3  ;;  %v2661_v24 = vor.u32 %v3443_v9, %v2658_v12 }
 0x16e   :  { %v1701_v10 = vpop.f32.mrf.mxu1 }
 0x16f   :  { %v1877_v41 = vadd.f32 %v1876_v26, %v1788_v61  ;;  %v1702_v49 = vadd.f32 %v1701_v10, %v4206_v58  ;;  %v2656_v58 = vld [vmem:[%s5136_s0 + $0xa8] sm:$0xf] }
 0x170   :  { %v1968_v42 = vpop.f32.mrf.mxu0  ;;  %v2657_v23 = vor.u32 %v3447_v43, %v2656_v58  ;;  %v3457_v58 = vld [vmem:[%s5136_s0 + $0x118] sm:$0xf0] }
 0x171   :  { %2016 = vmatmul.bf16.gmra.mxu1 %v2617_v27  ;;  %2105 = vmatmul.bf16.gmra.mxu2 %v2621_v29  ;;  %v4638_v48 = vadd.f32 %v1965_v47, %v1877_v41 }
 0x172   :  { %2194 = vmatmul.bf16.gmra.mxu3 %v2625_v35 }
 0x173   :  { %2283 = vmatmul.bf16.gmra.mxu0 %v2629_v50 }
 0x174   :  { %v1790_v54 = vpop.f32.mrf.mxu2 }
 0x175   :  { %v1791_v55 = vadd.f32 %v1790_v54, %v1702_v49  ;;  %v1879_v46 = vpop.f32.mrf.mxu3  ;;  %v3451_v54 = vld [vmem:[%s5136_s0 + $0xec] sm:$0xf] }
 0x176   :  { %v1703_v62 = vpop.f32.mrf.mxu1 }
 0x177   :  { %v1880_v63 = vadd.f32 %v1879_v46, %v1791_v55  ;;  %v1704_v47 = vadd.f32 %v1703_v62, %v4238_v6  ;;  %v2665_v6 = vor.u32 %v3448_v36, %v2664_v14  ;;  %v2686_v55 = vld [vmem:[%s5136_s0 + $0x10c] sm:$0xf0]  ;;  %v3456_v62 = vld [vmem:[%s5136_s0 + $0x110] sm:$0xf0] }
 0x178   :  { %v1970_v2 = vpop.f32.mrf.mxu0  ;;  %v2689_v12 = vor.u32 %v3451_v54, %v2686_v55  ;;  %v2730_v54 = vld [vmem:[%s5136_s0 + $0x15c] sm:$0xf0] }
 0x179   :  { %v4647_v18 = vadd.f32 %v1968_v42, %v1880_v63  ;;  %v3452_v63 = vld [vmem:[%s5136_s0 + $0xf4] sm:$0xf]  ;;  %v2736_v55 = vld [vmem:[%s5136_s0 + $0x140] sm:$0xf] }
 0x17c   :  { %v1792_v15 = vpop.f32.mrf.mxu2 }
 0x17d   :  { %v1793_v20 = vadd.f32 %v1792_v15, %v1704_v47  ;;  %v1881_v22 = vpop.f32.mrf.mxu3  ;;  %v2697_v15 = vor.u32 %v3452_v63, %v2694_v13 }
 0x17e   :  { %v1706_v38 = vpop.f32.mrf.mxu1 }
 0x17f   :  { %v1882_v61 = vadd.f32 %v1881_v22, %v1793_v20  ;;  %v1707_v29 = vadd.f32 %v1706_v38, %v4252_v16  ;;  %v2692_v16 = vld [vmem:[%s5136_s0 + $0xf0] sm:$0xf] }
 0x180   :  { %v1973_v26 = vpop.f32.mrf.mxu0  ;;  %v2693_v14 = vor.u32 %v3456_v62, %v2692_v16  ;;  %v3466_v16 = vld [vmem:[%s5136_s0 + $0x160] sm:$0xf0] }
 0x181   :  { %2021 = vmatmul.bf16.gmra.mxu1 %v2653_v57  ;;  %2110 = vmatmul.bf16.gmra.mxu2 %v2657_v23  ;;  %v4668_v27 = vadd.f32 %v1970_v2, %v1882_v61 }
 0x182   :  { %2199 = vmatmul.bf16.gmra.mxu3 %v2661_v24 }
 0x183   :  { %2288 = vmatmul.bf16.gmra.mxu0 %v2665_v6 }
 0x184   :  { %v1795_v10 = vpop.f32.mrf.mxu2 }
 0x185   :  { %v1796_v35 = vadd.f32 %v1795_v10, %v1707_v29  ;;  %v1884_v50 = vpop.f32.mrf.mxu3  ;;  %v3460_v10 = vld [vmem:[%s5136_s0 + $0x134] sm:$0xf] }
 0x186   :  { %v1708_v41 = vpop.f32.mrf.mxu1 }
 0x187   :  { %v1885_v42 = vadd.f32 %v1884_v50, %v1796_v35  ;;  %v1709_v2 = vadd.f32 %v1708_v41, %v4290_v31  ;;  %v2701_v31 = vor.u32 %v3457_v58, %v2700_v4  ;;  %v2722_v35 = vld [vmem:[%s5136_s0 + $0x154] sm:$0xf0]  ;;  %v3465_v41 = vld [vmem:[%s5136_s0 + $0x158] sm:$0xf0] }
 0x188   :  { %v1975_v49 = vpop.f32.mrf.mxu0  ;;  %v2725_v13 = vor.u32 %v3460_v10, %v2722_v35  ;;  %v2766_v10 = vld [vmem:[%s5136_s0 + $0x1a4] sm:$0xf0] }
 0x189   :  { %v4677_v46 = vadd.f32 %v1973_v26, %v1885_v42  ;;  %v3461_v42 = vld [vmem:[%s5136_s0 + $0x13c] sm:$0xf]  ;;  %v2772_v35 = vld [vmem:[%s5136_s0 + $0x188] sm:$0xf] }
 0x18c   :  { %v1797_v43 = vpop.f32.mrf.mxu2 }
 0x18d   :  { %v1798_v9 = vadd.f32 %v1797_v43, %v1709_v2  ;;  %v1886_v47 = vpop.f32.mrf.mxu3  ;;  %v2733_v43 = vor.u32 %v3461_v42, %v2730_v54 }
 0x18e   :  { %v1711_v36 = vpop.f32.mrf.mxu1 }
 0x18f   :  { %v1887_v20 = vadd.f32 %v1886_v47, %v1798_v9  ;;  %v1712_v23 = vadd.f32 %v1711_v36, %v4298_v44  ;;  %v2728_v44 = vld [vmem:[%s5136_s0 + $0x138] sm:$0xf] }
 0x190   :  { %v1978_v22 = vpop.f32.mrf.mxu0  ;;  %v2729_v4 = vor.u32 %v3465_v41, %v2728_v44  ;;  %v3475_v44 = vld [vmem:[%s5136_s0 + $0x1a8] sm:$0xf0] }
 0x191   :  { %2026 = vmatmul.bf16.gmra.mxu1 %v2689_v12  ;;  %2115 = vmatmul.bf16.gmra.mxu2 %v2693_v14  ;;  %v4698_v57 = vadd.f32 %v1975_v49, %v1887_v20 }
 0x192   :  { %2204 = vmatmul.bf16.gmra.mxu3 %v2697_v15 }
 0x193   :  { %2293 = vmatmul.bf16.gmra.mxu0 %v2701_v31 }
 0x194   :  { %v1800_v38 = vpop.f32.mrf.mxu2 }
 0x195   :  { %v1801_v24 = vadd.f32 %v1800_v38, %v1712_v23  ;;  %v1889_v6 = vpop.f32.mrf.mxu3  ;;  %v3469_v38 = vld [vmem:[%s5136_s0 + $0x17c] sm:$0xf] }
 0x196   :  { %v1713_v61 = vpop.f32.mrf.mxu1 }
 0x197   :  { %v1890_v26 = vadd.f32 %v1889_v6, %v1801_v24  ;;  %v1714_v49 = vadd.f32 %v1713_v61, %v4330_v0  ;;  %v2737_v0 = vor.u32 %v3466_v16, %v2736_v55  ;;  %v2758_v24 = vld [vmem:[%s5136_s0 + $0x19c] sm:$0xf0]  ;;  %v3474_v61 = vld [vmem:[%s5136_s0 + $0x1a0] sm:$0xf0] }
 0x198   :  { %v1980_v29 = vpop.f32.mrf.mxu0  ;;  %v2761_v54 = vor.u32 %v3469_v38, %v2758_v24  ;;  %v2802_v38 = vld [vmem:[%s5136_s0 + $0x1ec] sm:$0xf0] }
 0x199   :  { %v4707_v50 = vadd.f32 %v1978_v22, %v1890_v26  ;;  %v3470_v26 = vld [vmem:[%s5136_s0 + $0x184] sm:$0xf]  ;;  %v2808_v24 = vld [vmem:[%s5136_s0 + $0x1d0] sm:$0xf] }
 0x19c   :  { %v1802_v62 = vpop.f32.mrf.mxu2 }
 0x19d   :  { %v1803_v63 = vadd.f32 %v1802_v62, %v1714_v49  ;;  %v1891_v2 = vpop.f32.mrf.mxu3  ;;  %v2769_v62 = vor.u32 %v3470_v26, %v2766_v10 }
 0x19e   :  { %v1716_v58 = vpop.f32.mrf.mxu1 }
 0x19f   :  { %v1892_v9 = vadd.f32 %v1891_v2, %v1803_v63  ;;  %v1717_v14 = vadd.f32 %v1716_v58, %v4162_v37  ;;  %v2764_v37 = vld [vmem:[%s5136_s0 + $0x180] sm:$0xf] }
 0x1a0   :  { %v1983_v47 = vpop.f32.mrf.mxu0  ;;  %v2765_v55 = vor.u32 %v3474_v61, %v2764_v37  ;;  %v3484_v37 = vld [vmem:[%s5136_s0 + $0x1f0] sm:$0xf0] }
 0x1a1   :  { %2031 = vmatmul.bf16.gmra.mxu1 %v2725_v13  ;;  %2120 = vmatmul.bf16.gmra.mxu2 %v2729_v4  ;;  %v4728_v12 = vadd.f32 %v1980_v29, %v1892_v9 }
 0x1a2   :  { %2209 = vmatmul.bf16.gmra.mxu3 %v2733_v43 }
 0x1a3   :  { %2298 = vmatmul.bf16.gmra.mxu0 %v2737_v0 }
 0x1a4   :  { %v1805_v36 = vpop.f32.mrf.mxu2 }
 0x1a5   :  { %v1806_v15 = vadd.f32 %v1805_v36, %v1717_v14  ;;  %v1894_v31 = vpop.f32.mrf.mxu3  ;;  %v3478_v36 = vld [vmem:[%s5136_s0 + $0x1c4] sm:$0xf] }
 0x1a6   :  { %v1718_v20 = vpop.f32.mrf.mxu1 }
 0x1a7   :  { %v1895_v22 = vadd.f32 %v1894_v31, %v1806_v15  ;;  %v1719_v29 = vadd.f32 %v1718_v20, %v4200_v51  ;;  %v2773_v51 = vor.u32 %v3475_v44, %v2772_v35  ;;  %v2794_v15 = vld [vmem:[%s5136_s0 + $0x1e4] sm:$0xf0]  ;;  %v3483_v20 = vld [vmem:[%s5136_s0 + $0x1e8] sm:$0xf0] }
 0x1a8   :  { %v1985_v23 = vpop.f32.mrf.mxu0  ;;  %v2797_v10 = vor.u32 %v3478_v36, %v2794_v15  ;;  %v2838_v36 = vld [vmem:[%s5136_s0 + $0x234] sm:$0xf0] }
 0x1a9   :  { %v4737_v6 = vadd.f32 %v1983_v47, %v1895_v22  ;;  %v3479_v22 = vld [vmem:[%s5136_s0 + $0x1cc] sm:$0xf]  ;;  %v2844_v15 = vld [vmem:[%s5136_s0 + $0x218] sm:$0xf] }
 0x1ac   :  { %v1807_v41 = vpop.f32.mrf.mxu2 }
 0x1ad   :  { %v1808_v42 = vadd.f32 %v1807_v41, %v1719_v29  ;;  %v1896_v49 = vpop.f32.mrf.mxu3  ;;  %v2805_v41 = vor.u32 %v3479_v22, %v2802_v38 }
 0x1ae   :  { %v1721_v16 = vpop.f32.mrf.mxu1 }
 0x1af   :  { %v1897_v63 = vadd.f32 %v1896_v49, %v1808_v42  ;;  %v1722_v4 = vadd.f32 %v1721_v16, %v4208_v59  ;;  %v2800_v59 = vld [vmem:[%s5136_s0 + $0x1c8] sm:$0xf] }
 0x1b0   :  { %v1988_v2 = vpop.f32.mrf.mxu0  ;;  %v2801_v35 = vor.u32 %v3483_v20, %v2800_v59  ;;  %v3493_v59 = vld [vmem:[%s5136_s0 + $0x238] sm:$0xf0] }
 0x1b1   :  { %2036 = vmatmul.bf16.gmra.mxu1 %v2761_v54  ;;  %2125 = vmatmul.bf16.gmra.mxu2 %v2765_v55  ;;  %v4758_v13 = vadd.f32 %v1985_v23, %v1897_v63 }
 0x1b2   :  { %2214 = vmatmul.bf16.gmra.mxu3 %v2769_v62 }
 0x1b3   :  { %2303 = vmatmul.bf16.gmra.mxu0 %v2773_v51 }
 0x1b4   :  { %v1810_v58 = vpop.f32.mrf.mxu2 }
 0x1b5   :  { %v1811_v43 = vadd.f32 %v1810_v58, %v1722_v4  ;;  %v1899_v0 = vpop.f32.mrf.mxu3  ;;  %v3487_v58 = vld [vmem:[%s5136_s0 + $0x20c] sm:$0xf] }
 0x1b6   :  { %v1723_v9 = vpop.f32.mrf.mxu1 }
 0x1b7   :  { %v1900_v47 = vadd.f32 %v1899_v0, %v1811_v43  ;;  %v1724_v23 = vadd.f32 %v1723_v9, %v4240_v7  ;;  %v2809_v7 = vor.u32 %v3484_v37, %v2808_v24  ;;  %v2830_v43 = vld [vmem:[%s5136_s0 + $0x22c] sm:$0xf0]  ;;  %v3492_v9 = vld [vmem:[%s5136_s0 + $0x230] sm:$0xf0] }
 0x1b8   :  { %v1990_v14 = vpop.f32.mrf.mxu0  ;;  %v2833_v38 = vor.u32 %v3487_v58, %v2830_v43  ;;  %v2874_v58 = vld [vmem:[%s5136_s0 + $0x27c] sm:$0xf0] }
 0x1b9   :  { %v4767_v31 = vadd.f32 %v1988_v2, %v1900_v47  ;;  %v3488_v47 = vld [vmem:[%s5136_s0 + $0x214] sm:$0xf]  ;;  %v2880_v43 = vld [vmem:[%s5136_s0 + $0x260] sm:$0xf] }
 0x1bc   :  { %v1812_v61 = vpop.f32.mrf.mxu2 }
 0x1bd   :  { %v1813_v26 = vadd.f32 %v1812_v61, %v1724_v23  ;;  %v1901_v29 = vpop.f32.mrf.mxu3  ;;  %v2841_v61 = vor.u32 %v3488_v47, %v2838_v36 }
 0x1be   :  { %v1726_v44 = vpop.f32.mrf.mxu1 }
 0x1bf   :  { %v1902_v42 = vadd.f32 %v1901_v29, %v1813_v26  ;;  %v1727_v55 = vadd.f32 %v1726_v44, %v4254_v17  ;;  %v2836_v17 = vld [vmem:[%s5136_s0 + $0x210] sm:$0xf] }
 0x1c0   :  { %v1993_v49 = vpop.f32.mrf.mxu0  ;;  %v2837_v24 = vor.u32 %v3492_v9, %v2836_v17  ;;  %v3502_v17 = vld [vmem:[%s5136_s0 + $0x280] sm:$0xf0] }
 0x1c1   :  { %2041 = vmatmul.bf16.gmra.mxu1 %v2797_v10  ;;  %2130 = vmatmul.bf16.gmra.mxu2 %v2801_v35  ;;  %v4788_v54 = vadd.f32 %v1990_v14, %v1902_v42 }
 0x1c2   :  { %2219 = vmatmul.bf16.gmra.mxu3 %v2805_v41 }
 0x1c3   :  { %2308 = vmatmul.bf16.gmra.mxu0 %v2809_v7 }
 0x1c4   :  { %v1815_v16 = vpop.f32.mrf.mxu2 }
 0x1c5   :  { %v1816_v62 = vadd.f32 %v1815_v16, %v1727_v55  ;;  %v1904_v51 = vpop.f32.mrf.mxu3  ;;  %v3496_v16 = vld [vmem:[%s5136_s0 + $0x254] sm:$0xf] }
 0x1c6   :  { %v1728_v63 = vpop.f32.mrf.mxu1 }
 0x1c7   :  { %v1905_v2 = vadd.f32 %v1904_v51, %v1816_v62  ;;  %v1729_v14 = vadd.f32 %v1728_v63, %v4292_v32  ;;  %v2845_v32 = vor.u32 %v3493_v59, %v2844_v15  ;;  %v2866_v62 = vld [vmem:[%s5136_s0 + $0x274] sm:$0xf0]  ;;  %v3501_v63 = vld [vmem:[%s5136_s0 + $0x278] sm:$0xf0] }
 0x1c8   :  { %v1995_v4 = vpop.f32.mrf.mxu0  ;;  %v2869_v36 = vor.u32 %v3496_v16, %v2866_v62  ;;  %v2916_v16 = vld [vmem:[%s5136_s0 + $0x2a8] sm:$0xf]  ;;  %v3511_v62 = vld [vmem:[%s5136_s0 + $0x2c8] sm:$0xf0] }
 0x1c9   :  { %v4797_v0 = vadd.f32 %v1993_v49, %v1905_v2  ;;  %v3497_v2 = vld [vmem:[%s5136_s0 + $0x25c] sm:$0xf] }
 0x1cc   :  { %v1817_v20 = vpop.f32.mrf.mxu2 }
 0x1cd   :  { %v1818_v22 = vadd.f32 %v1817_v20, %v1729_v14  ;;  %v1906_v23 = vpop.f32.mrf.mxu3  ;;  %v2877_v20 = vor.u32 %v3497_v2, %v2874_v58 }
 0x1ce   :  { %v1731_v37 = vpop.f32.mrf.mxu1 }
 0x1cf   :  { %v1907_v26 = vadd.f32 %v1906_v23, %v1818_v22  ;;  %v1732_v35 = vadd.f32 %v1731_v37, %v4300_v45  ;;  %v2872_v45 = vld [vmem:[%s5136_s0 + $0x258] sm:$0xf] }
 0x1d0   :  { %v1998_v29 = vpop.f32.mrf.mxu0  ;;  %v2873_v15 = vor.u32 %v3501_v63, %v2872_v45  ;;  %v4879_v63 = vld [vmem:[%s5137_s2] ss:$0 sm:$0xff] }
 0x1d1   :  { %2046 = vmatmul.bf16.gmra.mxu1 %v2833_v38  ;;  %2135 = vmatmul.bf16.gmra.mxu2 %v2837_v24  ;;  %v4818_v10 = vadd.f32 %v1995_v4, %v1907_v26 }
 0x1d2   :  { %2224 = vmatmul.bf16.gmra.mxu3 %v2841_v61 }
 0x1d3   :  { %2313 = vmatmul.bf16.gmra.mxu0 %v2845_v32 }
 0x1d4   :  { %v1820_v44 = vpop.f32.mrf.mxu2 }
 0x1d5   :  { %v1821_v41 = vadd.f32 %v1820_v44, %v1732_v35  ;;  %v1909_v7 = vpop.f32.mrf.mxu3  ;;  %v3505_v44 = vld [vmem:[%s5136_s0 + $0x29c] sm:$0xf] }
 0x1d6   :  { %v1733_v42 = vpop.f32.mrf.mxu1 }
 0x1d7   :  { %v1910_v49 = vadd.f32 %v1909_v7, %v1821_v41  ;;  %v1734_v4 = vadd.f32 %v1733_v42, %v4332_v1  ;;  %v2881_v1 = vor.u32 %v3502_v17, %v2880_v43  ;;  %v2902_v41 = vld [vmem:[%s5136_s0 + $0x2bc] sm:$0xf0]  ;;  %v3506_v42 = vld [vmem:[%s5136_s0 + $0x2a4] sm:$0xf] }
 0x1d8   :  { %v2000_v55 = vpop.f32.mrf.mxu0  ;;  %v2908_v7 = vld [vmem:[%s5136_s0 + $0x2a0] sm:$0xf]  ;;  %v2905_v58 = vor.u32 %v3505_v44, %v2902_v41  ;;  %v3514_v44 = vld [vmem:[%s5136_s0 + $0x2e4] sm:$0xf]  ;;  %v2944_v41 = vld [vmem:[%s5136_s0 + $0x2e8] sm:$0xf] }
 0x1d9   :  { %v4827_v51 = vadd.f32 %v1998_v29, %v1910_v49 }
 0x1dc   :  { %v1822_v9 = vpop.f32.mrf.mxu2 }
 0x1dd   :  { %v1823_v47 = vadd.f32 %v1822_v9, %v1734_v4  ;;  %v1911_v14 = vpop.f32.mrf.mxu3 }
 0x1de   :  { %v2012_v59 = vpop.f32.mrf.mxu1 }
 0x1df   :  { %v1912_v22 = vadd.f32 %v1911_v14, %v1823_v47  ;;  %v2013_v24 = vadd.f32 %v2012_v59, %v4354_v40  ;;  %v3510_v40 = vld [vmem:[%s5136_s0 + $0x2c0] sm:$0xf0]  ;;  %v2917_v47 = vor.u32 %v3511_v62, %v2916_v16  ;;  %v3520_v16 = vld [vmem:[%s5136_s0 + $0x310] sm:$0xf0] }
 0x1e0   :  { %v2279_v23 = vpop.f32.mrf.mxu0  ;;  %v2909_v43 = vor.u32 %v3510_v40, %v2908_v7  ;;  %v3519_v7 = vld [vmem:[%s5136_s0 + $0x308] sm:$0xf0] }
 0x1e1   :  { %2051 = vmatmul.bf16.gmra.mxu1 %v2869_v36  ;;  %2140 = vmatmul.bf16.gmra.mxu2 %v2873_v15  ;;  %v4848_v38 = vadd.f32 %v2000_v55, %v1912_v22  ;;  %v2910_v55 = vld [vmem:[%s5136_s0 + $0x2c4] sm:$0xf0]  ;;  %v3515_v40 = vld [vmem:[%s5136_s0 + $0x2ec] sm:$0xf] }
 0x1e2   :  { %2229 = vmatmul.bf16.gmra.mxu3 %v2877_v20  ;;  %v2913_v9 = vor.u32 %v3506_v42, %v2910_v55  ;;  %v2952_v55 = vld [vmem:[%s5136_s0 + $0x2f0] sm:$0xf] }
 0x1e3   :  { %2318 = vmatmul.bf16.gmra.mxu0 %v2881_v1 }
 0x1e4   :  { %v2101_v37 = vpop.f32.mrf.mxu2 }
 0x1e5   :  { %v2102_v61 = vadd.f32 %v2101_v37, %v2013_v24  ;;  %v2190_v32 = vpop.f32.mrf.mxu3 }
 0x1e6   :  { %v2014_v26 = vpop.f32.mrf.mxu1 }
 0x1e7   :  { %v2191_v35 = vadd.f32 %v2190_v32, %v2102_v61  ;;  %v2015_v49 = vadd.f32 %v2014_v26, %v4375_v8 }
 0x1e8   :  { %v2281_v29 = vpop.f32.mrf.mxu0 }
 0x1e9   :  { %v2280_v2 = vadd.f32 %v2279_v23, %v2191_v35 }
 0x1eb   :  { %v2359_v15 = vadd.f32 %v4879_v63, %v2280_v2 }
 0x1ec   :  { %v2103_v45 = vpop.f32.mrf.mxu2 }
 0x1ed   :  { %v2104_v8 = vadd.f32 %v2103_v45, %v2015_v49  ;;  %v2192_v4 = vpop.f32.mrf.mxu3  ;;  %v2458_v23 = vmax.f32 %v2359_v15, 0.0  ;;  %v2946_v49 = vld [vmem:[%s5136_s0 + $0x30c] sm:$0xf0] }
 0x1ee   :  { %v2017_v17 = vpop.f32.mrf.mxu1 }
 0x1ef   :  { %v2193_v14 = vadd.f32 %v2192_v4, %v2104_v8  ;;  %v2018_v1 = vadd.f32 %v2017_v17, %v4384_v33  ;;  %v2938_v33 = vld [vmem:[%s5136_s0 + $0x304] sm:$0xf0]  ;;  %v2953_v17 = vor.u32 %v3520_v16, %v2952_v55 }
 0x1f0   :  { %v2284_v36 = vpop.f32.mrf.mxu0  ;;  %v2941_v4 = vor.u32 %v3514_v44, %v2938_v33  ;;  %v3528_v44 = vld [vmem:[%s5136_s0 + $0x350] sm:$0xf0] }
 0x1f1   :  { %v2282_v59 = vadd.f32 %v2281_v29, %v2193_v14  ;;  %2056 = vmatmul.bf16.gmra.mxu1 %v2905_v58  ;;  %2145 = vmatmul.bf16.gmra.mxu2 %v2909_v43  ;;  %v2945_v58 = vor.u32 %v3519_v7, %v2944_v41  ;;  %v3524_v33 = vld [vmem:[%s5136_s0 + $0x334] sm:$0xf]  ;;  %v2982_v7 = vld [vmem:[%s5136_s0 + $0x354] sm:$0xf0] }
 0x1f2   :  { %2234 = vmatmul.bf16.gmra.mxu3 %v2913_v9 }
 0x1f3   :  { %2323 = vmatmul.bf16.gmra.mxu0 %v2917_v47  ;;  %v2360_v20 = vadd.f32 %v4879_v63, %v2282_v59 }
 0x1f4   :  { %v2106_v22 = vpop.f32.mrf.mxu2 }
 0x1f5   :  { %v2459_v24 = vmax.f32 %v2360_v20, 0.0  ;;  %v2107_v37 = vadd.f32 %v2106_v22, %v2018_v1  ;;  %v2195_v61 = vpop.f32.mrf.mxu3 }
 0x1f6   :  { %v2019_v32 = vpop.f32.mrf.mxu1 }
 0x1f7   :  { %v3641_v26 = vpack.c.bf16 %v2459_v24, %v2458_v23  ;;  %v2196_v29 = vadd.f32 %v2195_v61, %v2107_v37  ;;  %v2020_v42 = vadd.f32 %v2019_v32, %v4405_v56  ;;  %v2949_v56 = vor.u32 %v3515_v40, %v2946_v49  ;;  %v2988_v40 = vld [vmem:[%s5136_s0 + $0x338] sm:$0xf] }
 0x1f8   :  { %v2286_v35 = vpop.f32.mrf.mxu0 }
 0x1f9   :  { %3642 = vst [vmem:[%s5138_s3] sm:$0xff] %v3641_v26   ;;  %v2285_v45 = vadd.f32 %v2284_v36, %v2196_v29  ;;  %v2980_v29 = vld [vmem:[%s5136_s0 + $0x330] sm:$0xf] }
 0x1fb   :  { %v2361_v14 = vadd.f32 %v4879_v63, %v2285_v45 }
 0x1fc   :  { %v2108_v62 = vpop.f32.mrf.mxu2 }
 0x1fd   :  { %v2109_v2 = vadd.f32 %v2108_v62, %v2020_v42  ;;  %v2197_v8 = vpop.f32.mrf.mxu3  ;;  %v2460_v1 = vmax.f32 %v2361_v14, 0.0  ;;  %v3529_v42 = vld [vmem:[%s5136_s0 + $0x358] sm:$0xf0] }
 0x1fe   :  { %v2022_v43 = vpop.f32.mrf.mxu1 }
 0x1ff   :  { %v2198_v9 = vadd.f32 %v2197_v8, %v2109_v2  ;;  %v2023_v36 = vadd.f32 %v2022_v43, %v4426_v19  ;;  %v2974_v19 = vld [vmem:[%s5136_s0 + $0x34c] sm:$0xf0]  ;;  %v2981_v2 = vor.u32 %v3528_v44, %v2980_v29  ;;  %v3024_v29 = vld [vmem:[%s5136_s0 + $0x380] sm:$0xf]  ;;  %v3538_v44 = vld [vmem:[%s5136_s0 + $0x3a0] sm:$0xf0] }
 0x200   :  { %v2289_v47 = vpop.f32.mrf.mxu0 }
 0x201   :  { %v2287_v15 = vadd.f32 %v2286_v35, %v2198_v9  ;;  %2061 = vmatmul.bf16.gmra.mxu1 %v2941_v4  ;;  %2150 = vmatmul.bf16.gmra.mxu2 %v2945_v58  ;;  %v3523_v35 = vld [vmem:[%s5136_s0 + $0x32c] sm:$0xf]  ;;  %v2989_v4 = vor.u32 %v3529_v42, %v2988_v40 }
 0x202   :  { %2239 = vmatmul.bf16.gmra.mxu3 %v2949_v56  ;;  %v2977_v45 = vor.u32 %v3523_v35, %v2974_v19  ;;  %v3018_v19 = vld [vmem:[%s5136_s0 + $0x39c] sm:$0xf0] }
 0x203   :  { %2328 = vmatmul.bf16.gmra.mxu0 %v2953_v17  ;;  %v2362_v59 = vadd.f32 %v4879_v63, %v2287_v15 }
 0x204   :  { %v2111_v20 = vpop.f32.mrf.mxu2 }
 0x205   :  { %v2461_v22 = vmax.f32 %v2362_v59, 0.0  ;;  %v2112_v23 = vadd.f32 %v2111_v20, %v2023_v36  ;;  %v2200_v24 = vpop.f32.mrf.mxu3 }
 0x206   :  { %v2024_v37 = vpop.f32.mrf.mxu1 }
 0x207   :  { %v3646_v61 = vpack.c.bf16 %v2461_v22, %v2460_v1  ;;  %v2201_v26 = vadd.f32 %v2200_v24, %v2112_v23  ;;  %v2025_v41 = vadd.f32 %v2024_v37, %v4447_v52  ;;  %v2985_v52 = vor.u32 %v3524_v33, %v2982_v7  ;;  %v3532_v37 = vld [vmem:[%s5136_s0 + $0x374] sm:$0xf] }
 0x208   :  { %v2291_v32 = vpop.f32.mrf.mxu0 }
 0x209   :  { %3718 = vst [vmem:[%s5138_s3 + $0x8] sm:$0xff] %v3646_v61   ;;  %v2290_v55 = vadd.f32 %v2289_v47, %v2201_v26  ;;  %v3016_v61 = vld [vmem:[%s5136_s0 + $0x378] sm:$0xf]  ;;  %v3533_v26 = vld [vmem:[%s5136_s0 + $0x37c] sm:$0xf] }
 0x20b   :  { %v2363_v56 = vadd.f32 %v4879_v63, %v2290_v55 }
 0x20c   :  { %v2113_v49 = vpop.f32.mrf.mxu2 }
 0x20d   :  { %v2114_v16 = vadd.f32 %v2113_v49, %v2025_v41  ;;  %v2202_v62 = vpop.f32.mrf.mxu3  ;;  %v2462_v15 = vmax.f32 %v2363_v56, 0.0 }
 0x20e   :  { %v2027_v8 = vpop.f32.mrf.mxu1 }
 0x20f   :  { %v2203_v58 = vadd.f32 %v2202_v62, %v2114_v16  ;;  %v2028_v47 = vadd.f32 %v2027_v8, %v4456_v5  ;;  %v3010_v5 = vld [vmem:[%s5136_s0 + $0x394] sm:$0xf0]  ;;  %v3025_v16 = vor.u32 %v3538_v44, %v3024_v29 }
 0x210   :  { %v2294_v43 = vpop.f32.mrf.mxu0  ;;  %v3013_v42 = vor.u32 %v3532_v37, %v3010_v5  ;;  %v3060_v37 = vld [vmem:[%s5136_s0 + $0x3c8] sm:$0xf]  ;;  %v3547_v5 = vld [vmem:[%s5136_s0 + $0x3e8] sm:$0xf0] }
 0x211   :  { %v2292_v17 = vadd.f32 %v2291_v32, %v2203_v58  ;;  %2066 = vmatmul.bf16.gmra.mxu1 %v2977_v45  ;;  %2155 = vmatmul.bf16.gmra.mxu2 %v2981_v2  ;;  %v3537_v32 = vld [vmem:[%s5136_s0 + $0x398] sm:$0xf0] }
 0x212   :  { %2244 = vmatmul.bf16.gmra.mxu3 %v2985_v52  ;;  %v3017_v49 = vor.u32 %v3537_v32, %v3016_v61 }
 0x213   :  { %2333 = vmatmul.bf16.gmra.mxu0 %v2989_v4  ;;  %v2364_v9 = vadd.f32 %v4879_v63, %v2292_v17 }
 0x214   :  { %v2116_v14 = vpop.f32.mrf.mxu2 }
 0x215   :  { %v2463_v59 = vmax.f32 %v2364_v9, 0.0  ;;  %v2117_v36 = vadd.f32 %v2116_v14, %v2028_v47  ;;  %v2205_v20 = vpop.f32.mrf.mxu3 }
 0x216   :  { %v2029_v1 = vpop.f32.mrf.mxu1 }
 0x217   :  { %v3651_v22 = vpack.c.bf16 %v2463_v59, %v2462_v15  ;;  %v2206_v24 = vadd.f32 %v2205_v20, %v2117_v36  ;;  %v2030_v35 = vadd.f32 %v2029_v1, %v4476_v28  ;;  %v3021_v28 = vor.u32 %v3533_v26, %v3018_v19  ;;  %v3541_v36 = vld [vmem:[%s5136_s0 + $0x3bc] sm:$0xf]  ;;  %v3052_v20 = vld [vmem:[%s5136_s0 + $0x3c0] sm:$0xf]  ;;  %v3546_v1 = vld [vmem:[%s5136_s0 + $0x3e0] sm:$0xf0] }
 0x218   :  { %v2296_v23 = vpop.f32.mrf.mxu0  ;;  %v3053_v29 = vor.u32 %v3546_v1, %v3052_v20 }
 0x219   :  { %3719 = vst [vmem:[%s5138_s3 + $0x10] sm:$0xff] %v3651_v22   ;;  %v2295_v41 = vadd.f32 %v2294_v43, %v2206_v24  ;;  %v3542_v22 = vld [vmem:[%s5136_s0 + $0x3c4] sm:$0xf]  ;;  %v3054_v24 = vld [vmem:[%s5136_s0 + $0x3e4] sm:$0xf0] }
 0x21b   :  { %v2365_v2 = vadd.f32 %v4879_v63, %v2295_v41 }
 0x21c   :  { %v2118_v33 = vpop.f32.mrf.mxu2 }
 0x21d   :  { %v2119_v7 = vadd.f32 %v2118_v33, %v2030_v35  ;;  %v2207_v40 = vpop.f32.mrf.mxu3  ;;  %v2464_v43 = vmax.f32 %v2365_v2, 0.0  ;;  %v3061_v33 = vor.u32 %v3547_v5, %v3060_v37 }
 0x21e   :  { %v2032_v55 = vpop.f32.mrf.mxu1 }
 0x21f   :  { %v2208_v62 = vadd.f32 %v2207_v40, %v2119_v7  ;;  %v2033_v4 = vadd.f32 %v2032_v55, %v4497_v3  ;;  %v3046_v3 = vld [vmem:[%s5136_s0 + $0x3dc] sm:$0xf0] }
 0x220   :  { %v2299_v45 = vpop.f32.mrf.mxu0  ;;  %v3049_v19 = vor.u32 %v3541_v36, %v3046_v3 }
 0x221   :  { %v2297_v8 = vadd.f32 %v2296_v23, %v2208_v62  ;;  %2071 = vmatmul.bf16.gmra.mxu1 %v3013_v42  ;;  %2160 = vmatmul.bf16.gmra.mxu2 %v3017_v49 }
 0x222   :  { %2249 = vmatmul.bf16.gmra.mxu3 %v3021_v28 }
 0x223   :  { %2338 = vmatmul.bf16.gmra.mxu0 %v3025_v16  ;;  %v2366_v52 = vadd.f32 %v4879_v63, %v2297_v8 }
 0x224   :  { %v2121_v58 = vpop.f32.mrf.mxu2 }
 0x225   :  { %v2465_v56 = vmax.f32 %v2366_v52, 0.0  ;;  %v2122_v17 = vadd.f32 %v2121_v58, %v2033_v4  ;;  %v2210_v9 = vpop.f32.mrf.mxu3 }
 0x226   :  { %v2034_v47 = vpop.f32.mrf.mxu1 }
 0x227   :  { %v3656_v14 = vpack.c.bf16 %v2465_v56, %v2464_v43  ;;  %v2211_v59 = vadd.f32 %v2210_v9, %v2122_v17  ;;  %v2035_v23 = vadd.f32 %v2034_v47, %v4518_v25  ;;  %v3057_v25 = vor.u32 %v3542_v22, %v3054_v24  ;;  %v3550_v43 = vld [vmem:[%s5136_s0 + $0x404] sm:$0xf]  ;;  %v3088_v56 = vld [vmem:[%s5136_s0 + $0x408] sm:$0xf]  ;;  %v3555_v17 = vld [vmem:[%s5136_s0 + $0x428] sm:$0xf0] }
 0x228   :  { %v2301_v15 = vpop.f32.mrf.mxu0  ;;  %v3551_v9 = vld [vmem:[%s5136_s0 + $0x40c] sm:$0xf] }
 0x229   :  { %3720 = vst [vmem:[%s5138_s3 + $0x18] sm:$0xff] %v3656_v14   ;;  %v2300_v32 = vadd.f32 %v2299_v45, %v2211_v59  ;;  %v3090_v14 = vld [vmem:[%s5136_s0 + $0x42c] sm:$0xf0]  ;;  %v3556_v59 = vld [vmem:[%s5136_s0 + $0x430] sm:$0xf0] }
 0x22b   :  { %v2367_v40 = vadd.f32 %v4879_v63, %v2300_v32 }
 0x22c   :  { %v2123_v61 = vpop.f32.mrf.mxu2 }
 0x22d   :  { %v2124_v26 = vadd.f32 %v2123_v61, %v2035_v23  ;;  %v2212_v35 = vpop.f32.mrf.mxu3  ;;  %v2466_v16 = vmax.f32 %v2367_v40, 0.0  ;;  %v3089_v23 = vor.u32 %v3555_v17, %v3088_v56 }
 0x22e   :  { %v2037_v44 = vpop.f32.mrf.mxu1 }
 0x22f   :  { %v2213_v41 = vadd.f32 %v2212_v35, %v2124_v26  ;;  %v2038_v55 = vadd.f32 %v2037_v44, %v4527_v53  ;;  %v3082_v53 = vld [vmem:[%s5136_s0 + $0x424] sm:$0xf0] }
 0x230   :  { %v2304_v7 = vpop.f32.mrf.mxu0  ;;  %v3085_v22 = vor.u32 %v3550_v43, %v3082_v53 }
 0x231   :  { %v2302_v42 = vadd.f32 %v2301_v15, %v2213_v41  ;;  %2076 = vmatmul.bf16.gmra.mxu1 %v3049_v19  ;;  %2165 = vmatmul.bf16.gmra.mxu2 %v3053_v29  ;;  %v3096_v15 = vld [vmem:[%s5136_s0 + $0x410] sm:$0xf] }
 0x232   :  { %2254 = vmatmul.bf16.gmra.mxu3 %v3057_v25  ;;  %v3097_v37 = vor.u32 %v3556_v59, %v3096_v15 }
 0x233   :  { %2343 = vmatmul.bf16.gmra.mxu0 %v3061_v33  ;;  %v2368_v49 = vadd.f32 %v4879_v63, %v2302_v42 }
 0x234   :  { %v2126_v28 = vpop.f32.mrf.mxu2 }
 0x235   :  { %v2467_v62 = vmax.f32 %v2368_v49, 0.0  ;;  %v2127_v45 = vadd.f32 %v2126_v28, %v2038_v55  ;;  %v2215_v2 = vpop.f32.mrf.mxu3  ;;  %v3559_v55 = vld [vmem:[%s5136_s0 + $0x44c] sm:$0xf]  ;;  %v3124_v28 = vld [vmem:[%s5136_s0 + $0x450] sm:$0xf] }
 0x236   :  { %v2039_v8 = vpop.f32.mrf.mxu1 }
 0x237   :  { %v3661_v52 = vpack.c.bf16 %v2467_v62, %v2466_v16  ;;  %v2216_v58 = vadd.f32 %v2215_v2, %v2127_v45  ;;  %v2040_v47 = vadd.f32 %v2039_v8, %v4548_v21  ;;  %v3093_v21 = vor.u32 %v3551_v9, %v3090_v14  ;;  %v3564_v16 = vld [vmem:[%s5136_s0 + $0x470] sm:$0xf0]  ;;  %v3126_v2 = vld [vmem:[%s5136_s0 + $0x474] sm:$0xf0] }
 0x238   :  { %v2306_v4 = vpop.f32.mrf.mxu0  ;;  %v3560_v62 = vld [vmem:[%s5136_s0 + $0x454] sm:$0xf]  ;;  %v3132_v8 = vld [vmem:[%s5136_s0 + $0x458] sm:$0xf]  ;;  %v3125_v17 = vor.u32 %v3564_v16, %v3124_v28 }
 0x239   :  { %3721 = vst [vmem:[%s5138_s3 + $0x20] sm:$0xff] %v3661_v52   ;;  %v2305_v3 = vadd.f32 %v2304_v7, %v2216_v58  ;;  %v3565_v52 = vld [vmem:[%s5136_s0 + $0x478] sm:$0xf0] }
 0x23b   :  { %v2369_v32 = vadd.f32 %v4879_v63, %v2305_v3 }
 0x23c   :  { %v2128_v36 = vpop.f32.mrf.mxu2 }
 0x23d   :  { %v2129_v20 = vadd.f32 %v2128_v36, %v2040_v47  ;;  %v2217_v1 = vpop.f32.mrf.mxu3  ;;  %v2468_v44 = vmax.f32 %v2369_v32, 0.0  ;;  %v3133_v47 = vor.u32 %v3565_v52, %v3132_v8 }
 0x23e   :  { %v2042_v24 = vpop.f32.mrf.mxu1 }
 0x23f   :  { %v2218_v5 = vadd.f32 %v2217_v1, %v2129_v20  ;;  %v2043_v19 = vadd.f32 %v2042_v24, %v4557_v34  ;;  %v3118_v34 = vld [vmem:[%s5136_s0 + $0x46c] sm:$0xf0] }
 0x240   :  { %v2309_v61 = vpop.f32.mrf.mxu0  ;;  %v3121_v56 = vor.u32 %v3559_v55, %v3118_v34 }
 0x241   :  { %v2307_v26 = vadd.f32 %v2306_v4, %v2218_v5  ;;  %2081 = vmatmul.bf16.gmra.mxu1 %v3085_v22  ;;  %2170 = vmatmul.bf16.gmra.mxu2 %v3089_v23 }
 0x242   :  { %2259 = vmatmul.bf16.gmra.mxu3 %v3093_v21 }
 0x243   :  { %2348 = vmatmul.bf16.gmra.mxu0 %v3097_v37  ;;  %v2370_v35 = vadd.f32 %v4879_v63, %v2307_v26 }
 0x244   :  { %v2131_v29 = vpop.f32.mrf.mxu2 }
 0x245   :  { %v2469_v25 = vmax.f32 %v2370_v35, 0.0  ;;  %v2132_v33 = vadd.f32 %v2131_v29, %v2043_v19  ;;  %v2220_v41 = vpop.f32.mrf.mxu3 }
 0x246   :  { %v2044_v7 = vpop.f32.mrf.mxu1 }
 0x247   :  { %v3666_v40 = vpack.c.bf16 %v2469_v25, %v2468_v44  ;;  %v2221_v49 = vadd.f32 %v2220_v41, %v2132_v33  ;;  %v2045_v45 = vadd.f32 %v2044_v7, %v4578_v11  ;;  %v3129_v11 = vor.u32 %v3560_v62, %v3126_v2 }
 0x248   :  { %v2311_v42 = vpop.f32.mrf.mxu0 }
 0x249   :  { %3722 = vst [vmem:[%s5138_s3 + $0x28] sm:$0xff] %v3666_v40   ;;  %v2310_v58 = vadd.f32 %v2309_v61, %v2221_v49 }
 0x24b   :  { %v2371_v59 = vadd.f32 %v4879_v63, %v2310_v58 }
 0x24c   :  { %v2133_v4 = vpop.f32.mrf.mxu2 }
 0x24d   :  { %v2134_v43 = vadd.f32 %v2133_v4, %v2045_v45  ;;  %v2222_v53 = vpop.f32.mrf.mxu3  ;;  %v2470_v22 = vmax.f32 %v2371_v59, 0.0 }
 0x24e   :  { %v2047_v9 = vpop.f32.mrf.mxu1 }
 0x24f   :  { %v2223_v14 = vadd.f32 %v2222_v53, %v2134_v43  ;;  %v2048_v20 = vadd.f32 %v2047_v9, %v4587_v39 }
 0x250   :  { %v2314_v15 = vpop.f32.mrf.mxu0 }
 0x251   :  { %v2312_v36 = vadd.f32 %v2311_v42, %v2223_v14  ;;  %2086 = vmatmul.bf16.gmra.mxu1 %v3121_v56  ;;  %2175 = vmatmul.bf16.gmra.mxu2 %v3125_v17 }
 0x252   :  { %2264 = vmatmul.bf16.gmra.mxu3 %v3129_v11 }
 0x253   :  { %2353 = vmatmul.bf16.gmra.mxu0 %v3133_v47  ;;  %v2372_v3 = vadd.f32 %v4879_v63, %v2312_v36 }
 0x254   :  { %v2136_v1 = vpop.f32.mrf.mxu2 }
 0x255   :  { %v2471_v23 = vmax.f32 %v2372_v3, 0.0  ;;  %v2137_v24 = vadd.f32 %v2136_v1, %v2048_v20  ;;  %v2225_v21 = vpop.f32.mrf.mxu3 }
 0x256   :  { %v2049_v37 = vpop.f32.mrf.mxu1 }
 0x257   :  { %v3671_v5 = vpack.c.bf16 %v2471_v23, %v2470_v22  ;;  %v2226_v32 = vadd.f32 %v2225_v21, %v2137_v24  ;;  %v2050_v26 = vadd.f32 %v2049_v37, %v4608_v30 }
 0x258   :  { %v2316_v61 = vpop.f32.mrf.mxu0 }
 0x259   :  { %3723 = vst [vmem:[%s5138_s3 + $0x30] sm:$0xff] %v3671_v5   ;;  %v2315_v19 = vadd.f32 %v2314_v15, %v2226_v32 }
 0x25b   :  { %v2373_v41 = vadd.f32 %v4879_v63, %v2315_v19 }
 0x25c   :  { %v2138_v35 = vpop.f32.mrf.mxu2 }
 0x25d   :  { %v2139_v29 = vadd.f32 %v2138_v35, %v2050_v26  ;;  %v2227_v44 = vpop.f32.mrf.mxu3  ;;  %v2472_v55 = vmax.f32 %v2373_v41, 0.0 }
 0x25e   :  { %v2052_v39 = vpop.f32.mrf.mxu1 }
 0x25f   :  { %v2228_v25 = vadd.f32 %v2227_v44, %v2139_v29  ;;  %v2053_v42 = vadd.f32 %v2052_v39, %v4617_v60 }
 0x260   :  { %v2319_v33 = vpop.f32.mrf.mxu0 }
 0x261   :  { %v2317_v7 = vadd.f32 %v2316_v61, %v2228_v25 }
 0x263   :  { %v2374_v40 = vadd.f32 %v4879_v63, %v2317_v7 }
 0x264   :  { %v2141_v49 = vpop.f32.mrf.mxu2 }
 0x265   :  { %v2473_v34 = vmax.f32 %v2374_v40, 0.0  ;;  %v2142_v28 = vadd.f32 %v2141_v49, %v2053_v42  ;;  %v2230_v16 = vpop.f32.mrf.mxu3 }
 0x266   :  { %v2054_v30 = vpop.f32.mrf.mxu1 }
 0x267   :  { %v3676_v62 = vpack.c.bf16 %v2473_v34, %v2472_v55  ;;  %v2231_v2 = vadd.f32 %v2230_v16, %v2142_v28  ;;  %v2055_v8 = vadd.f32 %v2054_v30, %v4638_v48 }
 0x268   :  { %v2321_v45 = vpop.f32.mrf.mxu0 }
 0x269   :  { %3724 = vst [vmem:[%s5138_s3 + $0x38] sm:$0xff] %v3676_v62   ;;  %v2320_v4 = vadd.f32 %v2319_v33, %v2231_v2 }
 0x26b   :  { %v2375_v17 = vadd.f32 %v4879_v63, %v2320_v4 }
 0x26c   :  { %v2143_v52 = vpop.f32.mrf.mxu2 }
 0x26d   :  { %v2144_v58 = vadd.f32 %v2143_v52, %v2055_v8  ;;  %v2232_v43 = vpop.f32.mrf.mxu3  ;;  %v2474_v15 = vmax.f32 %v2375_v17, 0.0 }
 0x26e   :  { %v2057_v60 = vpop.f32.mrf.mxu1 }
 0x26f   :  { %v2233_v53 = vadd.f32 %v2232_v43, %v2144_v58  ;;  %v2058_v47 = vadd.f32 %v2057_v60, %v4647_v18 }
 0x270   :  { %v2324_v56 = vpop.f32.mrf.mxu0 }
 0x271   :  { %v2322_v9 = vadd.f32 %v2321_v45, %v2233_v53 }
 0x273   :  { %v2376_v11 = vadd.f32 %v4879_v63, %v2322_v9 }
 0x274   :  { %v2146_v14 = vpop.f32.mrf.mxu2 }
 0x275   :  { %v2475_v59 = vmax.f32 %v2376_v11, 0.0  ;;  %v2147_v36 = vadd.f32 %v2146_v14, %v2058_v47  ;;  %v2235_v3 = vpop.f32.mrf.mxu3 }
 0x276   :  { %v2059_v48 = vpop.f32.mrf.mxu1 }
 0x277   :  { %v3681_v20 = vpack.c.bf16 %v2475_v59, %v2474_v15  ;;  %v2236_v22 = vadd.f32 %v2235_v3, %v2147_v36  ;;  %v2060_v23 = vadd.f32 %v2059_v48, %v4668_v27 }
 0x278   :  { %v2326_v1 = vpop.f32.mrf.mxu0 }
 0x279   :  { %3725 = vst [vmem:[%s5138_s3 + $0x40] sm:$0xff] %v3681_v20   ;;  %v2325_v21 = vadd.f32 %v2324_v56, %v2236_v22 }
 0x27b   :  { %v2377_v26 = vadd.f32 %v4879_v63, %v2325_v21 }
 0x27c   :  { %v2148_v24 = vpop.f32.mrf.mxu2 }
 0x27d   :  { %v2149_v37 = vadd.f32 %v2148_v24, %v2060_v23  ;;  %v2237_v5 = vpop.f32.mrf.mxu3  ;;  %v2476_v39 = vmax.f32 %v2377_v26, 0.0 }
 0x27e   :  { %v2062_v18 = vpop.f32.mrf.mxu1 }
 0x27f   :  { %v2238_v61 = vadd.f32 %v2237_v5, %v2149_v37  ;;  %v2063_v29 = vadd.f32 %v2062_v18, %v4677_v46 }
 0x280   :  { %v2329_v32 = vpop.f32.mrf.mxu0 }
 0x281   :  { %v2327_v35 = vadd.f32 %v2326_v1, %v2238_v61 }
 0x283   :  { %v2378_v19 = vadd.f32 %v4879_v63, %v2327_v35 }
 0x284   :  { %v2151_v44 = vpop.f32.mrf.mxu2 }
 0x285   :  { %v2477_v25 = vmax.f32 %v2378_v19, 0.0  ;;  %v2152_v33 = vadd.f32 %v2151_v44, %v2063_v29  ;;  %v2240_v41 = vpop.f32.mrf.mxu3 }
 0x286   :  { %v2064_v27 = vpop.f32.mrf.mxu1 }
 0x287   :  { %v3686_v7 = vpack.c.bf16 %v2477_v25, %v2476_v39  ;;  %v2241_v42 = vadd.f32 %v2240_v41, %v2152_v33  ;;  %v2065_v49 = vadd.f32 %v2064_v27, %v4698_v57 }
 0x288   :  { %v2331_v40 = vpop.f32.mrf.mxu0 }
 0x289   :  { %3726 = vst [vmem:[%s5138_s3 + $0x48] sm:$0xff] %v3686_v7   ;;  %v2330_v34 = vadd.f32 %v2329_v32, %v2241_v42 }
 0x28b   :  { %v2379_v45 = vadd.f32 %v4879_v63, %v2330_v34 }
 0x28c   :  { %v2153_v55 = vpop.f32.mrf.mxu2 }
 0x28d   :  { %v2154_v28 = vadd.f32 %v2153_v55, %v2065_v49  ;;  %v2242_v16 = vpop.f32.mrf.mxu3  ;;  %v2478_v58 = vmax.f32 %v2379_v45, 0.0 }
 0x28e   :  { %v2067_v46 = vpop.f32.mrf.mxu1 }
 0x28f   :  { %v2243_v30 = vadd.f32 %v2242_v16, %v2154_v28  ;;  %v2068_v52 = vadd.f32 %v2067_v46, %v4707_v50 }
 0x290   :  { %v2334_v62 = vpop.f32.mrf.mxu0 }
 0x291   :  { %v2332_v2 = vadd.f32 %v2331_v40, %v2243_v30 }
 0x293   :  { %v2380_v8 = vadd.f32 %v4879_v63, %v2332_v2 }
 0x294   :  { %v2156_v4 = vpop.f32.mrf.mxu2 }
 0x295   :  { %v2479_v43 = vmax.f32 %v2380_v8, 0.0  ;;  %v2157_v60 = vadd.f32 %v2156_v4, %v2068_v52  ;;  %v2245_v53 = vpop.f32.mrf.mxu3 }
 0x296   :  { %v2069_v57 = vpop.f32.mrf.mxu1 }
 0x297   :  { %v3691_v56 = vpack.c.bf16 %v2479_v43, %v2478_v58  ;;  %v2246_v9 = vadd.f32 %v2245_v53, %v2157_v60  ;;  %v2070_v11 = vadd.f32 %v2069_v57, %v4728_v12 }
 0x298   :  { %v2336_v17 = vpop.f32.mrf.mxu0 }
 0x299   :  { %3727 = vst [vmem:[%s5138_s3 + $0x50] sm:$0xff] %v3691_v56   ;;  %v2335_v14 = vadd.f32 %v2334_v62, %v2246_v9 }
 0x29b   :  { %v2381_v48 = vadd.f32 %v4879_v63, %v2335_v14 }
 0x29c   :  { %v2158_v47 = vpop.f32.mrf.mxu2 }
 0x29d   :  { %v2159_v15 = vadd.f32 %v2158_v47, %v2070_v11  ;;  %v2247_v59 = vpop.f32.mrf.mxu3  ;;  %v2480_v24 = vmax.f32 %v2381_v48, 0.0 }
 0x29e   :  { %v2072_v50 = vpop.f32.mrf.mxu1 }
 0x29f   :  { %v2248_v36 = vadd.f32 %v2247_v59, %v2159_v15  ;;  %v2073_v22 = vadd.f32 %v2072_v50, %v4737_v6 }
 0x2a0   :  { %v2339_v3 = vpop.f32.mrf.mxu0 }
 0x2a1   :  { %v2337_v20 = vadd.f32 %v2336_v17, %v2248_v36 }
 0x2a3   :  { %v2382_v1 = vadd.f32 %v4879_v63, %v2337_v20 }
 0x2a4   :  { %v2161_v23 = vpop.f32.mrf.mxu2 }
 0x2a5   :  { %v2481_v21 = vmax.f32 %v2382_v1, 0.0  ;;  %v2162_v37 = vadd.f32 %v2161_v23, %v2073_v22  ;;  %v2250_v5 = vpop.f32.mrf.mxu3 }
 0x2a6   :  { %v2074_v12 = vpop.f32.mrf.mxu1 }
 0x2a7   :  { %v3696_v18 = vpack.c.bf16 %v2481_v21, %v2480_v24  ;;  %v2251_v32 = vadd.f32 %v2250_v5, %v2162_v37  ;;  %v2075_v26 = vadd.f32 %v2074_v12, %v4758_v13 }
 0x2a8   :  { %v2341_v61 = vpop.f32.mrf.mxu0 }
 0x2a9   :  { %3728 = vst [vmem:[%s5138_s3 + $0x58] sm:$0xff] %v3696_v18   ;;  %v2340_v19 = vadd.f32 %v2339_v3, %v2251_v32 }
 0x2ab   :  { %v2383_v33 = vadd.f32 %v4879_v63, %v2340_v19 }
 0x2ac   :  { %v2163_v35 = vpop.f32.mrf.mxu2 }
 0x2ad   :  { %v2164_v29 = vadd.f32 %v2163_v35, %v2075_v26  ;;  %v2252_v44 = vpop.f32.mrf.mxu3  ;;  %v2482_v42 = vmax.f32 %v2383_v33, 0.0 }
 0x2ae   :  { %v2077_v6 = vpop.f32.mrf.mxu1 }
 0x2af   :  { %v2253_v39 = vadd.f32 %v2252_v44, %v2164_v29  ;;  %v2078_v7 = vadd.f32 %v2077_v6, %v4767_v31 }
 0x2b0   :  { %v2344_v25 = vpop.f32.mrf.mxu0 }
 0x2b1   :  { %v2342_v41 = vadd.f32 %v2341_v61, %v2253_v39 }
 0x2b3   :  { %v2384_v27 = vadd.f32 %v4879_v63, %v2342_v41 }
 0x2b4   :  { %v2166_v40 = vpop.f32.mrf.mxu2 }
 0x2b5   :  { %v2483_v49 = vmax.f32 %v2384_v27, 0.0  ;;  %v2167_v55 = vadd.f32 %v2166_v40, %v2078_v7  ;;  %v2255_v34 = vpop.f32.mrf.mxu3 }
 0x2b6   :  { %v2079_v13 = vpop.f32.mrf.mxu1 }
 0x2b7   :  { %v3701_v28 = vpack.c.bf16 %v2483_v49, %v2482_v42  ;;  %v2256_v46 = vadd.f32 %v2255_v34, %v2167_v55  ;;  %v2080_v30 = vadd.f32 %v2079_v13, %v4788_v54 }
 0x2b8   :  { %v2346_v16 = vpop.f32.mrf.mxu0 }
 0x2b9   :  { %3729 = vst [vmem:[%s5138_s3 + $0x60] sm:$0xff] %v3701_v28   ;;  %v2345_v45 = vadd.f32 %v2344_v25, %v2256_v46 }
 0x2bb   :  { %v2385_v4 = vadd.f32 %v4879_v63, %v2345_v45 }
 0x2bc   :  { %v2168_v62 = vpop.f32.mrf.mxu2 }
 0x2bd   :  { %v2169_v2 = vadd.f32 %v2168_v62, %v2080_v30  ;;  %v2257_v8 = vpop.f32.mrf.mxu3  ;;  %v2484_v56 = vmax.f32 %v2385_v4, 0.0 }
 0x2be   :  { %v2082_v31 = vpop.f32.mrf.mxu1 }
 0x2bf   :  { %v2258_v52 = vadd.f32 %v2257_v8, %v2169_v2  ;;  %v2083_v53 = vadd.f32 %v2082_v31, %v4797_v0 }
 0x2c0   :  { %v2349_v43 = vpop.f32.mrf.mxu0 }
 0x2c1   :  { %v2347_v58 = vadd.f32 %v2346_v16, %v2258_v52 }
 0x2c3   :  { %v2386_v60 = vadd.f32 %v4879_v63, %v2347_v58 }
 0x2c4   :  { %v2171_v57 = vpop.f32.mrf.mxu2 }
 0x2c5   :  { %v2485_v17 = vmax.f32 %v2386_v60, 0.0  ;;  %v2172_v9 = vadd.f32 %v2171_v57, %v2083_v53  ;;  %v2260_v11 = vpop.f32.mrf.mxu3 }
 0x2c6   :  { %v2084_v54 = vpop.f32.mrf.mxu1 }
 0x2c7   :  { %v3706_v47 = vpack.c.bf16 %v2485_v17, %v2484_v56  ;;  %v2261_v14 = vadd.f32 %v2260_v11, %v2172_v9  ;;  %v2085_v15 = vadd.f32 %v2084_v54, %v4818_v10 }
 0x2c8   :  { %v2351_v59 = vpop.f32.mrf.mxu0 }
 0x2c9   :  { %3730 = vst [vmem:[%s5138_s3 + $0x68] sm:$0xff] %v3706_v47   ;;  %v2350_v36 = vadd.f32 %v2349_v43, %v2261_v14 }
 0x2cb   :  { %v2387_v1 = vadd.f32 %v4879_v63, %v2350_v36 }
 0x2cc   :  { %v2173_v50 = vpop.f32.mrf.mxu2 }
 0x2cd   :  { %v2174_v3 = vadd.f32 %v2173_v50, %v2085_v15  ;;  %v2262_v48 = vpop.f32.mrf.mxu3  ;;  %v2486_v37 = vmax.f32 %v2387_v1, 0.0 }
 0x2ce   :  { %v2087_v0 = vpop.f32.mrf.mxu1 }
 0x2cf   :  { %v2263_v20 = vadd.f32 %v2262_v48, %v2174_v3  ;;  %v2088_v24 = vadd.f32 %v2087_v0, %v4827_v51 }
 0x2d0   :  { %v2354_v10 = vpop.f32.mrf.mxu0 }
 0x2d1   :  { %v2352_v22 = vadd.f32 %v2351_v59, %v2263_v20 }
 0x2d3   :  { %v2388_v23 = vadd.f32 %v4879_v63, %v2352_v22 }
 0x2d4   :  { %v2176_v21 = vpop.f32.mrf.mxu2 }
 0x2d5   :  { %v2487_v5 = vmax.f32 %v2388_v23, 0.0  ;;  %v2177_v12 = vadd.f32 %v2176_v21, %v2088_v24  ;;  %v2265_v18 = vpop.f32.mrf.mxu3 }
 0x2d6   :  { %v2089_v32 = vpop.f32.mrf.mxu1 }
 0x2d7   :  { %v3711_v61 = vpack.c.bf16 %v2487_v5, %v2486_v37  ;;  %v2266_v26 = vadd.f32 %v2265_v18, %v2177_v12  ;;  %v2090_v35 = vadd.f32 %v2089_v32, %v4848_v38 }
 0x2d8   :  { %v2356_v39 = vpop.f32.mrf.mxu0 }
 0x2d9   :  { %3731 = vst [vmem:[%s5138_s3 + $0x70] sm:$0xff] %v3711_v61   ;;  %v2355_v29 = vadd.f32 %v2354_v10, %v2266_v26 }
 0x2db   :  { %v2389_v25 = vadd.f32 %v4879_v63, %v2355_v29 }
 0x2dc   :  { %v2178_v19 = vpop.f32.mrf.mxu2 }
 0x2dd   :  { %v2179_v44 = vadd.f32 %v2178_v19, %v2090_v35  ;;  %v2267_v6 = vpop.f32.mrf.mxu3  ;;  %v2488_v27 = vmax.f32 %v2389_v25, 0.0 }
 0x2df   :  { %v2268_v51 = vadd.f32 %v2267_v6, %v2179_v44 }
 0x2e1   :  { %v2357_v33 = vadd.f32 %v2356_v39, %v2268_v51 }
 0x2e3   :  { %v2390_v41 = vadd.f32 %v4879_v63, %v2357_v33 }
 0x2e5   :  { %v2489_v7 = vmax.f32 %v2390_v41, 0.0 }
 0x2e7   :  { %v3716_v40 = vpack.c.bf16 %v2489_v7, %v2488_v27 }
 0x2e9   :  { %3732 = vst [vmem:[%s5138_s3 + $0x78] sm:$0xff] %v3716_v40  }

// kernel: feature_extraction_forward.112
= control target key start
LH: loop header
LB: loop body
LE: loop exit
PB: predicated region body
PF: predicated region fallthrough
CT: control target
= control target key end

     0   :  { %s2468_s12 = smov 0   ;;  %s2470_s13 = smov 0   ;;  %s2882_s0 = inlined_call_operand.vmem [shape: bf16[256,3072], index: 0, kind: input, shape index: {}]   ;;  %s2883_s1 = inlined_call_operand.vmem [shape: bf16[3072,128], index: 1, kind: input, shape index: {}]   ;;  %s2884_s2 = inlined_call_operand.vmem [shape: f32[1,128], index: 2, kind: input, shape index: {}]   ;;  %s2885_s3 = inlined_call_operand.vmem [shape: bf16[256,128], index: 3, kind: output, shape index: {}]  }
   0x1   :  { %s2472_s14 = smov 0   ;;  %s2474_s15 = smov 0  }
   0x2   :  { %s2476_s16 = smov 0  }
   0x3 LB: > { %s25_s17 = sadd.s32 1, %s2442_s15  ;;  %p48_p1 = scmp.ne.s32.totalorder %s2434_s13, %s2430_s12  ;;  %s2446_s16 = sphi %s2476_s16, %s13_s16   ;;  %s2442_s15 = sphi %s2474_s15, %s2889_s15   ;;  %s2438_s14 = sphi %s2472_s14, %s2888_s14   ;;  %s2434_s13 = sphi %s2470_s13, %s2887_s13   ;;  %s2430_s12 = sphi %s2468_s12, %s2886_s12  }
   0x4   : > { %p26_p0 = scmp.ge.s32.totalorder %s25_s17, 6  ;;  %p49_p2 = scmp.eq.s32.totalorder %s2446_s16, 0 }
   0x5   : > { %s41_s19 = sadd.s32 1, %s2434_s13  ;;  %p1777_p5 = scmp.ge.s32.totalorder %s2446_s16, 6 }
   0x6   : > { %s2891_s17 = smov (%p26_p0, %s25_s17), 0  ;;  %p50_p3 = por %p49_p2, %p48_p1 }
   0x7   : > { %s37_s18 = ssub.s32 %s2442_s15, %s2891_s17  ;;  %162 = sbr.rel (%p1777_p5) target bundleno = 80 (0x50), region = 20 }
   0x8   : > { %p39_p4 = scmp.eq.s32.totalorder %s37_s18, 0 }
   0xa   : > { %s2503_s20 = scalar_select %p39_p4, %s2434_s13, %s41_s19  }
   0xc   : > { %165 = sbr.rel (!%p50_p3) target bundleno = 80 (0x50), region = 24  ;;  %s167_s21 = sand.u32 (%p50_p3), 1, %s2434_s13  }
   0xd   : > { %s2175_s22 = sshll.u32 (%p50_p3), %s2442_s15, 4  ;;  %s1778_s23 = sshll.u32 (%p50_p3), %s167_s21, 9 }
   0xe   : > { %s2511_s26 = scalar_lea.vmem (%p50_p3), %s2882_s0, %s2175_s22  ;;  %s2516_s27 = scalar_lea.vmem (%p50_p3), [#allocation3], %s1778_s23 }
   0xf   : > { %v188_v0 = vld [vmem:[%s2511_s26] sm:$0xff] (%p50_p3)  ;;  %v190_v1 = vld [vmem:[%s2511_s26 + $0x8] sm:$0xff] (%p50_p3) }
  0x10   : > { %v192_v2 = vld [vmem:[%s2511_s26 + $0x60] sm:$0xff] (%p50_p3)  ;;  %189 = vst [vmem:[%s2516_s27] sm:$0xff] (%p50_p3), %v188_v0  ;;  %v194_v3 = vld [vmem:[%s2511_s26 + $0x68] sm:$0xff] (%p50_p3) }
  0x11   : > { %191 = vst [vmem:[%s2516_s27 + $0x8] sm:$0xff] %v190_v1  ;;  %v196_v4 = vld [vmem:[%s2511_s26 + $0xc0] sm:$0xff]  ;;  %v198_v5 = vld [vmem:[%s2511_s26 + $0xc8] sm:$0xff] }
  0x12   : > { %193 = vst [vmem:[%s2516_s27 + $0x10] sm:$0xff] %v192_v2  ;;  %v200_v6 = vld [vmem:[%s2511_s26 + $0x120] sm:$0xff]  ;;  %v202_v7 = vld [vmem:[%s2511_s26 + $0x128] sm:$0xff] }
  0x13   : > { %195 = vst [vmem:[%s2516_s27 + $0x18] sm:$0xff] %v194_v3  ;;  %v204_v8 = vld [vmem:[%s2511_s26 + $0x180] sm:$0xff]  ;;  %v206_v9 = vld [vmem:[%s2511_s26 + $0x188] sm:$0xff] }
  0x14   : > { %197 = vst [vmem:[%s2516_s27 + $0x20] sm:$0xff] %v196_v4  ;;  %v208_v10 = vld [vmem:[%s2511_s26 + $0x1e0] sm:$0xff]  ;;  %v210_v11 = vld [vmem:[%s2511_s26 + $0x1e8] sm:$0xff] }
  0x15   : > { %199 = vst [vmem:[%s2516_s27 + $0x28] sm:$0xff] %v198_v5  ;;  %v212_v12 = vld [vmem:[%s2511_s26 + $0x240] sm:$0xff]  ;;  %v214_v13 = vld [vmem:[%s2511_s26 + $0x248] sm:$0xff] }
  0x16   : > { %201 = vst [vmem:[%s2516_s27 + $0x30] sm:$0xff] %v200_v6  ;;  %v216_v14 = vld [vmem:[%s2511_s26 + $0x2a0] sm:$0xff]  ;;  %v218_v15 = vld [vmem:[%s2511_s26 + $0x2a8] sm:$0xff] }
  0x17   : > { %203 = vst [vmem:[%s2516_s27 + $0x38] sm:$0xff] %v202_v7  ;;  %v220_v16 = vld [vmem:[%s2511_s26 + $0x300] sm:$0xff]  ;;  %v222_v17 = vld [vmem:[%s2511_s26 + $0x308] sm:$0xff] }
  0x18   : > { %205 = vst [vmem:[%s2516_s27 + $0x40] sm:$0xff] %v204_v8  ;;  %v224_v18 = vld [vmem:[%s2511_s26 + $0x360] sm:$0xff]  ;;  %v226_v19 = vld [vmem:[%s2511_s26 + $0x368] sm:$0xff] }
  0x19   : > { %207 = vst [vmem:[%s2516_s27 + $0x48] sm:$0xff] %v206_v9  ;;  %v228_v20 = vld [vmem:[%s2511_s26 + $0x3c0] sm:$0xff]  ;;  %v230_v21 = vld [vmem:[%s2511_s26 + $0x3c8] sm:$0xff] }
  0x1a   : > { %209 = vst [vmem:[%s2516_s27 + $0x50] sm:$0xff] %v208_v10  ;;  %v232_v22 = vld [vmem:[%s2511_s26 + $0x420] sm:$0xff]  ;;  %v234_v23 = vld [vmem:[%s2511_s26 + $0x428] sm:$0xff] }
  0x1b   : > { %211 = vst [vmem:[%s2516_s27 + $0x58] sm:$0xff] %v210_v11  ;;  %v236_v24 = vld [vmem:[%s2511_s26 + $0x480] sm:$0xff]  ;;  %v238_v25 = vld [vmem:[%s2511_s26 + $0x488] sm:$0xff] }
  0x1c   : > { %213 = vst [vmem:[%s2516_s27 + $0x60] sm:$0xff] %v212_v12  ;;  %v240_v26 = vld [vmem:[%s2511_s26 + $0x4e0] sm:$0xff]  ;;  %v242_v27 = vld [vmem:[%s2511_s26 + $0x4e8] sm:$0xff] }
  0x1d   : > { %215 = vst [vmem:[%s2516_s27 + $0x68] sm:$0xff] %v214_v13  ;;  %v244_v28 = vld [vmem:[%s2511_s26 + $0x540] sm:$0xff]  ;;  %v246_v29 = vld [vmem:[%s2511_s26 + $0x548] sm:$0xff] }
  0x1e   : > { %217 = vst [vmem:[%s2516_s27 + $0x70] sm:$0xff] %v216_v14  ;;  %v248_v30 = vld [vmem:[%s2511_s26 + $0x5a0] sm:$0xff]  ;;  %v250_v31 = vld [vmem:[%s2511_s26 + $0x5a8] sm:$0xff] }
  0x1f   : > { %219 = vst [vmem:[%s2516_s27 + $0x78] sm:$0xff] %v218_v15  ;;  %v252_v32 = vld [vmem:[%s2511_s26 + $0x600] sm:$0xff]  ;;  %v254_v33 = vld [vmem:[%s2511_s26 + $0x608] sm:$0xff] }
  0x20   : > { %221 = vst [vmem:[%s2516_s27 + $0x80] sm:$0xff] %v220_v16  ;;  %v256_v34 = vld [vmem:[%s2511_s26 + $0x660] sm:$0xff]  ;;  %v258_v35 = vld [vmem:[%s2511_s26 + $0x668] sm:$0xff] }
  0x21   : > { %223 = vst [vmem:[%s2516_s27 + $0x88] sm:$0xff] %v222_v17  ;;  %v260_v36 = vld [vmem:[%s2511_s26 + $0x6c0] sm:$0xff]  ;;  %v262_v37 = vld [vmem:[%s2511_s26 + $0x6c8] sm:$0xff] }
  0x22   : > { %225 = vst [vmem:[%s2516_s27 + $0x90] sm:$0xff] %v224_v18  ;;  %v264_v38 = vld [vmem:[%s2511_s26 + $0x720] sm:$0xff]  ;;  %v266_v39 = vld [vmem:[%s2511_s26 + $0x728] sm:$0xff] }
  0x23   : > { %227 = vst [vmem:[%s2516_s27 + $0x98] sm:$0xff] %v226_v19  ;;  %v268_v40 = vld [vmem:[%s2511_s26 + $0x780] sm:$0xff]  ;;  %v270_v41 = vld [vmem:[%s2511_s26 + $0x788] sm:$0xff] }
  0x24   : > { %229 = vst [vmem:[%s2516_s27 + $0xa0] sm:$0xff] %v228_v20  ;;  %v272_v42 = vld [vmem:[%s2511_s26 + $0x7e0] sm:$0xff]  ;;  %v274_v43 = vld [vmem:[%s2511_s26 + $0x7e8] sm:$0xff] }
  0x25   : > { %231 = vst [vmem:[%s2516_s27 + $0xa8] sm:$0xff] %v230_v21  ;;  %v276_v44 = vld [vmem:[%s2511_s26 + $0x840] sm:$0xff]  ;;  %v278_v45 = vld [vmem:[%s2511_s26 + $0x848] sm:$0xff] }
  0x26   : > { %233 = vst [vmem:[%s2516_s27 + $0xb0] sm:$0xff] %v232_v22  ;;  %v280_v46 = vld [vmem:[%s2511_s26 + $0x8a0] sm:$0xff]  ;;  %v282_v47 = vld [vmem:[%s2511_s26 + $0x8a8] sm:$0xff] }
  0x27   : > { %235 = vst [vmem:[%s2516_s27 + $0xb8] sm:$0xff] %v234_v23  ;;  %v284_v48 = vld [vmem:[%s2511_s26 + $0x900] sm:$0xff]  ;;  %v286_v49 = vld [vmem:[%s2511_s26 + $0x908] sm:$0xff] }
  0x28   : > { %237 = vst [vmem:[%s2516_s27 + $0xc0] sm:$0xff] %v236_v24  ;;  %v288_v50 = vld [vmem:[%s2511_s26 + $0x960] sm:$0xff]  ;;  %v290_v51 = vld [vmem:[%s2511_s26 + $0x968] sm:$0xff] }
  0x29   : > { %239 = vst [vmem:[%s2516_s27 + $0xc8] sm:$0xff] %v238_v25  ;;  %v292_v52 = vld [vmem:[%s2511_s26 + $0x9c0] sm:$0xff]  ;;  %v294_v53 = vld [vmem:[%s2511_s26 + $0x9c8] sm:$0xff] }
  0x2a   : > { %241 = vst [vmem:[%s2516_s27 + $0xd0] sm:$0xff] %v240_v26  ;;  %v296_v54 = vld [vmem:[%s2511_s26 + $0xa20] sm:$0xff]  ;;  %v298_v55 = vld [vmem:[%s2511_s26 + $0xa28] sm:$0xff] }
  0x2b   : > { %243 = vst [vmem:[%s2516_s27 + $0xd8] sm:$0xff] %v242_v27  ;;  %v300_v56 = vld [vmem:[%s2511_s26 + $0xa80] sm:$0xff]  ;;  %v302_v57 = vld [vmem:[%s2511_s26 + $0xa88] sm:$0xff] }
  0x2c   : > { %245 = vst [vmem:[%s2516_s27 + $0xe0] sm:$0xff] %v244_v28  ;;  %v304_v58 = vld [vmem:[%s2511_s26 + $0xae0] sm:$0xff]  ;;  %v306_v59 = vld [vmem:[%s2511_s26 + $0xae8] sm:$0xff] }
  0x2d   : > { %247 = vst [vmem:[%s2516_s27 + $0xe8] sm:$0xff] %v246_v29  ;;  %v308_v60 = vld [vmem:[%s2511_s26 + $0xb40] sm:$0xff]  ;;  %v310_v61 = vld [vmem:[%s2511_s26 + $0xb48] sm:$0xff] }
  0x2e   : > { %249 = vst [vmem:[%s2516_s27 + $0xf0] sm:$0xff] %v248_v30  ;;  %v312_v62 = vld [vmem:[%s2511_s26 + $0xba0] sm:$0xff]  ;;  %v314_v63 = vld [vmem:[%s2511_s26 + $0xba8] sm:$0xff] }
  0x2f   : > { %251 = vst [vmem:[%s2516_s27 + $0xf8] sm:$0xff] %v250_v31 }
  0x30   : > { %253 = vst [vmem:[%s2516_s27 + $0x100] sm:$0xff] %v252_v32 }
  0x31   : > { %255 = vst [vmem:[%s2516_s27 + $0x108] sm:$0xff] %v254_v33 }
  0x32   : > { %257 = vst [vmem:[%s2516_s27 + $0x110] sm:$0xff] %v256_v34 }
  0x33   : > { %259 = vst [vmem:[%s2516_s27 + $0x118] sm:$0xff] %v258_v35 }
  0x34   : > { %261 = vst [vmem:[%s2516_s27 + $0x120] sm:$0xff] %v260_v36 }
  0x35   : > { %263 = vst [vmem:[%s2516_s27 + $0x128] sm:$0xff] %v262_v37 }
  0x36   : > { %265 = vst [vmem:[%s2516_s27 + $0x130] sm:$0xff] %v264_v38 }
  0x37   : > { %267 = vst [vmem:[%s2516_s27 + $0x138] sm:$0xff] %v266_v39 }
  0x38   : > { %269 = vst [vmem:[%s2516_s27 + $0x140] sm:$0xff] %v268_v40 }
  0x39   : > { %271 = vst [vmem:[%s2516_s27 + $0x148] sm:$0xff] %v270_v41 }
  0x3a   : > { %273 = vst [vmem:[%s2516_s27 + $0x150] sm:$0xff] %v272_v42 }
  0x3b   : > { %275 = vst [vmem:[%s2516_s27 + $0x158] sm:$0xff] %v274_v43 }
  0x3c   : > { %277 = vst [vmem:[%s2516_s27 + $0x160] sm:$0xff] %v276_v44 }
  0x3d   : > { %279 = vst [vmem:[%s2516_s27 + $0x168] sm:$0xff] %v278_v45 }
  0x3e   : > { %281 = vst [vmem:[%s2516_s27 + $0x170] sm:$0xff] %v280_v46 }
  0x3f   : > { %283 = vst [vmem:[%s2516_s27 + $0x178] sm:$0xff] %v282_v47 }
  0x40   : > { %285 = vst [vmem:[%s2516_s27 + $0x180] sm:$0xff] %v284_v48 }
  0x41   : > { %287 = vst [vmem:[%s2516_s27 + $0x188] sm:$0xff] %v286_v49 }
  0x42   : > { %289 = vst [vmem:[%s2516_s27 + $0x190] sm:$0xff] %v288_v50 }
  0x43   : > { %291 = vst [vmem:[%s2516_s27 + $0x198] sm:$0xff] %v290_v51 }
  0x44   : > { %293 = vst [vmem:[%s2516_s27 + $0x1a0] sm:$0xff] %v292_v52 }
  0x45   : > { %295 = vst [vmem:[%s2516_s27 + $0x1a8] sm:$0xff] %v294_v53 }
  0x46   : > { %297 = vst [vmem:[%s2516_s27 + $0x1b0] sm:$0xff] %v296_v54 }
  0x47   : > { %299 = vst [vmem:[%s2516_s27 + $0x1b8] sm:$0xff] %v298_v55 }
  0x48   : > { %301 = vst [vmem:[%s2516_s27 + $0x1c0] sm:$0xff] %v300_v56 }
  0x49   : > { %303 = vst [vmem:[%s2516_s27 + $0x1c8] sm:$0xff] %v302_v57 }
  0x4a   : > { %305 = vst [vmem:[%s2516_s27 + $0x1d0] sm:$0xff] %v304_v58 }
  0x4b   : > { %307 = vst [vmem:[%s2516_s27 + $0x1d8] sm:$0xff] %v306_v59 }
  0x4c   : > { %309 = vst [vmem:[%s2516_s27 + $0x1e0] sm:$0xff] %v308_v60 }
  0x4d   : > { %311 = vst [vmem:[%s2516_s27 + $0x1e8] sm:$0xff] %v310_v61 }
  0x4e   : > { %313 = vst [vmem:[%s2516_s27 + $0x1f0] sm:$0xff] %v312_v62 }
  0x4f   : > { %315 = vst [vmem:[%s2516_s27 + $0x1f8] sm:$0xff] %v314_v63 }
  0x50 PF: > { %p1781_p6 = scmp.ge.s32.totalorder %s2446_s16, 1  ;;  %p332_p7 = scmp.lt.s32.totalorder %s2446_s16, 7 }
  0x52   : > { %p333_p8 = pnand %p1781_p6, %p332_p7 }
  0x53   : > { %s339_s28 = sand.u32 (!%p333_p8), 1, %s2430_s12   ;;  %s1783_s29 = sshll.u32 (!%p333_p8), %s2438_s14, 6 }
  0x54   : > { %336 = sbr.rel (%p333_p8) target bundleno = 569 (0x239), region = 51  ;;  %s1782_s30 = sshll.u32 (!%p333_p8), %s339_s28, 9 }
  0x55   : > { %p379_p9 = scmp.lt.s32.totalorder (!%p333_p8), %s1783_s29, 383  ;;  %s2652_s8 = scalar_lea.vmem (!%p333_p8), [#allocation3], %s1782_s30 }
  0x56   : > { %p1785_p10 = scmp.ne.s32.totalorder (!%p333_p8), %s2438_s14, 0 }
  0x59   : > { %s2893_s29 = smov (!%p379_p9, %s1783_s29), 383  ;;  %402 = sbr.rel (%p1785_p10) target bundleno = 127 (0x7f), region = 59 }
  0x5a   : > { %s1784_s4 = sshll.u32 %s2893_s29, 2 }
  0x5b   : > { %s2650_s7 = scalar_lea.vmem %s2883_s1, %s1784_s4 }
  0x5e   : > { %v2407_v0 = vld [vmem:[%s2884_s2] ss:$0 sm:$0xff] }
  0x5f   : > { %407 = vst [vmem:[#allocation2 + $0xb0] sm:$0xff] %v2407_v0 }
  0x60   : > { %408 = vst [vmem:[#allocation2] sm:$0xff] %v2407_v0 }
  0x61   : > { %409 = vst [vmem:[#allocation2 + $0xd8] sm:$0xff] %v2407_v0 }
  0x62   : > { %410 = vst [vmem:[#allocation2 + $0x18] sm:$0xff] %v2407_v0 }
  0x63   : > { %411 = vst [vmem:[#allocation2 + $0x50] sm:$0xff] %v2407_v0 }
  0x64   : > { %412 = vst [vmem:[#allocation2 + $0x68] sm:$0xff] %v2407_v0 }
  0x65   : > { %413 = vst [vmem:[#allocation2 + $0x30] sm:$0xff] %v2407_v0 }
  0x66   : > { %414 = vst [vmem:[#allocation2 + $0x48] sm:$0xff] %v2407_v0 }
  0x67   : > { %415 = vst [vmem:[#allocation2 + $0x80] sm:$0xff] %v2407_v0 }
  0x68   : > { %416 = vst [vmem:[#allocation2 + $0x88] sm:$0xff] %v2407_v0 }
  0x69   : > { %417 = vst [vmem:[#allocation2 + $0xe8] sm:$0xff] %v2407_v0 }
  0x6a   : > { %418 = vst [vmem:[#allocation2 + $0xb8] sm:$0xff] %v2407_v0 }
  0x6b   : > { %419 = vst [vmem:[#allocation2 + $0x60] sm:$0xff] %v2407_v0 }
  0x6c   : > { %420 = vst [vmem:[#allocation2 + $0xf0] sm:$0xff] %v2407_v0 }
  0x6d   : > { %421 = vst [vmem:[#allocation2 + $0x8] sm:$0xff] %v2407_v0 }
  0x6e   : > { %422 = vst [vmem:[#allocation2 + $0x78] sm:$0xff] %v2407_v0 }
  0x6f   : > { %423 = vst [vmem:[#allocation2 + $0x38] sm:$0xff] %v2407_v0 }
  0x70   : > { %424 = vst [vmem:[#allocation2 + $0x58] sm:$0xff] %v2407_v0 }
  0x71   : > { %425 = vst [vmem:[#allocation2 + $0x40] sm:$0xff] %v2407_v0 }
  0x72   : > { %426 = vst [vmem:[#allocation2 + $0xc8] sm:$0xff] %v2407_v0 }
  0x73   : > { %427 = vst [vmem:[#allocation2 + $0xe0] sm:$0xff] %v2407_v0 }
  0x74   : > { %428 = vst [vmem:[#allocation2 + $0x90] sm:$0xff] %v2407_v0 }
  0x75   : > { %429 = vst [vmem:[#allocation2 + $0x70] sm:$0xff] %v2407_v0 }
  0x76   : > { %430 = vst [vmem:[#allocation2 + $0xc0] sm:$0xff] %v2407_v0 }
  0x77   : > { %431 = vst [vmem:[#allocation2 + $0xa8] sm:$0xff] %v2407_v0 }
  0x78   : > { %432 = vst [vmem:[#allocation2 + $0xd0] sm:$0xff] %v2407_v0 }
  0x79   : > { %433 = vst [vmem:[#allocation2 + $0x10] sm:$0xff] %v2407_v0 }
  0x7a   : > { %434 = vst [vmem:[#allocation2 + $0x28] sm:$0xff] %v2407_v0 }
  0x7b   : > { %435 = vst [vmem:[#allocation2 + $0xa0] sm:$0xff] %v2407_v0 }
  0x7c   : > { %436 = vst [vmem:[#allocation2 + $0xf8] sm:$0xff] %v2407_v0 }
  0x7d   : > { %437 = vst [vmem:[#allocation2 + $0x20] sm:$0xff] %v2407_v0 }
  0x7e   : > { %438 = vst [vmem:[#allocation2 + $0x98] sm:$0xff] %v2407_v0 }
  0x7f PF: > { %v2247_v1 = vld [vmem:[%s2650_s7 + $0x38] sm:$0xff]  ;;  %v2246_v5 = vld [vmem:[%s2650_s7 + $0x30] sm:$0xff]  ;;  %v2245_v9 = vld [vmem:[%s2650_s7 + $0x28] sm:$0xff]  ;;  %p2170_p11 = scmp.ne.s32.totalorder %s2438_s14, 5 }
  0x80   : > { %v2255_v2 = vld [vmem:[%s2650_s7 + $0x78] sm:$0xff]  ;;  %1111 = vmatpush.bf16.msra.mxu0 %v2247_v1  ;;  %v2254_v6 = vld [vmem:[%s2650_s7 + $0x70] sm:$0xff]  ;;  %v2253_v10 = vld [vmem:[%s2650_s7 + $0x68] sm:$0xff] }
  0x81   : > { %v2263_v3 = vld [vmem:[%s2650_s7 + $0xb8] sm:$0xff]  ;;  %1200 = vmatpush.bf16.msra.mxu1 %v2255_v2  ;;  %v2262_v7 = vld [vmem:[%s2650_s7 + $0xb0] sm:$0xff]  ;;  %v2261_v11 = vld [vmem:[%s2650_s7 + $0xa8] sm:$0xff] }
  0x82   : > { %v2271_v4 = vld [vmem:[%s2650_s7 + $0xf8] sm:$0xff]  ;;  %1289 = vmatpush.bf16.msra.mxu2 %v2263_v3  ;;  %v2270_v8 = vld [vmem:[%s2650_s7 + $0xf0] sm:$0xff]  ;;  %v2269_v12 = vld [vmem:[%s2650_s7 + $0xe8] sm:$0xff] }
  0x83   : > { %1378 = vmatpush.bf16.msra.mxu3 %v2271_v4  ;;  %v2244_v13 = vld [vmem:[%s2650_s7 + $0x20] sm:$0xff]  ;;  %v2243_v17 = vld [vmem:[%s2650_s7 + $0x18] sm:$0xff]  ;;  %v2242_v21 = vld [vmem:[%s2650_s7 + $0x10] sm:$0xff] }
  0x84   : > { %1112 = vmatpush.bf16.msra.mxu0 %v2246_v5  ;;  %v2252_v14 = vld [vmem:[%s2650_s7 + $0x60] sm:$0xff]  ;;  %v2251_v18 = vld [vmem:[%s2650_s7 + $0x58] sm:$0xff]  ;;  %v2250_v22 = vld [vmem:[%s2650_s7 + $0x50] sm:$0xff] }
  0x85   : > { %1201 = vmatpush.bf16.msra.mxu1 %v2254_v6  ;;  %v2260_v15 = vld [vmem:[%s2650_s7 + $0xa0] sm:$0xff]  ;;  %v2259_v19 = vld [vmem:[%s2650_s7 + $0x98] sm:$0xff]  ;;  %v2258_v23 = vld [vmem:[%s2650_s7 + $0x90] sm:$0xff] }
  0x86   : > { %1290 = vmatpush.bf16.msra.mxu2 %v2262_v7  ;;  %v2268_v16 = vld [vmem:[%s2650_s7 + $0xe0] sm:$0xff]  ;;  %v2267_v20 = vld [vmem:[%s2650_s7 + $0xd8] sm:$0xff]  ;;  %v2266_v24 = vld [vmem:[%s2650_s7 + $0xd0] sm:$0xff] }
  0x87   : > { %1379 = vmatpush.bf16.msra.mxu3 %v2270_v8  ;;  %v2241_v25 = vld [vmem:[%s2650_s7 + $0x8] sm:$0xff]  ;;  %v2240_v29 = vld [vmem:[%s2650_s7] sm:$0xff]  ;;  %v2178_v34 = vld [vmem:[%s2652_s8 + $0xc] sm:$0xf0] }
  0x88   : > { %1113 = vmatpush.bf16.msra.mxu0 %v2245_v9  ;;  %v2249_v26 = vld [vmem:[%s2650_s7 + $0x48] sm:$0xff]  ;;  %v2248_v30 = vld [vmem:[%s2650_s7 + $0x40] sm:$0xff]  ;;  %v1790_v36 = vld [vmem:[%s2652_s8 + $0x10] sm:$0xf0] }
  0x89   : > { %1202 = vmatpush.bf16.msra.mxu1 %v2253_v10  ;;  %v2257_v27 = vld [vmem:[%s2650_s7 + $0x88] sm:$0xff]  ;;  %v2256_v31 = vld [vmem:[%s2650_s7 + $0x80] sm:$0xff]  ;;  %v2179_v38 = vld [vmem:[%s2652_s8 + $0x14] sm:$0xf0] }
  0x8a   : > { %1291 = vmatpush.bf16.msra.mxu2 %v2261_v11  ;;  %v2265_v28 = vld [vmem:[%s2650_s7 + $0xc8] sm:$0xff]  ;;  %v2264_v32 = vld [vmem:[%s2650_s7 + $0xc0] sm:$0xff]  ;;  %v1798_v40 = vld [vmem:[%s2652_s8 + $0x18] sm:$0xf0] }
  0x8b   : > { %1380 = vmatpush.bf16.msra.mxu3 %v2269_v12  ;;  %v1788_v33 = vld [vmem:[%s2652_s8] sm:$0xf]  ;;  %v2176_v35 = vld [vmem:[%s2652_s8 + $0x4] sm:$0xf]  ;;  %v1796_v37 = vld [vmem:[%s2652_s8 + $0x8] sm:$0xf] }
  0x8c   : > { %1114 = vmatpush.bf16.msra.mxu0 %v2244_v13  ;;  %v2177_v39 = vld [vmem:[%s2652_s8 + $0xc] sm:$0xf]  ;;  %v1789_v41 = vor.u32 %v2178_v34, %v1788_v33  ;;  %v1793_v42 = vor.u32 %v2176_v35, %v1790_v36  ;;  %v1797_v43 = vor.u32 %v2179_v38, %v1796_v37  ;;  %v1804_v45 = vld [vmem:[%s2652_s8 + $0x20] sm:$0xf]  ;;  %v2182_v46 = vld [vmem:[%s2652_s8 + $0x2c] sm:$0xf0] }
  0x8d   : > { %1203 = vmatpush.bf16.msra.mxu1 %v2252_v14  ;;  %v1801_v44 = vor.u32 %v2177_v39, %v1798_v40  ;;  %v2180_v47 = vld [vmem:[%s2652_s8 + $0x24] sm:$0xf]  ;;  %v1806_v48 = vld [vmem:[%s2652_s8 + $0x30] sm:$0xf0]  ;;  %v1812_v49 = vld [vmem:[%s2652_s8 + $0x28] sm:$0xf]  ;;  %v1805_v53 = vor.u32 %v2182_v46, %v1804_v45 }
  0x8e   : > { %1292 = vmatpush.bf16.msra.mxu2 %v2260_v15  ;;  %v2183_v50 = vld [vmem:[%s2652_s8 + $0x34] sm:$0xf0]  ;;  %v2181_v51 = vld [vmem:[%s2652_s8 + $0x2c] sm:$0xf]  ;;  %v1814_v52 = vld [vmem:[%s2652_s8 + $0x38] sm:$0xf0]  ;;  %v1809_v54 = vor.u32 %v2180_v47, %v1806_v48 }
  0x8f   : > { %1381 = vmatpush.bf16.msra.mxu3 %v2268_v16  ;;  %v1813_v55 = vor.u32 %v2183_v50, %v1812_v49  ;;  %v1817_v56 = vor.u32 %v2181_v51, %v1814_v52  ;;  %v1820_v57 = vld [vmem:[%s2652_s8 + $0x40] sm:$0xf]  ;;  %v2186_v58 = vld [vmem:[%s2652_s8 + $0x4c] sm:$0xf0]  ;;  %v2184_v59 = vld [vmem:[%s2652_s8 + $0x44] sm:$0xf] }
  0x90   : > { %1115 = vmatpush.bf16.msra.mxu0 %v2243_v17  ;;  %v1822_v60 = vld [vmem:[%s2652_s8 + $0x50] sm:$0xf0]  ;;  %v1828_v61 = vld [vmem:[%s2652_s8 + $0x48] sm:$0xf]  ;;  %v2187_v62 = vld [vmem:[%s2652_s8 + $0x54] sm:$0xf0]  ;;  %v1821_v1 = vor.u32 %v2186_v58, %v1820_v57 }
  0x91   : > { %1204 = vmatpush.bf16.msra.mxu1 %v2251_v18  ;;  %v2185_v63 = vld [vmem:[%s2652_s8 + $0x4c] sm:$0xf]  ;;  %v1830_v0 = vld [vmem:[%s2652_s8 + $0x58] sm:$0xf0]  ;;  %v1825_v2 = vor.u32 %v2184_v59, %v1822_v60  ;;  %v1829_v3 = vor.u32 %v2187_v62, %v1828_v61  ;;  %v1836_v5 = vld [vmem:[%s2652_s8 + $0x60] sm:$0xf] }
  0x92   : > { %1293 = vmatpush.bf16.msra.mxu2 %v2259_v19  ;;  %v1833_v4 = vor.u32 %v2185_v63, %v1830_v0  ;;  %v2190_v6 = vld [vmem:[%s2652_s8 + $0x6c] sm:$0xf0]  ;;  %v2188_v7 = vld [vmem:[%s2652_s8 + $0x64] sm:$0xf]  ;;  %v1838_v8 = vld [vmem:[%s2652_s8 + $0x70] sm:$0xf0] }
  0x93   : > { %1382 = vmatpush.bf16.msra.mxu3 %v2267_v20  ;;  %v1844_v9 = vld [vmem:[%s2652_s8 + $0x68] sm:$0xf]  ;;  %v2191_v10 = vld [vmem:[%s2652_s8 + $0x74] sm:$0xf0]  ;;  %v2189_v11 = vld [vmem:[%s2652_s8 + $0x6c] sm:$0xf]  ;;  %v1837_v13 = vor.u32 %v2190_v6, %v1836_v5  ;;  %v1841_v14 = vor.u32 %v2188_v7, %v1838_v8 }
  0x94   : > { %1116 = vmatpush.bf16.msra.mxu0 %v2242_v21  ;;  %v1846_v12 = vld [vmem:[%s2652_s8 + $0x78] sm:$0xf0]  ;;  %v1845_v15 = vor.u32 %v2191_v10, %v1844_v9  ;;  %v1852_v17 = vld [vmem:[%s2652_s8 + $0x80] sm:$0xf]  ;;  %v2194_v18 = vld [vmem:[%s2652_s8 + $0x8c] sm:$0xf0] }
  0x95   : > { %1205 = vmatpush.bf16.msra.mxu1 %v2250_v22  ;;  %v1849_v16 = vor.u32 %v2189_v11, %v1846_v12  ;;  %v2192_v19 = vld [vmem:[%s2652_s8 + $0x84] sm:$0xf]  ;;  %v1854_v20 = vld [vmem:[%s2652_s8 + $0x90] sm:$0xf0]  ;;  %v1860_v21 = vld [vmem:[%s2652_s8 + $0x88] sm:$0xf] }
  0x96   : > { %1294 = vmatpush.bf16.msra.mxu2 %v2258_v23  ;;  %v2195_v22 = vld [vmem:[%s2652_s8 + $0x94] sm:$0xf0]  ;;  %v2193_v23 = vld [vmem:[%s2652_s8 + $0x8c] sm:$0xf]  ;;  %v1876_v33 = vld [vmem:[%s2652_s8 + $0xa8] sm:$0xf] }
  0x97   : > { %1383 = vmatpush.bf16.msra.mxu3 %v2266_v24  ;;  %v1862_v24 = vld [vmem:[%s2652_s8 + $0x98] sm:$0xf0]  ;;  %v2199_v34 = vld [vmem:[%s2652_s8 + $0xb4] sm:$0xf0]  ;;  %v2197_v35 = vld [vmem:[%s2652_s8 + $0xac] sm:$0xf] }
  0x98   : > { %1117 = vmatpush.bf16.msra.mxu0 %v2241_v25  ;;  %v1853_v25 = vor.u32 %v2194_v18, %v1852_v17  ;;  %v1878_v36 = vld [vmem:[%s2652_s8 + $0xb8] sm:$0xf0]  ;;  %v1877_v39 = vor.u32 %v2199_v34, %v1876_v33  ;;  %v1892_v45 = vld [vmem:[%s2652_s8 + $0xc8] sm:$0xf]  ;;  %v2203_v46 = vld [vmem:[%s2652_s8 + $0xd4] sm:$0xf0] }
  0x99   : > { %1206 = vmatpush.bf16.msra.mxu1 %v2249_v26  ;;  %v1857_v26 = vor.u32 %v2192_v19, %v1854_v20  ;;  %v1881_v40 = vor.u32 %v2197_v35, %v1878_v36  ;;  %v2201_v47 = vld [vmem:[%s2652_s8 + $0xcc] sm:$0xf]  ;;  %v1894_v48 = vld [vmem:[%s2652_s8 + $0xd8] sm:$0xf0]  ;;  %v1893_v51 = vor.u32 %v2203_v46, %v1892_v45  ;;  %v1908_v57 = vld [vmem:[%s2652_s8 + $0xe8] sm:$0xf] }
  0x9a   : > { %1295 = vmatpush.bf16.msra.mxu2 %v2257_v27  ;;  %v1861_v27 = vor.u32 %v2195_v22, %v1860_v21  ;;  %v1897_v52 = vor.u32 %v2201_v47, %v1894_v48  ;;  %v2207_v58 = vld [vmem:[%s2652_s8 + $0xf4] sm:$0xf0]  ;;  %v2205_v59 = vld [vmem:[%s2652_s8 + $0xec] sm:$0xf]  ;;  %v1910_v60 = vld [vmem:[%s2652_s8 + $0xf8] sm:$0xf0] }
  0x9b   : > { %1384 = vmatpush.bf16.msra.mxu3 %v2265_v28  ;;  %v1865_v28 = vor.u32 %v2193_v23, %v1862_v24  ;;  %v1909_v63 = vor.u32 %v2207_v58, %v1908_v57  ;;  %v1913_v0 = vor.u32 %v2205_v59, %v1910_v60  ;;  %v1924_v5 = vld [vmem:[%s2652_s8 + $0x108] sm:$0xf]  ;;  %v2211_v6 = vld [vmem:[%s2652_s8 + $0x114] sm:$0xf0]  ;;  %v2209_v7 = vld [vmem:[%s2652_s8 + $0x10c] sm:$0xf] }
  0x9c   : > { %1118 = vmatpush.bf16.msra.mxu0 %v2240_v29  ;;  %v1868_v29 = vld [vmem:[%s2652_s8 + $0xa0] sm:$0xf]  ;;  %v1926_v8 = vld [vmem:[%s2652_s8 + $0x118] sm:$0xf0]  ;;  %v439_v21 = vld [vmem:[#allocation2 + $0xb0] sm:$0xff] }
  0x9d   : > { %1207 = vmatpush.bf16.msra.mxu1 %v2248_v30  ;;  %v2198_v30 = vld [vmem:[%s2652_s8 + $0xac] sm:$0xf0]  ;;  %v1932_v23 = vld [vmem:[%s2652_s8 + $0x120] sm:$0xf]  ;;  %v1950_v57 = vld [vmem:[%s2652_s8 + $0x150] sm:$0xf0] }
  0x9e   : > { %1296 = vmatpush.bf16.msra.mxu2 %v2256_v31  ;;  %v2196_v31 = vld [vmem:[%s2652_s8 + $0xa4] sm:$0xf]  ;;  %v1869_v37 = vor.u32 %v2198_v30, %v1868_v29  ;;  %v2214_v24 = vld [vmem:[%s2652_s8 + $0x12c] sm:$0xf0]  ;;  %v2215_v29 = vld [vmem:[%s2652_s8 + $0x134] sm:$0xf0] }
  0x9f   : > { %1385 = vmatpush.bf16.msra.mxu3 %v2264_v32  ;;  %1119 = vmatmul.bf16.vlgmr.msra.gmra.mxu0 %v1789_v41  ;;  %v1870_v32 = vld [vmem:[%s2652_s8 + $0xb0] sm:$0xf0]  ;;  %v1884_v41 = vld [vmem:[%s2652_s8 + $0xc0] sm:$0xf]  ;;  %v2213_v30 = vld [vmem:[%s2652_s8 + $0x12c] sm:$0xf]  ;;  %v1933_v35 = vor.u32 %v2214_v24, %v1932_v23 }
  0xa0   : > { %1208 = vmatmul.bf16.vlgmr.msra.gmra.mxu1 %v1793_v42  ;;  %v1873_v38 = vor.u32 %v2196_v31, %v1870_v32  ;;  %v2202_v42 = vld [vmem:[%s2652_s8 + $0xcc] sm:$0xf0]  ;;  %v1942_v31 = vld [vmem:[%s2652_s8 + $0x138] sm:$0xf0]  ;;  %v1956_v58 = vld [vmem:[%s2652_s8 + $0x148] sm:$0xf] }
  0xa1   : > { %1297 = vmatmul.bf16.vlgmr.msra.gmra.mxu2 %v1797_v43  ;;  %v2200_v43 = vld [vmem:[%s2652_s8 + $0xc4] sm:$0xf]  ;;  %v1885_v49 = vor.u32 %v2202_v42, %v1884_v41  ;;  %v1945_v41 = vor.u32 %v2213_v30, %v1942_v31  ;;  %v2219_v59 = vld [vmem:[%s2652_s8 + $0x154] sm:$0xf0]  ;;  %v2217_v60 = vld [vmem:[%s2652_s8 + $0x14c] sm:$0xf] }
  0xa2   : > { %1386 = vmatmul.bf16.vlgmr.msra.gmra.mxu3 %v1801_v44  ;;  %v1886_v44 = vld [vmem:[%s2652_s8 + $0xd0] sm:$0xf0]  ;;  %v440_v42 = vld [vmem:[#allocation2] sm:$0xff]  ;;  %v1972_v24 = vld [vmem:[%s2652_s8 + $0x168] sm:$0xf] }
  0xa3   : > { %v1889_v50 = vor.u32 %v2200_v43, %v1886_v44  ;;  %v1966_v23 = vld [vmem:[%s2652_s8 + $0x170] sm:$0xf0] }
  0xaf   : > { %1124 = vmatmul.bf16.gmra.mxu0 %v1805_v53  ;;  %v1900_v53 = vld [vmem:[%s2652_s8 + $0xe0] sm:$0xf] }
  0xb0   : > { %1213 = vmatmul.bf16.gmra.mxu1 %v1809_v54  ;;  %v2206_v54 = vld [vmem:[%s2652_s8 + $0xec] sm:$0xf0] }
  0xb1   : > { %1302 = vmatmul.bf16.gmra.mxu2 %v1813_v55  ;;  %v2204_v55 = vld [vmem:[%s2652_s8 + $0xe4] sm:$0xf]  ;;  %v1901_v61 = vor.u32 %v2206_v54, %v1900_v53  ;;  %v1948_v53 = vld [vmem:[%s2652_s8 + $0x140] sm:$0xf]  ;;  %v2218_v54 = vld [vmem:[%s2652_s8 + $0x14c] sm:$0xf0] }
  0xb2   : > { %1391 = vmatmul.bf16.gmra.mxu3 %v1817_v56  ;;  %v1902_v56 = vld [vmem:[%s2652_s8 + $0xf0] sm:$0xf0] }
  0xb3   : > { %v1905_v62 = vor.u32 %v2204_v55, %v1902_v56  ;;  %v2216_v56 = vld [vmem:[%s2652_s8 + $0x144] sm:$0xf] }
  0xbf   : > { %1129 = vmatmul.bf16.gmra.mxu0 %v1821_v1  ;;  %v1916_v1 = vld [vmem:[%s2652_s8 + $0x100] sm:$0xf] }
  0xc0   : > { %1218 = vmatmul.bf16.gmra.mxu1 %v1825_v2  ;;  %v2210_v2 = vld [vmem:[%s2652_s8 + $0x10c] sm:$0xf0] }
  0xc1   : > { %1307 = vmatmul.bf16.gmra.mxu2 %v1829_v3  ;;  %v2208_v3 = vld [vmem:[%s2652_s8 + $0x104] sm:$0xf]  ;;  %v1917_v9 = vor.u32 %v2210_v2, %v1916_v1  ;;  %v1949_v1 = vor.u32 %v2218_v54, %v1948_v53  ;;  %v1953_v2 = vor.u32 %v2216_v56, %v1950_v57  ;;  %v1982_v53 = vld [vmem:[%s2652_s8 + $0x190] sm:$0xf0]  ;;  %v1988_v54 = vld [vmem:[%s2652_s8 + $0x188] sm:$0xf] }
  0xc2   : > { %1396 = vmatmul.bf16.gmra.mxu3 %v1833_v4  ;;  %v1918_v4 = vld [vmem:[%s2652_s8 + $0x110] sm:$0xf0]  ;;  %v2225_v56 = vld [vmem:[%s2652_s8 + $0x18c] sm:$0xf]  ;;  %v1990_v57 = vld [vmem:[%s2652_s8 + $0x198] sm:$0xf0] }
  0xc3   : > { %v1921_v10 = vor.u32 %v2208_v3, %v1918_v4 }
  0xcf   : > { %1134 = vmatmul.bf16.gmra.mxu0 %v1837_v13  ;;  %v1925_v13 = vor.u32 %v2211_v6, %v1924_v5  ;;  %v1957_v6 = vor.u32 %v2219_v59, %v1956_v58 }
  0xd0   : > { %1223 = vmatmul.bf16.gmra.mxu1 %v1841_v14  ;;  %v1929_v14 = vor.u32 %v2209_v7, %v1926_v8  ;;  %v442_v8 = vld [vmem:[#allocation2 + $0x18] sm:$0xff] }
  0xd1   : > { %1312 = vmatmul.bf16.gmra.mxu2 %v1845_v15 }
  0xd2   : > { %1401 = vmatmul.bf16.gmra.mxu3 %v1849_v16 }
  0xdf   : > { %1139 = vmatmul.bf16.gmra.mxu0 %v1853_v25 }
  0xe0   : > { %1228 = vmatmul.bf16.gmra.mxu1 %v1857_v26  ;;  %v2212_v26 = vld [vmem:[%s2652_s8 + $0x124] sm:$0xf] }
  0xe1   : > { %1317 = vmatmul.bf16.gmra.mxu2 %v1861_v27  ;;  %v1934_v27 = vld [vmem:[%s2652_s8 + $0x130] sm:$0xf0] }
  0xe2   : > { %1406 = vmatmul.bf16.gmra.mxu3 %v1865_v28  ;;  %v1940_v28 = vld [vmem:[%s2652_s8 + $0x128] sm:$0xf]  ;;  %v1937_v36 = vor.u32 %v2212_v26, %v1934_v27  ;;  %v2221_v26 = vld [vmem:[%s2652_s8 + $0x16c] sm:$0xf]  ;;  %v1974_v27 = vld [vmem:[%s2652_s8 + $0x178] sm:$0xf0] }
  0xef   : > { %1144 = vmatmul.bf16.gmra.mxu0 %v1869_v37 }
  0xf0   : > { %1233 = vmatmul.bf16.gmra.mxu1 %v1873_v38 }
  0xf1   : > { %1322 = vmatmul.bf16.gmra.mxu2 %v1877_v39 }
  0xf2   : > { %1411 = vmatmul.bf16.gmra.mxu3 %v1881_v40  ;;  %v1941_v40 = vor.u32 %v2215_v29, %v1940_v28 }
  0xff   : > { %1149 = vmatmul.bf16.gmra.mxu0 %v1885_v49 }
 0x100   : > { %1238 = vmatmul.bf16.gmra.mxu1 %v1889_v50 }
 0x101   : > { %1327 = vmatmul.bf16.gmra.mxu2 %v1893_v51  ;;  %v441_v51 = vld [vmem:[#allocation2 + $0xd8] sm:$0xff] }
 0x102   : > { %1416 = vmatmul.bf16.gmra.mxu3 %v1897_v52 }
 0x10f   : > { %1154 = vmatmul.bf16.gmra.mxu0 %v1901_v61  ;;  %v1958_v61 = vld [vmem:[%s2652_s8 + $0x158] sm:$0xf0] }
 0x110   : > { %1243 = vmatmul.bf16.gmra.mxu1 %v1905_v62  ;;  %v1961_v7 = vor.u32 %v2217_v60, %v1958_v61 }
 0x111   : > { %1332 = vmatmul.bf16.gmra.mxu2 %v1909_v63 }
 0x112   : > { %1421 = vmatmul.bf16.gmra.mxu3 %v1913_v0 }
 0x11c   : > { %v1120_v11 = vpop.f32.mrf.mxu0 }
 0x11d   : > { %v1209_v12 = vpop.f32.mrf.mxu1 }
 0x11e   : > { %v1210_v15 = vadd.f32 %v1209_v12, %v1120_v11 }
 0x11f   : > { %1159 = vmatmul.bf16.gmra.mxu0 %v1917_v9 }
 0x120   : > { %1248 = vmatmul.bf16.gmra.mxu1 %v1921_v10 }
 0x121   : > { %1337 = vmatmul.bf16.gmra.mxu2 %v1925_v13 }
 0x122   : > { %1426 = vmatmul.bf16.gmra.mxu3 %v1929_v14 }
 0x124   : > { %v1298_v16 = vpop.f32.mrf.mxu2  ;;  %v1122_v19 = vpop.f32.mrf.mxu0 }
 0x125   : > { %v1387_v17 = vpop.f32.mrf.mxu3  ;;  %v1299_v18 = vadd.f32 %v1298_v16, %v1210_v15  ;;  %v1211_v20 = vpop.f32.mrf.mxu1 }
 0x126   : > { %v1212_v32 = vadd.f32 %v1211_v20, %v1122_v19  ;;  %v1964_v19 = vld [vmem:[%s2652_s8 + $0x160] sm:$0xf]  ;;  %v2222_v20 = vld [vmem:[%s2652_s8 + $0x16c] sm:$0xf0] }
 0x127   : > { %v1388_v22 = vadd.f32 %v1387_v17, %v1299_v18  ;;  %v443_v17 = vld [vmem:[#allocation2 + $0x50] sm:$0xff]  ;;  %v1965_v31 = vor.u32 %v2222_v20, %v1964_v19  ;;  %v2004_v20 = vld [vmem:[%s2652_s8 + $0x1a8] sm:$0xf] }
 0x128   : > { %v1998_v19 = vld [vmem:[%s2652_s8 + $0x1b0] sm:$0xf0] }
 0x129   : > { %v1467_v25 = vadd.f32 %v1388_v22, %v439_v21  ;;  %v2220_v22 = vld [vmem:[%s2652_s8 + $0x164] sm:$0xf] }
 0x12b   : > { %1499 = vst [vmem:[#allocation2 + $0xb0] sm:$0xff] %v1467_v25  ;;  %v2223_v25 = vld [vmem:[%s2652_s8 + $0x174] sm:$0xf0] }
 0x12c   : > { %v1300_v33 = vpop.f32.mrf.mxu2  ;;  %v1125_v38 = vpop.f32.mrf.mxu0 }
 0x12d   : > { %v1389_v34 = vpop.f32.mrf.mxu3  ;;  %v1301_v37 = vadd.f32 %v1300_v33, %v1212_v32  ;;  %v1214_v39 = vpop.f32.mrf.mxu1  ;;  %v1969_v32 = vor.u32 %v2220_v22, %v1966_v23  ;;  %v2229_v22 = vld [vmem:[%s2652_s8 + $0x1ac] sm:$0xf]  ;;  %v2006_v23 = vld [vmem:[%s2652_s8 + $0x1b8] sm:$0xf0] }
 0x12e   : > { %v1215_v45 = vadd.f32 %v1214_v39, %v1125_v38  ;;  %v444_v38 = vld [vmem:[#allocation2 + $0x68] sm:$0xff] }
 0x12f   : > { %v1390_v43 = vadd.f32 %v1389_v34, %v1301_v37  ;;  %1164 = vmatmul.bf16.gmra.mxu0 %v1933_v35  ;;  %v1977_v37 = vor.u32 %v2221_v26, %v1974_v27 }
 0x130   : > { %1253 = vmatmul.bf16.gmra.mxu1 %v1937_v36  ;;  %v1973_v36 = vor.u32 %v2223_v25, %v1972_v24 }
 0x131   : > { %v1468_v44 = vadd.f32 %v1390_v43, %v440_v42  ;;  %1342 = vmatmul.bf16.gmra.mxu2 %v1941_v40 }
 0x132   : > { %1431 = vmatmul.bf16.gmra.mxu3 %v1945_v41 }
 0x133   : > { %1500 = vst [vmem:[#allocation2] sm:$0xff] %v1468_v44 }
 0x134   : > { %v1303_v46 = vpop.f32.mrf.mxu2  ;;  %v1127_v49 = vpop.f32.mrf.mxu0 }
 0x135   : > { %v1392_v47 = vpop.f32.mrf.mxu3  ;;  %v1304_v48 = vadd.f32 %v1303_v46, %v1215_v45  ;;  %v1216_v50 = vpop.f32.mrf.mxu1 }
 0x136   : > { %v1217_v62 = vadd.f32 %v1216_v50, %v1127_v49  ;;  %v1980_v49 = vld [vmem:[%s2652_s8 + $0x180] sm:$0xf]  ;;  %v2226_v50 = vld [vmem:[%s2652_s8 + $0x18c] sm:$0xf0] }
 0x137   : > { %v1393_v52 = vadd.f32 %v1392_v47, %v1304_v48  ;;  %v445_v47 = vld [vmem:[#allocation2 + $0x30] sm:$0xff]  ;;  %v1981_v61 = vor.u32 %v2226_v50, %v1980_v49  ;;  %v2020_v50 = vld [vmem:[%s2652_s8 + $0x1c8] sm:$0xf] }
 0x138   : > { %v2014_v49 = vld [vmem:[%s2652_s8 + $0x1d0] sm:$0xf0] }
 0x139   : > { %v1469_v55 = vadd.f32 %v1393_v52, %v441_v51  ;;  %v2224_v52 = vld [vmem:[%s2652_s8 + $0x184] sm:$0xf] }
 0x13b   : > { %1501 = vst [vmem:[#allocation2 + $0xd8] sm:$0xff] %v1469_v55  ;;  %v2227_v55 = vld [vmem:[%s2652_s8 + $0x194] sm:$0xf0] }
 0x13c   : > { %v1305_v63 = vpop.f32.mrf.mxu2  ;;  %v1130_v4 = vpop.f32.mrf.mxu0 }
 0x13d   : > { %v1394_v0 = vpop.f32.mrf.mxu3  ;;  %v1306_v3 = vadd.f32 %v1305_v63, %v1217_v62  ;;  %v1219_v5 = vpop.f32.mrf.mxu1  ;;  %v1985_v62 = vor.u32 %v2224_v52, %v1982_v53  ;;  %v2233_v52 = vld [vmem:[%s2652_s8 + $0x1cc] sm:$0xf]  ;;  %v2022_v53 = vld [vmem:[%s2652_s8 + $0x1d8] sm:$0xf0] }
 0x13e   : > { %v1220_v11 = vadd.f32 %v1219_v5, %v1130_v4  ;;  %v446_v4 = vld [vmem:[#allocation2 + $0x48] sm:$0xff] }
 0x13f   : > { %v1395_v9 = vadd.f32 %v1394_v0, %v1306_v3  ;;  %1169 = vmatmul.bf16.gmra.mxu0 %v1949_v1  ;;  %v1993_v3 = vor.u32 %v2225_v56, %v1990_v57 }
 0x140   : > { %1258 = vmatmul.bf16.gmra.mxu1 %v1953_v2  ;;  %v1989_v2 = vor.u32 %v2227_v55, %v1988_v54 }
 0x141   : > { %v1470_v10 = vadd.f32 %v1395_v9, %v442_v8  ;;  %1347 = vmatmul.bf16.gmra.mxu2 %v1957_v6 }
 0x142   : > { %1436 = vmatmul.bf16.gmra.mxu3 %v1961_v7 }
 0x143   : > { %1502 = vst [vmem:[#allocation2 + $0x18] sm:$0xff] %v1470_v10 }
 0x144   : > { %v1308_v12 = vpop.f32.mrf.mxu2  ;;  %v1132_v15 = vpop.f32.mrf.mxu0 }
 0x145   : > { %v1397_v13 = vpop.f32.mrf.mxu3  ;;  %v1309_v14 = vadd.f32 %v1308_v12, %v1220_v11  ;;  %v1221_v16 = vpop.f32.mrf.mxu1 }
 0x146   : > { %v1222_v28 = vadd.f32 %v1221_v16, %v1132_v15  ;;  %v1996_v15 = vld [vmem:[%s2652_s8 + $0x1a0] sm:$0xf]  ;;  %v2230_v16 = vld [vmem:[%s2652_s8 + $0x1ac] sm:$0xf0] }
 0x147   : > { %v1398_v18 = vadd.f32 %v1397_v13, %v1309_v14  ;;  %v447_v13 = vld [vmem:[#allocation2 + $0x80] sm:$0xff]  ;;  %v1997_v27 = vor.u32 %v2230_v16, %v1996_v15  ;;  %v2030_v15 = vld [vmem:[%s2652_s8 + $0x1f0] sm:$0xf0]  ;;  %v2036_v16 = vld [vmem:[%s2652_s8 + $0x1e8] sm:$0xf] }
 0x149   : > { %v1471_v21 = vadd.f32 %v1398_v18, %v443_v17  ;;  %v2228_v18 = vld [vmem:[%s2652_s8 + $0x1a4] sm:$0xf] }
 0x14b   : > { %1503 = vst [vmem:[#allocation2 + $0x50] sm:$0xff] %v1471_v21  ;;  %v2231_v21 = vld [vmem:[%s2652_s8 + $0x1b4] sm:$0xf0] }
 0x14c   : > { %v1310_v29 = vpop.f32.mrf.mxu2  ;;  %v1135_v34 = vpop.f32.mrf.mxu0 }
 0x14d   : > { %v1399_v30 = vpop.f32.mrf.mxu3  ;;  %v1311_v33 = vadd.f32 %v1310_v29, %v1222_v28  ;;  %v1224_v35 = vpop.f32.mrf.mxu1  ;;  %v2001_v28 = vor.u32 %v2228_v18, %v1998_v19  ;;  %v2237_v18 = vld [vmem:[%s2652_s8 + $0x1ec] sm:$0xf]  ;;  %v2038_v19 = vld [vmem:[%s2652_s8 + $0x1f8] sm:$0xf0] }
 0x14e   : > { %v1225_v41 = vadd.f32 %v1224_v35, %v1135_v34  ;;  %v448_v34 = vld [vmem:[#allocation2 + $0x88] sm:$0xff] }
 0x14f   : > { %v1400_v39 = vadd.f32 %v1399_v30, %v1311_v33  ;;  %1174 = vmatmul.bf16.gmra.mxu0 %v1965_v31  ;;  %v2009_v33 = vor.u32 %v2229_v22, %v2006_v23 }
 0x150   : > { %1263 = vmatmul.bf16.gmra.mxu1 %v1969_v32  ;;  %v2005_v32 = vor.u32 %v2231_v21, %v2004_v20 }
 0x151   : > { %v1472_v40 = vadd.f32 %v1400_v39, %v444_v38  ;;  %1352 = vmatmul.bf16.gmra.mxu2 %v1973_v36 }
 0x152   : > { %1441 = vmatmul.bf16.gmra.mxu3 %v1977_v37 }
 0x153   : > { %1504 = vst [vmem:[#allocation2 + $0x68] sm:$0xff] %v1472_v40 }
 0x154   : > { %v1313_v42 = vpop.f32.mrf.mxu2  ;;  %v1137_v45 = vpop.f32.mrf.mxu0 }
 0x155   : > { %v1402_v43 = vpop.f32.mrf.mxu3  ;;  %v1314_v44 = vadd.f32 %v1313_v42, %v1225_v41  ;;  %v1226_v46 = vpop.f32.mrf.mxu1 }
 0x156   : > { %v1227_v58 = vadd.f32 %v1226_v46, %v1137_v45  ;;  %v2012_v45 = vld [vmem:[%s2652_s8 + $0x1c0] sm:$0xf]  ;;  %v2234_v46 = vld [vmem:[%s2652_s8 + $0x1cc] sm:$0xf0] }
 0x157   : > { %v1403_v48 = vadd.f32 %v1402_v43, %v1314_v44  ;;  %v449_v43 = vld [vmem:[#allocation2 + $0xe8] sm:$0xff]  ;;  %v2013_v57 = vor.u32 %v2234_v46, %v2012_v45 }
 0x159   : > { %v1473_v51 = vadd.f32 %v1403_v48, %v445_v47  ;;  %v2232_v48 = vld [vmem:[%s2652_s8 + $0x1c4] sm:$0xf] }
 0x15b   : > { %1505 = vst [vmem:[#allocation2 + $0x30] sm:$0xff] %v1473_v51  ;;  %v2235_v51 = vld [vmem:[%s2652_s8 + $0x1d4] sm:$0xf0] }
 0x15c   : > { %v1315_v59 = vpop.f32.mrf.mxu2  ;;  %v1140_v0 = vpop.f32.mrf.mxu0 }
 0x15d   : > { %v1404_v60 = vpop.f32.mrf.mxu3  ;;  %v1316_v63 = vadd.f32 %v1315_v59, %v1227_v58  ;;  %v1229_v1 = vpop.f32.mrf.mxu1  ;;  %v2017_v58 = vor.u32 %v2232_v48, %v2014_v49  ;;  %v454_v48 = vld [vmem:[#allocation2 + $0x78] sm:$0xff] }
 0x15e   : > { %v1230_v7 = vadd.f32 %v1229_v1, %v1140_v0  ;;  %v450_v0 = vld [vmem:[#allocation2 + $0xb8] sm:$0xff] }
 0x15f   : > { %v1405_v5 = vadd.f32 %v1404_v60, %v1316_v63  ;;  %1179 = vmatmul.bf16.gmra.mxu0 %v1981_v61  ;;  %v2025_v63 = vor.u32 %v2233_v52, %v2022_v53 }
 0x160   : > { %1268 = vmatmul.bf16.gmra.mxu1 %v1985_v62  ;;  %v2021_v62 = vor.u32 %v2235_v51, %v2020_v50 }
 0x161   : > { %v1474_v6 = vadd.f32 %v1405_v5, %v446_v4  ;;  %1357 = vmatmul.bf16.gmra.mxu2 %v1989_v2 }
 0x162   : > { %1446 = vmatmul.bf16.gmra.mxu3 %v1993_v3 }
 0x163   : > { %1506 = vst [vmem:[#allocation2 + $0x48] sm:$0xff] %v1474_v6 }
 0x164   : > { %v1318_v8 = vpop.f32.mrf.mxu2  ;;  %v1142_v11 = vpop.f32.mrf.mxu0 }
 0x165   : > { %v1407_v9 = vpop.f32.mrf.mxu3  ;;  %v1319_v10 = vadd.f32 %v1318_v8, %v1230_v7  ;;  %v1231_v12 = vpop.f32.mrf.mxu1 }
 0x166   : > { %v1232_v24 = vadd.f32 %v1231_v12, %v1142_v11  ;;  %v2028_v11 = vld [vmem:[%s2652_s8 + $0x1e0] sm:$0xf]  ;;  %v2238_v12 = vld [vmem:[%s2652_s8 + $0x1ec] sm:$0xf0] }
 0x167   : > { %v1408_v14 = vadd.f32 %v1407_v9, %v1319_v10  ;;  %v451_v9 = vld [vmem:[#allocation2 + $0x60] sm:$0xff]  ;;  %v2029_v23 = vor.u32 %v2238_v12, %v2028_v11 }
 0x168   : > { %v457_v11 = vld [vmem:[#allocation2 + $0x40] sm:$0xff] }
 0x169   : > { %v1475_v17 = vadd.f32 %v1408_v14, %v447_v13  ;;  %v2236_v14 = vld [vmem:[%s2652_s8 + $0x1e4] sm:$0xf] }
 0x16b   : > { %1507 = vst [vmem:[#allocation2 + $0x80] sm:$0xff] %v1475_v17  ;;  %v2239_v17 = vld [vmem:[%s2652_s8 + $0x1f4] sm:$0xf0] }
 0x16c   : > { %v1320_v25 = vpop.f32.mrf.mxu2  ;;  %v1145_v30 = vpop.f32.mrf.mxu0 }
 0x16d   : > { %v1409_v26 = vpop.f32.mrf.mxu3  ;;  %v1321_v29 = vadd.f32 %v1320_v25, %v1232_v24  ;;  %v1234_v31 = vpop.f32.mrf.mxu1  ;;  %v2033_v24 = vor.u32 %v2236_v14, %v2030_v15 }
 0x16e   : > { %v1235_v37 = vadd.f32 %v1234_v31, %v1145_v30  ;;  %v452_v30 = vld [vmem:[#allocation2 + $0xf0] sm:$0xff] }
 0x16f   : > { %v1410_v35 = vadd.f32 %v1409_v26, %v1321_v29  ;;  %1184 = vmatmul.bf16.gmra.mxu0 %v1997_v27  ;;  %v2041_v29 = vor.u32 %v2237_v18, %v2038_v19 }
 0x170   : > { %1273 = vmatmul.bf16.gmra.mxu1 %v2001_v28  ;;  %v2037_v28 = vor.u32 %v2239_v17, %v2036_v16 }
 0x171   : > { %v1476_v36 = vadd.f32 %v1410_v35, %v448_v34  ;;  %1362 = vmatmul.bf16.gmra.mxu2 %v2005_v32 }
 0x172   : > { %1451 = vmatmul.bf16.gmra.mxu3 %v2009_v33 }
 0x173   : > { %1508 = vst [vmem:[#allocation2 + $0x88] sm:$0xff] %v1476_v36 }
 0x174   : > { %v1323_v38 = vpop.f32.mrf.mxu2  ;;  %v1147_v41 = vpop.f32.mrf.mxu0 }
 0x175   : > { %v1412_v39 = vpop.f32.mrf.mxu3  ;;  %v1324_v40 = vadd.f32 %v1323_v38, %v1235_v37  ;;  %v1236_v42 = vpop.f32.mrf.mxu1 }
 0x176   : > { %v1237_v54 = vadd.f32 %v1236_v42, %v1147_v41 }
 0x177   : > { %v1413_v44 = vadd.f32 %v1412_v39, %v1324_v40  ;;  %v453_v39 = vld [vmem:[#allocation2 + $0x8] sm:$0xff] }
 0x179   : > { %v1477_v47 = vadd.f32 %v1413_v44, %v449_v43 }
 0x17b   : > { %1509 = vst [vmem:[#allocation2 + $0xe8] sm:$0xff] %v1477_v47 }
 0x17c   : > { %v1325_v55 = vpop.f32.mrf.mxu2  ;;  %v1150_v60 = vpop.f32.mrf.mxu0 }
 0x17d   : > { %v1414_v56 = vpop.f32.mrf.mxu3  ;;  %v1326_v59 = vadd.f32 %v1325_v55, %v1237_v54  ;;  %v1239_v61 = vpop.f32.mrf.mxu1 }
 0x17e   : > { %v1240_v3 = vadd.f32 %v1239_v61, %v1150_v60 }
 0x17f   : > { %v1415_v1 = vadd.f32 %v1414_v56, %v1326_v59  ;;  %1189 = vmatmul.bf16.gmra.mxu0 %v2013_v57  ;;  %v455_v57 = vld [vmem:[#allocation2 + $0x38] sm:$0xff] }
 0x180   : > { %1278 = vmatmul.bf16.gmra.mxu1 %v2017_v58 }
 0x181   : > { %v1478_v2 = vadd.f32 %v1415_v1, %v450_v0  ;;  %1367 = vmatmul.bf16.gmra.mxu2 %v2021_v62 }
 0x182   : > { %1456 = vmatmul.bf16.gmra.mxu3 %v2025_v63 }
 0x183   : > { %1510 = vst [vmem:[#allocation2 + $0xb8] sm:$0xff] %v1478_v2  ;;  %v456_v2 = vld [vmem:[#allocation2 + $0x58] sm:$0xff] }
 0x184   : > { %v1328_v4 = vpop.f32.mrf.mxu2  ;;  %v1152_v7 = vpop.f32.mrf.mxu0 }
 0x185   : > { %v1417_v5 = vpop.f32.mrf.mxu3  ;;  %v1329_v6 = vadd.f32 %v1328_v4, %v1240_v3  ;;  %v1241_v8 = vpop.f32.mrf.mxu1 }
 0x186   : > { %v1242_v20 = vadd.f32 %v1241_v8, %v1152_v7 }
 0x187   : > { %v1418_v10 = vadd.f32 %v1417_v5, %v1329_v6 }
 0x189   : > { %v1479_v13 = vadd.f32 %v1418_v10, %v451_v9 }
 0x18b   : > { %1511 = vst [vmem:[#allocation2 + $0x60] sm:$0xff] %v1479_v13 }
 0x18c   : > { %v1330_v21 = vpop.f32.mrf.mxu2  ;;  %v1155_v26 = vpop.f32.mrf.mxu0 }
 0x18d   : > { %v1419_v22 = vpop.f32.mrf.mxu3  ;;  %v1331_v25 = vadd.f32 %v1330_v21, %v1242_v20  ;;  %v1244_v27 = vpop.f32.mrf.mxu1  ;;  %v458_v20 = vld [vmem:[#allocation2 + $0xc8] sm:$0xff] }
 0x18e   : > { %v1245_v33 = vadd.f32 %v1244_v27, %v1155_v26 }
 0x18f   : > { %v1420_v31 = vadd.f32 %v1419_v22, %v1331_v25  ;;  %1194 = vmatmul.bf16.gmra.mxu0 %v2029_v23 }
 0x190   : > { %1283 = vmatmul.bf16.gmra.mxu1 %v2033_v24 }
 0x191   : > { %v1480_v32 = vadd.f32 %v1420_v31, %v452_v30  ;;  %1372 = vmatmul.bf16.gmra.mxu2 %v2037_v28 }
 0x192   : > { %1461 = vmatmul.bf16.gmra.mxu3 %v2041_v29  ;;  %v459_v29 = vld [vmem:[#allocation2 + $0xe0] sm:$0xff] }
 0x193   : > { %1512 = vst [vmem:[#allocation2 + $0xf0] sm:$0xff] %v1480_v32 }
 0x194   : > { %v1333_v34 = vpop.f32.mrf.mxu2  ;;  %v1157_v37 = vpop.f32.mrf.mxu0 }
 0x195   : > { %v1422_v35 = vpop.f32.mrf.mxu3  ;;  %v1334_v36 = vadd.f32 %v1333_v34, %v1245_v33  ;;  %v1246_v38 = vpop.f32.mrf.mxu1 }
 0x196   : > { %v1247_v42 = vadd.f32 %v1246_v38, %v1157_v37  ;;  %v460_v38 = vld [vmem:[#allocation2 + $0x90] sm:$0xff] }
 0x197   : > { %v1423_v40 = vadd.f32 %v1422_v35, %v1334_v36 }
 0x199   : > { %v1481_v41 = vadd.f32 %v1423_v40, %v453_v39 }
 0x19b   : > { %1513 = vst [vmem:[#allocation2 + $0x8] sm:$0xff] %v1481_v41 }
 0x19c   : > { %v1335_v43 = vpop.f32.mrf.mxu2  ;;  %v1160_v46 = vpop.f32.mrf.mxu0 }
 0x19d   : > { %v1424_v44 = vpop.f32.mrf.mxu3  ;;  %v1336_v45 = vadd.f32 %v1335_v43, %v1247_v42  ;;  %v1249_v47 = vpop.f32.mrf.mxu1 }
 0x19e   : > { %v1250_v51 = vadd.f32 %v1249_v47, %v1160_v46  ;;  %v461_v47 = vld [vmem:[#allocation2 + $0x70] sm:$0xff] }
 0x19f   : > { %v1425_v49 = vadd.f32 %v1424_v44, %v1336_v45 }
 0x1a1   : > { %v1482_v50 = vadd.f32 %v1425_v49, %v454_v48 }
 0x1a3   : > { %1514 = vst [vmem:[#allocation2 + $0x78] sm:$0xff] %v1482_v50 }
 0x1a4   : > { %v1338_v52 = vpop.f32.mrf.mxu2  ;;  %v1162_v55 = vpop.f32.mrf.mxu0 }
 0x1a5   : > { %v1427_v53 = vpop.f32.mrf.mxu3  ;;  %v1339_v54 = vadd.f32 %v1338_v52, %v1250_v51  ;;  %v1251_v56 = vpop.f32.mrf.mxu1 }
 0x1a6   : > { %v1252_v60 = vadd.f32 %v1251_v56, %v1162_v55  ;;  %v462_v56 = vld [vmem:[#allocation2 + $0xc0] sm:$0xff] }
 0x1a7   : > { %v1428_v58 = vadd.f32 %v1427_v53, %v1339_v54 }
 0x1a9   : > { %v1483_v59 = vadd.f32 %v1428_v58, %v455_v57 }
 0x1ab   : > { %1515 = vst [vmem:[#allocation2 + $0x38] sm:$0xff] %v1483_v59 }
 0x1ac   : > { %v1340_v61 = vpop.f32.mrf.mxu2  ;;  %v1165_v0 = vpop.f32.mrf.mxu0 }
 0x1ad   : > { %v1429_v62 = vpop.f32.mrf.mxu3  ;;  %v1341_v63 = vadd.f32 %v1340_v61, %v1252_v60  ;;  %v1254_v1 = vpop.f32.mrf.mxu1 }
 0x1ae   : > { %v1255_v5 = vadd.f32 %v1254_v1, %v1165_v0  ;;  %v463_v1 = vld [vmem:[#allocation2 + $0xa8] sm:$0xff] }
 0x1af   : > { %v1430_v3 = vadd.f32 %v1429_v62, %v1341_v63 }
 0x1b1   : > { %v1484_v4 = vadd.f32 %v1430_v3, %v456_v2 }
 0x1b3   : > { %1516 = vst [vmem:[#allocation2 + $0x58] sm:$0xff] %v1484_v4 }
 0x1b4   : > { %v1343_v6 = vpop.f32.mrf.mxu2  ;;  %v1167_v9 = vpop.f32.mrf.mxu0 }
 0x1b5   : > { %v1432_v7 = vpop.f32.mrf.mxu3  ;;  %v1344_v8 = vadd.f32 %v1343_v6, %v1255_v5  ;;  %v1256_v10 = vpop.f32.mrf.mxu1 }
 0x1b6   : > { %v1257_v14 = vadd.f32 %v1256_v10, %v1167_v9  ;;  %v464_v10 = vld [vmem:[#allocation2 + $0xd0] sm:$0xff] }
 0x1b7   : > { %v1433_v12 = vadd.f32 %v1432_v7, %v1344_v8 }
 0x1b9   : > { %v1485_v13 = vadd.f32 %v1433_v12, %v457_v11 }
 0x1bb   : > { %1517 = vst [vmem:[#allocation2 + $0x40] sm:$0xff] %v1485_v13 }
 0x1bc   : > { %v1345_v15 = vpop.f32.mrf.mxu2  ;;  %v1170_v18 = vpop.f32.mrf.mxu0 }
 0x1bd   : > { %v1434_v16 = vpop.f32.mrf.mxu3  ;;  %v1346_v17 = vadd.f32 %v1345_v15, %v1257_v14  ;;  %v1259_v19 = vpop.f32.mrf.mxu1 }
 0x1be   : > { %v1260_v23 = vadd.f32 %v1259_v19, %v1170_v18  ;;  %v465_v19 = vld [vmem:[#allocation2 + $0x10] sm:$0xff] }
 0x1bf   : > { %v1435_v21 = vadd.f32 %v1434_v16, %v1346_v17 }
 0x1c1   : > { %v1486_v22 = vadd.f32 %v1435_v21, %v458_v20 }
 0x1c3   : > { %1518 = vst [vmem:[#allocation2 + $0xc8] sm:$0xff] %v1486_v22 }
 0x1c4   : > { %v1348_v24 = vpop.f32.mrf.mxu2  ;;  %v1172_v27 = vpop.f32.mrf.mxu0 }
 0x1c5   : > { %v1437_v25 = vpop.f32.mrf.mxu3  ;;  %v1349_v26 = vadd.f32 %v1348_v24, %v1260_v23  ;;  %v1261_v28 = vpop.f32.mrf.mxu1 }
 0x1c6   : > { %v1262_v32 = vadd.f32 %v1261_v28, %v1172_v27  ;;  %v466_v28 = vld [vmem:[#allocation2 + $0x28] sm:$0xff] }
 0x1c7   : > { %v1438_v30 = vadd.f32 %v1437_v25, %v1349_v26 }
 0x1c9   : > { %v1487_v31 = vadd.f32 %v1438_v30, %v459_v29 }
 0x1cb   : > { %1519 = vst [vmem:[#allocation2 + $0xe0] sm:$0xff] %v1487_v31 }
 0x1cc   : > { %v1350_v33 = vpop.f32.mrf.mxu2  ;;  %v1175_v36 = vpop.f32.mrf.mxu0 }
 0x1cd   : > { %v1439_v34 = vpop.f32.mrf.mxu3  ;;  %v1351_v35 = vadd.f32 %v1350_v33, %v1262_v32  ;;  %v1264_v37 = vpop.f32.mrf.mxu1 }
 0x1ce   : > { %v1265_v41 = vadd.f32 %v1264_v37, %v1175_v36  ;;  %v467_v37 = vld [vmem:[#allocation2 + $0xa0] sm:$0xff] }
 0x1cf   : > { %v1440_v39 = vadd.f32 %v1439_v34, %v1351_v35 }
 0x1d1   : > { %v1488_v40 = vadd.f32 %v1440_v39, %v460_v38 }
 0x1d3   : > { %1520 = vst [vmem:[#allocation2 + $0x90] sm:$0xff] %v1488_v40 }
 0x1d4   : > { %v1353_v42 = vpop.f32.mrf.mxu2  ;;  %v1177_v45 = vpop.f32.mrf.mxu0 }
 0x1d5   : > { %v1442_v43 = vpop.f32.mrf.mxu3  ;;  %v1354_v44 = vadd.f32 %v1353_v42, %v1265_v41  ;;  %v1266_v46 = vpop.f32.mrf.mxu1 }
 0x1d6   : > { %v1267_v50 = vadd.f32 %v1266_v46, %v1177_v45 }
 0x1d7   : > { %v1443_v48 = vadd.f32 %v1442_v43, %v1354_v44  ;;  %v468_v44 = vld [vmem:[#allocation2 + $0xf8] sm:$0xff] }
 0x1d9   : > { %v1489_v49 = vadd.f32 %v1443_v48, %v461_v47 }
 0x1db   : > { %1521 = vst [vmem:[#allocation2 + $0x70] sm:$0xff] %v1489_v49 }
 0x1dc   : > { %v1355_v51 = vpop.f32.mrf.mxu2  ;;  %v1180_v54 = vpop.f32.mrf.mxu0 }
 0x1dd   : > { %v1444_v52 = vpop.f32.mrf.mxu3  ;;  %v1356_v53 = vadd.f32 %v1355_v51, %v1267_v50  ;;  %v1269_v55 = vpop.f32.mrf.mxu1 }
 0x1de   : > { %v1270_v59 = vadd.f32 %v1269_v55, %v1180_v54 }
 0x1df   : > { %v1445_v57 = vadd.f32 %v1444_v52, %v1356_v53  ;;  %v469_v53 = vld [vmem:[#allocation2 + $0x20] sm:$0xff] }
 0x1e1   : > { %v1490_v58 = vadd.f32 %v1445_v57, %v462_v56 }
 0x1e3   : > { %1522 = vst [vmem:[#allocation2 + $0xc0] sm:$0xff] %v1490_v58 }
 0x1e4   : > { %v1358_v60 = vpop.f32.mrf.mxu2  ;;  %v1182_v63 = vpop.f32.mrf.mxu0 }
 0x1e5   : > { %v1447_v61 = vpop.f32.mrf.mxu3  ;;  %v1359_v62 = vadd.f32 %v1358_v60, %v1270_v59  ;;  %v1271_v0 = vpop.f32.mrf.mxu1 }
 0x1e6   : > { %v1272_v4 = vadd.f32 %v1271_v0, %v1182_v63 }
 0x1e7   : > { %v1448_v2 = vadd.f32 %v1447_v61, %v1359_v62  ;;  %v470_v61 = vld [vmem:[#allocation2 + $0x98] sm:$0xff] }
 0x1e9   : > { %v1491_v3 = vadd.f32 %v1448_v2, %v463_v1 }
 0x1eb   : > { %1523 = vst [vmem:[#allocation2 + $0xa8] sm:$0xff] %v1491_v3 }
 0x1ec   : > { %v1360_v5 = vpop.f32.mrf.mxu2  ;;  %v1185_v8 = vpop.f32.mrf.mxu0 }
 0x1ed   : > { %v1449_v6 = vpop.f32.mrf.mxu3  ;;  %v1361_v7 = vadd.f32 %v1360_v5, %v1272_v4  ;;  %v1274_v9 = vpop.f32.mrf.mxu1 }
 0x1ee   : > { %v1275_v13 = vadd.f32 %v1274_v9, %v1185_v8 }
 0x1ef   : > { %v1450_v11 = vadd.f32 %v1449_v6, %v1361_v7 }
 0x1f1   : > { %v1492_v12 = vadd.f32 %v1450_v11, %v464_v10 }
 0x1f3   : > { %1524 = vst [vmem:[#allocation2 + $0xd0] sm:$0xff] %v1492_v12 }
 0x1f4   : > { %v1363_v14 = vpop.f32.mrf.mxu2  ;;  %v1187_v17 = vpop.f32.mrf.mxu0 }
 0x1f5   : > { %v1452_v15 = vpop.f32.mrf.mxu3  ;;  %v1364_v16 = vadd.f32 %v1363_v14, %v1275_v13  ;;  %v1276_v18 = vpop.f32.mrf.mxu1 }
 0x1f6   : > { %v1277_v22 = vadd.f32 %v1276_v18, %v1187_v17 }
 0x1f7   : > { %v1453_v20 = vadd.f32 %v1452_v15, %v1364_v16 }
 0x1f9   : > { %v1493_v21 = vadd.f32 %v1453_v20, %v465_v19 }
 0x1fb   : > { %1525 = vst [vmem:[#allocation2 + $0x10] sm:$0xff] %v1493_v21 }
 0x1fc   : > { %v1365_v23 = vpop.f32.mrf.mxu2  ;;  %v1190_v26 = vpop.f32.mrf.mxu0 }
 0x1fd   : > { %v1454_v24 = vpop.f32.mrf.mxu3  ;;  %v1366_v25 = vadd.f32 %v1365_v23, %v1277_v22  ;;  %v1279_v27 = vpop.f32.mrf.mxu1 }
 0x1fe   : > { %v1280_v31 = vadd.f32 %v1279_v27, %v1190_v26 }
 0x1ff   : > { %v1455_v29 = vadd.f32 %v1454_v24, %v1366_v25 }
 0x201   : > { %v1494_v30 = vadd.f32 %v1455_v29, %v466_v28 }
 0x203   : > { %1526 = vst [vmem:[#allocation2 + $0x28] sm:$0xff] %v1494_v30 }
 0x204   : > { %v1368_v32 = vpop.f32.mrf.mxu2  ;;  %v1192_v35 = vpop.f32.mrf.mxu0 }
 0x205   : > { %v1457_v33 = vpop.f32.mrf.mxu3  ;;  %v1369_v34 = vadd.f32 %v1368_v32, %v1280_v31  ;;  %v1281_v36 = vpop.f32.mrf.mxu1 }
 0x206   : > { %v1282_v40 = vadd.f32 %v1281_v36, %v1192_v35 }
 0x207   : > { %v1458_v38 = vadd.f32 %v1457_v33, %v1369_v34 }
 0x209   : > { %v1495_v39 = vadd.f32 %v1458_v38, %v467_v37 }
 0x20b   : > { %1527 = vst [vmem:[#allocation2 + $0xa0] sm:$0xff] %v1495_v39 }
 0x20c   : > { %v1370_v41 = vpop.f32.mrf.mxu2  ;;  %v1195_v45 = vpop.f32.mrf.mxu0 }
 0x20d   : > { %v1459_v42 = vpop.f32.mrf.mxu3  ;;  %v1371_v43 = vadd.f32 %v1370_v41, %v1282_v40  ;;  %v1284_v46 = vpop.f32.mrf.mxu1 }
 0x20e   : > { %v1285_v49 = vadd.f32 %v1284_v46, %v1195_v45 }
 0x20f   : > { %v1460_v47 = vadd.f32 %v1459_v42, %v1371_v43 }
 0x211   : > { %v1496_v48 = vadd.f32 %v1460_v47, %v468_v44 }
 0x213   : > { %1528 = vst [vmem:[#allocation2 + $0xf8] sm:$0xff] %v1496_v48 }
 0x214   : > { %v1373_v50 = vpop.f32.mrf.mxu2  ;;  %v1197_v55 = vpop.f32.mrf.mxu0 }
 0x215   : > { %v1462_v51 = vpop.f32.mrf.mxu3  ;;  %v1374_v52 = vadd.f32 %v1373_v50, %v1285_v49  ;;  %v1286_v56 = vpop.f32.mrf.mxu1 }
 0x216   : > { %v1287_v58 = vadd.f32 %v1286_v56, %v1197_v55 }
 0x217   : > { %v1463_v54 = vadd.f32 %v1462_v51, %v1374_v52 }
 0x219   : > { %v1497_v57 = vadd.f32 %v1463_v54, %v469_v53 }
 0x21b   : > { %1529 = vst [vmem:[#allocation2 + $0x20] sm:$0xff] %v1497_v57 }
 0x21c   : > { %v1375_v59 = vpop.f32.mrf.mxu2 }
 0x21d   : > { %v1376_v60 = vadd.f32 %v1375_v59, %v1287_v58  ;;  %v1464_v62 = vpop.f32.mrf.mxu3 }
 0x21f   : > { %v1465_v63 = vadd.f32 %v1464_v62, %v1376_v60  ;;  %1534 = sbr.rel (%p2170_p11) target bundleno = 569 (0x239), region = 63 }
 0x221   : > { %v1498_v0 = vadd.f32 %v1465_v63, %v470_v61 }
 0x223   : > { %1530 = vst [vmem:[#allocation2 + $0x98] sm:$0xff] %v1498_v0 }
 0x224   : > { %v1535_v1 = vld [vmem:[#allocation2 + $0xb0] sm:$0xff]  ;;  %v1536_v2 = vld [vmem:[#allocation2] sm:$0xff]  ;;  %v1537_v3 = vld [vmem:[#allocation2 + $0xd8] sm:$0xff] }
 0x225   : > { %v1567_v4 = vmax.f32 %v1535_v1, 0.0  ;;  %v1568_v5 = vmax.f32 %v1536_v2, 0.0  ;;  %v1538_v6 = vld [vmem:[#allocation2 + $0x18] sm:$0xff]  ;;  %v1569_v7 = vmax.f32 %v1537_v3, 0.0  ;;  %v1539_v8 = vld [vmem:[#allocation2 + $0x50] sm:$0xff]  ;;  %v1540_v9 = vld [vmem:[#allocation2 + $0x68] sm:$0xff] }
 0x226   : > { %v1570_v10 = vmax.f32 %v1538_v6, 0.0  ;;  %v1571_v11 = vmax.f32 %v1539_v8, 0.0  ;;  %v1572_v12 = vmax.f32 %v1540_v9, 0.0  ;;  %v1541_v13 = vld [vmem:[#allocation2 + $0x30] sm:$0xff]  ;;  %v1542_v14 = vld [vmem:[#allocation2 + $0x48] sm:$0xff]  ;;  %v1543_v15 = vld [vmem:[#allocation2 + $0x80] sm:$0xff] }
 0x227   : > { %v2275_v16 = vpack.c.bf16 %v1568_v5, %v1567_v4  ;;  %v1573_v17 = vmax.f32 %v1541_v13, 0.0  ;;  %v1574_v18 = vmax.f32 %v1542_v14, 0.0  ;;  %v1544_v19 = vld [vmem:[#allocation2 + $0x88] sm:$0xff]  ;;  %v1575_v20 = vmax.f32 %v1543_v15, 0.0  ;;  %v1546_v22 = vld [vmem:[#allocation2 + $0xb8] sm:$0xff]  ;;  %v1547_v27 = vld [vmem:[#allocation2 + $0x60] sm:$0xff] }
 0x228   : > { %v1545_v21 = vld [vmem:[#allocation2 + $0xe8] sm:$0xff]  ;;  %v2280_v23 = vpack.c.bf16 %v1570_v10, %v1569_v7  ;;  %v2285_v24 = vpack.c.bf16 %v1572_v12, %v1571_v11  ;;  %v1576_v25 = vmax.f32 %v1544_v19, 0.0  ;;  %v1548_v28 = vld [vmem:[#allocation2 + $0xf0] sm:$0xff]  ;;  %v1578_v31 = vmax.f32 %v1546_v22, 0.0  ;;  %v1550_v34 = vld [vmem:[#allocation2 + $0x78] sm:$0xff] }
 0x229   : > { %v1577_v26 = vmax.f32 %v1545_v21, 0.0  ;;  %v1549_v29 = vld [vmem:[#allocation2 + $0x8] sm:$0xff]  ;;  %2276 = vst [vmem:[%s2885_s3] sm:$0xff] %v2275_v16   ;;  %v2290_v30 = vpack.c.bf16 %v1574_v18, %v1573_v17  ;;  %v1579_v32 = vmax.f32 %v1547_v27, 0.0  ;;  %v1580_v33 = vmax.f32 %v1548_v28, 0.0  ;;  %v1551_v35 = vld [vmem:[#allocation2 + $0x38] sm:$0xff]  ;;  %v1553_v41 = vld [vmem:[#allocation2 + $0x40] sm:$0xff] }
 0x22a   : > { %v1552_v36 = vld [vmem:[#allocation2 + $0x58] sm:$0xff]  ;;  %2352 = vst [vmem:[%s2885_s3 + $0x8] sm:$0xff] %v2280_v23   ;;  %v2295_v37 = vpack.c.bf16 %v1576_v25, %v1575_v20  ;;  %v1581_v38 = vmax.f32 %v1549_v29, 0.0  ;;  %v1582_v39 = vmax.f32 %v1550_v34, 0.0  ;;  %v1583_v40 = vmax.f32 %v1551_v35, 0.0  ;;  %v1554_v42 = vld [vmem:[#allocation2 + $0xc8] sm:$0xff] }
 0x22b   : > { %2353 = vst [vmem:[%s2885_s3 + $0x10] sm:$0xff] %v2285_v24   ;;  %v2300_v43 = vpack.c.bf16 %v1578_v31, %v1577_v26  ;;  %v2305_v44 = vpack.c.bf16 %v1580_v33, %v1579_v32  ;;  %v1584_v45 = vmax.f32 %v1552_v36, 0.0  ;;  %v1585_v46 = vmax.f32 %v1553_v41, 0.0  ;;  %v1555_v47 = vld [vmem:[#allocation2 + $0xe0] sm:$0xff]  ;;  %v1556_v48 = vld [vmem:[#allocation2 + $0x90] sm:$0xff]  ;;  %v1559_v55 = vld [vmem:[#allocation2 + $0xa8] sm:$0xff] }
 0x22c   : > { %v1557_v49 = vld [vmem:[#allocation2 + $0x70] sm:$0xff]  ;;  %2354 = vst [vmem:[%s2885_s3 + $0x18] sm:$0xff] %v2290_v30   ;;  %v2310_v50 = vpack.c.bf16 %v1582_v39, %v1581_v38  ;;  %v1586_v51 = vmax.f32 %v1554_v42, 0.0  ;;  %v1587_v52 = vmax.f32 %v1555_v47, 0.0  ;;  %v1588_v53 = vmax.f32 %v1556_v48, 0.0  ;;  %v1558_v54 = vld [vmem:[#allocation2 + $0xc0] sm:$0xff] }
 0x22d   : > { %2355 = vst [vmem:[%s2885_s3 + $0x20] sm:$0xff] %v2295_v37   ;;  %v2315_v56 = vpack.c.bf16 %v1584_v45, %v1583_v40  ;;  %v1589_v57 = vmax.f32 %v1557_v49, 0.0  ;;  %v1590_v58 = vmax.f32 %v1558_v54, 0.0  ;;  %v1560_v59 = vld [vmem:[#allocation2 + $0xd0] sm:$0xff]  ;;  %v1591_v60 = vmax.f32 %v1559_v55, 0.0  ;;  %v1562_v0 = vld [vmem:[#allocation2 + $0x28] sm:$0xff] }
 0x22e   : > { %v1561_v61 = vld [vmem:[#allocation2 + $0x10] sm:$0xff]  ;;  %2356 = vst [vmem:[%s2885_s3 + $0x28] sm:$0xff] %v2300_v43   ;;  %v2320_v62 = vpack.c.bf16 %v1586_v51, %v1585_v46  ;;  %v1592_v63 = vmax.f32 %v1560_v59, 0.0  ;;  %v1563_v2 = vld [vmem:[#allocation2 + $0xa0] sm:$0xff]  ;;  %v1564_v3 = vld [vmem:[#allocation2 + $0xf8] sm:$0xff]  ;;  %v2325_v4 = vpack.c.bf16 %v1588_v53, %v1587_v52  ;;  %v1594_v5 = vmax.f32 %v1562_v0, 0.0 }
 0x22f   : > { %v1593_v1 = vmax.f32 %v1561_v61, 0.0  ;;  %2357 = vst [vmem:[%s2885_s3 + $0x30] sm:$0xff] %v2305_v44   ;;  %v1595_v6 = vmax.f32 %v1563_v2, 0.0  ;;  %v1596_v7 = vmax.f32 %v1564_v3, 0.0  ;;  %v1565_v8 = vld [vmem:[#allocation2 + $0x20] sm:$0xff]  ;;  %v1566_v9 = vld [vmem:[#allocation2 + $0x98] sm:$0xff]  ;;  %v2330_v10 = vpack.c.bf16 %v1590_v58, %v1589_v57 }
 0x230   : > { %2358 = vst [vmem:[%s2885_s3 + $0x38] sm:$0xff] %v2310_v50   ;;  %v1597_v11 = vmax.f32 %v1565_v8, 0.0  ;;  %v1598_v12 = vmax.f32 %v1566_v9, 0.0  ;;  %v2335_v13 = vpack.c.bf16 %v1592_v63, %v1591_v60 }
 0x231   : > { %2359 = vst [vmem:[%s2885_s3 + $0x40] sm:$0xff] %v2315_v56   ;;  %v2340_v14 = vpack.c.bf16 %v1594_v5, %v1593_v1  ;;  %v2345_v15 = vpack.c.bf16 %v1596_v7, %v1595_v6 }
 0x232   : > { %2360 = vst [vmem:[%s2885_s3 + $0x48] sm:$0xff] %v2320_v62   ;;  %v2350_v16 = vpack.c.bf16 %v1598_v12, %v1597_v11 }
 0x233   : > { %2361 = vst [vmem:[%s2885_s3 + $0x50] sm:$0xff] %v2325_v4  }
 0x234   : > { %2362 = vst [vmem:[%s2885_s3 + $0x58] sm:$0xff] %v2330_v10  }
 0x235   : > { %2363 = vst [vmem:[%s2885_s3 + $0x60] sm:$0xff] %v2335_v13  }
 0x236   : > { %2364 = vst [vmem:[%s2885_s3 + $0x68] sm:$0xff] %v2340_v14  }
 0x237   : > { %2365 = vst [vmem:[%s2885_s3 + $0x70] sm:$0xff] %v2345_v15  }
 0x238   : > { %2366 = vst [vmem:[%s2885_s3 + $0x78] sm:$0xff] %v2350_v16  }
 0x239 PF: > { %s13_s16 = sadd.s32 1, %s2446_s16   ;;  %s2886_s12 = smov %s2434_s13 }
 0x23a   : > { %p10_p12 = scmp.ge.s32.totalorder %s13_s16, 8   ;;  %s2887_s13 = smov %s2503_s20 }
 0x23b   : > { %s2888_s14 = smov %s2442_s15  ;;  %s2889_s15 = smov %s2891_s17 }
 0x23c   :  { %12 = sbr.rel (!%p10_p12) target bundleno = 3 (0x3), region = 104 }

</bundles_post_ra>
